<compile_context>
chip_gen: v5e
topology: v5e:2x2
jax: 0.10.0
libtpu: 0.0.40
codegen_flags: <defaults>
</compile_context>

<pallas_src>
import functools

import jax
import jax.numpy as jnp
from jax.experimental import pallas as pl
from jax.experimental.pallas import tpu as pltpu


def _round_up(x, m):
    return (x + m - 1) // m * m


# ----------------------------------------------------------------------------
# Pallas kernels
# ----------------------------------------------------------------------------
def _mm_epilogue_kernel(a_ref, b_ref, scale_ref, bias_ref, o_ref, acc_ref, *, relu):
    """o = [relu]((a @ b) * scale + bias); K reduction over grid axis 2."""
    k = pl.program_id(2)

    @pl.when(k == 0)
    def _():
        acc_ref[...] = jnp.zeros_like(acc_ref)

    acc_ref[...] += jnp.dot(a_ref[...], b_ref[...],
                            preferred_element_type=jnp.float32)

    @pl.when(k == pl.num_programs(2) - 1)
    def _():
        out = acc_ref[...] * scale_ref[...] + bias_ref[...]
        if relu:
            out = jnp.maximum(out, 0.0)
        o_ref[...] = out.astype(o_ref.dtype)


def pallas_matmul(a, b, scale, bias, *, relu=False, out_dtype=jnp.bfloat16,
                  tm_max=256, tn_max=256, tk_max=2048):
    """a: (M,K), b: (K,N) (weights, pre-cast bf16), scale/bias: (N,) f32.
    Returns (M,N) in out_dtype. MXU fed in bf16, f32 accumulate/epilogue."""
    M, K = a.shape
    K2, N = b.shape
    assert K == K2

    tm = min(tm_max, _round_up(M, 8))
    tn = min(tn_max, _round_up(N, 128))
    kp128 = _round_up(K, 128)
    if kp128 <= tk_max:
        tk, Kp = kp128, kp128          # single K step, no waste
    else:
        tk = 512                       # 256-aligned K tile (v6e/v7x MXU)
        Kp = _round_up(K, tk)
    Mp = _round_up(M, tm)
    Np = _round_up(N, tn)

    a = a.astype(jnp.bfloat16)
    b = b.astype(jnp.bfloat16)
    if (Mp, Kp) != (M, K):
        a = jnp.zeros((Mp, Kp), jnp.bfloat16).at[:M, :K].set(a)
    if (Kp, Np) != (K, N):
        b = jnp.zeros((Kp, Np), jnp.bfloat16).at[:K, :N].set(b)
    s = jnp.zeros((1, Np), jnp.float32).at[0, :N].set(scale.astype(jnp.float32))
    c = jnp.zeros((1, Np), jnp.float32).at[0, :N].set(bias.astype(jnp.float32))

    out = pl.pallas_call(
        functools.partial(_mm_epilogue_kernel, relu=relu),
        out_shape=jax.ShapeDtypeStruct((Mp, Np), out_dtype),
        grid_spec=pltpu.PrefetchScalarGridSpec(
            num_scalar_prefetch=0,
            grid=(Mp // tm, Np // tn, Kp // tk),
            in_specs=[
                pl.BlockSpec((tm, tk), lambda i, j, k: (i, k)),
                pl.BlockSpec((tk, tn), lambda i, j, k: (k, j)),
                pl.BlockSpec((1, tn), lambda i, j, k: (0, j)),
                pl.BlockSpec((1, tn), lambda i, j, k: (0, j)),
            ],
            out_specs=pl.BlockSpec((tm, tn), lambda i, j, k: (i, j)),
            scratch_shapes=[pltpu.VMEM((tm, tn), jnp.float32)],
        ),
        compiler_params=pltpu.CompilerParams(
            dimension_semantics=("parallel", "parallel", "arbitrary"),
            vmem_limit_bytes=32 * 1024 * 1024),
    )(a, b, s, c)
    if (Mp, Np) != (M, N):
        out = out[:M, :N]
    return out


def _spatial_softmax_kernel(x_ref, pos_ref, o_ref):
    """Rows = (batch*channel) maps flattened over space; softmax over space,
    expected coords = (p @ pos) * 1/sum(p) (EUP reciprocal)."""
    x = x_ref[...].astype(jnp.float32)
    m = jnp.max(x, axis=-1, keepdims=True)
    p = jnp.exp(x - m)
    s = jnp.sum(p, axis=-1, keepdims=True)
    e = jnp.dot(p, pos_ref[...], preferred_element_type=jnp.float32)
    o_ref[...] = e * pl.reciprocal(s, approx=True)


def pallas_spatial_softmax(feat_nchw):
    """feat_nchw: (B, C, H, W) -> (B, C, 2) expected (x, y) in [-1, 1]."""
    B, C, H, W = feat_nchw.shape
    R, HW = B * C, H * W
    rows = feat_nchw.reshape(R, HW).astype(jnp.float32)
    tr = min(256, _round_up(R, 8))
    Rp = _round_up(R, tr)
    if Rp != R:
        rows = jnp.zeros((Rp, HW), jnp.float32).at[:R].set(rows)

    ys = jnp.linspace(-1.0, 1.0, H)
    xs = jnp.linspace(-1.0, 1.0, W)
    gy, gx = jnp.meshgrid(ys, xs, indexing="ij")
    pos = jnp.stack([gx.reshape(-1), gy.reshape(-1)], axis=-1)      # (HW, 2)
    pos_p = jnp.zeros((HW, 128), jnp.float32).at[:, :2].set(pos)    # lane-dense

    out = pl.pallas_call(
        _spatial_softmax_kernel,
        out_shape=jax.ShapeDtypeStruct((Rp, 128), jnp.float32),
        grid_spec=pltpu.PrefetchScalarGridSpec(
            num_scalar_prefetch=0,
            grid=(Rp // tr,),
            in_specs=[pl.BlockSpec((tr, HW), lambda i: (i, 0)),
                      pl.BlockSpec((HW, 128), lambda i: (0, 0))],
            out_specs=pl.BlockSpec((tr, 128), lambda i: (i, 0)),
        ),
        compiler_params=pltpu.CompilerParams(
            dimension_semantics=("parallel",),
            vmem_limit_bytes=32 * 1024 * 1024),
    )(rows, pos_p)
    return out[:R, :2].reshape(B, C, 2)


def _spd_encoder_kernel(spd_ref, w1_ref, b1_ref, w2_ref, b2_ref, o_ref):
    """Fused Linear(1,128)+ReLU+Linear(128,128): single tiny block."""
    h = jnp.maximum(spd_ref[...] * w1_ref[...] + b1_ref[...], 0.0)
    o_ref[...] = (jnp.dot(h, w2_ref[...], preferred_element_type=jnp.float32)
                  + b2_ref[...])


def pallas_spd_encoder(spd, p):
    B = spd.shape[0]
    Bp = _round_up(B, 8)
    spd_b = jnp.zeros((Bp, 128), jnp.float32).at[:B, :].set(
        jnp.broadcast_to(spd.reshape(B, 1).astype(jnp.float32), (B, 128)))
    out = pl.pallas_call(
        _spd_encoder_kernel,
        out_shape=jax.ShapeDtypeStruct((Bp, 128), jnp.float32),
        grid=(1,),
        in_specs=[pl.BlockSpec((Bp, 128), lambda i: (0, 0)),
                  pl.BlockSpec((1, 128), lambda i: (0, 0)),
                  pl.BlockSpec((1, 128), lambda i: (0, 0)),
                  pl.BlockSpec((128, 128), lambda i: (0, 0)),
                  pl.BlockSpec((1, 128), lambda i: (0, 0))],
        out_specs=pl.BlockSpec((Bp, 128), lambda i: (0, 0)),
    )(spd_b, p["w1"], p["b1"], p["w2t"], p["b2"])
    return out[:B]


# ----------------------------------------------------------------------------
# Conv glue (im2col / sub-pixel transposed conv), activations kept in bf16
# ----------------------------------------------------------------------------
def _im2col(x_nhwc, kh, kw, stride, pad):
    B, H, W, C = x_nhwc.shape
    Ho = (H + 2 * pad - kh) // stride + 1
    Wo = (W + 2 * pad - kw) // stride + 1
    if kh == 1 and kw == 1 and stride == 1 and pad == 0:
        return x_nhwc.reshape(B * Ho * Wo, C), (B, Ho, Wo)
    xp = jnp.pad(x_nhwc, ((0, 0), (pad, pad), (pad, pad), (0, 0)))
    cols = []
    for i in range(kh):
        for j in range(kw):
            cols.append(xp[:, i:i + stride * Ho:stride,
                           j:j + stride * Wo:stride, :])
    patches = jnp.concatenate(cols, axis=-1)              # (B, Ho, Wo, kh*kw*C)
    return patches.reshape(B * Ho * Wo, kh * kw * C), (B, Ho, Wo)


def conv2d(x_nhwc, layer, *, kh, kw, stride, pad, relu, out_dtype=jnp.bfloat16):
    """layer['w'] is pre-packed (kh*kw*Cin, Cout) bf16; scale/bias are folded BN."""
    cols, (B, Ho, Wo) = _im2col(x_nhwc.astype(jnp.bfloat16), kh, kw, stride, pad)
    out = pallas_matmul(cols, layer["w"], layer["scale"], layer["bias"],
                        relu=relu, out_dtype=out_dtype)
    Cout = layer["w"].shape[1]
    return out.reshape(B, Ho, Wo, Cout)


def conv_transpose2d_s2(x_nhwc, layer, *, relu, out_dtype=jnp.bfloat16):
    """ConvTranspose2d(k=3, s=2, p=1, output_padding=1) via sub-pixel phases:
    a single matmul on 2x2 neighborhoods against a combined (4Cin, 4Cout)
    weight (built once at pack time) — no zero-dilated input, no 9x im2col."""
    B, H, W, Cin = x_nhwc.shape
    x = x_nhwc.astype(jnp.bfloat16)
    xp = jnp.pad(x, ((0, 0), (0, 1), (0, 1), (0, 0)))      # zero row/col at end
    patches = jnp.concatenate(
        [xp[:, :H, :W, :], xp[:, :H, 1:W + 1, :],
         xp[:, 1:H + 1, :W, :], xp[:, 1:H + 1, 1:W + 1, :]], axis=-1)
    cols = patches.reshape(B * H * W, 4 * Cin)
    out = pallas_matmul(cols, layer["w"], layer["scale"], layer["bias"],
                        relu=relu, out_dtype=out_dtype)     # (B*H*W, 4*Cout)
    Cout = layer["w"].shape[1] // 4
    out = out.reshape(B, H, W, 2, 2, Cout)                  # phases (dr, dc)
    out = jnp.transpose(out, (0, 1, 3, 2, 4, 5)).reshape(B, 2 * H, 2 * W, Cout)
    return out


# ----------------------------------------------------------------------------
# Parameters: raw (PyTorch-layout) init + one-time packing
# ----------------------------------------------------------------------------
def init_params(key, *, input_channel, output_channel, num_labels):
    keys = jax.random.split(key, 128)
    it = iter(keys)

    def nrm(shape, s=0.05):
        return s * jax.random.normal(next(it), shape, dtype=jnp.float32)

    params = {}
    chans = [input_channel, 32, 64, 128, 256, 512]
    params["backbone"] = [
        dict(w=nrm((co, ci, 3, 3)), b=nrm((co,)),
             gamma=1.0 + nrm((co,)), beta=nrm((co,)),
             mean=nrm((co,)), var=1.0 + jnp.abs(nrm((co,))))
        for ci, co in zip(chans[:-1], chans[1:])
    ]
    params["spd"] = dict(w1=nrm((128, 1)), b1=nrm((128,)),
                         w2=nrm((128, 128)), b2=nrm((128,)))
    params["upconv_t"] = [
        dict(w=nrm((ci, co, 3, 3)), b=nrm((co,)),
             gamma=1.0 + nrm((co,)), beta=nrm((co,)),
             mean=nrm((co,)), var=1.0 + jnp.abs(nrm((co,))))
        for ci, co in [(640, 256), (256, 128), (128, 64)]
    ]
    params["up_final"] = dict(w=nrm((output_channel, 64, 1, 1)),
                              b=nrm((output_channel,)))
    params["seg"] = dict(w=nrm((num_labels, 512, 1, 1)), b=nrm((num_labels,)))
    return params


def _fold_bn(b, gamma, beta, mean, var, eps=1e-5):
    scale = gamma / jnp.sqrt(var + eps)
    bias = beta + scale * (b - mean)
    return scale, bias


def _pack_conv_bn(w_oihw, b, gamma, beta, mean, var):
    Cout, Cin, kh, kw = w_oihw.shape
    scale, bias = _fold_bn(b, gamma, beta, mean, var)
    w_mat = jnp.transpose(w_oihw, (2, 3, 1, 0)).reshape(kh * kw * Cin, Cout)
    return dict(w=w_mat.astype(jnp.bfloat16),
                scale=scale.astype(jnp.float32), bias=bias.astype(jnp.float32))


def _pack_conv(w_oihw, b):
    Cout, Cin, kh, kw = w_oihw.shape
    w_mat = jnp.transpose(w_oihw, (2, 3, 1, 0)).reshape(kh * kw * Cin, Cout)
    return dict(w=w_mat.astype(jnp.bfloat16),
                scale=jnp.ones((Cout,), jnp.float32),
                bias=b.astype(jnp.float32))


def _pack_convT_combined(w_iohw, b, gamma, beta, mean, var):
    """ConvTranspose2d(3,2,1,1) weight (Cin,Cout,3,3) -> combined (4Cin, 4Cout)
    sub-pixel weight; column phase order [ee, eo, oe, oo], row tap order
    [(i,j),(i,j+1),(i+1,j),(i+1,j+1)]."""
    Cin, Cout = w_iohw.shape[0], w_iohw.shape[1]
    scale, bias = _fold_bn(b, gamma, beta, mean, var)
    w = jnp.asarray(w_iohw)
    z = jnp.zeros((Cin, Cout), w.dtype)
    t = lambda kh_, kw_: w[:, :, kh_, kw_]
    ee = jnp.concatenate([t(1, 1), z, z, z], axis=0)
    eo = jnp.concatenate([t(1, 2), t(1, 0), z, z], axis=0)
    oe = jnp.concatenate([t(2, 1), z, t(0, 1), z], axis=0)
    oo = jnp.concatenate([t(2, 2), t(2, 0), t(0, 2), t(0, 0)], axis=0)
    w_comb = jnp.concatenate([ee, eo, oe, oo], axis=1)      # (4Cin, 4Cout)
    return dict(w=w_comb.astype(jnp.bfloat16),
                scale=jnp.tile(scale, 4).astype(jnp.float32),
                bias=jnp.tile(bias, 4).astype(jnp.float32))


def pack_params(raw):
    """One-time weight prep (BN fold, transpose, bf16 cast) — hoisted out of
    the per-step forward pass."""
    packed = {}
    packed["backbone"] = [
        _pack_conv_bn(l["w"], l["b"], l["gamma"], l["beta"], l["mean"], l["var"])
        for l in raw["backbone"]]
    packed["spd"] = dict(w1=raw["spd"]["w1"].T.astype(jnp.float32),     # (1,128)
                         b1=raw["spd"]["b1"].reshape(1, 128).astype(jnp.float32),
                         w2t=raw["spd"]["w2"].T.astype(jnp.float32),    # (128,128)
                         b2=raw["spd"]["b2"].reshape(1, 128).astype(jnp.float32))
    packed["upconv_t"] = [
        _pack_convT_combined(l["w"], l["b"], l["gamma"], l["beta"],
                             l["mean"], l["var"])
        for l in raw["upconv_t"]]
    packed["up_final"] = _pack_conv(raw["up_final"]["w"], raw["up_final"]["b"])
    packed["seg"] = _pack_conv(raw["seg"]["w"], raw["seg"]["b"])
    return packed


# ----------------------------------------------------------------------------
# RGBPointModel forward
# ----------------------------------------------------------------------------
def rgb_point_model_forward(packed, rgb_nchw, spd, pred_seg=True):
    """rgb_nchw: (B, 3, H, W) in [0, 255]; spd: (B,) scalar speed."""
    B = rgb_nchw.shape[0]

    # normalize(rgb / 255.)
    x = jnp.transpose(rgb_nchw, (0, 2, 3, 1)).astype(jnp.float32) / 255.0
    mean = jnp.array([0.485, 0.456, 0.406], jnp.float32)
    std = jnp.array([0.229, 0.224, 0.225], jnp.float32)
    x = ((x - mean) / std).astype(jnp.bfloat16)

    # backbone -> (B, H/32, W/32, 512)
    for layer in packed["backbone"]:
        x = conv2d(x, layer, kh=3, kw=3, stride=2, pad=1, relu=True)
    inputs = x
    kh_, kw_ = inputs.shape[1], inputs.shape[2]

    # speed encoder (fused Pallas kernel), broadcast over spatial, concat -> 640ch
    spd_emb = pallas_spd_encoder(spd, packed["spd"])                   # (B, 128)
    spd_map = jnp.broadcast_to(spd_emb[:, None, None, :].astype(jnp.bfloat16),
                               (B, kh_, kw_, 128))
    x = jnp.concatenate([inputs, spd_map], axis=-1)                    # (B,kh,kw,640)

    # upconv: 3x (ConvTranspose2d s2 + BN + ReLU), sub-pixel matmuls
    for layer in packed["upconv_t"]:
        x = conv_transpose2d_s2(x, layer, relu=True)
    # final 1x1 conv (no activation), keep f32 for the softmax logits
    x = conv2d(x, packed["up_final"], kh=1, kw=1, stride=1, pad=0,
               relu=False, out_dtype=jnp.float32)                      # (B,H/4,W/4,C)

    # SpatialSoftmax -> (B, C, 2), then remap y coord: points[...,1]=(y+1)/2
    # TODO(synk): (x, y) output ordering of the reference SpatialSoftmax assumed.
    x_nchw = jnp.transpose(x, (0, 3, 1, 2))
    points = pallas_spatial_softmax(x_nchw)
    points = points.at[..., 1].set((points[..., 1] + 1.0) / 2.0)

    if pred_seg:
        segs = conv2d(inputs, packed["seg"], kh=1, kw=1, stride=1, pad=0,
                      relu=False, out_dtype=jnp.float32)
        segs = jnp.transpose(segs, (0, 3, 1, 2))                       # NCHW
        return points, segs
    return points


# ----------------------------------------------------------------------------
if __name__ == "__main__":
    # small shapes: height=width=32 -> kh=kw=1 (backbone stride 32)
    B, H, W = 2, 32, 32
    OUTPUT_CHANNEL, NUM_LABELS = 8, 7

    raw = init_params(jax.random.PRNGKey(0),
                      input_channel=3,
                      output_channel=OUTPUT_CHANNEL,
                      num_labels=NUM_LABELS)
    packed = pack_params(raw)          # one-time weight prep (hoisted)

    k_rgb, k_spd = jax.random.split(jax.random.PRNGKey(0))
    rgb = jax.random.uniform(k_rgb, (B, 3, H, W), jnp.float32, 0.0, 255.0)
    spd = jax.random.uniform(k_spd, (B,), jnp.float32, 0.0, 30.0)

    fwd = jax.jit(functools.partial(rgb_point_model_forward, pred_seg=True))
    points, segs = fwd(packed, rgb, spd)
    jax.block_until_ready((points, segs))

    assert points.shape == (B, OUTPUT_CHANNEL, 2)
    assert segs.shape == (B, NUM_LABELS, H // 32, W // 32)
    assert bool(jnp.all(jnp.isfinite(points))) and bool(jnp.all(jnp.isfinite(segs)))
    print("KERNEL_OK")
</pallas_src>

<mosaic_0001>
module attributes {stable_mosaic.version = 11 : i64} {
  func.func @_mm_epilogue_kernel(%arg0: i32, %arg1: i32, %arg2: i32, %arg3: memref<256x128xbf16, #tpu.memory_space<vmem>>, %arg4: memref<128x128xbf16, #tpu.memory_space<vmem>>, %arg5: memref<1x128xf32, #tpu.memory_space<vmem>>, %arg6: memref<1x128xf32, #tpu.memory_space<vmem>>, %arg7: memref<256x128xbf16, #tpu.memory_space<vmem>>, %arg8: memref<256x128xf32, #tpu.memory_space<vmem>>) attributes {dimension_semantics = [#tpu.dimension_semantics<parallel>, #tpu.dimension_semantics<parallel>, #tpu.dimension_semantics<arbitrary>], iteration_bounds = array<i64: 2, 1, 1>, scalar_prefetch = 0 : i64, scratch_operands = 1 : i64, tpu.core_type = #tpu.core_type<tc>, window_params = [{transform_indices = @transform_0, window_bounds = array<i64: 256, 128>}, {transform_indices = @transform_1, window_bounds = array<i64: 128, 128>}, {transform_indices = @transform_2, window_bounds = array<i64: 1, 128>}, {transform_indices = @transform_3, window_bounds = array<i64: 1, 128>}, {transform_indices = @transform_4, window_bounds = array<i64: 256, 128>}]} {
    %c0_i32 = arith.constant 0 : i32
    %0 = arith.cmpi eq, %arg2, %c0_i32 : i32
    %1 = arith.extui %0 : i1 to i32
    %c0_i32_0 = arith.constant 0 : i32
    %2 = arith.cmpi ne, %1, %c0_i32_0 : i32
    scf.if %2 {
      %cst_10 = arith.constant 0.000000e+00 : f32
      %12 = vector.broadcast %cst_10 : f32 to vector<256x128xf32>
      %c0_11 = arith.constant 0 : index
      %c0_12 = arith.constant 0 : index
      %13 = vector.load %arg8[%c0_11, %c0_12] : memref<256x128xf32, #tpu.memory_space<vmem>>, vector<256x128xf32>
      tpu.vector_store %arg8[%c0_11, %c0_12], %12 {strides = array<i32>} : memref<256x128xf32, #tpu.memory_space<vmem>>, vector<256x128xf32>,
    } else {
    }
    %c0 = arith.constant 0 : index
    %c0_1 = arith.constant 0 : index
    %3 = vector.load %arg8[%c0, %c0_1] : memref<256x128xf32, #tpu.memory_space<vmem>>, vector<256x128xf32>
    %c0_2 = arith.constant 0 : index
    %c0_3 = arith.constant 0 : index
    %4 = vector.load %arg3[%c0_2, %c0_3] : memref<256x128xbf16, #tpu.memory_space<vmem>>, vector<256x128xbf16>
    %c0_4 = arith.constant 0 : index
    %c0_5 = arith.constant 0 : index
    %5 = vector.load %arg4[%c0_4, %c0_5] : memref<128x128xbf16, #tpu.memory_space<vmem>>, vector<128x128xbf16>
    %cst = arith.constant dense<0.000000e+00> : vector<256x128xf32>
    %6 = tpu.matmul %4, %5, %cst {dimension_numbers = #tpu.dot_dimension_numbers<[1], [0], [0], [1], [0, 0, 1, 1], [], []>} : vector<256x128xbf16>, vector<128x128xbf16>, vector<256x128xf32> -> vector<256x128xf32>
    %7 = arith.addf %3, %6 : vector<256x128xf32>
    %c0_6 = arith.constant 0 : index
    %c0_7 = arith.constant 0 : index
    %8 = vector.load %arg8[%c0_6, %c0_7] : memref<256x128xf32, #tpu.memory_space<vmem>>, vector<256x128xf32>
    tpu.vector_store %arg8[%c0_6, %c0_7], %7 {strides = array<i32>} : memref<256x128xf32, #tpu.memory_space<vmem>>, vector<256x128xf32>,
    %c0_i32_8 = arith.constant 0 : i32
    %9 = arith.cmpi eq, %arg2, %c0_i32_8 : i32
    %10 = arith.extui %9 : i1 to i32
    %c0_i32_9 = arith.constant 0 : i32
    %11 = arith.cmpi ne, %10, %c0_i32_9 : i32
    scf.if %11 {
      %c0_10 = arith.constant 0 : index
      %c0_11 = arith.constant 0 : index
      %12 = vector.load %arg8[%c0_10, %c0_11] : memref<256x128xf32, #tpu.memory_space<vmem>>, vector<256x128xf32>
      %c0_12 = arith.constant 0 : index
      %c0_13 = arith.constant 0 : index
      %13 = vector.load %arg5[%c0_12, %c0_13] : memref<1x128xf32, #tpu.memory_space<vmem>>, vector<1x128xf32>
      %14 = vector.broadcast %13 : vector<1x128xf32> to vector<256x128xf32>
      %15 = arith.mulf %12, %14 : vector<256x128xf32>
      %c0_14 = arith.constant 0 : index
      %c0_15 = arith.constant 0 : index
      %16 = vector.load %arg6[%c0_14, %c0_15] : memref<1x128xf32, #tpu.memory_space<vmem>>, vector<1x128xf32>
      %17 = vector.broadcast %16 : vector<1x128xf32> to vector<256x128xf32>
      %18 = arith.addf %15, %17 : vector<256x128xf32>
      %cst_16 = arith.constant 0.000000e+00 : f32
      %19 = vector.broadcast %cst_16 : f32 to vector<256x128xf32>
      %20 = arith.maximumf %18, %19 : vector<256x128xf32>
      %21 = arith.truncf %20 : vector<256x128xf32> to vector<256x128xbf16>
      %c0_17 = arith.constant 0 : index
      %c0_18 = arith.constant 0 : index
      %22 = vector.load %arg7[%c0_17, %c0_18] : memref<256x128xbf16, #tpu.memory_space<vmem>>, vector<256x128xbf16>
      tpu.vector_store %arg7[%c0_17, %c0_18], %21 {strides = array<i32>} : memref<256x128xbf16, #tpu.memory_space<vmem>>, vector<256x128xbf16>,
    } else {
    }
    return
  }
  func.func @transform_0(%arg0: i32, %arg1: i32, %arg2: i32) -> (i32, i32) {
    %c0_i32 = arith.constant 0 : i32
    return %arg0, %arg2 : i32, i32
  }
  func.func @transform_1(%arg0: i32, %arg1: i32, %arg2: i32) -> (i32, i32) {
    %c0_i32 = arith.constant 0 : i32
    return %arg2, %arg1 : i32, i32
  }
  func.func @transform_2(%arg0: i32, %arg1: i32, %arg2: i32) -> (i32, i32) {
    %c0_i32 = arith.constant 0 : i32
    %c0_i32_0 = arith.constant 0 : i32
    return %c0_i32, %arg1 : i32, i32
  }
  func.func @transform_3(%arg0: i32, %arg1: i32, %arg2: i32) -> (i32, i32) {
    %c0_i32 = arith.constant 0 : i32
    %c0_i32_0 = arith.constant 0 : i32
    return %c0_i32, %arg1 : i32, i32
  }
  func.func @transform_4(%arg0: i32, %arg1: i32, %arg2: i32) -> (i32, i32) {
    %c0_i32 = arith.constant 0 : i32
    return %arg0, %arg1 : i32, i32
  }
}

module attributes {stable_mosaic.version = 11 : i64} {
  func.func @_mm_epilogue_kernel(%arg0: i32, %arg1: i32, %arg2: i32, %arg3: memref<128x384xbf16, #tpu.memory_space<vmem>>, %arg4: memref<384x128xbf16, #tpu.memory_space<vmem>>, %arg5: memref<1x128xf32, #tpu.memory_space<vmem>>, %arg6: memref<1x128xf32, #tpu.memory_space<vmem>>, %arg7: memref<128x128xbf16, #tpu.memory_space<vmem>>, %arg8: memref<128x128xf32, #tpu.memory_space<vmem>>) attributes {dimension_semantics = [#tpu.dimension_semantics<parallel>, #tpu.dimension_semantics<parallel>, #tpu.dimension_semantics<arbitrary>], iteration_bounds = array<i64: 1, 1, 1>, scalar_prefetch = 0 : i64, scratch_operands = 1 : i64, tpu.core_type = #tpu.core_type<tc>, window_params = [{transform_indices = @transform_0, window_bounds = array<i64: 128, 384>}, {transform_indices = @transform_1, window_bounds = array<i64: 384, 128>}, {transform_indices = @transform_2, window_bounds = array<i64: 1, 128>}, {transform_indices = @transform_3, window_bounds = array<i64: 1, 128>}, {transform_indices = @transform_4, window_bounds = array<i64: 128, 128>}]} {
    %c0_i32 = arith.constant 0 : i32
    %0 = arith.cmpi eq, %arg2, %c0_i32 : i32
    %1 = arith.extui %0 : i1 to i32
    %c0_i32_0 = arith.constant 0 : i32
    %2 = arith.cmpi ne, %1, %c0_i32_0 : i32
    scf.if %2 {
      %cst_10 = arith.constant 0.000000e+00 : f32
      %12 = vector.broadcast %cst_10 : f32 to vector<128x128xf32>
      %c0_11 = arith.constant 0 : index
      %c0_12 = arith.constant 0 : index
      %13 = vector.load %arg8[%c0_11, %c0_12] : memref<128x128xf32, #tpu.memory_space<vmem>>, vector<128x128xf32>
      tpu.vector_store %arg8[%c0_11, %c0_12], %12 {strides = array<i32>} : memref<128x128xf32, #tpu.memory_space<vmem>>, vector<128x128xf32>,
    } else {
    }
    %c0 = arith.constant 0 : index
    %c0_1 = arith.constant 0 : index
    %3 = vector.load %arg8[%c0, %c0_1] : memref<128x128xf32, #tpu.memory_space<vmem>>, vector<128x128xf32>
    %c0_2 = arith.constant 0 : index
    %c0_3 = arith.constant 0 : index
    %4 = vector.load %arg3[%c0_2, %c0_3] : memref<128x384xbf16, #tpu.memory_space<vmem>>, vector<128x384xbf16>
    %c0_4 = arith.constant 0 : index
    %c0_5 = arith.constant 0 : index
    %5 = vector.load %arg4[%c0_4, %c0_5] : memref<384x128xbf16, #tpu.memory_space<vmem>>, vector<384x128xbf16>
    %cst = arith.constant dense<0.000000e+00> : vector<128x128xf32>
    %6 = tpu.matmul %4, %5, %cst {dimension_numbers = #tpu.dot_dimension_numbers<[1], [0], [0], [1], [0, 0, 1, 1], [], []>} : vector<128x384xbf16>, vector<384x128xbf16>, vector<128x128xf32> -> vector<128x128xf32>
    %7 = arith.addf %3, %6 : vector<128x128xf32>
    %c0_6 = arith.constant 0 : index
    %c0_7 = arith.constant 0 : index
    %8 = vector.load %arg8[%c0_6, %c0_7] : memref<128x128xf32, #tpu.memory_space<vmem>>, vector<128x128xf32>
    tpu.vector_store %arg8[%c0_6, %c0_7], %7 {strides = array<i32>} : memref<128x128xf32, #tpu.memory_space<vmem>>, vector<128x128xf32>,
    %c0_i32_8 = arith.constant 0 : i32
    %9 = arith.cmpi eq, %arg2, %c0_i32_8 : i32
    %10 = arith.extui %9 : i1 to i32
    %c0_i32_9 = arith.constant 0 : i32
    %11 = arith.cmpi ne, %10, %c0_i32_9 : i32
    scf.if %11 {
      %c0_10 = arith.constant 0 : index
      %c0_11 = arith.constant 0 : index
      %12 = vector.load %arg8[%c0_10, %c0_11] : memref<128x128xf32, #tpu.memory_space<vmem>>, vector<128x128xf32>
      %c0_12 = arith.constant 0 : index
      %c0_13 = arith.constant 0 : index
      %13 = vector.load %arg5[%c0_12, %c0_13] : memref<1x128xf32, #tpu.memory_space<vmem>>, vector<1x128xf32>
      %14 = vector.broadcast %13 : vector<1x128xf32> to vector<128x128xf32>
      %15 = arith.mulf %12, %14 : vector<128x128xf32>
      %c0_14 = arith.constant 0 : index
      %c0_15 = arith.constant 0 : index
      %16 = vector.load %arg6[%c0_14, %c0_15] : memref<1x128xf32, #tpu.memory_space<vmem>>, vector<1x128xf32>
      %17 = vector.broadcast %16 : vector<1x128xf32> to vector<128x128xf32>
      %18 = arith.addf %15, %17 : vector<128x128xf32>
      %cst_16 = arith.constant 0.000000e+00 : f32
      %19 = vector.broadcast %cst_16 : f32 to vector<128x128xf32>
      %20 = arith.maximumf %18, %19 : vector<128x128xf32>
      %21 = arith.truncf %20 : vector<128x128xf32> to vector<128x128xbf16>
      %c0_17 = arith.constant 0 : index
      %c0_18 = arith.constant 0 : index
      %22 = vector.load %arg7[%c0_17, %c0_18] : memref<128x128xbf16, #tpu.memory_space<vmem>>, vector<128x128xbf16>
      tpu.vector_store %arg7[%c0_17, %c0_18], %21 {strides = array<i32>} : memref<128x128xbf16, #tpu.memory_space<vmem>>, vector<128x128xbf16>,
    } else {
    }
    return
  }
  func.func @transform_0(%arg0: i32, %arg1: i32, %arg2: i32) -> (i32, i32) {
    %c0_i32 = arith.constant 0 : i32
    return %arg0, %arg2 : i32, i32
  }
  func.func @transform_1(%arg0: i32, %arg1: i32, %arg2: i32) -> (i32, i32) {
    %c0_i32 = arith.constant 0 : i32
    return %arg2, %arg1 : i32, i32
  }
  func.func @transform_2(%arg0: i32, %arg1: i32, %arg2: i32) -> (i32, i32) {
    %c0_i32 = arith.constant 0 : i32
    %c0_i32_0 = arith.constant 0 : i32
    return %c0_i32, %arg1 : i32, i32
  }
  func.func @transform_3(%arg0: i32, %arg1: i32, %arg2: i32) -> (i32, i32) {
    %c0_i32 = arith.constant 0 : i32
    %c0_i32_0 = arith.constant 0 : i32
    return %c0_i32, %arg1 : i32, i32
  }
  func.func @transform_4(%arg0: i32, %arg1: i32, %arg2: i32) -> (i32, i32) {
    %c0_i32 = arith.constant 0 : i32
    return %arg0, %arg1 : i32, i32
  }
}

module attributes {stable_mosaic.version = 11 : i64} {
  func.func @_mm_epilogue_kernel(%arg0: i32, %arg1: i32, %arg2: i32, %arg3: memref<32x640xbf16, #tpu.memory_space<vmem>>, %arg4: memref<640x128xbf16, #tpu.memory_space<vmem>>, %arg5: memref<1x128xf32, #tpu.memory_space<vmem>>, %arg6: memref<1x128xf32, #tpu.memory_space<vmem>>, %arg7: memref<32x128xbf16, #tpu.memory_space<vmem>>, %arg8: memref<32x128xf32, #tpu.memory_space<vmem>>) attributes {dimension_semantics = [#tpu.dimension_semantics<parallel>, #tpu.dimension_semantics<parallel>, #tpu.dimension_semantics<arbitrary>], iteration_bounds = array<i64: 1, 1, 1>, scalar_prefetch = 0 : i64, scratch_operands = 1 : i64, tpu.core_type = #tpu.core_type<tc>, window_params = [{transform_indices = @transform_0, window_bounds = array<i64: 32, 640>}, {transform_indices = @transform_1, window_bounds = array<i64: 640, 128>}, {transform_indices = @transform_2, window_bounds = array<i64: 1, 128>}, {transform_indices = @transform_3, window_bounds = array<i64: 1, 128>}, {transform_indices = @transform_4, window_bounds = array<i64: 32, 128>}]} {
    %c0_i32 = arith.constant 0 : i32
    %0 = arith.cmpi eq, %arg2, %c0_i32 : i32
    %1 = arith.extui %0 : i1 to i32
    %c0_i32_0 = arith.constant 0 : i32
    %2 = arith.cmpi ne, %1, %c0_i32_0 : i32
    scf.if %2 {
      %cst_10 = arith.constant 0.000000e+00 : f32
      %12 = vector.broadcast %cst_10 : f32 to vector<32x128xf32>
      %c0_11 = arith.constant 0 : index
      %c0_12 = arith.constant 0 : index
      %13 = vector.load %arg8[%c0_11, %c0_12] : memref<32x128xf32, #tpu.memory_space<vmem>>, vector<32x128xf32>
      tpu.vector_store %arg8[%c0_11, %c0_12], %12 {strides = array<i32>} : memref<32x128xf32, #tpu.memory_space<vmem>>, vector<32x128xf32>,
    } else {
    }
    %c0 = arith.constant 0 : index
    %c0_1 = arith.constant 0 : index
    %3 = vector.load %arg8[%c0, %c0_1] : memref<32x128xf32, #tpu.memory_space<vmem>>, vector<32x128xf32>
    %c0_2 = arith.constant 0 : index
    %c0_3 = arith.constant 0 : index
    %4 = vector.load %arg3[%c0_2, %c0_3] : memref<32x640xbf16, #tpu.memory_space<vmem>>, vector<32x640xbf16>
    %c0_4 = arith.constant 0 : index
    %c0_5 = arith.constant 0 : index
    %5 = vector.load %arg4[%c0_4, %c0_5] : memref<640x128xbf16, #tpu.memory_space<vmem>>, vector<640x128xbf16>
    %cst = arith.constant dense<0.000000e+00> : vector<32x128xf32>
    %6 = tpu.matmul %4, %5, %cst {dimension_numbers = #tpu.dot_dimension_numbers<[1], [0], [0], [1], [0, 0, 1, 1], [], []>} : vector<32x640xbf16>, vector<640x128xbf16>, vector<32x128xf32> -> vector<32x128xf32>
    %7 = arith.addf %3, %6 : vector<32x128xf32>
    %c0_6 = arith.constant 0 : index
    %c0_7 = arith.constant 0 : index
    %8 = vector.load %arg8[%c0_6, %c0_7] : memref<32x128xf32, #tpu.memory_space<vmem>>, vector<32x128xf32>
    tpu.vector_store %arg8[%c0_6, %c0_7], %7 {strides = array<i32>} : memref<32x128xf32, #tpu.memory_space<vmem>>, vector<32x128xf32>,
    %c0_i32_8 = arith.constant 0 : i32
    %9 = arith.cmpi eq, %arg2, %c0_i32_8 : i32
    %10 = arith.extui %9 : i1 to i32
    %c0_i32_9 = arith.constant 0 : i32
    %11 = arith.cmpi ne, %10, %c0_i32_9 : i32
    scf.if %11 {
      %c0_10 = arith.constant 0 : index
      %c0_11 = arith.constant 0 : index
      %12 = vector.load %arg8[%c0_10, %c0_11] : memref<32x128xf32, #tpu.memory_space<vmem>>, vector<32x128xf32>
      %c0_12 = arith.constant 0 : index
      %c0_13 = arith.constant 0 : index
      %13 = vector.load %arg5[%c0_12, %c0_13] : memref<1x128xf32, #tpu.memory_space<vmem>>, vector<1x128xf32>
      %14 = vector.broadcast %13 : vector<1x128xf32> to vector<32x128xf32>
      %15 = arith.mulf %12, %14 : vector<32x128xf32>
      %c0_14 = arith.constant 0 : index
      %c0_15 = arith.constant 0 : index
      %16 = vector.load %arg6[%c0_14, %c0_15] : memref<1x128xf32, #tpu.memory_space<vmem>>, vector<1x128xf32>
      %17 = vector.broadcast %16 : vector<1x128xf32> to vector<32x128xf32>
      %18 = arith.addf %15, %17 : vector<32x128xf32>
      %cst_16 = arith.constant 0.000000e+00 : f32
      %19 = vector.broadcast %cst_16 : f32 to vector<32x128xf32>
      %20 = arith.maximumf %18, %19 : vector<32x128xf32>
      %21 = arith.truncf %20 : vector<32x128xf32> to vector<32x128xbf16>
      %c0_17 = arith.constant 0 : index
      %c0_18 = arith.constant 0 : index
      %22 = vector.load %arg7[%c0_17, %c0_18] : memref<32x128xbf16, #tpu.memory_space<vmem>>, vector<32x128xbf16>
      tpu.vector_store %arg7[%c0_17, %c0_18], %21 {strides = array<i32>} : memref<32x128xbf16, #tpu.memory_space<vmem>>, vector<32x128xbf16>,
    } else {
    }
    return
  }
  func.func @transform_0(%arg0: i32, %arg1: i32, %arg2: i32) -> (i32, i32) {
    %c0_i32 = arith.constant 0 : i32
    return %arg0, %arg2 : i32, i32
  }
  func.func @transform_1(%arg0: i32, %arg1: i32, %arg2: i32) -> (i32, i32) {
    %c0_i32 = arith.constant 0 : i32
    return %arg2, %arg1 : i32, i32
  }
  func.func @transform_2(%arg0: i32, %arg1: i32, %arg2: i32) -> (i32, i32) {
    %c0_i32 = arith.constant 0 : i32
    %c0_i32_0 = arith.constant 0 : i32
    return %c0_i32, %arg1 : i32, i32
  }
  func.func @transform_3(%arg0: i32, %arg1: i32, %arg2: i32) -> (i32, i32) {
    %c0_i32 = arith.constant 0 : i32
    %c0_i32_0 = arith.constant 0 : i32
    return %c0_i32, %arg1 : i32, i32
  }
  func.func @transform_4(%arg0: i32, %arg1: i32, %arg2: i32) -> (i32, i32) {
    %c0_i32 = arith.constant 0 : i32
    return %arg0, %arg1 : i32, i32
  }
}

module attributes {stable_mosaic.version = 11 : i64} {
  func.func @_mm_epilogue_kernel(%arg0: i32, %arg1: i32, %arg2: i32, %arg3: memref<8x1152xbf16, #tpu.memory_space<vmem>>, %arg4: memref<1152x256xbf16, #tpu.memory_space<vmem>>, %arg5: memref<1x256xf32, #tpu.memory_space<vmem>>, %arg6: memref<1x256xf32, #tpu.memory_space<vmem>>, %arg7: memref<8x256xbf16, #tpu.memory_space<vmem>>, %arg8: memref<8x256xf32, #tpu.memory_space<vmem>>) attributes {dimension_semantics = [#tpu.dimension_semantics<parallel>, #tpu.dimension_semantics<parallel>, #tpu.dimension_semantics<arbitrary>], iteration_bounds = array<i64: 1, 1, 1>, scalar_prefetch = 0 : i64, scratch_operands = 1 : i64, tpu.core_type = #tpu.core_type<tc>, window_params = [{transform_indices = @transform_0, window_bounds = array<i64: 8, 1152>}, {transform_indices = @transform_1, window_bounds = array<i64: 1152, 256>}, {transform_indices = @transform_2, window_bounds = array<i64: 1, 256>}, {transform_indices = @transform_3, window_bounds = array<i64: 1, 256>}, {transform_indices = @transform_4, window_bounds = array<i64: 8, 256>}]} {
    %c0_i32 = arith.constant 0 : i32
    %0 = arith.cmpi eq, %arg2, %c0_i32 : i32
    %1 = arith.extui %0 : i1 to i32
    %c0_i32_0 = arith.constant 0 : i32
    %2 = arith.cmpi ne, %1, %c0_i32_0 : i32
    scf.if %2 {
      %cst_10 = arith.constant 0.000000e+00 : f32
      %12 = vector.broadcast %cst_10 : f32 to vector<8x256xf32>
      %c0_11 = arith.constant 0 : index
      %c0_12 = arith.constant 0 : index
      %13 = vector.load %arg8[%c0_11, %c0_12] : memref<8x256xf32, #tpu.memory_space<vmem>>, vector<8x256xf32>
      tpu.vector_store %arg8[%c0_11, %c0_12], %12 {strides = array<i32>} : memref<8x256xf32, #tpu.memory_space<vmem>>, vector<8x256xf32>,
    } else {
    }
    %c0 = arith.constant 0 : index
    %c0_1 = arith.constant 0 : index
    %3 = vector.load %arg8[%c0, %c0_1] : memref<8x256xf32, #tpu.memory_space<vmem>>, vector<8x256xf32>
    %c0_2 = arith.constant 0 : index
    %c0_3 = arith.constant 0 : index
    %4 = vector.load %arg3[%c0_2, %c0_3] : memref<8x1152xbf16, #tpu.memory_space<vmem>>, vector<8x1152xbf16>
    %c0_4 = arith.constant 0 : index
    %c0_5 = arith.constant 0 : index
    %5 = vector.load %arg4[%c0_4, %c0_5] : memref<1152x256xbf16, #tpu.memory_space<vmem>>, vector<1152x256xbf16>
    %cst = arith.constant dense<0.000000e+00> : vector<8x256xf32>
    %6 = tpu.matmul %4, %5, %cst {dimension_numbers = #tpu.dot_dimension_numbers<[1], [0], [0], [1], [0, 0, 1, 1], [], []>} : vector<8x1152xbf16>, vector<1152x256xbf16>, vector<8x256xf32> -> vector<8x256xf32>
    %7 = arith.addf %3, %6 : vector<8x256xf32>
    %c0_6 = arith.constant 0 : index
    %c0_7 = arith.constant 0 : index
    %8 = vector.load %arg8[%c0_6, %c0_7] : memref<8x256xf32, #tpu.memory_space<vmem>>, vector<8x256xf32>
    tpu.vector_store %arg8[%c0_6, %c0_7], %7 {strides = array<i32>} : memref<8x256xf32, #tpu.memory_space<vmem>>, vector<8x256xf32>,
    %c0_i32_8 = arith.constant 0 : i32
    %9 = arith.cmpi eq, %arg2, %c0_i32_8 : i32
    %10 = arith.extui %9 : i1 to i32
    %c0_i32_9 = arith.constant 0 : i32
    %11 = arith.cmpi ne, %10, %c0_i32_9 : i32
    scf.if %11 {
      %c0_10 = arith.constant 0 : index
      %c0_11 = arith.constant 0 : index
      %12 = vector.load %arg8[%c0_10, %c0_11] : memref<8x256xf32, #tpu.memory_space<vmem>>, vector<8x256xf32>
      %c0_12 = arith.constant 0 : index
      %c0_13 = arith.constant 0 : index
      %13 = vector.load %arg5[%c0_12, %c0_13] : memref<1x256xf32, #tpu.memory_space<vmem>>, vector<1x256xf32>
      %14 = vector.broadcast %13 : vector<1x256xf32> to vector<8x256xf32>
      %15 = arith.mulf %12, %14 : vector<8x256xf32>
      %c0_14 = arith.constant 0 : index
      %c0_15 = arith.constant 0 : index
      %16 = vector.load %arg6[%c0_14, %c0_15] : memref<1x256xf32, #tpu.memory_space<vmem>>, vector<1x256xf32>
      %17 = vector.broadcast %16 : vector<1x256xf32> to vector<8x256xf32>
      %18 = arith.addf %15, %17 : vector<8x256xf32>
      %cst_16 = arith.constant 0.000000e+00 : f32
      %19 = vector.broadcast %cst_16 : f32 to vector<8x256xf32>
      %20 = arith.maximumf %18, %19 : vector<8x256xf32>
      %21 = arith.truncf %20 : vector<8x256xf32> to vector<8x256xbf16>
      %c0_17 = arith.constant 0 : index
      %c0_18 = arith.constant 0 : index
      %22 = vector.load %arg7[%c0_17, %c0_18] : memref<8x256xbf16, #tpu.memory_space<vmem>>, vector<8x256xbf16>
      tpu.vector_store %arg7[%c0_17, %c0_18], %21 {strides = array<i32>} : memref<8x256xbf16, #tpu.memory_space<vmem>>, vector<8x256xbf16>,
    } else {
    }
    return
  }
  func.func @transform_0(%arg0: i32, %arg1: i32, %arg2: i32) -> (i32, i32) {
    %c0_i32 = arith.constant 0 : i32
    return %arg0, %arg2 : i32, i32
  }
  func.func @transform_1(%arg0: i32, %arg1: i32, %arg2: i32) -> (i32, i32) {
    %c0_i32 = arith.constant 0 : i32
    return %arg2, %arg1 : i32, i32
  }
  func.func @transform_2(%arg0: i32, %arg1: i32, %arg2: i32) -> (i32, i32) {
    %c0_i32 = arith.constant 0 : i32
    %c0_i32_0 = arith.constant 0 : i32
    return %c0_i32, %arg1 : i32, i32
  }
  func.func @transform_3(%arg0: i32, %arg1: i32, %arg2: i32) -> (i32, i32) {
    %c0_i32 = arith.constant 0 : i32
    %c0_i32_0 = arith.constant 0 : i32
    return %c0_i32, %arg1 : i32, i32
  }
  func.func @transform_4(%arg0: i32, %arg1: i32, %arg2: i32) -> (i32, i32) {
    %c0_i32 = arith.constant 0 : i32
    return %arg0, %arg1 : i32, i32
  }
}

module attributes {stable_mosaic.version = 11 : i64} {
  func.func @_mm_epilogue_kernel(%arg0: i32, %arg1: i32, %arg2: i32, %arg3: memref<8x512xbf16, #tpu.memory_space<vmem>>, %arg4: memref<512x256xbf16, #tpu.memory_space<vmem>>, %arg5: memref<1x256xf32, #tpu.memory_space<vmem>>, %arg6: memref<1x256xf32, #tpu.memory_space<vmem>>, %arg7: memref<8x256xbf16, #tpu.memory_space<vmem>>, %arg8: memref<8x256xf32, #tpu.memory_space<vmem>>) attributes {dimension_semantics = [#tpu.dimension_semantics<parallel>, #tpu.dimension_semantics<parallel>, #tpu.dimension_semantics<arbitrary>], iteration_bounds = array<i64: 1, 2, 5>, scalar_prefetch = 0 : i64, scratch_operands = 1 : i64, tpu.core_type = #tpu.core_type<tc>, window_params = [{transform_indices = @transform_0, window_bounds = array<i64: 8, 512>}, {transform_indices = @transform_1, window_bounds = array<i64: 512, 256>}, {transform_indices = @transform_2, window_bounds = array<i64: 1, 256>}, {transform_indices = @transform_3, window_bounds = array<i64: 1, 256>}, {transform_indices = @transform_4, window_bounds = array<i64: 8, 256>}]} {
    %c0_i32 = arith.constant 0 : i32
    %0 = arith.cmpi eq, %arg2, %c0_i32 : i32
    %1 = arith.extui %0 : i1 to i32
    %c0_i32_0 = arith.constant 0 : i32
    %2 = arith.cmpi ne, %1, %c0_i32_0 : i32
    scf.if %2 {
      %cst_9 = arith.constant 0.000000e+00 : f32
      %12 = vector.broadcast %cst_9 : f32 to vector<8x256xf32>
      %c0_10 = arith.constant 0 : index
      %c0_11 = arith.constant 0 : index
      %13 = vector.load %arg8[%c0_10, %c0_11] : memref<8x256xf32, #tpu.memory_space<vmem>>, vector<8x256xf32>
      tpu.vector_store %arg8[%c0_10, %c0_11], %12 {strides = array<i32>} : memref<8x256xf32, #tpu.memory_space<vmem>>, vector<8x256xf32>,
    } else {
    }
    %c0 = arith.constant 0 : index
    %c0_1 = arith.constant 0 : index
    %3 = vector.load %arg8[%c0, %c0_1] : memref<8x256xf32, #tpu.memory_space<vmem>>, vector<8x256xf32>
    %c0_2 = arith.constant 0 : index
    %c0_3 = arith.constant 0 : index
    %4 = vector.load %arg3[%c0_2, %c0_3] : memref<8x512xbf16, #tpu.memory_space<vmem>>, vector<8x512xbf16>
    %c0_4 = arith.constant 0 : index
    %c0_5 = arith.constant 0 : index
    %5 = vector.load %arg4[%c0_4, %c0_5] : memref<512x256xbf16, #tpu.memory_space<vmem>>, vector<512x256xbf16>
    %cst = arith.constant dense<0.000000e+00> : vector<8x256xf32>
    %6 = tpu.matmul %4, %5, %cst {dimension_numbers = #tpu.dot_dimension_numbers<[1], [0], [0], [1], [0, 0, 1, 1], [], []>} : vector<8x512xbf16>, vector<512x256xbf16>, vector<8x256xf32> -> vector<8x256xf32>
    %7 = arith.addf %3, %6 : vector<8x256xf32>
    %c0_6 = arith.constant 0 : index
    %c0_7 = arith.constant 0 : index
    %8 = vector.load %arg8[%c0_6, %c0_7] : memref<8x256xf32, #tpu.memory_space<vmem>>, vector<8x256xf32>
    tpu.vector_store %arg8[%c0_6, %c0_7], %7 {strides = array<i32>} : memref<8x256xf32, #tpu.memory_space<vmem>>, vector<8x256xf32>,
    %c4_i32 = arith.constant 4 : i32
    %9 = arith.cmpi eq, %arg2, %c4_i32 : i32
    %10 = arith.extui %9 : i1 to i32
    %c0_i32_8 = arith.constant 0 : i32
    %11 = arith.cmpi ne, %10, %c0_i32_8 : i32
    scf.if %11 {
      %c0_9 = arith.constant 0 : index
      %c0_10 = arith.constant 0 : index
      %12 = vector.load %arg8[%c0_9, %c0_10] : memref<8x256xf32, #tpu.memory_space<vmem>>, vector<8x256xf32>
      %c0_11 = arith.constant 0 : index
      %c0_12 = arith.constant 0 : index
      %13 = vector.load %arg5[%c0_11, %c0_12] : memref<1x256xf32, #tpu.memory_space<vmem>>, vector<1x256xf32>
      %14 = vector.broadcast %13 : vector<1x256xf32> to vector<8x256xf32>
      %15 = arith.mulf %12, %14 : vector<8x256xf32>
      %c0_13 = arith.constant 0 : index
      %c0_14 = arith.constant 0 : index
      %16 = vector.load %arg6[%c0_13, %c0_14] : memref<1x256xf32, #tpu.memory_space<vmem>>, vector<1x256xf32>
      %17 = vector.broadcast %16 : vector<1x256xf32> to vector<8x256xf32>
      %18 = arith.addf %15, %17 : vector<8x256xf32>
      %cst_15 = arith.constant 0.000000e+00 : f32
      %19 = vector.broadcast %cst_15 : f32 to vector<8x256xf32>
      %20 = arith.maximumf %18, %19 : vector<8x256xf32>
      %21 = arith.truncf %20 : vector<8x256xf32> to vector<8x256xbf16>
      %c0_16 = arith.constant 0 : index
      %c0_17 = arith.constant 0 : index
      %22 = vector.load %arg7[%c0_16, %c0_17] : memref<8x256xbf16, #tpu.memory_space<vmem>>, vector<8x256xbf16>
      tpu.vector_store %arg7[%c0_16, %c0_17], %21 {strides = array<i32>} : memref<8x256xbf16, #tpu.memory_space<vmem>>, vector<8x256xbf16>,
    } else {
    }
    return
  }
  func.func @transform_0(%arg0: i32, %arg1: i32, %arg2: i32) -> (i32, i32) {
    %c0_i32 = arith.constant 0 : i32
    return %arg0, %arg2 : i32, i32
  }
  func.func @transform_1(%arg0: i32, %arg1: i32, %arg2: i32) -> (i32, i32) {
    %c0_i32 = arith.constant 0 : i32
    return %arg2, %arg1 : i32, i32
  }
  func.func @transform_2(%arg0: i32, %arg1: i32, %arg2: i32) -> (i32, i32) {
    %c0_i32 = arith.constant 0 : i32
    %c0_i32_0 = arith.constant 0 : i32
    return %c0_i32, %arg1 : i32, i32
  }
  func.func @transform_3(%arg0: i32, %arg1: i32, %arg2: i32) -> (i32, i32) {
    %c0_i32 = arith.constant 0 : i32
    %c0_i32_0 = arith.constant 0 : i32
    return %c0_i32, %arg1 : i32, i32
  }
  func.func @transform_4(%arg0: i32, %arg1: i32, %arg2: i32) -> (i32, i32) {
    %c0_i32 = arith.constant 0 : i32
    return %arg0, %arg1 : i32, i32
  }
}

module attributes {stable_mosaic.version = 11 : i64} {
  func.func @_spd_encoder_kernel(%arg0: i32, %arg1: memref<8x128xf32, #tpu.memory_space<vmem>>, %arg2: memref<1x128xf32, #tpu.memory_space<vmem>>, %arg3: memref<1x128xf32, #tpu.memory_space<vmem>>, %arg4: memref<128x128xf32, #tpu.memory_space<vmem>>, %arg5: memref<1x128xf32, #tpu.memory_space<vmem>>, %arg6: memref<8x128xf32, #tpu.memory_space<vmem>>) attributes {dimension_semantics = [#tpu.dimension_semantics<arbitrary>], iteration_bounds = array<i64: 1>, scalar_prefetch = 0 : i64, scratch_operands = 0 : i64, tpu.core_type = #tpu.core_type<tc>, window_params = [{pipeline_mode = #tpu.pipeline_mode<synchronous>, transform_indices = @transform_0, window_bounds = array<i64: 8, 128>}, {pipeline_mode = #tpu.pipeline_mode<synchronous>, transform_indices = @transform_1, window_bounds = array<i64: 1, 128>}, {pipeline_mode = #tpu.pipeline_mode<synchronous>, transform_indices = @transform_2, window_bounds = array<i64: 1, 128>}, {pipeline_mode = #tpu.pipeline_mode<synchronous>, transform_indices = @transform_3, window_bounds = array<i64: 128, 128>}, {pipeline_mode = #tpu.pipeline_mode<synchronous>, transform_indices = @transform_4, window_bounds = array<i64: 1, 128>}, {pipeline_mode = #tpu.pipeline_mode<synchronous>, transform_indices = @transform_5, window_bounds = array<i64: 8, 128>}]} {
    %c0 = arith.constant 0 : index
    %c0_0 = arith.constant 0 : index
    %0 = vector.load %arg1[%c0, %c0_0] : memref<8x128xf32, #tpu.memory_space<vmem>>, vector<8x128xf32>
    %c0_1 = arith.constant 0 : index
    %c0_2 = arith.constant 0 : index
    %1 = vector.load %arg2[%c0_1, %c0_2] : memref<1x128xf32, #tpu.memory_space<vmem>>, vector<1x128xf32>
    %2 = vector.broadcast %1 : vector<1x128xf32> to vector<8x128xf32>
    %3 = arith.mulf %0, %2 : vector<8x128xf32>
    %c0_3 = arith.constant 0 : index
    %c0_4 = arith.constant 0 : index
    %4 = vector.load %arg3[%c0_3, %c0_4] : memref<1x128xf32, #tpu.memory_space<vmem>>, vector<1x128xf32>
    %5 = vector.broadcast %4 : vector<1x128xf32> to vector<8x128xf32>
    %6 = arith.addf %3, %5 : vector<8x128xf32>
    %cst = arith.constant 0.000000e+00 : f32
    %7 = vector.broadcast %cst : f32 to vector<8x128xf32>
    %8 = arith.maximumf %6, %7 : vector<8x128xf32>
    %c0_5 = arith.constant 0 : index
    %c0_6 = arith.constant 0 : index
    %9 = vector.load %arg4[%c0_5, %c0_6] : memref<128x128xf32, #tpu.memory_space<vmem>>, vector<128x128xf32>
    %cst_7 = arith.constant dense<0.000000e+00> : vector<8x128xf32>
    %10 = tpu.matmul %8, %9, %cst_7 {dimension_numbers = #tpu.dot_dimension_numbers<[1], [0], [0], [1], [0, 0, 1, 1], [], []>} : vector<8x128xf32>, vector<128x128xf32>, vector<8x128xf32> -> vector<8x128xf32>
    %c0_8 = arith.constant 0 : index
    %c0_9 = arith.constant 0 : index
    %11 = vector.load %arg5[%c0_8, %c0_9] : memref<1x128xf32, #tpu.memory_space<vmem>>, vector<1x128xf32>
    %12 = vector.broadcast %11 : vector<1x128xf32> to vector<8x128xf32>
    %13 = arith.addf %10, %12 : vector<8x128xf32>
    %c0_10 = arith.constant 0 : index
    %c0_11 = arith.constant 0 : index
    %14 = vector.load %arg6[%c0_10, %c0_11] : memref<8x128xf32, #tpu.memory_space<vmem>>, vector<8x128xf32>
    tpu.vector_store %arg6[%c0_10, %c0_11], %13 {strides = array<i32>} : memref<8x128xf32, #tpu.memory_space<vmem>>, vector<8x128xf32>,
    return
  }
  func.func @transform_0(%arg0: i32) -> (i32, i32) {
    %c0_i32 = arith.constant 0 : i32
    %c0_i32_0 = arith.constant 0 : i32
    %c0_i32_1 = arith.constant 0 : i32
    return %c0_i32, %c0_i32_0 : i32, i32
  }
  func.func @transform_1(%arg0: i32) -> (i32, i32) {
    %c0_i32 = arith.constant 0 : i32
    %c0_i32_0 = arith.constant 0 : i32
    %c0_i32_1 = arith.constant 0 : i32
    return %c0_i32, %c0_i32_0 : i32, i32
  }
  func.func @transform_2(%arg0: i32) -> (i32, i32) {
    %c0_i32 = arith.constant 0 : i32
    %c0_i32_0 = arith.constant 0 : i32
    %c0_i32_1 = arith.constant 0 : i32
    return %c0_i32, %c0_i32_0 : i32, i32
  }
  func.func @transform_3(%arg0: i32) -> (i32, i32) {
    %c0_i32 = arith.constant 0 : i32
    %c0_i32_0 = arith.constant 0 : i32
    %c0_i32_1 = arith.constant 0 : i32
    return %c0_i32, %c0_i32_0 : i32, i32
  }
  func.func @transform_4(%arg0: i32) -> (i32, i32) {
    %c0_i32 = arith.constant 0 : i32
    %c0_i32_0 = arith.constant 0 : i32
    %c0_i32_1 = arith.constant 0 : i32
    return %c0_i32, %c0_i32_0 : i32, i32
  }
  func.func @transform_5(%arg0: i32) -> (i32, i32) {
    %c0_i32 = arith.constant 0 : i32
    %c0_i32_0 = arith.constant 0 : i32
    %c0_i32_1 = arith.constant 0 : i32
    return %c0_i32, %c0_i32_0 : i32, i32
  }
}

module attributes {stable_mosaic.version = 11 : i64} {
  func.func @_mm_epilogue_kernel(%arg0: i32, %arg1: i32, %arg2: i32, %arg3: memref<8x512xbf16, #tpu.memory_space<vmem>>, %arg4: memref<512x256xbf16, #tpu.memory_space<vmem>>, %arg5: memref<1x256xf32, #tpu.memory_space<vmem>>, %arg6: memref<1x256xf32, #tpu.memory_space<vmem>>, %arg7: memref<8x256xbf16, #tpu.memory_space<vmem>>, %arg8: memref<8x256xf32, #tpu.memory_space<vmem>>) attributes {dimension_semantics = [#tpu.dimension_semantics<parallel>, #tpu.dimension_semantics<parallel>, #tpu.dimension_semantics<arbitrary>], iteration_bounds = array<i64: 1, 4, 5>, scalar_prefetch = 0 : i64, scratch_operands = 1 : i64, tpu.core_type = #tpu.core_type<tc>, window_params = [{transform_indices = @transform_0, window_bounds = array<i64: 8, 512>}, {transform_indices = @transform_1, window_bounds = array<i64: 512, 256>}, {transform_indices = @transform_2, window_bounds = array<i64: 1, 256>}, {transform_indices = @transform_3, window_bounds = array<i64: 1, 256>}, {transform_indices = @transform_4, window_bounds = array<i64: 8, 256>}]} {
    %c0_i32 = arith.constant 0 : i32
    %0 = arith.cmpi eq, %arg2, %c0_i32 : i32
    %1 = arith.extui %0 : i1 to i32
    %c0_i32_0 = arith.constant 0 : i32
    %2 = arith.cmpi ne, %1, %c0_i32_0 : i32
    scf.if %2 {
      %cst_9 = arith.constant 0.000000e+00 : f32
      %12 = vector.broadcast %cst_9 : f32 to vector<8x256xf32>
      %c0_10 = arith.constant 0 : index
      %c0_11 = arith.constant 0 : index
      %13 = vector.load %arg8[%c0_10, %c0_11] : memref<8x256xf32, #tpu.memory_space<vmem>>, vector<8x256xf32>
      tpu.vector_store %arg8[%c0_10, %c0_11], %12 {strides = array<i32>} : memref<8x256xf32, #tpu.memory_space<vmem>>, vector<8x256xf32>,
    } else {
    }
    %c0 = arith.constant 0 : index
    %c0_1 = arith.constant 0 : index
    %3 = vector.load %arg8[%c0, %c0_1] : memref<8x256xf32, #tpu.memory_space<vmem>>, vector<8x256xf32>
    %c0_2 = arith.constant 0 : index
    %c0_3 = arith.constant 0 : index
    %4 = vector.load %arg3[%c0_2, %c0_3] : memref<8x512xbf16, #tpu.memory_space<vmem>>, vector<8x512xbf16>
    %c0_4 = arith.constant 0 : index
    %c0_5 = arith.constant 0 : index
    %5 = vector.load %arg4[%c0_4, %c0_5] : memref<512x256xbf16, #tpu.memory_space<vmem>>, vector<512x256xbf16>
    %cst = arith.constant dense<0.000000e+00> : vector<8x256xf32>
    %6 = tpu.matmul %4, %5, %cst {dimension_numbers = #tpu.dot_dimension_numbers<[1], [0], [0], [1], [0, 0, 1, 1], [], []>} : vector<8x512xbf16>, vector<512x256xbf16>, vector<8x256xf32> -> vector<8x256xf32>
    %7 = arith.addf %3, %6 : vector<8x256xf32>
    %c0_6 = arith.constant 0 : index
    %c0_7 = arith.constant 0 : index
    %8 = vector.load %arg8[%c0_6, %c0_7] : memref<8x256xf32, #tpu.memory_space<vmem>>, vector<8x256xf32>
    tpu.vector_store %arg8[%c0_6, %c0_7], %7 {strides = array<i32>} : memref<8x256xf32, #tpu.memory_space<vmem>>, vector<8x256xf32>,
    %c4_i32 = arith.constant 4 : i32
    %9 = arith.cmpi eq, %arg2, %c4_i32 : i32
    %10 = arith.extui %9 : i1 to i32
    %c0_i32_8 = arith.constant 0 : i32
    %11 = arith.cmpi ne, %10, %c0_i32_8 : i32
    scf.if %11 {
      %c0_9 = arith.constant 0 : index
      %c0_10 = arith.constant 0 : index
      %12 = vector.load %arg8[%c0_9, %c0_10] : memref<8x256xf32, #tpu.memory_space<vmem>>, vector<8x256xf32>
      %c0_11 = arith.constant 0 : index
      %c0_12 = arith.constant 0 : index
      %13 = vector.load %arg5[%c0_11, %c0_12] : memref<1x256xf32, #tpu.memory_space<vmem>>, vector<1x256xf32>
      %14 = vector.broadcast %13 : vector<1x256xf32> to vector<8x256xf32>
      %15 = arith.mulf %12, %14 : vector<8x256xf32>
      %c0_13 = arith.constant 0 : index
      %c0_14 = arith.constant 0 : index
      %16 = vector.load %arg6[%c0_13, %c0_14] : memref<1x256xf32, #tpu.memory_space<vmem>>, vector<1x256xf32>
      %17 = vector.broadcast %16 : vector<1x256xf32> to vector<8x256xf32>
      %18 = arith.addf %15, %17 : vector<8x256xf32>
      %cst_15 = arith.constant 0.000000e+00 : f32
      %19 = vector.broadcast %cst_15 : f32 to vector<8x256xf32>
      %20 = arith.maximumf %18, %19 : vector<8x256xf32>
      %21 = arith.truncf %20 : vector<8x256xf32> to vector<8x256xbf16>
      %c0_16 = arith.constant 0 : index
      %c0_17 = arith.constant 0 : index
      %22 = vector.load %arg7[%c0_16, %c0_17] : memref<8x256xbf16, #tpu.memory_space<vmem>>, vector<8x256xbf16>
      tpu.vector_store %arg7[%c0_16, %c0_17], %21 {strides = array<i32>} : memref<8x256xbf16, #tpu.memory_space<vmem>>, vector<8x256xbf16>,
    } else {
    }
    return
  }
  func.func @transform_0(%arg0: i32, %arg1: i32, %arg2: i32) -> (i32, i32) {
    %c0_i32 = arith.constant 0 : i32
    return %arg0, %arg2 : i32, i32
  }
  func.func @transform_1(%arg0: i32, %arg1: i32, %arg2: i32) -> (i32, i32) {
    %c0_i32 = arith.constant 0 : i32
    return %arg2, %arg1 : i32, i32
  }
  func.func @transform_2(%arg0: i32, %arg1: i32, %arg2: i32) -> (i32, i32) {
    %c0_i32 = arith.constant 0 : i32
    %c0_i32_0 = arith.constant 0 : i32
    return %c0_i32, %arg1 : i32, i32
  }
  func.func @transform_3(%arg0: i32, %arg1: i32, %arg2: i32) -> (i32, i32) {
    %c0_i32 = arith.constant 0 : i32
    %c0_i32_0 = arith.constant 0 : i32
    return %c0_i32, %arg1 : i32, i32
  }
  func.func @transform_4(%arg0: i32, %arg1: i32, %arg2: i32) -> (i32, i32) {
    %c0_i32 = arith.constant 0 : i32
    return %arg0, %arg1 : i32, i32
  }
}

module attributes {stable_mosaic.version = 11 : i64} {
  func.func @_mm_epilogue_kernel(%arg0: i32, %arg1: i32, %arg2: i32, %arg3: memref<8x1024xbf16, #tpu.memory_space<vmem>>, %arg4: memref<1024x256xbf16, #tpu.memory_space<vmem>>, %arg5: memref<1x256xf32, #tpu.memory_space<vmem>>, %arg6: memref<1x256xf32, #tpu.memory_space<vmem>>, %arg7: memref<8x256xbf16, #tpu.memory_space<vmem>>, %arg8: memref<8x256xf32, #tpu.memory_space<vmem>>) attributes {dimension_semantics = [#tpu.dimension_semantics<parallel>, #tpu.dimension_semantics<parallel>, #tpu.dimension_semantics<arbitrary>], iteration_bounds = array<i64: 1, 2, 1>, scalar_prefetch = 0 : i64, scratch_operands = 1 : i64, tpu.core_type = #tpu.core_type<tc>, window_params = [{transform_indices = @transform_0, window_bounds = array<i64: 8, 1024>}, {transform_indices = @transform_1, window_bounds = array<i64: 1024, 256>}, {transform_indices = @transform_2, window_bounds = array<i64: 1, 256>}, {transform_indices = @transform_3, window_bounds = array<i64: 1, 256>}, {transform_indices = @transform_4, window_bounds = array<i64: 8, 256>}]} {
    %c0_i32 = arith.constant 0 : i32
    %0 = arith.cmpi eq, %arg2, %c0_i32 : i32
    %1 = arith.extui %0 : i1 to i32
    %c0_i32_0 = arith.constant 0 : i32
    %2 = arith.cmpi ne, %1, %c0_i32_0 : i32
    scf.if %2 {
      %cst_10 = arith.constant 0.000000e+00 : f32
      %12 = vector.broadcast %cst_10 : f32 to vector<8x256xf32>
      %c0_11 = arith.constant 0 : index
      %c0_12 = arith.constant 0 : index
      %13 = vector.load %arg8[%c0_11, %c0_12] : memref<8x256xf32, #tpu.memory_space<vmem>>, vector<8x256xf32>
      tpu.vector_store %arg8[%c0_11, %c0_12], %12 {strides = array<i32>} : memref<8x256xf32, #tpu.memory_space<vmem>>, vector<8x256xf32>,
    } else {
    }
    %c0 = arith.constant 0 : index
    %c0_1 = arith.constant 0 : index
    %3 = vector.load %arg8[%c0, %c0_1] : memref<8x256xf32, #tpu.memory_space<vmem>>, vector<8x256xf32>
    %c0_2 = arith.constant 0 : index
    %c0_3 = arith.constant 0 : index
    %4 = vector.load %arg3[%c0_2, %c0_3] : memref<8x1024xbf16, #tpu.memory_space<vmem>>, vector<8x1024xbf16>
    %c0_4 = arith.constant 0 : index
    %c0_5 = arith.constant 0 : index
    %5 = vector.load %arg4[%c0_4, %c0_5] : memref<1024x256xbf16, #tpu.memory_space<vmem>>, vector<1024x256xbf16>
    %cst = arith.constant dense<0.000000e+00> : vector<8x256xf32>
    %6 = tpu.matmul %4, %5, %cst {dimension_numbers = #tpu.dot_dimension_numbers<[1], [0], [0], [1], [0, 0, 1, 1], [], []>} : vector<8x1024xbf16>, vector<1024x256xbf16>, vector<8x256xf32> -> vector<8x256xf32>
    %7 = arith.addf %3, %6 : vector<8x256xf32>
    %c0_6 = arith.constant 0 : index
    %c0_7 = arith.constant 0 : index
    %8 = vector.load %arg8[%c0_6, %c0_7] : memref<8x256xf32, #tpu.memory_space<vmem>>, vector<8x256xf32>
    tpu.vector_store %arg8[%c0_6, %c0_7], %7 {strides = array<i32>} : memref<8x256xf32, #tpu.memory_space<vmem>>, vector<8x256xf32>,
    %c0_i32_8 = arith.constant 0 : i32
    %9 = arith.cmpi eq, %arg2, %c0_i32_8 : i32
    %10 = arith.extui %9 : i1 to i32
    %c0_i32_9 = arith.constant 0 : i32
    %11 = arith.cmpi ne, %10, %c0_i32_9 : i32
    scf.if %11 {
      %c0_10 = arith.constant 0 : index
      %c0_11 = arith.constant 0 : index
      %12 = vector.load %arg8[%c0_10, %c0_11] : memref<8x256xf32, #tpu.memory_space<vmem>>, vector<8x256xf32>
      %c0_12 = arith.constant 0 : index
      %c0_13 = arith.constant 0 : index
      %13 = vector.load %arg5[%c0_12, %c0_13] : memref<1x256xf32, #tpu.memory_space<vmem>>, vector<1x256xf32>
      %14 = vector.broadcast %13 : vector<1x256xf32> to vector<8x256xf32>
      %15 = arith.mulf %12, %14 : vector<8x256xf32>
      %c0_14 = arith.constant 0 : index
      %c0_15 = arith.constant 0 : index
      %16 = vector.load %arg6[%c0_14, %c0_15] : memref<1x256xf32, #tpu.memory_space<vmem>>, vector<1x256xf32>
      %17 = vector.broadcast %16 : vector<1x256xf32> to vector<8x256xf32>
      %18 = arith.addf %15, %17 : vector<8x256xf32>
      %cst_16 = arith.constant 0.000000e+00 : f32
      %19 = vector.broadcast %cst_16 : f32 to vector<8x256xf32>
      %20 = arith.maximumf %18, %19 : vector<8x256xf32>
      %21 = arith.truncf %20 : vector<8x256xf32> to vector<8x256xbf16>
      %c0_17 = arith.constant 0 : index
      %c0_18 = arith.constant 0 : index
      %22 = vector.load %arg7[%c0_17, %c0_18] : memref<8x256xbf16, #tpu.memory_space<vmem>>, vector<8x256xbf16>
      tpu.vector_store %arg7[%c0_17, %c0_18], %21 {strides = array<i32>} : memref<8x256xbf16, #tpu.memory_space<vmem>>, vector<8x256xbf16>,
    } else {
    }
    return
  }
  func.func @transform_0(%arg0: i32, %arg1: i32, %arg2: i32) -> (i32, i32) {
    %c0_i32 = arith.constant 0 : i32
    return %arg0, %arg2 : i32, i32
  }
  func.func @transform_1(%arg0: i32, %arg1: i32, %arg2: i32) -> (i32, i32) {
    %c0_i32 = arith.constant 0 : i32
    return %arg2, %arg1 : i32, i32
  }
  func.func @transform_2(%arg0: i32, %arg1: i32, %arg2: i32) -> (i32, i32) {
    %c0_i32 = arith.constant 0 : i32
    %c0_i32_0 = arith.constant 0 : i32
    return %c0_i32, %arg1 : i32, i32
  }
  func.func @transform_3(%arg0: i32, %arg1: i32, %arg2: i32) -> (i32, i32) {
    %c0_i32 = arith.constant 0 : i32
    %c0_i32_0 = arith.constant 0 : i32
    return %c0_i32, %arg1 : i32, i32
  }
  func.func @transform_4(%arg0: i32, %arg1: i32, %arg2: i32) -> (i32, i32) {
    %c0_i32 = arith.constant 0 : i32
    return %arg0, %arg1 : i32, i32
  }
}

module attributes {stable_mosaic.version = 11 : i64} {
  func.func @_mm_epilogue_kernel(%arg0: i32, %arg1: i32, %arg2: i32, %arg3: memref<32x512xbf16, #tpu.memory_space<vmem>>, %arg4: memref<512x256xbf16, #tpu.memory_space<vmem>>, %arg5: memref<1x256xf32, #tpu.memory_space<vmem>>, %arg6: memref<1x256xf32, #tpu.memory_space<vmem>>, %arg7: memref<32x256xbf16, #tpu.memory_space<vmem>>, %arg8: memref<32x256xf32, #tpu.memory_space<vmem>>) attributes {dimension_semantics = [#tpu.dimension_semantics<parallel>, #tpu.dimension_semantics<parallel>, #tpu.dimension_semantics<arbitrary>], iteration_bounds = array<i64: 1, 1, 1>, scalar_prefetch = 0 : i64, scratch_operands = 1 : i64, tpu.core_type = #tpu.core_type<tc>, window_params = [{transform_indices = @transform_0, window_bounds = array<i64: 32, 512>}, {transform_indices = @transform_1, window_bounds = array<i64: 512, 256>}, {transform_indices = @transform_2, window_bounds = array<i64: 1, 256>}, {transform_indices = @transform_3, window_bounds = array<i64: 1, 256>}, {transform_indices = @transform_4, window_bounds = array<i64: 32, 256>}]} {
    %c0_i32 = arith.constant 0 : i32
    %0 = arith.cmpi eq, %arg2, %c0_i32 : i32
    %1 = arith.extui %0 : i1 to i32
    %c0_i32_0 = arith.constant 0 : i32
    %2 = arith.cmpi ne, %1, %c0_i32_0 : i32
    scf.if %2 {
      %cst_10 = arith.constant 0.000000e+00 : f32
      %12 = vector.broadcast %cst_10 : f32 to vector<32x256xf32>
      %c0_11 = arith.constant 0 : index
      %c0_12 = arith.constant 0 : index
      %13 = vector.load %arg8[%c0_11, %c0_12] : memref<32x256xf32, #tpu.memory_space<vmem>>, vector<32x256xf32>
      tpu.vector_store %arg8[%c0_11, %c0_12], %12 {strides = array<i32>} : memref<32x256xf32, #tpu.memory_space<vmem>>, vector<32x256xf32>,
    } else {
    }
    %c0 = arith.constant 0 : index
    %c0_1 = arith.constant 0 : index
    %3 = vector.load %arg8[%c0, %c0_1] : memref<32x256xf32, #tpu.memory_space<vmem>>, vector<32x256xf32>
    %c0_2 = arith.constant 0 : index
    %c0_3 = arith.constant 0 : index
    %4 = vector.load %arg3[%c0_2, %c0_3] : memref<32x512xbf16, #tpu.memory_space<vmem>>, vector<32x512xbf16>
    %c0_4 = arith.constant 0 : index
    %c0_5 = arith.constant 0 : index
    %5 = vector.load %arg4[%c0_4, %c0_5] : memref<512x256xbf16, #tpu.memory_space<vmem>>, vector<512x256xbf16>
    %cst = arith.constant dense<0.000000e+00> : vector<32x256xf32>
    %6 = tpu.matmul %4, %5, %cst {dimension_numbers = #tpu.dot_dimension_numbers<[1], [0], [0], [1], [0, 0, 1, 1], [], []>} : vector<32x512xbf16>, vector<512x256xbf16>, vector<32x256xf32> -> vector<32x256xf32>
    %7 = arith.addf %3, %6 : vector<32x256xf32>
    %c0_6 = arith.constant 0 : index
    %c0_7 = arith.constant 0 : index
    %8 = vector.load %arg8[%c0_6, %c0_7] : memref<32x256xf32, #tpu.memory_space<vmem>>, vector<32x256xf32>
    tpu.vector_store %arg8[%c0_6, %c0_7], %7 {strides = array<i32>} : memref<32x256xf32, #tpu.memory_space<vmem>>, vector<32x256xf32>,
    %c0_i32_8 = arith.constant 0 : i32
    %9 = arith.cmpi eq, %arg2, %c0_i32_8 : i32
    %10 = arith.extui %9 : i1 to i32
    %c0_i32_9 = arith.constant 0 : i32
    %11 = arith.cmpi ne, %10, %c0_i32_9 : i32
    scf.if %11 {
      %c0_10 = arith.constant 0 : index
      %c0_11 = arith.constant 0 : index
      %12 = vector.load %arg8[%c0_10, %c0_11] : memref<32x256xf32, #tpu.memory_space<vmem>>, vector<32x256xf32>
      %c0_12 = arith.constant 0 : index
      %c0_13 = arith.constant 0 : index
      %13 = vector.load %arg5[%c0_12, %c0_13] : memref<1x256xf32, #tpu.memory_space<vmem>>, vector<1x256xf32>
      %14 = vector.broadcast %13 : vector<1x256xf32> to vector<32x256xf32>
      %15 = arith.mulf %12, %14 : vector<32x256xf32>
      %c0_14 = arith.constant 0 : index
      %c0_15 = arith.constant 0 : index
      %16 = vector.load %arg6[%c0_14, %c0_15] : memref<1x256xf32, #tpu.memory_space<vmem>>, vector<1x256xf32>
      %17 = vector.broadcast %16 : vector<1x256xf32> to vector<32x256xf32>
      %18 = arith.addf %15, %17 : vector<32x256xf32>
      %cst_16 = arith.constant 0.000000e+00 : f32
      %19 = vector.broadcast %cst_16 : f32 to vector<32x256xf32>
      %20 = arith.maximumf %18, %19 : vector<32x256xf32>
      %21 = arith.truncf %20 : vector<32x256xf32> to vector<32x256xbf16>
      %c0_17 = arith.constant 0 : index
      %c0_18 = arith.constant 0 : index
      %22 = vector.load %arg7[%c0_17, %c0_18] : memref<32x256xbf16, #tpu.memory_space<vmem>>, vector<32x256xbf16>
      tpu.vector_store %arg7[%c0_17, %c0_18], %21 {strides = array<i32>} : memref<32x256xbf16, #tpu.memory_space<vmem>>, vector<32x256xbf16>,
    } else {
    }
    return
  }
  func.func @transform_0(%arg0: i32, %arg1: i32, %arg2: i32) -> (i32, i32) {
    %c0_i32 = arith.constant 0 : i32
    return %arg0, %arg2 : i32, i32
  }
  func.func @transform_1(%arg0: i32, %arg1: i32, %arg2: i32) -> (i32, i32) {
    %c0_i32 = arith.constant 0 : i32
    return %arg2, %arg1 : i32, i32
  }
  func.func @transform_2(%arg0: i32, %arg1: i32, %arg2: i32) -> (i32, i32) {
    %c0_i32 = arith.constant 0 : i32
    %c0_i32_0 = arith.constant 0 : i32
    return %c0_i32, %arg1 : i32, i32
  }
  func.func @transform_3(%arg0: i32, %arg1: i32, %arg2: i32) -> (i32, i32) {
    %c0_i32 = arith.constant 0 : i32
    %c0_i32_0 = arith.constant 0 : i32
    return %c0_i32, %arg1 : i32, i32
  }
  func.func @transform_4(%arg0: i32, %arg1: i32, %arg2: i32) -> (i32, i32) {
    %c0_i32 = arith.constant 0 : i32
    return %arg0, %arg1 : i32, i32
  }
}

module attributes {stable_mosaic.version = 11 : i64} {
  func.func @_mm_epilogue_kernel(%arg0: i32, %arg1: i32, %arg2: i32, %arg3: memref<128x128xbf16, #tpu.memory_space<vmem>>, %arg4: memref<128x128xbf16, #tpu.memory_space<vmem>>, %arg5: memref<1x128xf32, #tpu.memory_space<vmem>>, %arg6: memref<1x128xf32, #tpu.memory_space<vmem>>, %arg7: memref<128x128xf32, #tpu.memory_space<vmem>>, %arg8: memref<128x128xf32, #tpu.memory_space<vmem>>) attributes {dimension_semantics = [#tpu.dimension_semantics<parallel>, #tpu.dimension_semantics<parallel>, #tpu.dimension_semantics<arbitrary>], iteration_bounds = array<i64: 1, 1, 1>, scalar_prefetch = 0 : i64, scratch_operands = 1 : i64, tpu.core_type = #tpu.core_type<tc>, window_params = [{transform_indices = @transform_0, window_bounds = array<i64: 128, 128>}, {transform_indices = @transform_1, window_bounds = array<i64: 128, 128>}, {transform_indices = @transform_2, window_bounds = array<i64: 1, 128>}, {transform_indices = @transform_3, window_bounds = array<i64: 1, 128>}, {transform_indices = @transform_4, window_bounds = array<i64: 128, 128>}]} {
    %c0_i32 = arith.constant 0 : i32
    %0 = arith.cmpi eq, %arg2, %c0_i32 : i32
    %1 = arith.extui %0 : i1 to i32
    %c0_i32_0 = arith.constant 0 : i32
    %2 = arith.cmpi ne, %1, %c0_i32_0 : i32
    scf.if %2 {
      %cst_10 = arith.constant 0.000000e+00 : f32
      %12 = vector.broadcast %cst_10 : f32 to vector<128x128xf32>
      %c0_11 = arith.constant 0 : index
      %c0_12 = arith.constant 0 : index
      %13 = vector.load %arg8[%c0_11, %c0_12] : memref<128x128xf32, #tpu.memory_space<vmem>>, vector<128x128xf32>
      tpu.vector_store %arg8[%c0_11, %c0_12], %12 {strides = array<i32>} : memref<128x128xf32, #tpu.memory_space<vmem>>, vector<128x128xf32>,
    } else {
    }
    %c0 = arith.constant 0 : index
    %c0_1 = arith.constant 0 : index
    %3 = vector.load %arg8[%c0, %c0_1] : memref<128x128xf32, #tpu.memory_space<vmem>>, vector<128x128xf32>
    %c0_2 = arith.constant 0 : index
    %c0_3 = arith.constant 0 : index
    %4 = vector.load %arg3[%c0_2, %c0_3] : memref<128x128xbf16, #tpu.memory_space<vmem>>, vector<128x128xbf16>
    %c0_4 = arith.constant 0 : index
    %c0_5 = arith.constant 0 : index
    %5 = vector.load %arg4[%c0_4, %c0_5] : memref<128x128xbf16, #tpu.memory_space<vmem>>, vector<128x128xbf16>
    %cst = arith.constant dense<0.000000e+00> : vector<128x128xf32>
    %6 = tpu.matmul %4, %5, %cst {dimension_numbers = #tpu.dot_dimension_numbers<[1], [0], [0], [1], [0, 0, 1, 1], [], []>} : vector<128x128xbf16>, vector<128x128xbf16>, vector<128x128xf32> -> vector<128x128xf32>
    %7 = arith.addf %3, %6 : vector<128x128xf32>
    %c0_6 = arith.constant 0 : index
    %c0_7 = arith.constant 0 : index
    %8 = vector.load %arg8[%c0_6, %c0_7] : memref<128x128xf32, #tpu.memory_space<vmem>>, vector<128x128xf32>
    tpu.vector_store %arg8[%c0_6, %c0_7], %7 {strides = array<i32>} : memref<128x128xf32, #tpu.memory_space<vmem>>, vector<128x128xf32>,
    %c0_i32_8 = arith.constant 0 : i32
    %9 = arith.cmpi eq, %arg2, %c0_i32_8 : i32
    %10 = arith.extui %9 : i1 to i32
    %c0_i32_9 = arith.constant 0 : i32
    %11 = arith.cmpi ne, %10, %c0_i32_9 : i32
    scf.if %11 {
      %c0_10 = arith.constant 0 : index
      %c0_11 = arith.constant 0 : index
      %12 = vector.load %arg8[%c0_10, %c0_11] : memref<128x128xf32, #tpu.memory_space<vmem>>, vector<128x128xf32>
      %c0_12 = arith.constant 0 : index
      %c0_13 = arith.constant 0 : index
      %13 = vector.load %arg5[%c0_12, %c0_13] : memref<1x128xf32, #tpu.memory_space<vmem>>, vector<1x128xf32>
      %14 = vector.broadcast %13 : vector<1x128xf32> to vector<128x128xf32>
      %15 = arith.mulf %12, %14 : vector<128x128xf32>
      %c0_14 = arith.constant 0 : index
      %c0_15 = arith.constant 0 : index
      %16 = vector.load %arg6[%c0_14, %c0_15] : memref<1x128xf32, #tpu.memory_space<vmem>>, vector<1x128xf32>
      %17 = vector.broadcast %16 : vector<1x128xf32> to vector<128x128xf32>
      %18 = arith.addf %15, %17 : vector<128x128xf32>
      %c0_16 = arith.constant 0 : index
      %c0_17 = arith.constant 0 : index
      %19 = vector.load %arg7[%c0_16, %c0_17] : memref<128x128xf32, #tpu.memory_space<vmem>>, vector<128x128xf32>
      tpu.vector_store %arg7[%c0_16, %c0_17], %18 {strides = array<i32>} : memref<128x128xf32, #tpu.memory_space<vmem>>, vector<128x128xf32>,
    } else {
    }
    return
  }
  func.func @transform_0(%arg0: i32, %arg1: i32, %arg2: i32) -> (i32, i32) {
    %c0_i32 = arith.constant 0 : i32
    return %arg0, %arg2 : i32, i32
  }
  func.func @transform_1(%arg0: i32, %arg1: i32, %arg2: i32) -> (i32, i32) {
    %c0_i32 = arith.constant 0 : i32
    return %arg2, %arg1 : i32, i32
  }
  func.func @transform_2(%arg0: i32, %arg1: i32, %arg2: i32) -> (i32, i32) {
    %c0_i32 = arith.constant 0 : i32
    %c0_i32_0 = arith.constant 0 : i32
    return %c0_i32, %arg1 : i32, i32
  }
  func.func @transform_3(%arg0: i32, %arg1: i32, %arg2: i32) -> (i32, i32) {
    %c0_i32 = arith.constant 0 : i32
    %c0_i32_0 = arith.constant 0 : i32
    return %c0_i32, %arg1 : i32, i32
  }
  func.func @transform_4(%arg0: i32, %arg1: i32, %arg2: i32) -> (i32, i32) {
    %c0_i32 = arith.constant 0 : i32
    return %arg0, %arg1 : i32, i32
  }
}

module attributes {stable_mosaic.version = 11 : i64} {
  func.func @_spatial_softmax_kernel(%arg0: i32, %arg1: memref<16x64xf32, #tpu.memory_space<vmem>>, %arg2: memref<64x128xf32, #tpu.memory_space<vmem>>, %arg3: memref<16x128xf32, #tpu.memory_space<vmem>>) attributes {dimension_semantics = [#tpu.dimension_semantics<parallel>], iteration_bounds = array<i64: 1>, scalar_prefetch = 0 : i64, scratch_operands = 0 : i64, tpu.core_type = #tpu.core_type<tc>, window_params = [{transform_indices = @transform_0, window_bounds = array<i64: 16, 64>}, {pipeline_mode = #tpu.pipeline_mode<synchronous>, transform_indices = @transform_1, window_bounds = array<i64: 64, 128>}, {transform_indices = @transform_2, window_bounds = array<i64: 16, 128>}]} {
    %c0 = arith.constant 0 : index
    %c0_0 = arith.constant 0 : index
    %0 = vector.load %arg1[%c0, %c0_0] : memref<16x64xf32, #tpu.memory_space<vmem>>, vector<16x64xf32>
    %cst = arith.constant dense<0xFF800000> : vector<16xf32>
    %1 = vector.multi_reduction <maximumf>, %0, %cst [1] : vector<16x64xf32> to vector<16xf32>
    %2 = vector.shape_cast %1 : vector<16xf32> to vector<16x1xf32>
    %3 = vector.broadcast %2 : vector<16x1xf32> to vector<16x64xf32>
    %4 = arith.subf %0, %3 : vector<16x64xf32>
    %5 = math.exp %4 : vector<16x64xf32>
    %cst_1 = arith.constant dense<0.000000e+00> : vector<16xf32>
    %6 = vector.multi_reduction <add>, %5, %cst_1 [1] : vector<16x64xf32> to vector<16xf32>
    %7 = vector.shape_cast %6 : vector<16xf32> to vector<16x1xf32>
    %c0_2 = arith.constant 0 : index
    %c0_3 = arith.constant 0 : index
    %8 = vector.load %arg2[%c0_2, %c0_3] : memref<64x128xf32, #tpu.memory_space<vmem>>, vector<64x128xf32>
    %cst_4 = arith.constant dense<0.000000e+00> : vector<16x128xf32>
    %9 = tpu.matmul %5, %8, %cst_4 {dimension_numbers = #tpu.dot_dimension_numbers<[1], [0], [0], [1], [0, 0, 1, 1], [], []>} : vector<16x64xf32>, vector<64x128xf32>, vector<16x128xf32> -> vector<16x128xf32>
    %10 = tpu.reciprocal %7 {approx = true} : vector<16x1xf32> -> vector<16x1xf32>
    %11 = vector.broadcast %10 : vector<16x1xf32> to vector<16x128xf32>
    %12 = arith.mulf %9, %11 : vector<16x128xf32>
    %c0_5 = arith.constant 0 : index
    %c0_6 = arith.constant 0 : index
    %13 = vector.load %arg3[%c0_5, %c0_6] : memref<16x128xf32, #tpu.memory_space<vmem>>, vector<16x128xf32>
    tpu.vector_store %arg3[%c0_5, %c0_6], %12 {strides = array<i32>} : memref<16x128xf32, #tpu.memory_space<vmem>>, vector<16x128xf32>,
    return
  }
  func.func @transform_0(%arg0: i32) -> (i32, i32) {
    %c0_i32 = arith.constant 0 : i32
    %c0_i32_0 = arith.constant 0 : i32
    return %arg0, %c0_i32 : i32, i32
  }
  func.func @transform_1(%arg0: i32) -> (i32, i32) {
    %c0_i32 = arith.constant 0 : i32
    %c0_i32_0 = arith.constant 0 : i32
    %c0_i32_1 = arith.constant 0 : i32
    return %c0_i32, %c0_i32_0 : i32, i32
  }
  func.func @transform_2(%arg0: i32) -> (i32, i32) {
    %c0_i32 = arith.constant 0 : i32
    %c0_i32_0 = arith.constant 0 : i32
    return %arg0, %c0_i32 : i32, i32
  }
}

module attributes {stable_mosaic.version = 11 : i64} {
  func.func @_mm_epilogue_kernel(%arg0: i32, %arg1: i32, %arg2: i32, %arg3: memref<8x512xbf16, #tpu.memory_space<vmem>>, %arg4: memref<512x128xbf16, #tpu.memory_space<vmem>>, %arg5: memref<1x128xf32, #tpu.memory_space<vmem>>, %arg6: memref<1x128xf32, #tpu.memory_space<vmem>>, %arg7: memref<8x128xf32, #tpu.memory_space<vmem>>, %arg8: memref<8x128xf32, #tpu.memory_space<vmem>>) attributes {dimension_semantics = [#tpu.dimension_semantics<parallel>, #tpu.dimension_semantics<parallel>, #tpu.dimension_semantics<arbitrary>], iteration_bounds = array<i64: 1, 1, 1>, scalar_prefetch = 0 : i64, scratch_operands = 1 : i64, tpu.core_type = #tpu.core_type<tc>, window_params = [{transform_indices = @transform_0, window_bounds = array<i64: 8, 512>}, {transform_indices = @transform_1, window_bounds = array<i64: 512, 128>}, {transform_indices = @transform_2, window_bounds = array<i64: 1, 128>}, {transform_indices = @transform_3, window_bounds = array<i64: 1, 128>}, {transform_indices = @transform_4, window_bounds = array<i64: 8, 128>}]} {
    %c0_i32 = arith.constant 0 : i32
    %0 = arith.cmpi eq, %arg2, %c0_i32 : i32
    %1 = arith.extui %0 : i1 to i32
    %c0_i32_0 = arith.constant 0 : i32
    %2 = arith.cmpi ne, %1, %c0_i32_0 : i32
    scf.if %2 {
      %cst_10 = arith.constant 0.000000e+00 : f32
      %12 = vector.broadcast %cst_10 : f32 to vector<8x128xf32>
      %c0_11 = arith.constant 0 : index
      %c0_12 = arith.constant 0 : index
      %13 = vector.load %arg8[%c0_11, %c0_12] : memref<8x128xf32, #tpu.memory_space<vmem>>, vector<8x128xf32>
      tpu.vector_store %arg8[%c0_11, %c0_12], %12 {strides = array<i32>} : memref<8x128xf32, #tpu.memory_space<vmem>>, vector<8x128xf32>,
    } else {
    }
    %c0 = arith.constant 0 : index
    %c0_1 = arith.constant 0 : index
    %3 = vector.load %arg8[%c0, %c0_1] : memref<8x128xf32, #tpu.memory_space<vmem>>, vector<8x128xf32>
    %c0_2 = arith.constant 0 : index
    %c0_3 = arith.constant 0 : index
    %4 = vector.load %arg3[%c0_2, %c0_3] : memref<8x512xbf16, #tpu.memory_space<vmem>>, vector<8x512xbf16>
    %c0_4 = arith.constant 0 : index
    %c0_5 = arith.constant 0 : index
    %5 = vector.load %arg4[%c0_4, %c0_5] : memref<512x128xbf16, #tpu.memory_space<vmem>>, vector<512x128xbf16>
    %cst = arith.constant dense<0.000000e+00> : vector<8x128xf32>
    %6 = tpu.matmul %4, %5, %cst {dimension_numbers = #tpu.dot_dimension_numbers<[1], [0], [0], [1], [0, 0, 1, 1], [], []>} : vector<8x512xbf16>, vector<512x128xbf16>, vector<8x128xf32> -> vector<8x128xf32>
    %7 = arith.addf %3, %6 : vector<8x128xf32>
    %c0_6 = arith.constant 0 : index
    %c0_7 = arith.constant 0 : index
    %8 = vector.load %arg8[%c0_6, %c0_7] : memref<8x128xf32, #tpu.memory_space<vmem>>, vector<8x128xf32>
    tpu.vector_store %arg8[%c0_6, %c0_7], %7 {strides = array<i32>} : memref<8x128xf32, #tpu.memory_space<vmem>>, vector<8x128xf32>,
    %c0_i32_8 = arith.constant 0 : i32
    %9 = arith.cmpi eq, %arg2, %c0_i32_8 : i32
    %10 = arith.extui %9 : i1 to i32
    %c0_i32_9 = arith.constant 0 : i32
    %11 = arith.cmpi ne, %10, %c0_i32_9 : i32
    scf.if %11 {
      %c0_10 = arith.constant 0 : index
      %c0_11 = arith.constant 0 : index
      %12 = vector.load %arg8[%c0_10, %c0_11] : memref<8x128xf32, #tpu.memory_space<vmem>>, vector<8x128xf32>
      %c0_12 = arith.constant 0 : index
      %c0_13 = arith.constant 0 : index
      %13 = vector.load %arg5[%c0_12, %c0_13] : memref<1x128xf32, #tpu.memory_space<vmem>>, vector<1x128xf32>
      %14 = vector.broadcast %13 : vector<1x128xf32> to vector<8x128xf32>
      %15 = arith.mulf %12, %14 : vector<8x128xf32>
      %c0_14 = arith.constant 0 : index
      %c0_15 = arith.constant 0 : index
      %16 = vector.load %arg6[%c0_14, %c0_15] : memref<1x128xf32, #tpu.memory_space<vmem>>, vector<1x128xf32>
      %17 = vector.broadcast %16 : vector<1x128xf32> to vector<8x128xf32>
      %18 = arith.addf %15, %17 : vector<8x128xf32>
      %c0_16 = arith.constant 0 : index
      %c0_17 = arith.constant 0 : index
      %19 = vector.load %arg7[%c0_16, %c0_17] : memref<8x128xf32, #tpu.memory_space<vmem>>, vector<8x128xf32>
      tpu.vector_store %arg7[%c0_16, %c0_17], %18 {strides = array<i32>} : memref<8x128xf32, #tpu.memory_space<vmem>>, vector<8x128xf32>,
    } else {
    }
    return
  }
  func.func @transform_0(%arg0: i32, %arg1: i32, %arg2: i32) -> (i32, i32) {
    %c0_i32 = arith.constant 0 : i32
    return %arg0, %arg2 : i32, i32
  }
  func.func @transform_1(%arg0: i32, %arg1: i32, %arg2: i32) -> (i32, i32) {
    %c0_i32 = arith.constant 0 : i32
    return %arg2, %arg1 : i32, i32
  }
  func.func @transform_2(%arg0: i32, %arg1: i32, %arg2: i32) -> (i32, i32) {
    %c0_i32 = arith.constant 0 : i32
    %c0_i32_0 = arith.constant 0 : i32
    return %c0_i32, %arg1 : i32, i32
  }
  func.func @transform_3(%arg0: i32, %arg1: i32, %arg2: i32) -> (i32, i32) {
    %c0_i32 = arith.constant 0 : i32
    %c0_i32_0 = arith.constant 0 : i32
    return %c0_i32, %arg1 : i32, i32
  }
  func.func @transform_4(%arg0: i32, %arg1: i32, %arg2: i32) -> (i32, i32) {
    %c0_i32 = arith.constant 0 : i32
    return %arg0, %arg1 : i32, i32
  }
}

</mosaic_0001>

<bundles_post_ra>
// kernel: rgb_point_model_forward.12
= control target key start
LH: loop header
LB: loop body
LE: loop exit
PB: predicated region body
PF: predicated region fallthrough
CT: control target
= control target key end

     0   :  { %s1367_s15 = smov 0   ;;  %s1369_s16 = smov 0   ;;  %s1544_s0 = inlined_call_operand.vmem [shape: bf16[512,128], index: 0, kind: input, shape index: {}]   ;;  %s1545_s1 = inlined_call_operand.vmem [shape: bf16[128,128], index: 1, kind: input, shape index: {}]   ;;  %s1546_s2 = inlined_call_operand.vmem [shape: f32[1,128], index: 2, kind: input, shape index: {}]   ;;  %s1547_s3 = inlined_call_operand.vmem [shape: f32[1,128], index: 3, kind: input, shape index: {}]   ;;  %s1548_s4 = inlined_call_operand.vmem [shape: bf16[512,128], index: 4, kind: output, shape index: {}]  }
   0x1   :  { %s1371_s17 = smov 0  }
   0x2 LB: > { %s33_s18 = sadd.s32 1, %s1336_s16  ;;  %p1046_p0 = scmp.ge.s32.totalorder %s1340_s17, 1  ;;  %s1340_s17 = sphi %s1371_s17, %s14_s17   ;;  %s1336_s16 = sphi %s1369_s16, %s1550_s16   ;;  %s1332_s15 = sphi %s1367_s15, %s1549_s15  }
   0x3   : > { %p35_p1 = scmp.ge.s32.totalorder %s33_s18, 2  ;;  %p221_p2 = scmp.lt.s32.totalorder %s1340_s17, 3 }
   0x5   : > { %s1552_s18 = smov (%p35_p1, %s33_s18), 0  ;;  %p222_p3 = pnand %p1046_p0, %p221_p2 }
   0x6   : > { %s1047_s27 = sshll.u32 (!%p222_p3), %s1332_s15, 5 }
   0x7   : > { %225 = sbr.rel (%p222_p3) target bundleno = 243 (0xf3), region = 36  ;;  %p268_p4 = scmp.lt.s32.totalorder (!%p222_p3), %s1047_s27, 63 }
   0xc   : > { %v1172_v0 = vld [vmem:[%s1545_s1 + $0x38] sm:$0xff]  ;;  %v1171_v1 = vld [vmem:[%s1545_s1 + $0x30] sm:$0xff]  ;;  %v1170_v2 = vld [vmem:[%s1545_s1 + $0x28] sm:$0xff]  ;;  %s1554_s27 = smov (!%p268_p4, %s1047_s27), 63 }
   0xd   : > { %560 = vmatpush.bf16.msra.mxu0 %v1172_v0  ;;  %1268 = vmatpush.bf16.msra.mxu1 %v1172_v0  ;;  %v1169_v3 = vld [vmem:[%s1545_s1 + $0x20] sm:$0xff]  ;;  %v1168_v4 = vld [vmem:[%s1545_s1 + $0x18] sm:$0xff]  ;;  %v1167_v5 = vld [vmem:[%s1545_s1 + $0x10] sm:$0xff]  ;;  %s1048_s8 = sshll.u32 %s1554_s27, 2 }
   0xe   : > { %1269 = vmatpush.bf16.msra.mxu2 %v1172_v0  ;;  %1270 = vmatpush.bf16.msra.mxu3 %v1172_v0  ;;  %v1166_v6 = vld [vmem:[%s1545_s1 + $0x8] sm:$0xff]  ;;  %v1165_v7 = vld [vmem:[%s1545_s1] sm:$0xff]  ;;  %s1420_s13 = scalar_lea.vmem %s1544_s0, %s1048_s8  ;;  %s1463_s23 = scalar_lea.vmem %s1548_s4, %s1048_s8 }
   0xf   : > { %v1149_v8 = vld [vmem:[%s1420_s13] sm:$0xff]  ;;  %v1150_v12 = vld [vmem:[%s1420_s13 + $0x8] sm:$0xff]  ;;  %v1151_v16 = vld [vmem:[%s1420_s13 + $0x10] sm:$0xff] }
  0x10   : > { %v1153_v9 = vld [vmem:[%s1420_s13 + $0x20] sm:$0xff]  ;;  %v1154_v13 = vld [vmem:[%s1420_s13 + $0x28] sm:$0xff]  ;;  %v1155_v17 = vld [vmem:[%s1420_s13 + $0x30] sm:$0xff] }
  0x11   : > { %561 = vmatpush.bf16.msra.mxu0 %v1171_v1  ;;  %1271 = vmatpush.bf16.msra.mxu1 %v1171_v1  ;;  %v1157_v10 = vld [vmem:[%s1420_s13 + $0x40] sm:$0xff]  ;;  %v1158_v14 = vld [vmem:[%s1420_s13 + $0x48] sm:$0xff]  ;;  %v1159_v18 = vld [vmem:[%s1420_s13 + $0x50] sm:$0xff] }
  0x12   : > { %1272 = vmatpush.bf16.msra.mxu2 %v1171_v1  ;;  %1273 = vmatpush.bf16.msra.mxu3 %v1171_v1  ;;  %v1161_v11 = vld [vmem:[%s1420_s13 + $0x60] sm:$0xff]  ;;  %v1162_v15 = vld [vmem:[%s1420_s13 + $0x68] sm:$0xff]  ;;  %v1163_v19 = vld [vmem:[%s1420_s13 + $0x70] sm:$0xff] }
  0x13   : > { %v1152_v20 = vld [vmem:[%s1420_s13 + $0x18] sm:$0xff]  ;;  %v1441_v26 = vld [vmem:[%s1546_s2] ss:$0 sm:$0xff] }
  0x14   : > { %v1156_v21 = vld [vmem:[%s1420_s13 + $0x38] sm:$0xff]  ;;  %v1447_v28 = vld [vmem:[%s1547_s3] ss:$0 sm:$0xff] }
  0x15   : > { %562 = vmatpush.bf16.msra.mxu0 %v1170_v2  ;;  %1274 = vmatpush.bf16.msra.mxu1 %v1170_v2  ;;  %v1160_v22 = vld [vmem:[%s1420_s13 + $0x58] sm:$0xff] }
  0x16   : > { %1275 = vmatpush.bf16.msra.mxu2 %v1170_v2  ;;  %1276 = vmatpush.bf16.msra.mxu3 %v1170_v2  ;;  %v1164_v23 = vld [vmem:[%s1420_s13 + $0x78] sm:$0xff] }
  0x19   : > { %563 = vmatpush.bf16.msra.mxu0 %v1169_v3  ;;  %1277 = vmatpush.bf16.msra.mxu1 %v1169_v3 }
  0x1a   : > { %1278 = vmatpush.bf16.msra.mxu2 %v1169_v3  ;;  %1279 = vmatpush.bf16.msra.mxu3 %v1169_v3 }
  0x1d   : > { %564 = vmatpush.bf16.msra.mxu0 %v1168_v4  ;;  %1280 = vmatpush.bf16.msra.mxu1 %v1168_v4 }
  0x1e   : > { %1281 = vmatpush.bf16.msra.mxu2 %v1168_v4  ;;  %1282 = vmatpush.bf16.msra.mxu3 %v1168_v4 }
  0x21   : > { %565 = vmatpush.bf16.msra.mxu0 %v1167_v5  ;;  %1283 = vmatpush.bf16.msra.mxu1 %v1167_v5 }
  0x22   : > { %1284 = vmatpush.bf16.msra.mxu2 %v1167_v5  ;;  %1285 = vmatpush.bf16.msra.mxu3 %v1167_v5 }
  0x25   : > { %566 = vmatpush.bf16.msra.mxu0 %v1166_v6  ;;  %1286 = vmatpush.bf16.msra.mxu1 %v1166_v6 }
  0x26   : > { %1287 = vmatpush.bf16.msra.mxu2 %v1166_v6  ;;  %1288 = vmatpush.bf16.msra.mxu3 %v1166_v6 }
  0x29   : > { %567 = vmatpush.bf16.msra.mxu0 %v1165_v7  ;;  %1289 = vmatpush.bf16.msra.mxu1 %v1165_v7 }
  0x2a   : > { %1290 = vmatpush.bf16.msra.mxu2 %v1165_v7  ;;  %1291 = vmatpush.bf16.msra.mxu3 %v1165_v7 }
  0x2c   : > { %568 = vmatmul.bf16.vlgmr.msra.gmra.mxu0 %v1149_v8  ;;  %588 = vmatmul.bf16.vlgmr.msra.gmra.mxu1 %v1153_v9 }
  0x2d   : > { %608 = vmatmul.bf16.vlgmr.msra.gmra.mxu2 %v1157_v10  ;;  %628 = vmatmul.bf16.vlgmr.msra.gmra.mxu3 %v1161_v11 }
  0x3c   : > { %573 = vmatmul.bf16.gmra.mxu0 %v1150_v12  ;;  %593 = vmatmul.bf16.gmra.mxu1 %v1154_v13 }
  0x3d   : > { %613 = vmatmul.bf16.gmra.mxu2 %v1158_v14  ;;  %633 = vmatmul.bf16.gmra.mxu3 %v1162_v15 }
  0x4c   : > { %578 = vmatmul.bf16.gmra.mxu0 %v1151_v16  ;;  %598 = vmatmul.bf16.gmra.mxu1 %v1155_v17 }
  0x4d   : > { %618 = vmatmul.bf16.gmra.mxu2 %v1159_v18  ;;  %638 = vmatmul.bf16.gmra.mxu3 %v1163_v19 }
  0x5c   : > { %583 = vmatmul.bf16.gmra.mxu0 %v1152_v20  ;;  %603 = vmatmul.bf16.gmra.mxu1 %v1156_v21 }
  0x5d   : > { %623 = vmatmul.bf16.gmra.mxu2 %v1160_v22  ;;  %643 = vmatmul.bf16.gmra.mxu3 %v1164_v23 }
  0xa9   : > { %v569_v24 = vpop.f32.mrf.mxu0  ;;  %v589_v25 = vpop.f32.mrf.mxu1 }
  0xaa   : > { %v752_v27 = vmul.f32 %v1441_v26, %v569_v24  ;;  %v760_v29 = vmul.f32 %v1441_v26, %v589_v25 }
  0xac   : > { %v788_v34 = vadd.f32 %v1447_v28, %v752_v27  ;;  %v796_v35 = vadd.f32 %v1447_v28, %v760_v29 }
  0xae   : > { %v820_v42 = vmax.f32 %v788_v34, 0.0  ;;  %v828_v43 = vmax.f32 %v796_v35, 0.0 }
  0xb0   : > { %v609_v30 = vpop.f32.mrf.mxu2  ;;  %v629_v31 = vpop.f32.mrf.mxu3 }
  0xb1   : > { %v571_v32 = vpop.f32.mrf.mxu0  ;;  %v591_v33 = vpop.f32.mrf.mxu1  ;;  %v768_v40 = vmul.f32 %v1441_v26, %v609_v30  ;;  %v776_v41 = vmul.f32 %v1441_v26, %v629_v31 }
  0xb2   : > { %v753_v36 = vmul.f32 %v1441_v26, %v571_v32  ;;  %v761_v37 = vmul.f32 %v1441_v26, %v591_v33 }
  0xb3   : > { %v804_v50 = vadd.f32 %v1447_v28, %v768_v40  ;;  %v812_v51 = vadd.f32 %v1447_v28, %v776_v41 }
  0xb4   : > { %v789_v38 = vadd.f32 %v1447_v28, %v753_v36  ;;  %v797_v39 = vadd.f32 %v1447_v28, %v761_v37 }
  0xb5   : > { %v836_v58 = vmax.f32 %v804_v50, 0.0  ;;  %v844_v59 = vmax.f32 %v812_v51, 0.0 }
  0xb6   : > { %v821_v44 = vmax.f32 %v789_v38, 0.0  ;;  %v829_v45 = vmax.f32 %v797_v39, 0.0 }
  0xb8   : > { %v1176_v46 = vpack.c.bf16 %v821_v44, %v820_v42  ;;  %v1196_v47 = vpack.c.bf16 %v829_v45, %v828_v43  ;;  %v611_v48 = vpop.f32.mrf.mxu2  ;;  %v631_v49 = vpop.f32.mrf.mxu3 }
  0xb9   : > { %v769_v52 = vmul.f32 %v1441_v26, %v611_v48  ;;  %v777_v53 = vmul.f32 %v1441_v26, %v631_v49  ;;  %v574_v54 = vpop.f32.mrf.mxu0  ;;  %v594_v55 = vpop.f32.mrf.mxu1 }
  0xba   : > { %1177 = vst [vmem:[%s1463_s23] sm:$0xff] %v1176_v46   ;;  %v754_v62 = vmul.f32 %v1441_v26, %v574_v54  ;;  %v762_v63 = vmul.f32 %v1441_v26, %v594_v55 }
  0xbb   : > { %1256 = vst [vmem:[%s1463_s23 + $0x20] sm:$0xff] %v1196_v47   ;;  %v805_v56 = vadd.f32 %v1447_v28, %v769_v52  ;;  %v813_v57 = vadd.f32 %v1447_v28, %v777_v53 }
  0xbc   : > { %v790_v6 = vadd.f32 %v1447_v28, %v754_v62  ;;  %v798_v7 = vadd.f32 %v1447_v28, %v762_v63 }
  0xbd   : > { %v837_v60 = vmax.f32 %v805_v56, 0.0  ;;  %v845_v61 = vmax.f32 %v813_v57, 0.0 }
  0xbe   : > { %v822_v14 = vmax.f32 %v790_v6, 0.0  ;;  %v830_v15 = vmax.f32 %v798_v7, 0.0 }
  0xbf   : > { %v1216_v0 = vpack.c.bf16 %v837_v60, %v836_v58  ;;  %v1236_v1 = vpack.c.bf16 %v845_v61, %v844_v59 }
  0xc0   : > { %v614_v2 = vpop.f32.mrf.mxu2  ;;  %v634_v3 = vpop.f32.mrf.mxu3 }
  0xc1   : > { %1260 = vst [vmem:[%s1463_s23 + $0x40] sm:$0xff] %v1216_v0   ;;  %v576_v4 = vpop.f32.mrf.mxu0  ;;  %v596_v5 = vpop.f32.mrf.mxu1  ;;  %v770_v12 = vmul.f32 %v1441_v26, %v614_v2  ;;  %v778_v13 = vmul.f32 %v1441_v26, %v634_v3 }
  0xc2   : > { %1264 = vst [vmem:[%s1463_s23 + $0x60] sm:$0xff] %v1236_v1   ;;  %v755_v8 = vmul.f32 %v1441_v26, %v576_v4  ;;  %v763_v9 = vmul.f32 %v1441_v26, %v596_v5 }
  0xc3   : > { %v806_v22 = vadd.f32 %v1447_v28, %v770_v12  ;;  %v814_v23 = vadd.f32 %v1447_v28, %v778_v13 }
  0xc4   : > { %v791_v10 = vadd.f32 %v1447_v28, %v755_v8  ;;  %v799_v11 = vadd.f32 %v1447_v28, %v763_v9 }
  0xc5   : > { %v838_v32 = vmax.f32 %v806_v22, 0.0  ;;  %v846_v33 = vmax.f32 %v814_v23, 0.0 }
  0xc6   : > { %v823_v16 = vmax.f32 %v791_v10, 0.0  ;;  %v831_v17 = vmax.f32 %v799_v11, 0.0 }
  0xc8   : > { %v1181_v18 = vpack.c.bf16 %v823_v16, %v822_v14  ;;  %v1201_v19 = vpack.c.bf16 %v831_v17, %v830_v15  ;;  %v616_v20 = vpop.f32.mrf.mxu2  ;;  %v636_v21 = vpop.f32.mrf.mxu3 }
  0xc9   : > { %v771_v24 = vmul.f32 %v1441_v26, %v616_v20  ;;  %v779_v25 = vmul.f32 %v1441_v26, %v636_v21  ;;  %v579_v27 = vpop.f32.mrf.mxu0  ;;  %v599_v29 = vpop.f32.mrf.mxu1 }
  0xca   : > { %1253 = vst [vmem:[%s1463_s23 + $0x8] sm:$0xff] %v1181_v18   ;;  %v756_v36 = vmul.f32 %v1441_v26, %v579_v27  ;;  %v764_v37 = vmul.f32 %v1441_v26, %v599_v29 }
  0xcb   : > { %1257 = vst [vmem:[%s1463_s23 + $0x28] sm:$0xff] %v1201_v19   ;;  %v807_v30 = vadd.f32 %v1447_v28, %v771_v24  ;;  %v815_v31 = vadd.f32 %v1447_v28, %v779_v25 }
  0xcc   : > { %v792_v44 = vadd.f32 %v1447_v28, %v756_v36  ;;  %v800_v45 = vadd.f32 %v1447_v28, %v764_v37 }
  0xcd   : > { %v839_v34 = vmax.f32 %v807_v30, 0.0  ;;  %v847_v35 = vmax.f32 %v815_v31, 0.0 }
  0xce   : > { %v824_v52 = vmax.f32 %v792_v44, 0.0  ;;  %v832_v53 = vmax.f32 %v800_v45, 0.0 }
  0xcf   : > { %v1221_v38 = vpack.c.bf16 %v839_v34, %v838_v32  ;;  %v1241_v39 = vpack.c.bf16 %v847_v35, %v846_v33 }
  0xd0   : > { %v619_v40 = vpop.f32.mrf.mxu2  ;;  %v639_v41 = vpop.f32.mrf.mxu3 }
  0xd1   : > { %1261 = vst [vmem:[%s1463_s23 + $0x48] sm:$0xff] %v1221_v38   ;;  %v581_v42 = vpop.f32.mrf.mxu0  ;;  %v601_v43 = vpop.f32.mrf.mxu1  ;;  %v772_v50 = vmul.f32 %v1441_v26, %v619_v40  ;;  %v780_v51 = vmul.f32 %v1441_v26, %v639_v41 }
  0xd2   : > { %1265 = vst [vmem:[%s1463_s23 + $0x68] sm:$0xff] %v1241_v39   ;;  %v757_v46 = vmul.f32 %v1441_v26, %v581_v42  ;;  %v765_v47 = vmul.f32 %v1441_v26, %v601_v43 }
  0xd3   : > { %v808_v60 = vadd.f32 %v1447_v28, %v772_v50  ;;  %v816_v61 = vadd.f32 %v1447_v28, %v780_v51 }
  0xd4   : > { %v793_v48 = vadd.f32 %v1447_v28, %v757_v46  ;;  %v801_v49 = vadd.f32 %v1447_v28, %v765_v47 }
  0xd5   : > { %v840_v4 = vmax.f32 %v808_v60, 0.0  ;;  %v848_v5 = vmax.f32 %v816_v61, 0.0 }
  0xd6   : > { %v825_v54 = vmax.f32 %v793_v48, 0.0  ;;  %v833_v55 = vmax.f32 %v801_v49, 0.0 }
  0xd8   : > { %v1186_v56 = vpack.c.bf16 %v825_v54, %v824_v52  ;;  %v1206_v57 = vpack.c.bf16 %v833_v55, %v832_v53  ;;  %v621_v58 = vpop.f32.mrf.mxu2  ;;  %v641_v59 = vpop.f32.mrf.mxu3 }
  0xd9   : > { %v773_v62 = vmul.f32 %v1441_v26, %v621_v58  ;;  %v781_v63 = vmul.f32 %v1441_v26, %v641_v59  ;;  %v584_v0 = vpop.f32.mrf.mxu0  ;;  %v604_v1 = vpop.f32.mrf.mxu1 }
  0xda   : > { %1254 = vst [vmem:[%s1463_s23 + $0x10] sm:$0xff] %v1186_v56   ;;  %v758_v8 = vmul.f32 %v1441_v26, %v584_v0  ;;  %v766_v9 = vmul.f32 %v1441_v26, %v604_v1 }
  0xdb   : > { %1258 = vst [vmem:[%s1463_s23 + $0x30] sm:$0xff] %v1206_v57   ;;  %v809_v2 = vadd.f32 %v1447_v28, %v773_v62  ;;  %v817_v3 = vadd.f32 %v1447_v28, %v781_v63 }
  0xdc   : > { %v794_v16 = vadd.f32 %v1447_v28, %v758_v8  ;;  %v802_v17 = vadd.f32 %v1447_v28, %v766_v9 }
  0xdd   : > { %v841_v6 = vmax.f32 %v809_v2, 0.0  ;;  %v849_v7 = vmax.f32 %v817_v3, 0.0 }
  0xde   : > { %v826_v24 = vmax.f32 %v794_v16, 0.0  ;;  %v834_v25 = vmax.f32 %v802_v17, 0.0 }
  0xdf   : > { %v1226_v10 = vpack.c.bf16 %v841_v6, %v840_v4  ;;  %v1246_v11 = vpack.c.bf16 %v849_v7, %v848_v5 }
  0xe0   : > { %v624_v12 = vpop.f32.mrf.mxu2  ;;  %v644_v13 = vpop.f32.mrf.mxu3 }
  0xe1   : > { %1262 = vst [vmem:[%s1463_s23 + $0x50] sm:$0xff] %v1226_v10   ;;  %v586_v14 = vpop.f32.mrf.mxu0  ;;  %v606_v15 = vpop.f32.mrf.mxu1  ;;  %v774_v22 = vmul.f32 %v1441_v26, %v624_v12  ;;  %v782_v23 = vmul.f32 %v1441_v26, %v644_v13 }
  0xe2   : > { %1266 = vst [vmem:[%s1463_s23 + $0x70] sm:$0xff] %v1246_v11   ;;  %v759_v18 = vmul.f32 %v1441_v26, %v586_v14  ;;  %v767_v19 = vmul.f32 %v1441_v26, %v606_v15 }
  0xe3   : > { %v810_v34 = vadd.f32 %v1447_v28, %v774_v22  ;;  %v818_v35 = vadd.f32 %v1447_v28, %v782_v23 }
  0xe4   : > { %v795_v20 = vadd.f32 %v1447_v28, %v759_v18  ;;  %v803_v21 = vadd.f32 %v1447_v28, %v767_v19 }
  0xe5   : > { %v842_v40 = vmax.f32 %v810_v34, 0.0  ;;  %v850_v41 = vmax.f32 %v818_v35, 0.0 }
  0xe6   : > { %v827_v27 = vmax.f32 %v795_v20, 0.0  ;;  %v835_v29 = vmax.f32 %v803_v21, 0.0 }
  0xe8   : > { %v1191_v30 = vpack.c.bf16 %v827_v27, %v826_v24  ;;  %v1211_v31 = vpack.c.bf16 %v835_v29, %v834_v25  ;;  %v626_v32 = vpop.f32.mrf.mxu2  ;;  %v646_v33 = vpop.f32.mrf.mxu3 }
  0xe9   : > { %v775_v36 = vmul.f32 %v1441_v26, %v626_v32  ;;  %v783_v37 = vmul.f32 %v1441_v26, %v646_v33 }
  0xea   : > { %1255 = vst [vmem:[%s1463_s23 + $0x18] sm:$0xff] %v1191_v30  }
  0xeb   : > { %1259 = vst [vmem:[%s1463_s23 + $0x38] sm:$0xff] %v1211_v31   ;;  %v811_v38 = vadd.f32 %v1447_v28, %v775_v36  ;;  %v819_v39 = vadd.f32 %v1447_v28, %v783_v37 }
  0xed   : > { %v843_v42 = vmax.f32 %v811_v38, 0.0  ;;  %v851_v43 = vmax.f32 %v819_v39, 0.0 }
  0xef   : > { %v1231_v44 = vpack.c.bf16 %v843_v42, %v842_v40  ;;  %v1251_v45 = vpack.c.bf16 %v851_v43, %v850_v41 }
  0xf1   : > { %1263 = vst [vmem:[%s1463_s23 + $0x58] sm:$0xff] %v1231_v44  }
  0xf2   : > { %1267 = vst [vmem:[%s1463_s23 + $0x78] sm:$0xff] %v1251_v45  }
  0xf3 PF: > { %s14_s17 = sadd.s32 1, %s1340_s17   ;;  %s1549_s15 = smov %s1336_s16 }
  0xf4   : > { %p11_p5 = scmp.ge.s32.totalorder %s14_s17, 4   ;;  %s1550_s16 = smov %s1552_s18 }
  0xf6   :  { %13 = sbr.rel (!%p11_p5) target bundleno = 2 (0x2), region = 83 }

// kernel: rgb_point_model_forward.13
= control target key start
LH: loop header
LB: loop body
LE: loop exit
PB: predicated region body
PF: predicated region fallthrough
CT: control target
= control target key end

     0   :  { %s1371_s1 = inlined_call_operand.vmem [shape: bf16[384,128], index: 1, kind: input, shape index: {}]   ;;  %s1372_s0 = inlined_call_operand.vmem [shape: bf16[128,384], index: 0, kind: input, shape index: {}]   ;;  %s1373_s2 = inlined_call_operand.vmem [shape: f32[1,128], index: 2, kind: input, shape index: {}]   ;;  %s1374_s3 = inlined_call_operand.vmem [shape: f32[1,128], index: 3, kind: input, shape index: {}]   ;;  %s1375_s4 = inlined_call_operand.vmem [shape: bf16[128,128], index: 4, kind: output, shape index: {}]  }
   0x1   :  { %v918_v0 = vld [vmem:[%s1371_s1 + $0x38] sm:$0xff]  ;;  %v917_v3 = vld [vmem:[%s1371_s1 + $0x30] sm:$0xff]  ;;  %v916_v6 = vld [vmem:[%s1371_s1 + $0x28] sm:$0xff] }
   0x2   :  { %v1039_v1 = vld [vmem:[%s1371_s1 + $0x78] sm:$0xff]  ;;  %405 = vmatpush.bf16.msra.mxu0 %v918_v0  ;;  %982 = vmatpush.bf16.msra.mxu3 %v918_v0  ;;  %v1054_v4 = vld [vmem:[%s1371_s1 + $0x70] sm:$0xff]  ;;  %v924_v7 = vld [vmem:[%s1371_s1 + $0x68] sm:$0xff] }
   0x3   :  { %v1044_v2 = vld [vmem:[%s1371_s1 + $0xb8] sm:$0xff]  ;;  %454 = vmatpush.bf16.msra.mxu1 %v1039_v1  ;;  %v1059_v5 = vld [vmem:[%s1371_s1 + $0xb0] sm:$0xff]  ;;  %v1072_v8 = vld [vmem:[%s1371_s1 + $0xa8] sm:$0xff] }
   0x4   :  { %503 = vmatpush.bf16.msra.mxu2 %v1044_v2  ;;  %v915_v9 = vld [vmem:[%s1371_s1 + $0x20] sm:$0xff]  ;;  %v914_v12 = vld [vmem:[%s1371_s1 + $0x18] sm:$0xff]  ;;  %v913_v15 = vld [vmem:[%s1371_s1 + $0x10] sm:$0xff] }
   0x5   :  { %v1081_v10 = vld [vmem:[%s1371_s1 + $0x60] sm:$0xff]  ;;  %v922_v13 = vld [vmem:[%s1371_s1 + $0x58] sm:$0xff]  ;;  %v921_v16 = vld [vmem:[%s1371_s1 + $0x50] sm:$0xff] }
   0x6   :  { %406 = vmatpush.bf16.msra.mxu0 %v917_v3  ;;  %983 = vmatpush.bf16.msra.mxu3 %v917_v3  ;;  %v1086_v11 = vld [vmem:[%s1371_s1 + $0xa0] sm:$0xff]  ;;  %v1099_v14 = vld [vmem:[%s1371_s1 + $0x98] sm:$0xff]  ;;  %v1111_v17 = vld [vmem:[%s1371_s1 + $0x90] sm:$0xff] }
   0x7   :  { %455 = vmatpush.bf16.msra.mxu1 %v1054_v4  ;;  %v912_v18 = vld [vmem:[%s1371_s1 + $0x8] sm:$0xff]  ;;  %v911_v21 = vld [vmem:[%s1371_s1] sm:$0xff]  ;;  %v769_v26 = vld [vmem:[%s1372_s0 + $0x90] sm:$0xf] }
   0x8   :  { %504 = vmatpush.bf16.msra.mxu2 %v1059_v5  ;;  %v920_v19 = vld [vmem:[%s1371_s1 + $0x48] sm:$0xff]  ;;  %v919_v22 = vld [vmem:[%s1371_s1 + $0x40] sm:$0xff]  ;;  %v906_v27 = vld [vmem:[%s1372_s0 + $0x98] sm:$0xf0] }
   0x9   :  { %v1123_v20 = vld [vmem:[%s1371_s1 + $0x88] sm:$0xff]  ;;  %v1134_v23 = vld [vmem:[%s1371_s1 + $0x80] sm:$0xff]  ;;  %v699_v29 = vld [vmem:[%s1372_s0 + $0xc] sm:$0xf0]  ;;  %v770_v33 = vor.u32 %v906_v27, %v769_v26 }
   0xa   :  { %407 = vmatpush.bf16.msra.mxu0 %v916_v6  ;;  %984 = vmatpush.bf16.msra.mxu3 %v916_v6  ;;  %v697_v24 = vld [vmem:[%s1372_s0] sm:$0xf]  ;;  %v888_v25 = vld [vmem:[%s1372_s0 + $0x8] sm:$0xf0]  ;;  %v887_v28 = vld [vmem:[%s1372_s0 + $0x4] sm:$0xf] }
   0xb   :  { %456 = vmatpush.bf16.msra.mxu1 %v924_v7  ;;  %v705_v30 = vld [vmem:[%s1372_s0 + $0x8] sm:$0xf]  ;;  %v889_v31 = vld [vmem:[%s1372_s0 + $0x10] sm:$0xf0]  ;;  %v698_v32 = vor.u32 %v888_v25, %v697_v24  ;;  %v702_v34 = vor.u32 %v887_v28, %v699_v29  ;;  %v709_v36 = vld [vmem:[%s1372_s0 + $0x18] sm:$0xf] }
   0xc   :  { %505 = vmatpush.bf16.msra.mxu2 %v1072_v8  ;;  %v706_v35 = vor.u32 %v889_v31, %v705_v30  ;;  %v891_v37 = vld [vmem:[%s1372_s0 + $0x20] sm:$0xf0]  ;;  %v781_v38 = vld [vmem:[%s1372_s0 + $0xa8] sm:$0xf]  ;;  %v909_v39 = vld [vmem:[%s1372_s0 + $0xb0] sm:$0xf0] }
   0xd   :  { %v890_v40 = vld [vmem:[%s1372_s0 + $0x1c] sm:$0xf]  ;;  %v711_v41 = vld [vmem:[%s1372_s0 + $0x24] sm:$0xf0]  ;;  %v717_v42 = vld [vmem:[%s1372_s0 + $0x20] sm:$0xf]  ;;  %v710_v44 = vor.u32 %v891_v37, %v709_v36  ;;  %v782_v45 = vor.u32 %v909_v39, %v781_v38 }
   0xe   :  { %408 = vmatpush.bf16.msra.mxu0 %v915_v9  ;;  %985 = vmatpush.bf16.msra.mxu3 %v915_v9  ;;  %v892_v43 = vld [vmem:[%s1372_s0 + $0x28] sm:$0xf0]  ;;  %v714_v46 = vor.u32 %v890_v40, %v711_v41  ;;  %v721_v48 = vld [vmem:[%s1372_s0 + $0x30] sm:$0xf]  ;;  %v894_v49 = vld [vmem:[%s1372_s0 + $0x38] sm:$0xf0] }
   0xf   :  { %457 = vmatpush.bf16.msra.mxu1 %v1081_v10  ;;  %v718_v47 = vor.u32 %v892_v43, %v717_v42  ;;  %v893_v50 = vld [vmem:[%s1372_s0 + $0x34] sm:$0xf]  ;;  %v771_v52 = vld [vmem:[%s1372_s0 + $0x9c] sm:$0xf0]  ;;  %v729_v54 = vld [vmem:[%s1372_s0 + $0x38] sm:$0xf]  ;;  %v722_v56 = vor.u32 %v894_v49, %v721_v48 }
  0x10   :  { %506 = vmatpush.bf16.msra.mxu2 %v1086_v11  ;;  %v905_v51 = vld [vmem:[%s1372_s0 + $0x94] sm:$0xf]  ;;  %v723_v53 = vld [vmem:[%s1372_s0 + $0x3c] sm:$0xf0]  ;;  %v895_v55 = vld [vmem:[%s1372_s0 + $0x40] sm:$0xf0] }
  0x11   :  { %v774_v57 = vor.u32 %v905_v51, %v771_v52  ;;  %v726_v58 = vor.u32 %v893_v50, %v723_v53  ;;  %v730_v59 = vor.u32 %v895_v55, %v729_v54  ;;  %v733_v60 = vld [vmem:[%s1372_s0 + $0x48] sm:$0xf]  ;;  %v897_v61 = vld [vmem:[%s1372_s0 + $0x50] sm:$0xf0]  ;;  %v896_v62 = vld [vmem:[%s1372_s0 + $0x4c] sm:$0xf] }
  0x12   :  { %409 = vmatpush.bf16.msra.mxu0 %v914_v12  ;;  %986 = vmatpush.bf16.msra.mxu3 %v914_v12  ;;  %v908_v63 = vld [vmem:[%s1372_s0 + $0xac] sm:$0xf]  ;;  %v783_v0 = vld [vmem:[%s1372_s0 + $0xb4] sm:$0xf0]  ;;  %v898_v3 = vld [vmem:[%s1372_s0 + $0x58] sm:$0xf0] }
  0x13   :  { %458 = vmatpush.bf16.msra.mxu1 %v922_v13  ;;  %v900_v9 = vld [vmem:[%s1372_s0 + $0x68] sm:$0xf0]  ;;  %v907_v12 = vld [vmem:[%s1372_s0 + $0xa0] sm:$0xf0]  ;;  %v910_v24 = vld [vmem:[%s1372_s0 + $0xb8] sm:$0xf0] }
  0x14   :  { %507 = vmatpush.bf16.msra.mxu2 %v1099_v14  ;;  %v759_v25 = vld [vmem:[%s1372_s0 + $0x84] sm:$0xf0]  ;;  %v765_v26 = vld [vmem:[%s1372_s0 + $0x80] sm:$0xf]  ;;  %v904_v27 = vld [vmem:[%s1372_s0 + $0x88] sm:$0xf0] }
  0x15   :  { %v766_v31 = vor.u32 %v904_v27, %v765_v26  ;;  %v1298_v40 = vld [vmem:[%s1373_s2] ss:$0 sm:$0xff] }
  0x16   :  { %410 = vmatpush.bf16.msra.mxu0 %v913_v15  ;;  %987 = vmatpush.bf16.msra.mxu3 %v913_v15  ;;  %v901_v15 = vld [vmem:[%s1372_s0 + $0x70] sm:$0xf0]  ;;  %v1304_v42 = vld [vmem:[%s1374_s3] ss:$0 sm:$0xff] }
  0x17   :  { %459 = vmatpush.bf16.msra.mxu1 %v921_v16 }
  0x18   :  { %508 = vmatpush.bf16.msra.mxu2 %v1111_v17 }
  0x1a   :  { %411 = vmatpush.bf16.msra.mxu0 %v912_v18  ;;  %988 = vmatpush.bf16.msra.mxu3 %v912_v18 }
  0x1b   :  { %460 = vmatpush.bf16.msra.mxu1 %v920_v19 }
  0x1c   :  { %509 = vmatpush.bf16.msra.mxu2 %v1123_v20 }
  0x1e   :  { %412 = vmatpush.bf16.msra.mxu0 %v911_v21  ;;  %989 = vmatpush.bf16.msra.mxu3 %v911_v21  ;;  %v903_v21 = vld [vmem:[%s1372_s0 + $0x80] sm:$0xf0] }
  0x1f   :  { %461 = vmatpush.bf16.msra.mxu1 %v919_v22 }
  0x20   :  { %510 = vmatpush.bf16.msra.mxu2 %v1134_v23 }
  0x21   :  { %413 = vmatmul.bf16.vlgmr.msra.gmra.mxu0 %v698_v32  ;;  %443 = vmatmul.bf16.vlgmr.msra.gmra.mxu3 %v770_v33 }
  0x22   :  { %990 = vmatpush.bf16.msrb.mxu3 %v1039_v1  ;;  %462 = vmatmul.bf16.vlgmr.msra.gmra.mxu1 %v702_v34  ;;  %v735_v1 = vld [vmem:[%s1372_s0 + $0x54] sm:$0xf0] }
  0x23   :  { %511 = vmatmul.bf16.vlgmr.msra.gmra.mxu2 %v706_v35  ;;  %v738_v6 = vor.u32 %v896_v62, %v735_v1 }
  0x26   :  { %991 = vmatpush.bf16.msrb.mxu3 %v1054_v4  ;;  %v734_v4 = vor.u32 %v897_v61, %v733_v60 }
  0x2a   :  { %992 = vmatpush.bf16.msrb.mxu3 %v924_v7 }
  0x2e   :  { %993 = vmatpush.bf16.msrb.mxu3 %v1081_v10  ;;  %v899_v10 = vld [vmem:[%s1372_s0 + $0x64] sm:$0xf] }
  0x31   :  { %418 = vmatmul.bf16.gmra.mxu0 %v710_v44  ;;  %448 = vmatmul.bf16.gmra.mxu3 %v782_v45 }
  0x32   :  { %994 = vmatpush.bf16.msrb.mxu3 %v922_v13  ;;  %467 = vmatmul.bf16.gmra.mxu1 %v714_v46  ;;  %v747_v13 = vld [vmem:[%s1372_s0 + $0x6c] sm:$0xf0] }
  0x33   :  { %516 = vmatmul.bf16.gmra.mxu2 %v718_v47  ;;  %v750_v18 = vor.u32 %v899_v10, %v747_v13 }
  0x36   :  { %995 = vmatpush.bf16.msrb.mxu3 %v921_v16 }
  0x3a   :  { %996 = vmatpush.bf16.msrb.mxu3 %v920_v19 }
  0x3e   :  { %997 = vmatpush.bf16.msrb.mxu3 %v919_v22  ;;  %v902_v22 = vld [vmem:[%s1372_s0 + $0x7c] sm:$0xf] }
  0x3f   :  { %v762_v30 = vor.u32 %v902_v22, %v759_v25 }
  0x41   :  { %423 = vmatmul.bf16.gmra.mxu0 %v722_v56  ;;  %492 = vmatmul.bf16.vlgmr.msrb.gmra.mxu3 %v774_v57 }
  0x42   :  { %998 = vmatpush.bf16.msra.mxu3 %v1044_v2  ;;  %472 = vmatmul.bf16.gmra.mxu1 %v726_v58  ;;  %v741_v2 = vld [vmem:[%s1372_s0 + $0x50] sm:$0xf] }
  0x43   :  { %521 = vmatmul.bf16.gmra.mxu2 %v730_v59  ;;  %v742_v7 = vor.u32 %v898_v3, %v741_v2 }
  0x46   :  { %999 = vmatpush.bf16.msra.mxu3 %v1059_v5  ;;  %v786_v5 = vor.u32 %v908_v63, %v783_v0 }
  0x4a   :  { %1000 = vmatpush.bf16.msra.mxu3 %v1072_v8  ;;  %v745_v8 = vld [vmem:[%s1372_s0 + $0x60] sm:$0xf] }
  0x4b   :  { %v746_v16 = vor.u32 %v900_v9, %v745_v8 }
  0x4e   :  { %1001 = vmatpush.bf16.msra.mxu3 %v1086_v11  ;;  %v777_v11 = vld [vmem:[%s1372_s0 + $0x98] sm:$0xf] }
  0x51   :  { %428 = vmatmul.bf16.gmra.mxu0 %v734_v4  ;;  %497 = vmatmul.bf16.gmra.mxu3 %v786_v5 }
  0x52   :  { %1002 = vmatpush.bf16.msra.mxu3 %v1099_v14  ;;  %477 = vmatmul.bf16.gmra.mxu1 %v738_v6  ;;  %v753_v14 = vld [vmem:[%s1372_s0 + $0x68] sm:$0xf] }
  0x53   :  { %526 = vmatmul.bf16.gmra.mxu2 %v742_v7  ;;  %v754_v19 = vor.u32 %v901_v15, %v753_v14 }
  0x56   :  { %1003 = vmatpush.bf16.msra.mxu3 %v1111_v17  ;;  %v778_v17 = vor.u32 %v907_v12, %v777_v11 }
  0x5a   :  { %1004 = vmatpush.bf16.msra.mxu3 %v1123_v20  ;;  %v757_v20 = vld [vmem:[%s1372_s0 + $0x78] sm:$0xf] }
  0x5b   :  { %v758_v28 = vor.u32 %v903_v21, %v757_v20 }
  0x5e   :  { %1005 = vmatpush.bf16.msra.mxu3 %v1134_v23  ;;  %v789_v23 = vld [vmem:[%s1372_s0 + $0xb0] sm:$0xf] }
  0x5f   :  { %v790_v29 = vor.u32 %v910_v24, %v789_v23 }
  0x61   :  { %433 = vmatmul.bf16.gmra.mxu0 %v746_v16  ;;  %541 = vmatmul.bf16.vlgmr.msra.gmra.mxu3 %v778_v17 }
  0x62   :  { %482 = vmatmul.bf16.gmra.mxu1 %v750_v18 }
  0x63   :  { %531 = vmatmul.bf16.gmra.mxu2 %v754_v19 }
  0x71   :  { %438 = vmatmul.bf16.gmra.mxu0 %v758_v28  ;;  %546 = vmatmul.bf16.gmra.mxu3 %v790_v29 }
  0x72   :  { %487 = vmatmul.bf16.gmra.mxu1 %v762_v30 }
  0x73   :  { %536 = vmatmul.bf16.gmra.mxu2 %v766_v31 }
  0x9e   :  { %v414_v32 = vpop.f32.mrf.mxu0 }
  0x9f   :  { %v463_v33 = vpop.f32.mrf.mxu1 }
  0xa0   :  { %v464_v34 = vadd.f32 %v463_v33, %v414_v32 }
  0xa4   :  { %v1293_v35 = vpop.f32.mrf.mxu3 }
  0xa6   :  { %v512_v36 = vpop.f32.mrf.mxu2  ;;  %v416_v37 = vpop.f32.mrf.mxu0 }
  0xa7   :  { %v465_v38 = vpop.f32.mrf.mxu1  ;;  %v513_v39 = vadd.f32 %v512_v36, %v464_v34 }
  0xa8   :  { %v466_v43 = vadd.f32 %v465_v38, %v416_v37 }
  0xa9   :  { %v607_v41 = vmul.f32 %v1298_v40, %v513_v39 }
  0xab   :  { %v627_v49 = vadd.f32 %v1304_v42, %v607_v41 }
  0xac   :  { %v1306_v44 = vpop.f32.mrf.mxu3 }
  0xad   :  { %v643_v52 = vmax.f32 %v627_v49, 0.0 }
  0xae   :  { %v514_v45 = vpop.f32.mrf.mxu2  ;;  %v419_v47 = vpop.f32.mrf.mxu0 }
  0xaf   :  { %v515_v46 = vadd.f32 %v514_v45, %v466_v43  ;;  %v468_v48 = vpop.f32.mrf.mxu1 }
  0xb0   :  { %v469_v54 = vadd.f32 %v468_v48, %v419_v47 }
  0xb1   :  { %v608_v50 = vmul.f32 %v1298_v40, %v515_v46 }
  0xb3   :  { %v628_v51 = vadd.f32 %v1304_v42, %v608_v50 }
  0xb4   :  { %v1311_v55 = vpop.f32.mrf.mxu3 }
  0xb5   :  { %v644_v53 = vmax.f32 %v628_v51, 0.0 }
  0xb6   :  { %v517_v56 = vpop.f32.mrf.mxu2  ;;  %v421_v58 = vpop.f32.mrf.mxu0 }
  0xb7   :  { %v938_v57 = vpack.c.bf16 %v644_v53, %v643_v52  ;;  %v470_v59 = vpop.f32.mrf.mxu1  ;;  %v518_v60 = vadd.f32 %v517_v56, %v469_v54 }
  0xb8   :  { %v471_v62 = vadd.f32 %v470_v59, %v421_v58 }
  0xb9   :  { %939 = vst [vmem:[%s1375_s4] sm:$0xff] %v938_v57   ;;  %v609_v61 = vmul.f32 %v1298_v40, %v518_v60 }
  0xbb   :  { %v629_v4 = vadd.f32 %v1304_v42, %v609_v61 }
  0xbc   :  { %v1317_v63 = vpop.f32.mrf.mxu3 }
  0xbd   :  { %v645_v7 = vmax.f32 %v629_v4, 0.0 }
  0xbe   :  { %v519_v0 = vpop.f32.mrf.mxu2  ;;  %v424_v2 = vpop.f32.mrf.mxu0 }
  0xbf   :  { %v520_v1 = vadd.f32 %v519_v0, %v471_v62  ;;  %v473_v3 = vpop.f32.mrf.mxu1 }
  0xc0   :  { %v474_v9 = vadd.f32 %v473_v3, %v424_v2 }
  0xc1   :  { %v610_v5 = vmul.f32 %v1298_v40, %v520_v1 }
  0xc3   :  { %v630_v6 = vadd.f32 %v1304_v42, %v610_v5 }
  0xc4   :  { %v493_v10 = vpop.f32.mrf.mxu3 }
  0xc5   :  { %v646_v8 = vmax.f32 %v630_v6, 0.0  ;;  %v494_v53 = vadd.f32 %v493_v10, %v1293_v35 }
  0xc6   :  { %v522_v11 = vpop.f32.mrf.mxu2  ;;  %v426_v13 = vpop.f32.mrf.mxu0 }
  0xc7   :  { %v943_v12 = vpack.c.bf16 %v646_v8, %v645_v7  ;;  %v475_v14 = vpop.f32.mrf.mxu1  ;;  %v523_v15 = vadd.f32 %v522_v11, %v474_v9 }
  0xc8   :  { %v476_v17 = vadd.f32 %v475_v14, %v426_v13 }
  0xc9   :  { %975 = vst [vmem:[%s1375_s4 + $0x8] sm:$0xff] %v943_v12   ;;  %v611_v16 = vmul.f32 %v1298_v40, %v523_v15 }
  0xcb   :  { %v631_v23 = vadd.f32 %v1304_v42, %v611_v16 }
  0xcc   :  { %v495_v18 = vpop.f32.mrf.mxu3 }
  0xcd   :  { %v647_v26 = vmax.f32 %v631_v23, 0.0  ;;  %v496_v61 = vadd.f32 %v495_v18, %v1306_v44 }
  0xce   :  { %v524_v19 = vpop.f32.mrf.mxu2  ;;  %v429_v21 = vpop.f32.mrf.mxu0 }
  0xcf   :  { %v525_v20 = vadd.f32 %v524_v19, %v476_v17  ;;  %v478_v22 = vpop.f32.mrf.mxu1 }
  0xd0   :  { %v479_v28 = vadd.f32 %v478_v22, %v429_v21 }
  0xd1   :  { %v612_v24 = vmul.f32 %v1298_v40, %v525_v20 }
  0xd3   :  { %v632_v25 = vadd.f32 %v1304_v42, %v612_v24 }
  0xd4   :  { %v498_v29 = vpop.f32.mrf.mxu3 }
  0xd5   :  { %v648_v27 = vmax.f32 %v632_v25, 0.0  ;;  %v499_v18 = vadd.f32 %v498_v29, %v1311_v55 }
  0xd6   :  { %v527_v30 = vpop.f32.mrf.mxu2  ;;  %v431_v32 = vpop.f32.mrf.mxu0 }
  0xd7   :  { %v948_v31 = vpack.c.bf16 %v648_v27, %v647_v26  ;;  %v480_v33 = vpop.f32.mrf.mxu1  ;;  %v528_v34 = vadd.f32 %v527_v30, %v479_v28 }
  0xd8   :  { %v481_v37 = vadd.f32 %v480_v33, %v431_v32 }
  0xd9   :  { %976 = vst [vmem:[%s1375_s4 + $0x10] sm:$0xff] %v948_v31   ;;  %v613_v36 = vmul.f32 %v1298_v40, %v528_v34 }
  0xdb   :  { %v633_v46 = vadd.f32 %v1304_v42, %v613_v36 }
  0xdc   :  { %v500_v38 = vpop.f32.mrf.mxu3 }
  0xdd   :  { %v649_v49 = vmax.f32 %v633_v46, 0.0  ;;  %v501_v26 = vadd.f32 %v500_v38, %v1317_v63 }
  0xde   :  { %v529_v39 = vpop.f32.mrf.mxu2  ;;  %v434_v43 = vpop.f32.mrf.mxu0 }
  0xdf   :  { %v530_v41 = vadd.f32 %v529_v39, %v481_v37  ;;  %v483_v45 = vpop.f32.mrf.mxu1 }
  0xe0   :  { %v484_v51 = vadd.f32 %v483_v45, %v434_v43 }
  0xe1   :  { %v614_v47 = vmul.f32 %v1298_v40, %v530_v41 }
  0xe3   :  { %v634_v48 = vadd.f32 %v1304_v42, %v614_v47 }
  0xe4   :  { %v542_v52 = vpop.f32.mrf.mxu3 }
  0xe5   :  { %v650_v50 = vmax.f32 %v634_v48, 0.0  ;;  %v543_v58 = vadd.f32 %v542_v52, %v494_v53 }
  0xe6   :  { %v532_v54 = vpop.f32.mrf.mxu2  ;;  %v436_v57 = vpop.f32.mrf.mxu0 }
  0xe7   :  { %v953_v56 = vpack.c.bf16 %v650_v50, %v649_v49  ;;  %v485_v59 = vpop.f32.mrf.mxu1  ;;  %v533_v60 = vadd.f32 %v532_v54, %v484_v51  ;;  %v619_v62 = vmul.f32 %v1298_v40, %v543_v58 }
  0xe8   :  { %v486_v1 = vadd.f32 %v485_v59, %v436_v57 }
  0xe9   :  { %977 = vst [vmem:[%s1375_s4 + $0x18] sm:$0xff] %v953_v56   ;;  %v615_v0 = vmul.f32 %v1298_v40, %v533_v60  ;;  %v639_v5 = vadd.f32 %v1304_v42, %v619_v62 }
  0xeb   :  { %v635_v9 = vadd.f32 %v1304_v42, %v615_v0  ;;  %v655_v12 = vmax.f32 %v639_v5, 0.0 }
  0xec   :  { %v544_v2 = vpop.f32.mrf.mxu3 }
  0xed   :  { %v545_v35 = vadd.f32 %v544_v2, %v496_v61  ;;  %v651_v14 = vmax.f32 %v635_v9, 0.0 }
  0xee   :  { %v534_v3 = vpop.f32.mrf.mxu2  ;;  %v439_v7 = vpop.f32.mrf.mxu0 }
  0xef   :  { %v535_v4 = vadd.f32 %v534_v3, %v486_v1  ;;  %v620_v6 = vmul.f32 %v1298_v40, %v545_v35  ;;  %v488_v8 = vpop.f32.mrf.mxu1 }
  0xf0   :  { %v489_v16 = vadd.f32 %v488_v8, %v439_v7 }
  0xf1   :  { %v616_v10 = vmul.f32 %v1298_v40, %v535_v4  ;;  %v640_v44 = vadd.f32 %v1304_v42, %v620_v6 }
  0xf3   :  { %v636_v11 = vadd.f32 %v1304_v42, %v616_v10  ;;  %v656_v13 = vmax.f32 %v640_v44, 0.0 }
  0xf4   :  { %v547_v17 = vpop.f32.mrf.mxu3 }
  0xf5   :  { %v652_v15 = vmax.f32 %v636_v11, 0.0  ;;  %v968_v19 = vpack.c.bf16 %v656_v13, %v655_v12  ;;  %v548_v22 = vadd.f32 %v547_v17, %v499_v18 }
  0xf6   :  { %v537_v20 = vpop.f32.mrf.mxu2  ;;  %v441_v24 = vpop.f32.mrf.mxu0 }
  0xf7   :  { %v958_v21 = vpack.c.bf16 %v652_v15, %v651_v14  ;;  %980 = vst [vmem:[%s1375_s4 + $0x30] sm:$0xff] %v968_v19   ;;  %v538_v23 = vadd.f32 %v537_v20, %v489_v16  ;;  %v490_v25 = vpop.f32.mrf.mxu1  ;;  %v621_v27 = vmul.f32 %v1298_v40, %v548_v22 }
  0xf8   :  { %v491_v28 = vadd.f32 %v490_v25, %v441_v24 }
  0xf9   :  { %978 = vst [vmem:[%s1375_s4 + $0x20] sm:$0xff] %v958_v21   ;;  %v617_v55 = vmul.f32 %v1298_v40, %v538_v23  ;;  %v641_v33 = vadd.f32 %v1304_v42, %v621_v27 }
  0xfb   :  { %v637_v36 = vadd.f32 %v1304_v42, %v617_v55  ;;  %v657_v38 = vmax.f32 %v641_v33, 0.0 }
  0xfc   :  { %v549_v29 = vpop.f32.mrf.mxu3 }
  0xfd   :  { %v550_v31 = vadd.f32 %v549_v29, %v501_v26  ;;  %v653_v43 = vmax.f32 %v637_v36, 0.0 }
  0xfe   :  { %v539_v30 = vpop.f32.mrf.mxu2 }
  0xff   :  { %v540_v32 = vadd.f32 %v539_v30, %v491_v28  ;;  %v622_v34 = vmul.f32 %v1298_v40, %v550_v31 }
 0x101   :  { %v618_v37 = vmul.f32 %v1298_v40, %v540_v32  ;;  %v642_v39 = vadd.f32 %v1304_v42, %v622_v34 }
 0x103   :  { %v638_v63 = vadd.f32 %v1304_v42, %v618_v37  ;;  %v658_v41 = vmax.f32 %v642_v39, 0.0 }
 0x105   :  { %v654_v45 = vmax.f32 %v638_v63, 0.0  ;;  %v973_v46 = vpack.c.bf16 %v658_v41, %v657_v38 }
 0x107   :  { %v963_v47 = vpack.c.bf16 %v654_v45, %v653_v43  ;;  %981 = vst [vmem:[%s1375_s4 + $0x38] sm:$0xff] %v973_v46  }
 0x109   :  { %979 = vst [vmem:[%s1375_s4 + $0x28] sm:$0xff] %v963_v47  }

// kernel: rgb_point_model_forward.14
= control target key start
LH: loop header
LB: loop body
LE: loop exit
PB: predicated region body
PF: predicated region fallthrough
CT: control target
= control target key end

     0   :  { %s1043_s1 = inlined_call_operand.vmem [shape: bf16[640,128], index: 1, kind: input, shape index: {}]   ;;  %s1044_s0 = inlined_call_operand.vmem [shape: bf16[32,640], index: 0, kind: input, shape index: {}]   ;;  %s1045_s2 = inlined_call_operand.vmem [shape: f32[1,128], index: 2, kind: input, shape index: {}]   ;;  %s1046_s3 = inlined_call_operand.vmem [shape: f32[1,128], index: 3, kind: input, shape index: {}]   ;;  %s1047_s4 = inlined_call_operand.vmem [shape: bf16[32,128], index: 4, kind: output, shape index: {}]  }
   0x1   :  { %v772_v0 = vld [vmem:[%s1043_s1 + $0x38] sm:$0xff]  ;;  %v771_v4 = vld [vmem:[%s1043_s1 + $0x30] sm:$0xff]  ;;  %v770_v8 = vld [vmem:[%s1043_s1 + $0x28] sm:$0xff] }
   0x2   :  { %v780_v1 = vld [vmem:[%s1043_s1 + $0x78] sm:$0xff]  ;;  %413 = vmatpush.bf16.msra.mxu0 %v772_v0  ;;  %v779_v5 = vld [vmem:[%s1043_s1 + $0x70] sm:$0xff]  ;;  %v778_v9 = vld [vmem:[%s1043_s1 + $0x68] sm:$0xff] }
   0x3   :  { %v788_v2 = vld [vmem:[%s1043_s1 + $0xb8] sm:$0xff]  ;;  %432 = vmatpush.bf16.msra.mxu1 %v780_v1  ;;  %v787_v6 = vld [vmem:[%s1043_s1 + $0xb0] sm:$0xff]  ;;  %v786_v10 = vld [vmem:[%s1043_s1 + $0xa8] sm:$0xff] }
   0x4   :  { %v796_v3 = vld [vmem:[%s1043_s1 + $0xf8] sm:$0xff]  ;;  %451 = vmatpush.bf16.msra.mxu2 %v788_v2  ;;  %v795_v7 = vld [vmem:[%s1043_s1 + $0xf0] sm:$0xff]  ;;  %v794_v11 = vld [vmem:[%s1043_s1 + $0xe8] sm:$0xff] }
   0x5   :  { %470 = vmatpush.bf16.msra.mxu3 %v796_v3  ;;  %v769_v12 = vld [vmem:[%s1043_s1 + $0x20] sm:$0xff]  ;;  %v768_v16 = vld [vmem:[%s1043_s1 + $0x18] sm:$0xff]  ;;  %v767_v20 = vld [vmem:[%s1043_s1 + $0x10] sm:$0xff] }
   0x6   :  { %414 = vmatpush.bf16.msra.mxu0 %v771_v4  ;;  %v777_v13 = vld [vmem:[%s1043_s1 + $0x60] sm:$0xff]  ;;  %v776_v17 = vld [vmem:[%s1043_s1 + $0x58] sm:$0xff]  ;;  %v775_v21 = vld [vmem:[%s1043_s1 + $0x50] sm:$0xff] }
   0x7   :  { %433 = vmatpush.bf16.msra.mxu1 %v779_v5  ;;  %v785_v14 = vld [vmem:[%s1043_s1 + $0xa0] sm:$0xff]  ;;  %v784_v18 = vld [vmem:[%s1043_s1 + $0x98] sm:$0xff]  ;;  %v783_v22 = vld [vmem:[%s1043_s1 + $0x90] sm:$0xff] }
   0x8   :  { %452 = vmatpush.bf16.msra.mxu2 %v787_v6  ;;  %v793_v15 = vld [vmem:[%s1043_s1 + $0xe0] sm:$0xff]  ;;  %v792_v19 = vld [vmem:[%s1043_s1 + $0xd8] sm:$0xff]  ;;  %v791_v23 = vld [vmem:[%s1043_s1 + $0xd0] sm:$0xff] }
   0x9   :  { %471 = vmatpush.bf16.msra.mxu3 %v795_v7  ;;  %v766_v24 = vld [vmem:[%s1043_s1 + $0x8] sm:$0xff]  ;;  %v765_v28 = vld [vmem:[%s1043_s1] sm:$0xff]  ;;  %v757_v33 = vld [vmem:[%s1044_s0 + $0x10] sm:$0xf0] }
   0xa   :  { %415 = vmatpush.bf16.msra.mxu0 %v770_v8  ;;  %v774_v25 = vld [vmem:[%s1043_s1 + $0x48] sm:$0xff]  ;;  %v773_v29 = vld [vmem:[%s1043_s1 + $0x40] sm:$0xff]  ;;  %v559_v35 = vld [vmem:[%s1044_s0 + $0x14] sm:$0xf0] }
   0xb   :  { %434 = vmatpush.bf16.msra.mxu1 %v778_v9  ;;  %v782_v26 = vld [vmem:[%s1043_s1 + $0x88] sm:$0xff]  ;;  %v781_v30 = vld [vmem:[%s1043_s1 + $0x80] sm:$0xff]  ;;  %v758_v37 = vld [vmem:[%s1044_s0 + $0x18] sm:$0xf0] }
   0xc   :  { %453 = vmatpush.bf16.msra.mxu2 %v786_v10  ;;  %v790_v27 = vld [vmem:[%s1043_s1 + $0xc8] sm:$0xff]  ;;  %v789_v31 = vld [vmem:[%s1043_s1 + $0xc0] sm:$0xff]  ;;  %v804_v40 = vld [vmem:[%s1043_s1 + $0x138] sm:$0xff] }
   0xd   :  { %472 = vmatpush.bf16.msra.mxu3 %v794_v11  ;;  %v557_v32 = vld [vmem:[%s1044_s0] sm:$0xf]  ;;  %v755_v34 = vld [vmem:[%s1044_s0 + $0x4] sm:$0xf]  ;;  %v565_v36 = vld [vmem:[%s1044_s0 + $0x8] sm:$0xf] }
   0xe   :  { %416 = vmatpush.bf16.msra.mxu0 %v769_v12  ;;  %v756_v38 = vld [vmem:[%s1044_s0 + $0xc] sm:$0xf]  ;;  %v567_v39 = vld [vmem:[%s1044_s0 + $0x1c] sm:$0xf0]  ;;  %v558_v41 = vor.u32 %v757_v33, %v557_v32  ;;  %v562_v42 = vor.u32 %v755_v34, %v559_v35  ;;  %v566_v43 = vor.u32 %v758_v37, %v565_v36  ;;  %v803_v45 = vld [vmem:[%s1043_s1 + $0x130] sm:$0xff] }
   0xf   :  { %435 = vmatpush.bf16.msra.mxu1 %v777_v13  ;;  %v570_v44 = vor.u32 %v756_v38, %v567_v39  ;;  %v802_v46 = vld [vmem:[%s1043_s1 + $0x128] sm:$0xff]  ;;  %v801_v47 = vld [vmem:[%s1043_s1 + $0x120] sm:$0xff]  ;;  %v762_v49 = vld [vmem:[%s1044_s0 + $0x38] sm:$0xf0] }
  0x10   :  { %454 = vmatpush.bf16.msra.mxu2 %v785_v14  ;;  %v577_v48 = vld [vmem:[%s1044_s0 + $0x28] sm:$0xf]  ;;  %v760_v50 = vld [vmem:[%s1044_s0 + $0x2c] sm:$0xf]  ;;  %v579_v51 = vld [vmem:[%s1044_s0 + $0x3c] sm:$0xf0] }
  0x11   :  { %473 = vmatpush.bf16.msra.mxu3 %v793_v15  ;;  %v585_v52 = vld [vmem:[%s1044_s0 + $0x30] sm:$0xf]  ;;  %v763_v53 = vld [vmem:[%s1044_s0 + $0x40] sm:$0xf0]  ;;  %v761_v54 = vld [vmem:[%s1044_s0 + $0x34] sm:$0xf]  ;;  %v578_v57 = vor.u32 %v762_v49, %v577_v48  ;;  %v582_v58 = vor.u32 %v760_v50, %v579_v51 }
  0x12   :  { %417 = vmatpush.bf16.msra.mxu0 %v768_v16  ;;  %v587_v55 = vld [vmem:[%s1044_s0 + $0x44] sm:$0xf0]  ;;  %v800_v56 = vld [vmem:[%s1043_s1 + $0x118] sm:$0xff]  ;;  %v586_v59 = vor.u32 %v763_v53, %v585_v52  ;;  %v799_v61 = vld [vmem:[%s1043_s1 + $0x110] sm:$0xff] }
  0x13   :  { %436 = vmatpush.bf16.msra.mxu1 %v776_v17  ;;  %v590_v60 = vor.u32 %v761_v54, %v587_v55  ;;  %v798_v62 = vld [vmem:[%s1043_s1 + $0x108] sm:$0xff]  ;;  %v797_v63 = vld [vmem:[%s1043_s1 + $0x100] sm:$0xff]  ;;  %v573_v0 = vld [vmem:[%s1044_s0 + $0x10] sm:$0xf] }
  0x14   :  { %455 = vmatpush.bf16.msra.mxu2 %v784_v18  ;;  %v759_v1 = vld [vmem:[%s1044_s0 + $0x20] sm:$0xf0]  ;;  %v593_v2 = vld [vmem:[%s1044_s0 + $0x38] sm:$0xf]  ;;  %v764_v3 = vld [vmem:[%s1044_s0 + $0x48] sm:$0xf0] }
  0x15   :  { %474 = vmatpush.bf16.msra.mxu3 %v792_v19  ;;  %v574_v4 = vor.u32 %v759_v1, %v573_v0  ;;  %v594_v5 = vor.u32 %v764_v3, %v593_v2  ;;  %v824_v34 = vld [vmem:[%s1045_s2] ss:$0 sm:$0xff] }
  0x16   :  { %418 = vmatpush.bf16.msra.mxu0 %v767_v20 }
  0x17   :  { %437 = vmatpush.bf16.msra.mxu1 %v775_v21 }
  0x18   :  { %456 = vmatpush.bf16.msra.mxu2 %v783_v22 }
  0x19   :  { %475 = vmatpush.bf16.msra.mxu3 %v791_v23 }
  0x1a   :  { %419 = vmatpush.bf16.msra.mxu0 %v766_v24 }
  0x1b   :  { %438 = vmatpush.bf16.msra.mxu1 %v774_v25 }
  0x1c   :  { %457 = vmatpush.bf16.msra.mxu2 %v782_v26 }
  0x1d   :  { %476 = vmatpush.bf16.msra.mxu3 %v790_v27 }
  0x1e   :  { %420 = vmatpush.bf16.msra.mxu0 %v765_v28 }
  0x1f   :  { %439 = vmatpush.bf16.msra.mxu1 %v773_v29 }
  0x20   :  { %458 = vmatpush.bf16.msra.mxu2 %v781_v30 }
  0x21   :  { %477 = vmatpush.bf16.msra.mxu3 %v789_v31  ;;  %421 = vmatmul.bf16.vlgmr.msra.gmra.mxu0 %v558_v41 }
  0x22   :  { %489 = vmatpush.bf16.msrb.mxu0 %v804_v40  ;;  %440 = vmatmul.bf16.vlgmr.msra.gmra.mxu1 %v562_v42 }
  0x23   :  { %816 = vmatpush.bf16.msrb.mxu1 %v804_v40  ;;  %459 = vmatmul.bf16.vlgmr.msra.gmra.mxu2 %v566_v43  ;;  %v825_v40 = vld [vmem:[%s1046_s3] ss:$0 sm:$0xff] }
  0x24   :  { %478 = vmatmul.bf16.vlgmr.msra.gmra.mxu3 %v570_v44 }
  0x26   :  { %490 = vmatpush.bf16.msrb.mxu0 %v803_v45 }
  0x27   :  { %817 = vmatpush.bf16.msrb.mxu1 %v803_v45 }
  0x2a   :  { %491 = vmatpush.bf16.msrb.mxu0 %v802_v46 }
  0x2b   :  { %818 = vmatpush.bf16.msrb.mxu1 %v802_v46 }
  0x2e   :  { %492 = vmatpush.bf16.msrb.mxu0 %v801_v47 }
  0x2f   :  { %819 = vmatpush.bf16.msrb.mxu1 %v801_v47 }
  0x31   :  { %426 = vmatmul.bf16.gmra.mxu0 %v578_v57 }
  0x32   :  { %493 = vmatpush.bf16.msrb.mxu0 %v800_v56  ;;  %445 = vmatmul.bf16.gmra.mxu1 %v582_v58 }
  0x33   :  { %820 = vmatpush.bf16.msrb.mxu1 %v800_v56  ;;  %464 = vmatmul.bf16.gmra.mxu2 %v586_v59 }
  0x34   :  { %483 = vmatmul.bf16.gmra.mxu3 %v590_v60 }
  0x36   :  { %494 = vmatpush.bf16.msrb.mxu0 %v799_v61 }
  0x37   :  { %821 = vmatpush.bf16.msrb.mxu1 %v799_v61 }
  0x3a   :  { %495 = vmatpush.bf16.msrb.mxu0 %v798_v62 }
  0x3b   :  { %822 = vmatpush.bf16.msrb.mxu1 %v798_v62 }
  0x3e   :  { %496 = vmatpush.bf16.msrb.mxu0 %v797_v63 }
  0x3f   :  { %823 = vmatpush.bf16.msrb.mxu1 %v797_v63 }
  0x41   :  { %497 = vmatmul.bf16.vlgmr.msrb.gmra.mxu0 %v574_v4 }
  0x42   :  { %502 = vmatmul.bf16.vlgmr.msrb.gmra.mxu1 %v594_v5 }
  0x9e   :  { %v422_v6 = vpop.f32.mrf.mxu0 }
  0x9f   :  { %v441_v7 = vpop.f32.mrf.mxu1 }
  0xa0   :  { %v442_v19 = vadd.f32 %v441_v7, %v422_v6 }
  0xa6   :  { %v460_v8 = vpop.f32.mrf.mxu2  ;;  %v424_v10 = vpop.f32.mrf.mxu0 }
  0xa7   :  { %v479_v9 = vpop.f32.mrf.mxu3  ;;  %v443_v11 = vpop.f32.mrf.mxu1  ;;  %v461_v22 = vadd.f32 %v460_v8, %v442_v19 }
  0xa8   :  { %v444_v28 = vadd.f32 %v443_v11, %v424_v10 }
  0xa9   :  { %v480_v27 = vadd.f32 %v479_v9, %v461_v22 }
  0xae   :  { %v462_v12 = vpop.f32.mrf.mxu2  ;;  %v427_v13 = vpop.f32.mrf.mxu0 }
  0xaf   :  { %v446_v14 = vpop.f32.mrf.mxu1  ;;  %v481_v15 = vpop.f32.mrf.mxu3  ;;  %v463_v31 = vadd.f32 %v462_v12, %v444_v28 }
  0xb0   :  { %v447_v20 = vadd.f32 %v446_v14, %v427_v13 }
  0xb1   :  { %v482_v37 = vadd.f32 %v481_v15, %v463_v31 }
  0xb6   :  { %v465_v16 = vpop.f32.mrf.mxu2  ;;  %v429_v17 = vpop.f32.mrf.mxu0 }
  0xb7   :  { %v448_v18 = vpop.f32.mrf.mxu1  ;;  %v484_v21 = vpop.f32.mrf.mxu3  ;;  %v466_v23 = vadd.f32 %v465_v16, %v447_v20 }
  0xb8   :  { %v449_v30 = vadd.f32 %v448_v18, %v429_v17 }
  0xb9   :  { %v485_v29 = vadd.f32 %v484_v21, %v466_v23 }
  0xbe   :  { %v467_v24 = vpop.f32.mrf.mxu2  ;;  %v498_v25 = vpop.f32.mrf.mxu0 }
  0xbf   :  { %v503_v26 = vpop.f32.mrf.mxu1  ;;  %v468_v32 = vadd.f32 %v467_v24, %v449_v30  ;;  %v499_v33 = vadd.f32 %v498_v25, %v480_v27  ;;  %v486_v36 = vpop.f32.mrf.mxu3 }
  0xc0   :  { %v504_v35 = vadd.f32 %v503_v26, %v485_v29 }
  0xc1   :  { %v487_v38 = vadd.f32 %v486_v36, %v468_v32  ;;  %v527_v39 = vmul.f32 %v824_v34, %v499_v33 }
  0xc2   :  { %v529_v41 = vmul.f32 %v824_v34, %v504_v35 }
  0xc3   :  { %v535_v46 = vadd.f32 %v825_v40, %v527_v39 }
  0xc4   :  { %v537_v47 = vadd.f32 %v825_v40, %v529_v41 }
  0xc5   :  { %v539_v52 = vmax.f32 %v535_v46, 0.0 }
  0xc6   :  { %v500_v42 = vpop.f32.mrf.mxu0  ;;  %v541_v53 = vmax.f32 %v537_v47, 0.0 }
  0xc7   :  { %v505_v43 = vpop.f32.mrf.mxu1  ;;  %v501_v44 = vadd.f32 %v500_v42, %v482_v37 }
  0xc8   :  { %v506_v45 = vadd.f32 %v505_v43, %v487_v38 }
  0xc9   :  { %v528_v48 = vmul.f32 %v824_v34, %v501_v44 }
  0xca   :  { %v530_v49 = vmul.f32 %v824_v34, %v506_v45 }
  0xcb   :  { %v536_v50 = vadd.f32 %v825_v40, %v528_v48 }
  0xcc   :  { %v538_v51 = vadd.f32 %v825_v40, %v530_v49 }
  0xcd   :  { %v540_v54 = vmax.f32 %v536_v50, 0.0 }
  0xce   :  { %v542_v55 = vmax.f32 %v538_v51, 0.0 }
  0xcf   :  { %v808_v56 = vpack.c.bf16 %v540_v54, %v539_v52 }
  0xd0   :  { %v813_v57 = vpack.c.bf16 %v542_v55, %v541_v53 }
  0xd1   :  { %809 = vst [vmem:[%s1047_s4] sm:$0xff] %v808_v56  }
  0xd2   :  { %815 = vst [vmem:[%s1047_s4 + $0x8] sm:$0xff] %v813_v57  }

// kernel: rgb_point_model_forward.17
= control target key start
LH: loop header
LB: loop body
LE: loop exit
PB: predicated region body
PF: predicated region fallthrough
CT: control target
= control target key end

     0   :  { %s173_s3 = inlined_call_operand.vmem [shape: f32[128,128], index: 3, kind: input, shape index: {}]   ;;  %s174_s1 = inlined_call_operand.vmem [shape: f32[1,128], index: 1, kind: input, shape index: {}]   ;;  %s175_s2 = inlined_call_operand.vmem [shape: f32[1,128], index: 2, kind: input, shape index: {}]   ;;  %s176_s4 = inlined_call_operand.vmem [shape: f32[1,128], index: 4, kind: input, shape index: {}]   ;;  %s177_s0 = inlined_call_operand.vmem [shape: f32[8,128], index: 0, kind: input, shape index: {}]   ;;  %s178_s5 = inlined_call_operand.vmem [shape: f32[8,128], index: 5, kind: output, shape index: {}]  }
   0x1   :  { %v47_v0 = vld [vmem:[%s173_s3 + $0x78] sm:$0xff]  ;;  %v46_v1 = vld [vmem:[%s173_s3 + $0x70] sm:$0xff]  ;;  %v45_v2 = vld [vmem:[%s173_s3 + $0x68] sm:$0xff] }
   0x2   :  { %52 = vmatpush.msra.mxu0 %v47_v0  ;;  %v44_v3 = vld [vmem:[%s173_s3 + $0x60] sm:$0xff]  ;;  %v43_v4 = vld [vmem:[%s173_s3 + $0x58] sm:$0xff]  ;;  %v42_v5 = vld [vmem:[%s173_s3 + $0x50] sm:$0xff] }
   0x3   :  { %v41_v6 = vld [vmem:[%s173_s3 + $0x48] sm:$0xff]  ;;  %v40_v7 = vld [vmem:[%s173_s3 + $0x40] sm:$0xff]  ;;  %v39_v8 = vld [vmem:[%s173_s3 + $0x38] sm:$0xff] }
   0x4   :  { %53 = vmatpush.msra.mxu0 %v46_v1  ;;  %v38_v9 = vld [vmem:[%s173_s3 + $0x30] sm:$0xff]  ;;  %v77_v10 = vld [vmem:[%s174_s1] ss:$0 sm:$0xff]  ;;  %v37_v12 = vld [vmem:[%s173_s3 + $0x28] sm:$0xff] }
   0x5   :  { %v20_v11 = vld [vmem:[%s177_s0] sm:$0xff]  ;;  %v35_v16 = vld [vmem:[%s173_s3 + $0x18] sm:$0xff]  ;;  %v34_v17 = vld [vmem:[%s173_s3 + $0x10] sm:$0xff] }
   0x6   :  { %54 = vmatpush.msra.mxu0 %v45_v2  ;;  %v36_v13 = vld [vmem:[%s173_s3 + $0x20] sm:$0xff]  ;;  %v25_v14 = vmul.f32 %v77_v10, %v20_v11  ;;  %v33_v19 = vld [vmem:[%s173_s3 + $0x8] sm:$0xff] }
   0x7   :  { %v78_v15 = vld [vmem:[%s175_s2] ss:$0 sm:$0xff] }
   0x8   :  { %55 = vmatpush.msra.mxu0 %v44_v3  ;;  %v30_v18 = vadd.f32 %v78_v15, %v25_v14  ;;  %v32_v20 = vld [vmem:[%s173_s3] sm:$0xff] }
   0x9   :  { %v79_v22 = vld [vmem:[%s176_s4] ss:$0 sm:$0xff] }
   0xa   :  { %56 = vmatpush.msra.mxu0 %v43_v4  ;;  %v31_v21 = vmax.f32 %v30_v18, 0.0 }
   0xc   :  { %57 = vmatpush.msra.mxu0 %v42_v5 }
   0xe   :  { %58 = vmatpush.msra.mxu0 %v41_v6 }
  0x10   :  { %59 = vmatpush.msra.mxu0 %v40_v7 }
  0x12   :  { %60 = vmatpush.msra.mxu0 %v39_v8 }
  0x14   :  { %61 = vmatpush.msra.mxu0 %v38_v9 }
  0x16   :  { %62 = vmatpush.msra.mxu0 %v37_v12 }
  0x18   :  { %63 = vmatpush.msra.mxu0 %v36_v13 }
  0x1a   :  { %64 = vmatpush.msra.mxu0 %v35_v16 }
  0x1c   :  { %65 = vmatpush.msra.mxu0 %v34_v17 }
  0x1e   :  { %66 = vmatpush.msra.mxu0 %v33_v19 }
  0x20   :  { %67 = vmatpush.msra.mxu0 %v32_v20 }
  0x21   :  { %68 = vmatmul.f32.vlgmr.msra.gmra.mxu0 %v31_v21 }
  0x9e   :  { %v69_v23 = vpop.f32.mrf.mxu0 }
  0x9f   :  { %v70_v24 = vadd.f32 %v79_v22, %v69_v23 }
  0xa1   :  { %72 = vst [vmem:[%s178_s5] sm:$0xff] %v70_v24 }

// kernel: rgb_point_model_forward.15
= control target key start
LH: loop header
LB: loop body
LE: loop exit
PB: predicated region body
PF: predicated region fallthrough
CT: control target
= control target key end

     0   :  { %s2862_s1 = inlined_call_operand.vmem [shape: bf16[1152,256], index: 1, kind: input, shape index: {}]   ;;  %s2863_s0 = inlined_call_operand.vmem [shape: bf16[8,1152], index: 0, kind: input, shape index: {}]   ;;  %s2864_s2 = inlined_call_operand.vmem [shape: f32[1,256], index: 2, kind: input, shape index: {}]   ;;  %s2865_s3 = inlined_call_operand.vmem [shape: f32[1,256], index: 3, kind: input, shape index: {}]   ;;  %s2866_s4 = inlined_call_operand.vmem [shape: bf16[8,256], index: 4, kind: output, shape index: {}]  }
   0x1   :  { %v1251_v0 = vld [vmem:[%s2862_s1 + $0x70] sm:$0xf]  ;;  %v1784_v1 = vld [vmem:[%s2862_s1 + $0x74] sm:$0xf0]  ;;  %v1243_v11 = vld [vmem:[%s2862_s1 + $0x60] sm:$0xf] }
   0x2   :  { %v1315_v2 = vld [vmem:[%s2862_s1 + $0xf0] sm:$0xf]  ;;  %v1252_v3 = vor.u32 %v1784_v1, %v1251_v0  ;;  %v1800_v4 = vld [vmem:[%s2862_s1 + $0xf4] sm:$0xf0]  ;;  %v1782_v13 = vld [vmem:[%s2862_s1 + $0x64] sm:$0xf0] }
   0x3   :  { %v1379_v5 = vld [vmem:[%s2862_s1 + $0x170] sm:$0xf]  ;;  %v1816_v6 = vld [vmem:[%s2862_s1 + $0x174] sm:$0xf0]  ;;  %v1316_v7 = vor.u32 %v1800_v4, %v1315_v2  ;;  %v1307_v14 = vld [vmem:[%s2862_s1 + $0xe0] sm:$0xf]  ;;  %v1244_v16 = vor.u32 %v1782_v13, %v1243_v11 }
   0x4   :  { %v1380_v8 = vor.u32 %v1816_v6, %v1379_v5  ;;  %v1443_v9 = vld [vmem:[%s2862_s1 + $0x1f0] sm:$0xf]  ;;  %v1832_v10 = vld [vmem:[%s2862_s1 + $0x1f4] sm:$0xf0]  ;;  %926 = vmatpush.bf16.msra.mxu0 %v1252_v3  ;;  %v1798_v15 = vld [vmem:[%s2862_s1 + $0xe4] sm:$0xf0] }
   0x5   :  { %v1444_v12 = vor.u32 %v1832_v10, %v1443_v9  ;;  %939 = vmatpush.bf16.msra.mxu1 %v1316_v7  ;;  %v1308_v17 = vor.u32 %v1798_v15, %v1307_v14  ;;  %v1371_v18 = vld [vmem:[%s2862_s1 + $0x160] sm:$0xf]  ;;  %v1814_v19 = vld [vmem:[%s2862_s1 + $0x164] sm:$0xf0]  ;;  %v1235_v23 = vld [vmem:[%s2862_s1 + $0x50] sm:$0xf] }
   0x6   :  { %952 = vmatpush.bf16.msra.mxu2 %v1380_v8  ;;  %v1435_v20 = vld [vmem:[%s2862_s1 + $0x1e0] sm:$0xf]  ;;  %v1372_v21 = vor.u32 %v1814_v19, %v1371_v18  ;;  %v1830_v22 = vld [vmem:[%s2862_s1 + $0x1e4] sm:$0xf0]  ;;  %v1780_v24 = vld [vmem:[%s2862_s1 + $0x54] sm:$0xf0] }
   0x7   :  { %965 = vmatpush.bf16.msra.mxu3 %v1444_v12  ;;  %v1436_v25 = vor.u32 %v1830_v22, %v1435_v20  ;;  %v1299_v26 = vld [vmem:[%s2862_s1 + $0xd0] sm:$0xf]  ;;  %v1796_v27 = vld [vmem:[%s2862_s1 + $0xd4] sm:$0xf0]  ;;  %v1236_v29 = vor.u32 %v1780_v24, %v1235_v23  ;;  %v1227_v35 = vld [vmem:[%s2862_s1 + $0x40] sm:$0xf] }
   0x8   :  { %v1363_v28 = vld [vmem:[%s2862_s1 + $0x150] sm:$0xf]  ;;  %927 = vmatpush.bf16.msra.mxu0 %v1244_v16  ;;  %v1812_v30 = vld [vmem:[%s2862_s1 + $0x154] sm:$0xf0]  ;;  %v1300_v33 = vor.u32 %v1796_v27, %v1299_v26  ;;  %v1778_v36 = vld [vmem:[%s2862_s1 + $0x44] sm:$0xf0] }
   0x9   :  { %v1427_v31 = vld [vmem:[%s2862_s1 + $0x1d0] sm:$0xf]  ;;  %v1828_v32 = vld [vmem:[%s2862_s1 + $0x1d4] sm:$0xf0]  ;;  %940 = vmatpush.bf16.msra.mxu1 %v1308_v17  ;;  %v1364_v34 = vor.u32 %v1812_v30, %v1363_v28  ;;  %v1291_v37 = vld [vmem:[%s2862_s1 + $0xc0] sm:$0xf]  ;;  %v1228_v44 = vor.u32 %v1778_v36, %v1227_v35 }
   0xa   :  { %953 = vmatpush.bf16.msra.mxu2 %v1372_v21  ;;  %v1428_v38 = vor.u32 %v1828_v32, %v1427_v31  ;;  %v1794_v39 = vld [vmem:[%s2862_s1 + $0xc4] sm:$0xf0]  ;;  %v1355_v40 = vld [vmem:[%s2862_s1 + $0x140] sm:$0xf]  ;;  %v1219_v47 = vld [vmem:[%s2862_s1 + $0x30] sm:$0xf] }
   0xb   :  { %966 = vmatpush.bf16.msra.mxu3 %v1436_v25  ;;  %v1810_v41 = vld [vmem:[%s2862_s1 + $0x144] sm:$0xf0]  ;;  %v1419_v42 = vld [vmem:[%s2862_s1 + $0x1c0] sm:$0xf]  ;;  %v1292_v45 = vor.u32 %v1794_v39, %v1291_v37  ;;  %v1776_v48 = vld [vmem:[%s2862_s1 + $0x34] sm:$0xf0] }
   0xc   :  { %v1826_v43 = vld [vmem:[%s2862_s1 + $0x1c4] sm:$0xf0]  ;;  %928 = vmatpush.bf16.msra.mxu0 %v1236_v29  ;;  %v1356_v46 = vor.u32 %v1810_v41, %v1355_v40  ;;  %v1283_v49 = vld [vmem:[%s2862_s1 + $0xb0] sm:$0xf]  ;;  %v1792_v51 = vld [vmem:[%s2862_s1 + $0xb4] sm:$0xf0]  ;;  %v1220_v56 = vor.u32 %v1776_v48, %v1219_v47 }
   0xd   :  { %941 = vmatpush.bf16.msra.mxu1 %v1300_v33  ;;  %v1420_v50 = vor.u32 %v1826_v43, %v1419_v42  ;;  %v1347_v52 = vld [vmem:[%s2862_s1 + $0x130] sm:$0xf]  ;;  %v1808_v53 = vld [vmem:[%s2862_s1 + $0x134] sm:$0xf0]  ;;  %v1284_v57 = vor.u32 %v1792_v51, %v1283_v49  ;;  %v1211_v59 = vld [vmem:[%s2862_s1 + $0x20] sm:$0xf] }
   0xe   :  { %954 = vmatpush.bf16.msra.mxu2 %v1364_v34  ;;  %v1411_v54 = vld [vmem:[%s2862_s1 + $0x1b0] sm:$0xf]  ;;  %v1824_v55 = vld [vmem:[%s2862_s1 + $0x1b4] sm:$0xf0]  ;;  %v1348_v58 = vor.u32 %v1808_v53, %v1347_v52  ;;  %v1774_v60 = vld [vmem:[%s2862_s1 + $0x24] sm:$0xf0] }
   0xf   :  { %967 = vmatpush.bf16.msra.mxu3 %v1428_v38  ;;  %v1275_v61 = vld [vmem:[%s2862_s1 + $0xa0] sm:$0xf]  ;;  %v1412_v62 = vor.u32 %v1824_v55, %v1411_v54  ;;  %v1790_v63 = vld [vmem:[%s2862_s1 + $0xa4] sm:$0xf0]  ;;  %v1212_v4 = vor.u32 %v1774_v60, %v1211_v59  ;;  %v1203_v7 = vld [vmem:[%s2862_s1 + $0x10] sm:$0xf] }
  0x10   :  { %929 = vmatpush.bf16.msra.mxu0 %v1228_v44  ;;  %v1339_v0 = vld [vmem:[%s2862_s1 + $0x120] sm:$0xf]  ;;  %v1806_v1 = vld [vmem:[%s2862_s1 + $0x124] sm:$0xf0]  ;;  %v1276_v5 = vor.u32 %v1790_v63, %v1275_v61  ;;  %v1772_v8 = vld [vmem:[%s2862_s1 + $0x14] sm:$0xf0] }
  0x11   :  { %942 = vmatpush.bf16.msra.mxu1 %v1292_v45  ;;  %v1403_v2 = vld [vmem:[%s2862_s1 + $0x1a0] sm:$0xf]  ;;  %v1822_v3 = vld [vmem:[%s2862_s1 + $0x1a4] sm:$0xf0]  ;;  %v1340_v6 = vor.u32 %v1806_v1, %v1339_v0  ;;  %v1267_v9 = vld [vmem:[%s2862_s1 + $0x90] sm:$0xf]  ;;  %v1204_v16 = vor.u32 %v1772_v8, %v1203_v7 }
  0x12   :  { %955 = vmatpush.bf16.msra.mxu2 %v1356_v46  ;;  %v1404_v10 = vor.u32 %v1822_v3, %v1403_v2  ;;  %v1788_v11 = vld [vmem:[%s2862_s1 + $0x94] sm:$0xf0]  ;;  %v1331_v12 = vld [vmem:[%s2862_s1 + $0x110] sm:$0xf]  ;;  %v1195_v17 = vld [vmem:[%s2862_s1] sm:$0xf] }
  0x13   :  { %968 = vmatpush.bf16.msra.mxu3 %v1420_v50  ;;  %v1804_v13 = vld [vmem:[%s2862_s1 + $0x114] sm:$0xf0]  ;;  %v1395_v14 = vld [vmem:[%s2862_s1 + $0x190] sm:$0xf]  ;;  %v1770_v18 = vld [vmem:[%s2862_s1 + $0x4] sm:$0xf0]  ;;  %v1268_v19 = vor.u32 %v1788_v11, %v1267_v9 }
  0x14   :  { %930 = vmatpush.bf16.msra.mxu0 %v1220_v56  ;;  %v1820_v15 = vld [vmem:[%s2862_s1 + $0x194] sm:$0xf0]  ;;  %v1332_v20 = vor.u32 %v1804_v13, %v1331_v12  ;;  %v1259_v21 = vld [vmem:[%s2862_s1 + $0x80] sm:$0xf]  ;;  %v1786_v22 = vld [vmem:[%s2862_s1 + $0x84] sm:$0xf0]  ;;  %v1196_v31 = vor.u32 %v1770_v18, %v1195_v17 }
  0x15   :  { %943 = vmatpush.bf16.msra.mxu1 %v1284_v57  ;;  %v1323_v23 = vld [vmem:[%s2862_s1 + $0x100] sm:$0xf]  ;;  %v1396_v24 = vor.u32 %v1820_v15, %v1395_v14  ;;  %v1802_v25 = vld [vmem:[%s2862_s1 + $0x104] sm:$0xf0]  ;;  %v1507_v26 = vld [vmem:[%s2862_s1 + $0x270] sm:$0xf]  ;;  %v1260_v35 = vor.u32 %v1786_v22, %v1259_v21 }
  0x16   :  { %956 = vmatpush.bf16.msra.mxu2 %v1348_v58  ;;  %v1848_v27 = vld [vmem:[%s2862_s1 + $0x274] sm:$0xf0]  ;;  %v1571_v28 = vld [vmem:[%s2862_s1 + $0x2f0] sm:$0xf]  ;;  %v1387_v33 = vld [vmem:[%s2862_s1 + $0x180] sm:$0xf]  ;;  %v1324_v36 = vor.u32 %v1802_v25, %v1323_v23 }
  0x17   :  { %969 = vmatpush.bf16.msra.mxu3 %v1412_v62  ;;  %v1864_v29 = vld [vmem:[%s2862_s1 + $0x2f4] sm:$0xf0]  ;;  %v1635_v30 = vld [vmem:[%s2862_s1 + $0x370] sm:$0xf]  ;;  %v1818_v34 = vld [vmem:[%s2862_s1 + $0x184] sm:$0xf0]  ;;  %v1508_v39 = vor.u32 %v1848_v27, %v1507_v26 }
  0x18   :  { %931 = vmatpush.bf16.msra.mxu0 %v1212_v4  ;;  %v1880_v32 = vld [vmem:[%s2862_s1 + $0x374] sm:$0xf0]  ;;  %v1699_v37 = vld [vmem:[%s2862_s1 + $0x3f0] sm:$0xf]  ;;  %v1572_v40 = vor.u32 %v1864_v29, %v1571_v28  ;;  %v1499_v41 = vld [vmem:[%s2862_s1 + $0x260] sm:$0xf]  ;;  %v1388_v43 = vor.u32 %v1818_v34, %v1387_v33 }
  0x19   :  { %944 = vmatpush.bf16.msra.mxu1 %v1276_v5  ;;  %v1896_v38 = vld [vmem:[%s2862_s1 + $0x3f4] sm:$0xf0]  ;;  %v1636_v42 = vor.u32 %v1880_v32, %v1635_v30  ;;  %v1846_v44 = vld [vmem:[%s2862_s1 + $0x264] sm:$0xf0]  ;;  %v1563_v45 = vld [vmem:[%s2862_s1 + $0x2e0] sm:$0xf] }
  0x1a   :  { %957 = vmatpush.bf16.msra.mxu2 %v1340_v6  ;;  %v1862_v46 = vld [vmem:[%s2862_s1 + $0x2e4] sm:$0xf0]  ;;  %v1700_v47 = vor.u32 %v1896_v38, %v1699_v37  ;;  %v1627_v48 = vld [vmem:[%s2862_s1 + $0x360] sm:$0xf]  ;;  %v1500_v52 = vor.u32 %v1846_v44, %v1499_v41  ;;  %v1491_v54 = vld [vmem:[%s2862_s1 + $0x250] sm:$0xf] }
  0x1b   :  { %970 = vmatpush.bf16.msra.mxu3 %v1404_v10  ;;  %v1878_v49 = vld [vmem:[%s2862_s1 + $0x364] sm:$0xf0]  ;;  %v1691_v50 = vld [vmem:[%s2862_s1 + $0x3e0] sm:$0xf]  ;;  %v1564_v53 = vor.u32 %v1862_v46, %v1563_v45  ;;  %v1844_v55 = vld [vmem:[%s2862_s1 + $0x254] sm:$0xf0] }
  0x1c   :  { %932 = vmatpush.bf16.msra.mxu0 %v1204_v16  ;;  %v1894_v51 = vld [vmem:[%s2862_s1 + $0x3e4] sm:$0xf0]  ;;  %v1628_v57 = vor.u32 %v1878_v49, %v1627_v48  ;;  %v1555_v58 = vld [vmem:[%s2862_s1 + $0x2d0] sm:$0xf]  ;;  %v1860_v59 = vld [vmem:[%s2862_s1 + $0x2d4] sm:$0xf0]  ;;  %v1492_v4 = vor.u32 %v1844_v55, %v1491_v54 }
  0x1d   :  { %945 = vmatpush.bf16.msra.mxu1 %v1268_v19  ;;  %v26_v56 = vld [vmem:[%s2863_s0 + $0x8] sm:$0xff]  ;;  %v25_v61 = vld [vmem:[%s2863_s0] sm:$0xff]  ;;  %v1692_v63 = vor.u32 %v1894_v51, %v1691_v50  ;;  %v1619_v0 = vld [vmem:[%s2862_s1 + $0x350] sm:$0xf]  ;;  %v1556_v9 = vor.u32 %v1860_v59, %v1555_v58 }
  0x1e   :  { %958 = vmatpush.bf16.msra.mxu2 %v1332_v20  ;;  %v181_v60 = vunpack.c.l.b16 %v26_v56  ;;  %v182_v62 = vunpack.c.h.b16 %v26_v56  ;;  %v1876_v1 = vld [vmem:[%s2862_s1 + $0x354] sm:$0xf0]  ;;  %v179_v2 = vunpack.c.l.b16 %v25_v61  ;;  %v180_v3 = vunpack.c.h.b16 %v25_v61  ;;  %v1683_v5 = vld [vmem:[%s2862_s1 + $0x3d0] sm:$0xf]  ;;  %v1483_v10 = vld [vmem:[%s2862_s1 + $0x240] sm:$0xf] }
  0x1f   :  { %971 = vmatpush.bf16.msra.mxu3 %v1396_v24  ;;  %v1892_v6 = vld [vmem:[%s2862_s1 + $0x3d4] sm:$0xf0]  ;;  %v1620_v13 = vor.u32 %v1876_v1, %v1619_v0  ;;  %v1842_v14 = vld [vmem:[%s2862_s1 + $0x244] sm:$0xf0]  ;;  %v1547_v15 = vld [vmem:[%s2862_s1 + $0x2c0] sm:$0xf] }
  0x20   :  { %933 = vmatpush.bf16.msra.mxu0 %v1196_v31  ;;  %v2208_v7 = vpack.c.b16 %v181_v60, %v181_v60  ;;  %v2210_v8 = vpack.c.b16 %v182_v62, %v182_v62  ;;  %v2215_v11 = vpack.c.b16 %v179_v2, %v179_v2  ;;  %v2217_v12 = vpack.c.b16 %v180_v3, %v180_v3  ;;  %v1858_v16 = vld [vmem:[%s2862_s1 + $0x2c4] sm:$0xf0]  ;;  %v1611_v18 = vld [vmem:[%s2862_s1 + $0x340] sm:$0xf]  ;;  %v1475_v24 = vld [vmem:[%s2862_s1 + $0x230] sm:$0xf] }
  0x21   :  { %946 = vmatpush.bf16.msra.mxu1 %v1260_v35  ;;  %v1684_v17 = vor.u32 %v1892_v6, %v1683_v5  ;;  %v1874_v19 = vld [vmem:[%s2862_s1 + $0x344] sm:$0xf0]  ;;  %v1675_v20 = vld [vmem:[%s2862_s1 + $0x3c0] sm:$0xf]  ;;  %v1484_v22 = vor.u32 %v1842_v14, %v1483_v10  ;;  %v1548_v23 = vor.u32 %v1858_v16, %v1547_v15  ;;  %v1840_v26 = vld [vmem:[%s2862_s1 + $0x234] sm:$0xf0] }
  0x22   :  { %959 = vmatpush.bf16.msra.mxu2 %v1324_v36  ;;  %v1890_v21 = vld [vmem:[%s2862_s1 + $0x3c4] sm:$0xf0]  ;;  %v1612_v25 = vor.u32 %v1874_v19, %v1611_v18  ;;  %v1539_v27 = vld [vmem:[%s2862_s1 + $0x2b0] sm:$0xf]  ;;  %v1856_v28 = vld [vmem:[%s2862_s1 + $0x2b4] sm:$0xf0]  ;;  %v1476_v34 = vor.u32 %v1840_v26, %v1475_v24 }
  0x23   :  { %972 = vmatpush.bf16.msra.mxu3 %v1388_v43  ;;  %934 = vmatmul.bf16.vlgmr.msra.gmra.mxu0 %v2215_v11  ;;  %v1676_v29 = vor.u32 %v1890_v21, %v1675_v20  ;;  %v1603_v30 = vld [vmem:[%s2862_s1 + $0x330] sm:$0xf]  ;;  %v1872_v31 = vld [vmem:[%s2862_s1 + $0x334] sm:$0xf0]  ;;  %v1540_v35 = vor.u32 %v1856_v28, %v1539_v27  ;;  %v1467_v36 = vld [vmem:[%s2862_s1 + $0x220] sm:$0xf] }
  0x24   :  { %978 = vmatpush.bf16.msrb.mxu0 %v1508_v39  ;;  %947 = vmatmul.bf16.vlgmr.msra.gmra.mxu1 %v2217_v12  ;;  %v1667_v32 = vld [vmem:[%s2862_s1 + $0x3b0] sm:$0xf]  ;;  %v1888_v33 = vld [vmem:[%s2862_s1 + $0x3b4] sm:$0xf0]  ;;  %v1604_v37 = vor.u32 %v1872_v31, %v1603_v30  ;;  %v1838_v38 = vld [vmem:[%s2862_s1 + $0x224] sm:$0xf0] }
  0x25   :  { %991 = vmatpush.bf16.msrb.mxu1 %v1572_v40  ;;  %960 = vmatmul.bf16.vlgmr.msra.gmra.mxu2 %v2208_v7  ;;  %v1531_v39 = vld [vmem:[%s2862_s1 + $0x2a0] sm:$0xf]  ;;  %v1854_v40 = vld [vmem:[%s2862_s1 + $0x2a4] sm:$0xf0]  ;;  %v1668_v41 = vor.u32 %v1888_v33, %v1667_v32  ;;  %v1468_v46 = vor.u32 %v1838_v38, %v1467_v36  ;;  %v1459_v48 = vld [vmem:[%s2862_s1 + $0x210] sm:$0xf] }
  0x26   :  { %1004 = vmatpush.bf16.msrb.mxu2 %v1636_v42  ;;  %973 = vmatmul.bf16.vlgmr.msra.gmra.mxu3 %v2210_v8  ;;  %v1595_v42 = vld [vmem:[%s2862_s1 + $0x320] sm:$0xf]  ;;  %v1870_v43 = vld [vmem:[%s2862_s1 + $0x324] sm:$0xf0]  ;;  %v1836_v50 = vld [vmem:[%s2862_s1 + $0x214] sm:$0xf0] }
  0x27   :  { %1017 = vmatpush.bf16.msrb.mxu3 %v1700_v47  ;;  %v1659_v44 = vld [vmem:[%s2862_s1 + $0x3a0] sm:$0xf]  ;;  %v1886_v45 = vld [vmem:[%s2862_s1 + $0x3a4] sm:$0xf0]  ;;  %v1532_v47 = vor.u32 %v1854_v40, %v1531_v39  ;;  %v1596_v49 = vor.u32 %v1870_v43, %v1595_v42  ;;  %v1523_v51 = vld [vmem:[%s2862_s1 + $0x290] sm:$0xf]  ;;  %v1460_v60 = vor.u32 %v1836_v50, %v1459_v48 }
  0x28   :  { %979 = vmatpush.bf16.msrb.mxu0 %v1500_v52  ;;  %v1852_v52 = vld [vmem:[%s2862_s1 + $0x294] sm:$0xf0]  ;;  %v1587_v54 = vld [vmem:[%s2862_s1 + $0x310] sm:$0xf]  ;;  %v1451_v58 = vld [vmem:[%s2862_s1 + $0x200] sm:$0xf] }
  0x29   :  { %992 = vmatpush.bf16.msrb.mxu1 %v1564_v53  ;;  %v1660_v53 = vor.u32 %v1886_v45, %v1659_v44  ;;  %v1868_v55 = vld [vmem:[%s2862_s1 + $0x314] sm:$0xf0]  ;;  %v1651_v56 = vld [vmem:[%s2862_s1 + $0x390] sm:$0xf]  ;;  %v1834_v59 = vld [vmem:[%s2862_s1 + $0x204] sm:$0xf0]  ;;  %v1524_v61 = vor.u32 %v1852_v52, %v1523_v51 }
  0x2a   :  { %1005 = vmatpush.bf16.msrb.mxu2 %v1628_v57  ;;  %v1884_v57 = vld [vmem:[%s2862_s1 + $0x394] sm:$0xf0]  ;;  %v1515_v62 = vld [vmem:[%s2862_s1 + $0x280] sm:$0xf]  ;;  %v27_v0 = vld [vmem:[%s2863_s0 + $0x10] sm:$0xff]  ;;  %v1588_v1 = vor.u32 %v1868_v55, %v1587_v54 }
  0x2b   :  { %1018 = vmatpush.bf16.msrb.mxu3 %v1692_v63  ;;  %v1850_v63 = vld [vmem:[%s2862_s1 + $0x284] sm:$0xf0]  ;;  %v1579_v2 = vld [vmem:[%s2862_s1 + $0x300] sm:$0xf]  ;;  %v1652_v5 = vor.u32 %v1884_v57, %v1651_v56  ;;  %v1763_v6 = vld [vmem:[%s2862_s1 + $0x470] sm:$0xf]  ;;  %v183_v16 = vunpack.c.l.b16 %v27_v0  ;;  %v184_v26 = vunpack.c.h.b16 %v27_v0 }
  0x2c   :  { %980 = vmatpush.bf16.msrb.mxu0 %v1492_v4  ;;  %v1866_v3 = vld [vmem:[%s2862_s1 + $0x304] sm:$0xf0]  ;;  %v28_v4 = vld [vmem:[%s2863_s0 + $0x18] sm:$0xff]  ;;  %v1783_v10 = vld [vmem:[%s2862_s1 + $0x74] sm:$0xf]  ;;  %v1516_v18 = vor.u32 %v1850_v63, %v1515_v62 }
  0x2d   :  { %993 = vmatpush.bf16.msrb.mxu1 %v1556_v9  ;;  %v1912_v9 = vld [vmem:[%s2862_s1 + $0x474] sm:$0xf0]  ;;  %v1799_v14 = vld [vmem:[%s2862_s1 + $0xf4] sm:$0xf]  ;;  %v1317_v15 = vld [vmem:[%s2862_s1 + $0xf8] sm:$0xf0]  ;;  %v185_v21 = vunpack.c.l.b16 %v28_v4  ;;  %v2388_v36 = vpack.c.b16 %v183_v16, %v183_v16  ;;  %v2398_v43 = vpack.c.b16 %v184_v26, %v184_v26 }
  0x2e   :  { %1006 = vmatpush.bf16.msrb.mxu2 %v1620_v13  ;;  %v1253_v13 = vld [vmem:[%s2862_s1 + $0x78] sm:$0xf0]  ;;  %v1643_v19 = vld [vmem:[%s2862_s1 + $0x380] sm:$0xf]  ;;  %v1882_v20 = vld [vmem:[%s2862_s1 + $0x384] sm:$0xf0]  ;;  %v1320_v28 = vor.u32 %v1799_v14, %v1317_v15 }
  0x2f   :  { %1019 = vmatpush.bf16.msrb.mxu3 %v1684_v17  ;;  %v1452_v17 = vor.u32 %v1834_v59, %v1451_v58  ;;  %v1815_v24 = vld [vmem:[%s2862_s1 + $0x174] sm:$0xf]  ;;  %v1256_v27 = vor.u32 %v1783_v10, %v1253_v13  ;;  %v1910_v30 = vld [vmem:[%s2862_s1 + $0x464] sm:$0xf0]  ;;  %v1781_v31 = vld [vmem:[%s2862_s1 + $0x64] sm:$0xf]  ;;  %v1644_v32 = vor.u32 %v1882_v20, %v1643_v19  ;;  %v2390_v39 = vpack.c.b16 %v185_v21, %v185_v21 }
  0x30   :  { %981 = vmatpush.bf16.msrb.mxu0 %v1484_v22  ;;  %v1580_v22 = vor.u32 %v1866_v3, %v1579_v2  ;;  %v1245_v33 = vld [vmem:[%s2862_s1 + $0x68] sm:$0xf0]  ;;  %v1779_v48 = vld [vmem:[%s2862_s1 + $0x54] sm:$0xf]  ;;  %v1237_v50 = vld [vmem:[%s2862_s1 + $0x58] sm:$0xf0] }
  0x31   :  { %994 = vmatpush.bf16.msrb.mxu1 %v1548_v23  ;;  %v1764_v23 = vor.u32 %v1912_v9, %v1763_v6  ;;  %v1373_v42 = vld [vmem:[%s2862_s1 + $0x168] sm:$0xf0]  ;;  %v1248_v44 = vor.u32 %v1781_v31, %v1245_v33  ;;  %v1795_v51 = vld [vmem:[%s2862_s1 + $0xd4] sm:$0xf]  ;;  %v1301_v52 = vld [vmem:[%s2862_s1 + $0xd8] sm:$0xf0]  ;;  %v1240_v57 = vor.u32 %v1779_v48, %v1237_v50 }
  0x32   :  { %1007 = vmatpush.bf16.msrb.mxu2 %v1612_v25  ;;  %v1381_v25 = vld [vmem:[%s2862_s1 + $0x178] sm:$0xf0]  ;;  %v1811_v55 = vld [vmem:[%s2862_s1 + $0x154] sm:$0xf]  ;;  %v1304_v58 = vor.u32 %v1795_v51, %v1301_v52  ;;  %v1739_v59 = vld [vmem:[%s2862_s1 + $0x440] sm:$0xf] }
  0x33   :  { %1020 = vmatpush.bf16.msrb.mxu3 %v1676_v29  ;;  %v1755_v29 = vld [vmem:[%s2862_s1 + $0x460] sm:$0xf]  ;;  %v1384_v38 = vor.u32 %v1815_v24, %v1381_v25  ;;  %v1365_v56 = vld [vmem:[%s2862_s1 + $0x158] sm:$0xf0]  ;;  %v1229_v62 = vld [vmem:[%s2862_s1 + $0x48] sm:$0xf0] }
  0x34   :  { %982 = vmatpush.bf16.msrb.mxu0 %v1476_v34  ;;  %v1797_v34 = vld [vmem:[%s2862_s1 + $0xe4] sm:$0xf]  ;;  %v1756_v40 = vor.u32 %v1910_v30, %v1755_v29  ;;  %v1293_v0 = vld [vmem:[%s2862_s1 + $0xc8] sm:$0xf0]  ;;  %v1731_v9 = vld [vmem:[%s2862_s1 + $0x430] sm:$0xf] }
  0x35   :  { %995 = vmatpush.bf16.msrb.mxu1 %v1540_v35  ;;  %v1309_v35 = vld [vmem:[%s2862_s1 + $0xe8] sm:$0xf0]  ;;  %v1793_v63 = vld [vmem:[%s2862_s1 + $0xc4] sm:$0xf]  ;;  %v1904_v10 = vld [vmem:[%s2862_s1 + $0x434] sm:$0xf0] }
  0x36   :  { %1008 = vmatpush.bf16.msrb.mxu2 %v1604_v37  ;;  %v186_v37 = vunpack.c.h.b16 %v28_v4  ;;  %v1312_v45 = vor.u32 %v1797_v34, %v1309_v35  ;;  %v1809_v3 = vld [vmem:[%s2862_s1 + $0x144] sm:$0xf]  ;;  %v1357_v4 = vld [vmem:[%s2862_s1 + $0x148] sm:$0xf0]  ;;  %v1296_v6 = vor.u32 %v1793_v63, %v1293_v0  ;;  %v1775_v13 = vld [vmem:[%s2862_s1 + $0x34] sm:$0xf] }
  0x37   :  { %1021 = vmatpush.bf16.msrb.mxu3 %v1668_v41  ;;  %v1813_v41 = vld [vmem:[%s2862_s1 + $0x164] sm:$0xf]  ;;  %v1221_v14 = vld [vmem:[%s2862_s1 + $0x38] sm:$0xf0]  ;;  %v1791_v15 = vld [vmem:[%s2862_s1 + $0xb4] sm:$0xf] }
  0x38   :  { %983 = vmatpush.bf16.msrb.mxu0 %v1468_v46  ;;  %v1747_v46 = vld [vmem:[%s2862_s1 + $0x450] sm:$0xf]  ;;  %v1285_v16 = vld [vmem:[%s2862_s1 + $0xb8] sm:$0xf0]  ;;  %v1807_v19 = vld [vmem:[%s2862_s1 + $0x134] sm:$0xf]  ;;  %v1224_v21 = vor.u32 %v1775_v13, %v1221_v14 }
  0x39   :  { %996 = vmatpush.bf16.msrb.mxu1 %v1532_v47  ;;  %v1908_v47 = vld [vmem:[%s2862_s1 + $0x454] sm:$0xf0]  ;;  %v1349_v20 = vld [vmem:[%s2862_s1 + $0x138] sm:$0xf0]  ;;  %v1902_v24 = vld [vmem:[%s2862_s1 + $0x424] sm:$0xf0] }
  0x3a   :  { %1009 = vmatpush.bf16.msrb.mxu2 %v1596_v49  ;;  %v2410_v49 = vpack.c.b16 %v186_v37, %v186_v37  ;;  %v1748_v54 = vor.u32 %v1908_v47, %v1747_v46  ;;  %v1773_v25 = vld [vmem:[%s2862_s1 + $0x24] sm:$0xf]  ;;  %v1213_v26 = vld [vmem:[%s2862_s1 + $0x28] sm:$0xf0]  ;;  %v1352_v29 = vor.u32 %v1807_v19, %v1349_v20  ;;  %v1715_v35 = vld [vmem:[%s2862_s1 + $0x410] sm:$0xf] }
  0x3b   :  { %1022 = vmatpush.bf16.msrb.mxu3 %v1660_v53  ;;  %v1376_v53 = vor.u32 %v1813_v41, %v1373_v42  ;;  %v1805_v31 = vld [vmem:[%s2862_s1 + $0x124] sm:$0xf]  ;;  %v1216_v33 = vor.u32 %v1773_v25, %v1213_v26  ;;  %v1900_v37 = vld [vmem:[%s2862_s1 + $0x414] sm:$0xf0]  ;;  %v1787_v41 = vld [vmem:[%s2862_s1 + $0x94] sm:$0xf] }
  0x3c   :  { %984 = vmatpush.bf16.msrb.mxu0 %v1460_v60  ;;  %v1906_v60 = vld [vmem:[%s2862_s1 + $0x444] sm:$0xf0]  ;;  %v1269_v42 = vld [vmem:[%s2862_s1 + $0x98] sm:$0xf0]  ;;  %v1716_v46 = vor.u32 %v1900_v37, %v1715_v35  ;;  %v1707_v48 = vld [vmem:[%s2862_s1 + $0x400] sm:$0xf] }
  0x3d   :  { %997 = vmatpush.bf16.msrb.mxu1 %v1524_v61  ;;  %v1777_v61 = vld [vmem:[%s2862_s1 + $0x44] sm:$0xf]  ;;  %v1740_v2 = vor.u32 %v1906_v60, %v1739_v59  ;;  %v1333_v47 = vld [vmem:[%s2862_s1 + $0x118] sm:$0xf0]  ;;  %v29_v50 = vld [vmem:[%s2863_s0 + $0x20] sm:$0xf]  ;;  %v1272_v52 = vor.u32 %v1787_v41, %v1269_v42 }
  0x3e   :  { %1010 = vmatpush.bf16.msrb.mxu2 %v1588_v1  ;;  %v1368_v1 = vor.u32 %v1811_v55, %v1365_v56  ;;  %v1197_v55 = vld [vmem:[%s2862_s1 + $0x8] sm:$0xf0]  ;;  %v1785_v56 = vld [vmem:[%s2862_s1 + $0x84] sm:$0xf]  ;;  %v1445_v60 = vld [vmem:[%s2862_s1 + $0x1f8] sm:$0xf0]  ;;  %v187_v63 = vunpack.c.l.b16 %v29_v50 }
  0x3f   :  { %1023 = vmatpush.bf16.msrb.mxu3 %v1652_v5  ;;  %v1232_v5 = vor.u32 %v1777_v61, %v1229_v62  ;;  %v1847_v61 = vld [vmem:[%s2862_s1 + $0x274] sm:$0xf]  ;;  %v1509_v62 = vld [vmem:[%s2862_s1 + $0x278] sm:$0xf0]  ;;  %v1845_v19 = vld [vmem:[%s2862_s1 + $0x264] sm:$0xf] }
  0x40   :  { %985 = vmatpush.bf16.msrb.mxu0 %v1452_v17  ;;  %v1360_v17 = vor.u32 %v1809_v3, %v1357_v4  ;;  %v1879_v13 = vld [vmem:[%s2862_s1 + $0x374] sm:$0xf]  ;;  %v1637_v14 = vld [vmem:[%s2862_s1 + $0x378] sm:$0xf0]  ;;  %v1501_v20 = vld [vmem:[%s2862_s1 + $0x268] sm:$0xf0] }
  0x41   :  { %998 = vmatpush.bf16.msrb.mxu1 %v1516_v18  ;;  %v1732_v18 = vor.u32 %v1904_v10, %v1731_v9  ;;  %v1512_v10 = vor.u32 %v1847_v61, %v1509_v62  ;;  %v1504_v26 = vor.u32 %v1845_v19, %v1501_v20  ;;  %v1557_v35 = vld [vmem:[%s2862_s1 + $0x2d8] sm:$0xf0]  ;;  %v1875_v41 = vld [vmem:[%s2862_s1 + $0x354] sm:$0xf] }
  0x42   :  { %1011 = vmatpush.bf16.msrb.mxu2 %v1580_v22  ;;  %v1288_v22 = vor.u32 %v1791_v15, %v1285_v16  ;;  %v1829_v15 = vld [vmem:[%s2862_s1 + $0x1e4] sm:$0xf]  ;;  %v1621_v42 = vld [vmem:[%s2862_s1 + $0x358] sm:$0xf0]  ;;  %v1819_v19 = vld [vmem:[%s2862_s1 + $0x194] sm:$0xf] }
  0x43   :  { %1024 = vmatpush.bf16.msrb.mxu3 %v1644_v32  ;;  %986 = vmatmul.bf16.vlgmr.msrb.gmra.mxu0 %v2388_v36  ;;  %v1341_v32 = vld [vmem:[%s2862_s1 + $0x128] sm:$0xf0]  ;;  %v1624_v50 = vor.u32 %v1875_v41, %v1621_v42  ;;  %v1701_v41 = vld [vmem:[%s2862_s1 + $0x3f8] sm:$0xf0] }
  0x44   :  { %1030 = vmatpush.bf16.msra.mxu0 %v1764_v23  ;;  %999 = vmatmul.bf16.vlgmr.msrb.gmra.mxu1 %v2398_v43  ;;  %v1723_v23 = vld [vmem:[%s2862_s1 + $0x420] sm:$0xf] }
  0x45   :  { %1043 = vmatpush.bf16.msra.mxu1 %v1256_v27  ;;  %1012 = vmatmul.bf16.vlgmr.msrb.gmra.mxu2 %v2390_v39  ;;  %v1789_v27 = vld [vmem:[%s2862_s1 + $0xa4] sm:$0xf]  ;;  %v1724_v30 = vor.u32 %v1902_v24, %v1723_v23  ;;  %v1565_v23 = vld [vmem:[%s2862_s1 + $0x2e8] sm:$0xf0]  ;;  %v1640_v24 = vor.u32 %v1879_v13, %v1637_v14 }
  0x46   :  { %1056 = vmatpush.bf16.msra.mxu2 %v1320_v28  ;;  %1025 = vmatmul.bf16.vlgmr.msrb.gmra.mxu3 %v2410_v49  ;;  %v1277_v28 = vld [vmem:[%s2862_s1 + $0xa8] sm:$0xf0] }
  0x47   :  { %1069 = vmatpush.bf16.msra.mxu3 %v1384_v38  ;;  %v1280_v34 = vor.u32 %v1789_v27, %v1277_v28  ;;  %v1771_v38 = vld [vmem:[%s2862_s1 + $0x14] sm:$0xf]  ;;  %v1877_v27 = vld [vmem:[%s2862_s1 + $0x364] sm:$0xf]  ;;  %v1629_v28 = vld [vmem:[%s2862_s1 + $0x368] sm:$0xf0] }
  0x48   :  { %1031 = vmatpush.bf16.msra.mxu0 %v1756_v40  ;;  %v1205_v40 = vld [vmem:[%s2862_s1 + $0x18] sm:$0xf0]  ;;  %v1632_v37 = vor.u32 %v1877_v27, %v1629_v28  ;;  %v1867_v27 = vld [vmem:[%s2862_s1 + $0x314] sm:$0xf] }
  0x49   :  { %1044 = vmatpush.bf16.msra.mxu1 %v1248_v44  ;;  %v1344_v44 = vor.u32 %v1805_v31, %v1341_v32  ;;  %v1208_v51 = vor.u32 %v1771_v38, %v1205_v40  ;;  %v1429_v31 = vld [vmem:[%s2862_s1 + $0x1d8] sm:$0xf0]  ;;  %v1843_v32 = vld [vmem:[%s2862_s1 + $0x254] sm:$0xf] }
  0x4a   :  { %1057 = vmatpush.bf16.msra.mxu2 %v1312_v45  ;;  %v1803_v45 = vld [vmem:[%s2862_s1 + $0x114] sm:$0xf] }
  0x4b   :  { %1070 = vmatpush.bf16.msra.mxu3 %v1376_v53  ;;  %v1898_v53 = vld [vmem:[%s2862_s1 + $0x404] sm:$0xf0]  ;;  %v1336_v59 = vor.u32 %v1803_v45, %v1333_v47  ;;  %v1841_v45 = vld [vmem:[%s2862_s1 + $0x244] sm:$0xf] }
  0x4c   :  { %1032 = vmatpush.bf16.msra.mxu0 %v1748_v54  ;;  %v1769_v54 = vld [vmem:[%s2862_s1 + $0x4] sm:$0xf]  ;;  %v1708_v0 = vor.u32 %v1898_v53, %v1707_v48  ;;  %v1549_v48 = vld [vmem:[%s2862_s1 + $0x2c8] sm:$0xf0] }
  0x4d   :  { %1045 = vmatpush.bf16.msra.mxu1 %v1240_v57  ;;  %v1261_v57 = vld [vmem:[%s2862_s1 + $0x88] sm:$0xf0]  ;;  %v1200_v3 = vor.u32 %v1769_v54, %v1197_v55  ;;  %v1857_v47 = vld [vmem:[%s2862_s1 + $0x2c4] sm:$0xf]  ;;  %v1823_v54 = vld [vmem:[%s2862_s1 + $0x1b4] sm:$0xf] }
  0x4e   :  { %1058 = vmatpush.bf16.msra.mxu2 %v1304_v58  ;;  %v1831_v58 = vld [vmem:[%s2862_s1 + $0x1f4] sm:$0xf]  ;;  %v1264_v4 = vor.u32 %v1785_v56, %v1261_v57  ;;  %v1873_v53 = vld [vmem:[%s2862_s1 + $0x344] sm:$0xf]  ;;  %v1552_v55 = vor.u32 %v1857_v47, %v1549_v48  ;;  %v1413_v56 = vld [vmem:[%s2862_s1 + $0x1b8] sm:$0xf0] }
  0x4f   :  { %1071 = vmatpush.bf16.msra.mxu3 %v1368_v1  ;;  %v1863_v1 = vld [vmem:[%s2862_s1 + $0x2f4] sm:$0xf]  ;;  %v1448_v9 = vor.u32 %v1831_v58, %v1445_v60  ;;  %v1477_v58 = vld [vmem:[%s2862_s1 + $0x238] sm:$0xf0]  ;;  %v1416_v62 = vor.u32 %v1823_v54, %v1413_v56  ;;  %v1581_v47 = vld [vmem:[%s2862_s1 + $0x308] sm:$0xf0] }
  0x50   :  { %1033 = vmatpush.bf16.msra.mxu0 %v1740_v2  ;;  %v1573_v2 = vld [vmem:[%s2862_s1 + $0x2f8] sm:$0xf0]  ;;  %v1839_v57 = vld [vmem:[%s2862_s1 + $0x234] sm:$0xf]  ;;  %v1909_v54 = vld [vmem:[%s2862_s1 + $0x464] sm:$0xf] }
  0x51   :  { %1046 = vmatpush.bf16.msra.mxu1 %v1232_v5  ;;  %v1801_v5 = vld [vmem:[%s2862_s1 + $0x104] sm:$0xf]  ;;  %v1576_v16 = vor.u32 %v1863_v1, %v1573_v2  ;;  %v1541_v60 = vld [vmem:[%s2862_s1 + $0x2b8] sm:$0xf0] }
  0x52   :  { %1059 = vmatpush.bf16.msra.mxu2 %v1296_v6  ;;  %v1325_v6 = vld [vmem:[%s2862_s1 + $0x108] sm:$0xf0]  ;;  %v1605_v1 = vld [vmem:[%s2862_s1 + $0x338] sm:$0xf0]  ;;  %v1821_v2 = vld [vmem:[%s2862_s1 + $0x1a4] sm:$0xf] }
  0x53   :  { %1072 = vmatpush.bf16.msra.mxu3 %v1360_v17  ;;  %v2580_v17 = vpack.c.b16 %v187_v63, %v187_v63  ;;  %v1480_v63 = vor.u32 %v1839_v57, %v1477_v58  ;;  %v1891_v58 = vld [vmem:[%s2862_s1 + $0x3d4] sm:$0xf] }
  0x54   :  { %1034 = vmatpush.bf16.msra.mxu0 %v1732_v18  ;;  %v1437_v18 = vld [vmem:[%s2862_s1 + $0x1e8] sm:$0xf0] }
  0x55   :  { %1047 = vmatpush.bf16.msra.mxu1 %v1224_v21  ;;  %v1328_v21 = vor.u32 %v1801_v5, %v1325_v6  ;;  %v1440_v25 = vor.u32 %v1829_v15, %v1437_v18  ;;  %v1837_v5 = vld [vmem:[%s2862_s1 + $0x224] sm:$0xf]  ;;  %v1469_v6 = vld [vmem:[%s2862_s1 + $0x228] sm:$0xf0] }
  0x56   :  { %1060 = vmatpush.bf16.msra.mxu2 %v1288_v22  ;;  %v1861_v22 = vld [vmem:[%s2862_s1 + $0x2e4] sm:$0xf]  ;;  %v1472_v15 = vor.u32 %v1837_v5, %v1469_v6  ;;  %v1597_v18 = vld [vmem:[%s2862_s1 + $0x328] sm:$0xf0]  ;;  %v1733_v5 = vld [vmem:[%s2862_s1 + $0x438] sm:$0xf0] }
  0x57   :  { %1073 = vmatpush.bf16.msra.mxu3 %v1352_v29  ;;  %v1827_v29 = vld [vmem:[%s2862_s1 + $0x1d4] sm:$0xf] }
  0x58   :  { %1035 = vmatpush.bf16.msra.mxu0 %v1724_v30  ;;  %v1568_v30 = vor.u32 %v1861_v22, %v1565_v23  ;;  %v1432_v38 = vor.u32 %v1827_v29, %v1429_v31  ;;  %v1835_v22 = vld [vmem:[%s2862_s1 + $0x214] sm:$0xf]  ;;  %v1461_v23 = vld [vmem:[%s2862_s1 + $0x218] sm:$0xf0]  ;;  %v1817_v31 = vld [vmem:[%s2862_s1 + $0x184] sm:$0xf] }
  0x59   :  { %1048 = vmatpush.bf16.msra.mxu1 %v1216_v33  ;;  %v1493_v33 = vld [vmem:[%s2862_s1 + $0x258] sm:$0xf0]  ;;  %v1464_v29 = vor.u32 %v1835_v22, %v1461_v23 }
  0x5a   :  { %1061 = vmatpush.bf16.msra.mxu2 %v1280_v34  ;;  %v1859_v34 = vld [vmem:[%s2862_s1 + $0x2d4] sm:$0xf]  ;;  %v1496_v40 = vor.u32 %v1843_v32, %v1493_v33  ;;  %v1389_v32 = vld [vmem:[%s2862_s1 + $0x188] sm:$0xf0]  ;;  %v1717_v22 = vld [vmem:[%s2862_s1 + $0x418] sm:$0xf0] }
  0x5b   :  { %1074 = vmatpush.bf16.msra.mxu3 %v1344_v44  ;;  %v1560_v44 = vor.u32 %v1859_v34, %v1557_v35  ;;  %v1833_v34 = vld [vmem:[%s2862_s1 + $0x204] sm:$0xf]  ;;  %v1453_v35 = vld [vmem:[%s2862_s1 + $0x208] sm:$0xf0] }
  0x5c   :  { %1036 = vmatpush.bf16.msra.mxu0 %v1716_v46  ;;  %v1485_v46 = vld [vmem:[%s2862_s1 + $0x248] sm:$0xf0] }
  0x5d   :  { %1049 = vmatpush.bf16.msra.mxu1 %v1208_v51 }
  0x5e   :  { %1062 = vmatpush.bf16.msra.mxu2 %v1272_v52  ;;  %v1488_v52 = vor.u32 %v1841_v45, %v1485_v46  ;;  %v1456_v45 = vor.u32 %v1833_v34, %v1453_v35  ;;  %v1865_v46 = vld [vmem:[%s2862_s1 + $0x304] sm:$0xf] }
  0x5f   :  { %1075 = vmatpush.bf16.msra.mxu3 %v1336_v59  ;;  %v1855_v59 = vld [vmem:[%s2862_s1 + $0x2b4] sm:$0xf] }
  0x60   :  { %1037 = vmatpush.bf16.msra.mxu0 %v1708_v0  ;;  %v1871_v0 = vld [vmem:[%s2862_s1 + $0x334] sm:$0xf] }
  0x61   :  { %1050 = vmatpush.bf16.msra.mxu1 %v1200_v3  ;;  %v1544_v3 = vor.u32 %v1855_v59, %v1541_v60  ;;  %v1608_v13 = vor.u32 %v1871_v0, %v1605_v1  ;;  %v1685_v59 = vld [vmem:[%s2862_s1 + $0x3d8] sm:$0xf0]  ;;  %v1907_v60 = vld [vmem:[%s2862_s1 + $0x454] sm:$0xf]  ;;  %v1677_v0 = vld [vmem:[%s2862_s1 + $0x3c8] sm:$0xf0] }
  0x62   :  { %1063 = vmatpush.bf16.msra.mxu2 %v1264_v4  ;;  %v1405_v4 = vld [vmem:[%s2862_s1 + $0x1a8] sm:$0xf0] }
  0x63   :  { %1038 = vmatmul.bf16.vlgmr.msra.gmra.mxu0 %v2580_v17  ;;  %1076 = vmatpush.bf16.msra.mxu3 %v1328_v21  ;;  %v1408_v14 = vor.u32 %v1821_v2, %v1405_v4  ;;  %v1397_v21 = vld [vmem:[%s2862_s1 + $0x198] sm:$0xf0]  ;;  %v1887_v2 = vld [vmem:[%s2862_s1 + $0x3b4] sm:$0xf] }
  0x64   :  { %1082 = vmatpush.bf16.msrb.mxu0 %v1448_v9  ;;  %1051 = vmatmul.bf16.vlgmr.msra.gmra.mxu1 %v2215_v11  ;;  %v1421_v11 = vld [vmem:[%s2862_s1 + $0x1c8] sm:$0xf0]  ;;  %v1853_v9 = vld [vmem:[%s2862_s1 + $0x2a4] sm:$0xf]  ;;  %v1400_v28 = vor.u32 %v1819_v19, %v1397_v21  ;;  %v1903_v4 = vld [vmem:[%s2862_s1 + $0x434] sm:$0xf] }
  0x65   :  { %1095 = vmatpush.bf16.msrb.mxu1 %v1512_v10  ;;  %1064 = vmatmul.bf16.vlgmr.msra.gmra.mxu2 %v2217_v12  ;;  %v1825_v12 = vld [vmem:[%s2862_s1 + $0x1c4] sm:$0xf]  ;;  %v1533_v10 = vld [vmem:[%s2862_s1 + $0x2a8] sm:$0xf0]  ;;  %v1883_v19 = vld [vmem:[%s2862_s1 + $0x394] sm:$0xf] }
  0x66   :  { %1108 = vmatpush.bf16.msrb.mxu2 %v1576_v16  ;;  %1077 = vmatmul.bf16.vlgmr.msra.gmra.mxu3 %v2208_v7  ;;  %v1424_v51 = vor.u32 %v1825_v12, %v1421_v11  ;;  %v1613_v7 = vld [vmem:[%s2862_s1 + $0x348] sm:$0xf0]  ;;  %v1869_v16 = vld [vmem:[%s2862_s1 + $0x324] sm:$0xf]  ;;  %v1536_v20 = vor.u32 %v1853_v9, %v1533_v10  ;;  %v1911_v12 = vld [vmem:[%s2862_s1 + $0x474] sm:$0xf]  ;;  %v1392_v11 = vor.u32 %v1817_v31, %v1389_v32 }
  0x67   :  { %1121 = vmatpush.bf16.msrb.mxu3 %v1640_v24  ;;  %v1616_v61 = vor.u32 %v1873_v53, %v1613_v7  ;;  %v1851_v24 = vld [vmem:[%s2862_s1 + $0x294] sm:$0xf]  ;;  %v1693_v53 = vld [vmem:[%s2862_s1 + $0x3e8] sm:$0xf0]  ;;  %v1584_v7 = vor.u32 %v1865_v46, %v1581_v47  ;;  %v1736_v9 = vor.u32 %v1903_v4, %v1733_v5  ;;  %v1885_v10 = vld [vmem:[%s2862_s1 + $0x3a4] sm:$0xf] }
  0x68   :  { %1083 = vmatpush.bf16.msrb.mxu0 %v1440_v25  ;;  %v1525_v25 = vld [vmem:[%s2862_s1 + $0x298] sm:$0xf0]  ;;  %v1899_v21 = vld [vmem:[%s2862_s1 + $0x414] sm:$0xf]  ;;  %v1169_v5 = vld [vmem:[%s2864_s2] sm:$0x3] }
  0x69   :  { %1096 = vmatpush.bf16.msrb.mxu1 %v1504_v26  ;;  %v1600_v26 = vor.u32 %v1869_v16, %v1597_v18  ;;  %v1528_v33 = vor.u32 %v1851_v24, %v1525_v25  ;;  %v1720_v24 = vor.u32 %v1899_v21, %v1717_v22  ;;  %v1881_v25 = vld [vmem:[%s2862_s1 + $0x384] sm:$0xf]  ;;  %v1172_v21 = vperm.slane %v1169_v5, 1 }
  0x6a   :  { %1109 = vmatpush.bf16.msrb.mxu2 %v1568_v30  ;;  %v1589_v30 = vld [vmem:[%s2862_s1 + $0x318] sm:$0xf0] }
  0x6b   :  { %1122 = vmatpush.bf16.msrb.mxu3 %v1632_v37  ;;  %v1849_v37 = vld [vmem:[%s2862_s1 + $0x284] sm:$0xf]  ;;  %v1592_v42 = vor.u32 %v1867_v27, %v1589_v30 }
  0x6c   :  { %1084 = vmatpush.bf16.msrb.mxu0 %v1432_v38  ;;  %v1517_v38 = vld [vmem:[%s2862_s1 + $0x288] sm:$0xf0]  ;;  %v1897_v27 = vld [vmem:[%s2862_s1 + $0x404] sm:$0xf] }
  0x6d   :  { %1097 = vmatpush.bf16.msrb.mxu1 %v1496_v40  ;;  %v1895_v40 = vld [vmem:[%s2862_s1 + $0x3f4] sm:$0xf]  ;;  %v1520_v48 = vor.u32 %v1849_v37, %v1517_v38 }
  0x6e   :  { %1110 = vmatpush.bf16.msrb.mxu2 %v1560_v44  ;;  %v1765_v44 = vld [vmem:[%s2862_s1 + $0x478] sm:$0xf0] }
  0x6f   :  { %1123 = vmatpush.bf16.msrb.mxu3 %v1624_v50  ;;  %v1704_v50 = vor.u32 %v1895_v40, %v1701_v41 }
  0x70   :  { %1085 = vmatpush.bf16.msrb.mxu0 %v1424_v51  ;;  %v1768_v51 = vor.u32 %v1911_v12, %v1765_v44 }
  0x71   :  { %1098 = vmatpush.bf16.msrb.mxu1 %v1488_v52  ;;  %v1893_v52 = vld [vmem:[%s2862_s1 + $0x3e4] sm:$0xf] }
  0x72   :  { %1111 = vmatpush.bf16.msrb.mxu2 %v1552_v55  ;;  %v1757_v55 = vld [vmem:[%s2862_s1 + $0x468] sm:$0xf0]  ;;  %v1696_v56 = vor.u32 %v1893_v52, %v1693_v53 }
  0x73   :  { %1124 = vmatpush.bf16.msrb.mxu3 %v1616_v61  ;;  %v1760_v57 = vor.u32 %v1909_v54, %v1757_v55  ;;  %v1749_v61 = vld [vmem:[%s2862_s1 + $0x458] sm:$0xf0] }
  0x74   :  { %1086 = vmatpush.bf16.msrb.mxu0 %v1416_v62  ;;  %v1688_v62 = vor.u32 %v1891_v58, %v1685_v59 }
  0x75   :  { %1099 = vmatpush.bf16.msrb.mxu1 %v1480_v63  ;;  %v1752_v63 = vor.u32 %v1907_v60, %v1749_v61 }
  0x76   :  { %1112 = vmatpush.bf16.msrb.mxu2 %v1544_v3  ;;  %v1669_v3 = vld [vmem:[%s2862_s1 + $0x3b8] sm:$0xf0] }
  0x77   :  { %1125 = vmatpush.bf16.msrb.mxu3 %v1608_v13  ;;  %v1672_v6 = vor.u32 %v1887_v2, %v1669_v3  ;;  %v1661_v13 = vld [vmem:[%s2862_s1 + $0x3a8] sm:$0xf0] }
  0x78   :  { %1087 = vmatpush.bf16.msrb.mxu0 %v1408_v14  ;;  %v1901_v14 = vld [vmem:[%s2862_s1 + $0x424] sm:$0xf]  ;;  %v1664_v16 = vor.u32 %v1885_v10, %v1661_v13  ;;  %v1171_v10 = vperm.slane %v1169_v5, 0  ;;  %v1177_v13 = vld [vmem:[%s2865_s3] sm:$0x3] }
  0x79   :  { %1100 = vmatpush.bf16.msrb.mxu1 %v1472_v15  ;;  %v1725_v15 = vld [vmem:[%s2862_s1 + $0x428] sm:$0xf0] }
  0x7a   :  { %1113 = vmatpush.bf16.msrb.mxu2 %v1536_v20  ;;  %v1728_v18 = vor.u32 %v1901_v14, %v1725_v15  ;;  %v1653_v20 = vld [vmem:[%s2862_s1 + $0x398] sm:$0xf0] }
  0x7b   :  { %1126 = vmatpush.bf16.msrb.mxu3 %v1600_v26  ;;  %v1656_v23 = vor.u32 %v1883_v19, %v1653_v20  ;;  %v1645_v26 = vld [vmem:[%s2862_s1 + $0x388] sm:$0xf0] }
  0x7c   :  { %1088 = vmatpush.bf16.msrb.mxu0 %v1400_v28  ;;  %v1709_v28 = vld [vmem:[%s2862_s1 + $0x408] sm:$0xf0] }
  0x7d   :  { %1101 = vmatpush.bf16.msrb.mxu1 %v1464_v29  ;;  %v1648_v29 = vor.u32 %v1881_v25, %v1645_v26  ;;  %v1712_v30 = vor.u32 %v1897_v27, %v1709_v28 }
  0x7e   :  { %1114 = vmatpush.bf16.msrb.mxu2 %v1528_v33 }
  0x7f   :  { %1127 = vmatpush.bf16.msrb.mxu3 %v1592_v42 }
  0x80   :  { %1089 = vmatpush.bf16.msrb.mxu0 %v1392_v11 }
  0x81   :  { %1102 = vmatpush.bf16.msrb.mxu1 %v1456_v45 }
  0x82   :  { %1115 = vmatpush.bf16.msrb.mxu2 %v1520_v48 }
  0x83   :  { %1128 = vmatpush.bf16.msrb.mxu3 %v1584_v7  ;;  %1090 = vmatmul.bf16.vlgmr.msrb.gmra.mxu0 %v2210_v8  ;;  %v1889_v8 = vld [vmem:[%s2862_s1 + $0x3c4] sm:$0xf] }
  0x84   :  { %1134 = vmatpush.bf16.msra.mxu0 %v1704_v50  ;;  %1103 = vmatmul.bf16.vlgmr.msrb.gmra.mxu1 %v2388_v36  ;;  %v1741_v36 = vld [vmem:[%s2862_s1 + $0x448] sm:$0xf0]  ;;  %v1680_v1 = vor.u32 %v1889_v8, %v1677_v0 }
  0x85   :  { %1147 = vmatpush.bf16.msra.mxu1 %v1768_v51  ;;  %1116 = vmatmul.bf16.vlgmr.msrb.gmra.mxu2 %v2398_v43  ;;  %v1905_v43 = vld [vmem:[%s2862_s1 + $0x444] sm:$0xf] }
  0x86   :  { %1129 = vmatmul.bf16.vlgmr.msrb.gmra.mxu3 %v2390_v39  ;;  %v1744_v39 = vor.u32 %v1905_v43, %v1741_v36 }
  0x88   :  { %1135 = vmatpush.bf16.msra.mxu0 %v1696_v56 }
  0x89   :  { %1148 = vmatpush.bf16.msra.mxu1 %v1760_v57 }
  0x8c   :  { %1136 = vmatpush.bf16.msra.mxu0 %v1688_v62 }
  0x8d   :  { %1149 = vmatpush.bf16.msra.mxu1 %v1752_v63 }
  0x90   :  { %1137 = vmatpush.bf16.msra.mxu0 %v1680_v1 }
  0x91   :  { %1150 = vmatpush.bf16.msra.mxu1 %v1744_v39 }
  0x94   :  { %1138 = vmatpush.bf16.msra.mxu0 %v1672_v6 }
  0x95   :  { %1151 = vmatpush.bf16.msra.mxu1 %v1736_v9 }
  0x98   :  { %1139 = vmatpush.bf16.msra.mxu0 %v1664_v16 }
  0x99   :  { %1152 = vmatpush.bf16.msra.mxu1 %v1728_v18  ;;  %v1179_v18 = vperm.slane %v1177_v13, 0 }
  0x9c   :  { %1140 = vmatpush.bf16.msra.mxu0 %v1656_v23  ;;  %v1180_v23 = vperm.slane %v1177_v13, 1 }
  0x9d   :  { %1153 = vmatpush.bf16.msra.mxu1 %v1720_v24 }
  0xa0   :  { %1141 = vmatpush.bf16.msra.mxu0 %v1648_v29  ;;  %v935_v31 = vpop.f32.mrf.mxu0 }
  0xa1   :  { %1154 = vmatpush.bf16.msra.mxu1 %v1712_v30  ;;  %v948_v32 = vpop.f32.mrf.mxu1 }
  0xa2   :  { %v949_v33 = vadd.f32 %v948_v32, %v935_v31 }
  0xa3   :  { %1142 = vmatmul.bf16.vlgmr.msra.gmra.mxu0 %v2410_v49 }
  0xa4   :  { %1155 = vmatmul.bf16.vlgmr.msra.gmra.mxu1 %v2580_v17 }
  0xa8   :  { %v961_v35 = vpop.f32.mrf.mxu2  ;;  %v937_v40 = vpop.f32.mrf.mxu0 }
  0xa9   :  { %v974_v34 = vpop.f32.mrf.mxu3  ;;  %v962_v37 = vadd.f32 %v961_v35, %v949_v33  ;;  %v950_v41 = vpop.f32.mrf.mxu1 }
  0xab   :  { %v975_v38 = vadd.f32 %v974_v34, %v962_v37 }
  0xb0   :  { %v963_v12 = vpop.f32.mrf.mxu2 }
  0xb1   :  { %v976_v42 = vpop.f32.mrf.mxu3 }
  0xc0   :  { %v987_v44 = vpop.f32.mrf.mxu0 }
  0xc1   :  { %v988_v11 = vadd.f32 %v987_v44, %v975_v38  ;;  %v1000_v45 = vpop.f32.mrf.mxu1 }
  0xc3   :  { %v1001_v46 = vadd.f32 %v1000_v45, %v988_v11 }
  0xc8   :  { %v1013_v47 = vpop.f32.mrf.mxu2  ;;  %v989_v49 = vpop.f32.mrf.mxu0 }
  0xc9   :  { %v1014_v48 = vadd.f32 %v1013_v47, %v1001_v46  ;;  %v1026_v50 = vpop.f32.mrf.mxu3  ;;  %v1002_v17 = vpop.f32.mrf.mxu1 }
  0xcb   :  { %v1027_v51 = vadd.f32 %v1026_v50, %v1014_v48 }
  0xd0   :  { %v1015_v52 = vpop.f32.mrf.mxu2 }
  0xd1   :  { %v1028_v53 = vpop.f32.mrf.mxu3 }
  0xe0   :  { %v1039_v7 = vpop.f32.mrf.mxu0 }
  0xe1   :  { %v1052_v54 = vpop.f32.mrf.mxu1  ;;  %v1040_v9 = vadd.f32 %v1039_v7, %v1027_v51 }
  0xe3   :  { %v1175_v16 = vmul.f32 %v1171_v10, %v1040_v9 }
  0xe5   :  { %v1183_v24 = vadd.f32 %v1179_v18, %v1175_v16 }
  0xe7   :  { %v1185_v28 = vmax.f32 %v1183_v24, 0.0 }
  0xe8   :  { %v1065_v55 = vpop.f32.mrf.mxu2  ;;  %v1041_v56 = vpop.f32.mrf.mxu0 }
  0xe9   :  { %v1078_v57 = vpop.f32.mrf.mxu3  ;;  %v1054_v58 = vpop.f32.mrf.mxu1  ;;  %v1066_v8 = vadd.f32 %v1065_v55, %v1052_v54 }
  0xeb   :  { %v1079_v1 = vadd.f32 %v1078_v57, %v1066_v8 }
  0xf0   :  { %v1067_v59 = vpop.f32.mrf.mxu2 }
  0xf1   :  { %v1080_v60 = vpop.f32.mrf.mxu3 }
 0x100   :  { %v1091_v61 = vpop.f32.mrf.mxu0 }
 0x101   :  { %v1104_v62 = vpop.f32.mrf.mxu1  ;;  %v1092_v2 = vadd.f32 %v1091_v61, %v1079_v1 }
 0x103   :  { %v1105_v4 = vadd.f32 %v1104_v62, %v1092_v2 }
 0x108   :  { %v1117_v63 = vpop.f32.mrf.mxu2  ;;  %v1093_v0 = vpop.f32.mrf.mxu0 }
 0x109   :  { %v1130_v43 = vpop.f32.mrf.mxu3  ;;  %v1106_v36 = vpop.f32.mrf.mxu1  ;;  %v1118_v6 = vadd.f32 %v1117_v63, %v1105_v4 }
 0x10b   :  { %v1131_v14 = vadd.f32 %v1130_v43, %v1118_v6 }
 0x110   :  { %v1119_v39 = vpop.f32.mrf.mxu2 }
 0x111   :  { %v1132_v3 = vpop.f32.mrf.mxu3 }
 0x120   :  { %v1143_v15 = vpop.f32.mrf.mxu0 }
 0x121   :  { %v1144_v19 = vadd.f32 %v1143_v15, %v1131_v14  ;;  %v1156_v20 = vpop.f32.mrf.mxu1 }
 0x123   :  { %v1157_v22 = vadd.f32 %v1156_v20, %v1144_v19 }
 0x125   :  { %v1176_v25 = vmul.f32 %v1172_v21, %v1157_v22 }
 0x127   :  { %v1184_v26 = vadd.f32 %v1180_v23, %v1176_v25 }
 0x128   :  { %v1145_v27 = vpop.f32.mrf.mxu0 }
 0x129   :  { %v1186_v29 = vmax.f32 %v1184_v26, 0.0  ;;  %v1158_v30 = vpop.f32.mrf.mxu1 }
 0x12b   :  { %v1187_v31 = vpack.c.bf16 %v1186_v29, %v1185_v28 }
 0x12d   :  { %1188 = vst [vmem:[%s2866_s4] sm:$0xff] %v1187_v31 }

// kernel: rgb_point_model_forward.16
= control target key start
LH: loop header
LB: loop body
LE: loop exit
PB: predicated region body
PF: predicated region fallthrough
CT: control target
= control target key end

     0   :  { %s1752_s15 = smov 0   ;;  %s1754_s16 = smov 0   ;;  %s2152_s0 = inlined_call_operand.vmem [shape: bf16[8,2560], index: 0, kind: input, shape index: {}]   ;;  %s2153_s1 = inlined_call_operand.vmem [shape: bf16[2560,512], index: 1, kind: input, shape index: {}]   ;;  %s2154_s2 = inlined_call_operand.vmem [shape: f32[1,512], index: 2, kind: input, shape index: {}]   ;;  %s2155_s3 = inlined_call_operand.vmem [shape: f32[1,512], index: 3, kind: input, shape index: {}]   ;;  %s2156_s4 = inlined_call_operand.vmem [shape: bf16[8,512], index: 4, kind: output, shape index: {}]  }
   0x1   :  { %s1756_s17 = smov 0   ;;  %s1758_s18 = smov 0  }
   0x2   :  { %s1760_s19 = smov 0   ;;  %s1762_s20 = smov 0  }
   0x3   :  { %s1764_s21 = smov 0  }
   0x4 LB: > { %s26_s22 = sadd.s32 1, %s1716_s19  ;;  %s29_s23 = sadd.s32 1, %s1720_s20  ;;  %s1724_s21 = sphi %s1764_s21, %s14_s21   ;;  %s1720_s20 = sphi %s1762_s20, %s2162_s20   ;;  %s1716_s19 = sphi %s1760_s19, %s2161_s19   ;;  %s1712_s18 = sphi %s1758_s18, %s2160_s18   ;;  %s1708_s17 = sphi %s1756_s17, %s2159_s17   ;;  %s1704_s16 = sphi %s1754_s16, %s2158_s16   ;;  %s1700_s15 = sphi %s1752_s15, %s2157_s15  }
   0x5   : > { %p27_p0 = scmp.ge.s32.totalorder %s26_s22, 5  ;;  %p77_p1 = scmp.ne.s32.totalorder %s1704_s16, %s1700_s15 }
   0x6   : > { %p78_p2 = scmp.eq.s32.totalorder %s1724_s21, 0  ;;  %s70_s27 = sadd.s32 1, %s1704_s16 }
   0x7   : > { %s2164_s22 = smov (%p27_p0, %s26_s22), 0  ;;  %s2166_s23 = smov (!%p27_p0, %s29_s23), %s1720_s20 }
   0x8   : > { %p79_p3 = por %p78_p2, %p77_p1  ;;  %p31_p4 = scmp.ge.s32.totalorder %s2166_s23, 2 }
   0x9   : > { %s65_s24 = ssub.s32 %s1716_s19, %s2164_s22  ;;  %p1274_p6 = scmp.ge.s32.totalorder %s1724_s21, 10 }
   0xa   : > { %s2168_s23 = smov (%p31_p4, %s2166_s23), 0 }
   0xb   : > { %s66_s25 = ssub.s32 %s1720_s20, %s2168_s23  ;;  %183 = sbr.rel (%p1274_p6) target bundleno = 87 (0x57), region = 16 }
   0xc   : > { %s67_s26 = sor.u32 %s66_s25, %s65_s24 }
   0xd   : > { %p68_p5 = scmp.eq.s32.totalorder %s67_s26, 0 }
   0xf   : > { %s1803_s28 = scalar_select %p68_p5, %s1704_s16, %s70_s27  }
  0x10   : > { %199 = sbr.rel (!%p79_p3) target bundleno = 87 (0x57), region = 24  ;;  %s201_s29 = sand.u32 (%p79_p3), 1, %s1704_s16  }
  0x11   : > { %s1277_s30 = sshll.u32 (%p79_p3), %s1720_s20, 1  ;;  %s1275_s5 = sshll.u32 (%p79_p3), %s201_s29, 9 }
  0x12   : > { %s1548_s6 = sshll.u32 (%p79_p3), %s1716_s19, 8  ;;  %s1817_s12 = scalar_lea.vmem (%p79_p3), [#allocation3], %s1275_s5 }
  0x13   : > { %s207_s7 = sadd.s32 (%p79_p3), %s1548_s6, %s1277_s30 }
  0x14   : > { %s1279_s8 = sshll.u32 (%p79_p3), %s207_s7, 2 }
  0x15   : > { %s1812_s11 = scalar_lea.vmem %s2153_s1, %s1279_s8 }
  0x16   : > { %v364_v0 = vld [vmem:[%s1812_s11] sm:$0xff]  ;;  %v366_v1 = vld [vmem:[%s1812_s11 + $0x10] sm:$0xff] }
  0x17   : > { %v368_v2 = vld [vmem:[%s1812_s11 + $0x20] sm:$0xff]  ;;  %365 = vst [vmem:[%s1817_s12] sm:$0xff] %v364_v0  ;;  %v370_v3 = vld [vmem:[%s1812_s11 + $0x30] sm:$0xff] }
  0x18   : > { %367 = vst [vmem:[%s1817_s12 + $0x8] sm:$0xff] %v366_v1  ;;  %v372_v4 = vld [vmem:[%s1812_s11 + $0x40] sm:$0xff]  ;;  %v374_v5 = vld [vmem:[%s1812_s11 + $0x50] sm:$0xff] }
  0x19   : > { %369 = vst [vmem:[%s1817_s12 + $0x10] sm:$0xff] %v368_v2  ;;  %v376_v6 = vld [vmem:[%s1812_s11 + $0x60] sm:$0xff]  ;;  %v378_v7 = vld [vmem:[%s1812_s11 + $0x70] sm:$0xff] }
  0x1a   : > { %371 = vst [vmem:[%s1817_s12 + $0x18] sm:$0xff] %v370_v3  ;;  %v380_v8 = vld [vmem:[%s1812_s11 + $0x80] sm:$0xff]  ;;  %v382_v9 = vld [vmem:[%s1812_s11 + $0x90] sm:$0xff] }
  0x1b   : > { %373 = vst [vmem:[%s1817_s12 + $0x20] sm:$0xff] %v372_v4  ;;  %v384_v10 = vld [vmem:[%s1812_s11 + $0xa0] sm:$0xff]  ;;  %v386_v11 = vld [vmem:[%s1812_s11 + $0xb0] sm:$0xff] }
  0x1c   : > { %375 = vst [vmem:[%s1817_s12 + $0x28] sm:$0xff] %v374_v5  ;;  %v388_v12 = vld [vmem:[%s1812_s11 + $0xc0] sm:$0xff]  ;;  %v390_v13 = vld [vmem:[%s1812_s11 + $0xd0] sm:$0xff] }
  0x1d   : > { %377 = vst [vmem:[%s1817_s12 + $0x30] sm:$0xff] %v376_v6  ;;  %v392_v14 = vld [vmem:[%s1812_s11 + $0xe0] sm:$0xff]  ;;  %v394_v15 = vld [vmem:[%s1812_s11 + $0xf0] sm:$0xff] }
  0x1e   : > { %379 = vst [vmem:[%s1817_s12 + $0x38] sm:$0xff] %v378_v7  ;;  %v396_v16 = vld [vmem:[%s1812_s11 + $0x100] sm:$0xff]  ;;  %v398_v17 = vld [vmem:[%s1812_s11 + $0x110] sm:$0xff] }
  0x1f   : > { %381 = vst [vmem:[%s1817_s12 + $0x40] sm:$0xff] %v380_v8  ;;  %v400_v18 = vld [vmem:[%s1812_s11 + $0x120] sm:$0xff]  ;;  %v402_v19 = vld [vmem:[%s1812_s11 + $0x130] sm:$0xff] }
  0x20   : > { %383 = vst [vmem:[%s1817_s12 + $0x48] sm:$0xff] %v382_v9  ;;  %v404_v20 = vld [vmem:[%s1812_s11 + $0x140] sm:$0xff]  ;;  %v406_v21 = vld [vmem:[%s1812_s11 + $0x150] sm:$0xff] }
  0x21   : > { %385 = vst [vmem:[%s1817_s12 + $0x50] sm:$0xff] %v384_v10  ;;  %v408_v22 = vld [vmem:[%s1812_s11 + $0x160] sm:$0xff]  ;;  %v410_v23 = vld [vmem:[%s1812_s11 + $0x170] sm:$0xff] }
  0x22   : > { %387 = vst [vmem:[%s1817_s12 + $0x58] sm:$0xff] %v386_v11  ;;  %v412_v24 = vld [vmem:[%s1812_s11 + $0x180] sm:$0xff]  ;;  %v414_v25 = vld [vmem:[%s1812_s11 + $0x190] sm:$0xff] }
  0x23   : > { %389 = vst [vmem:[%s1817_s12 + $0x60] sm:$0xff] %v388_v12  ;;  %v416_v26 = vld [vmem:[%s1812_s11 + $0x1a0] sm:$0xff]  ;;  %v418_v27 = vld [vmem:[%s1812_s11 + $0x1b0] sm:$0xff] }
  0x24   : > { %391 = vst [vmem:[%s1817_s12 + $0x68] sm:$0xff] %v390_v13  ;;  %v420_v28 = vld [vmem:[%s1812_s11 + $0x1c0] sm:$0xff]  ;;  %v422_v29 = vld [vmem:[%s1812_s11 + $0x1d0] sm:$0xff] }
  0x25   : > { %393 = vst [vmem:[%s1817_s12 + $0x70] sm:$0xff] %v392_v14  ;;  %v424_v30 = vld [vmem:[%s1812_s11 + $0x1e0] sm:$0xff]  ;;  %v426_v31 = vld [vmem:[%s1812_s11 + $0x1f0] sm:$0xff] }
  0x26   : > { %395 = vst [vmem:[%s1817_s12 + $0x78] sm:$0xff] %v394_v15  ;;  %v428_v32 = vld [vmem:[%s1812_s11 + $0x200] sm:$0xff]  ;;  %v430_v33 = vld [vmem:[%s1812_s11 + $0x210] sm:$0xff] }
  0x27   : > { %397 = vst [vmem:[%s1817_s12 + $0x80] sm:$0xff] %v396_v16  ;;  %v432_v34 = vld [vmem:[%s1812_s11 + $0x220] sm:$0xff]  ;;  %v434_v35 = vld [vmem:[%s1812_s11 + $0x230] sm:$0xff] }
  0x28   : > { %399 = vst [vmem:[%s1817_s12 + $0x88] sm:$0xff] %v398_v17  ;;  %v436_v36 = vld [vmem:[%s1812_s11 + $0x240] sm:$0xff]  ;;  %v438_v37 = vld [vmem:[%s1812_s11 + $0x250] sm:$0xff] }
  0x29   : > { %401 = vst [vmem:[%s1817_s12 + $0x90] sm:$0xff] %v400_v18  ;;  %v440_v38 = vld [vmem:[%s1812_s11 + $0x260] sm:$0xff]  ;;  %v442_v39 = vld [vmem:[%s1812_s11 + $0x270] sm:$0xff] }
  0x2a   : > { %403 = vst [vmem:[%s1817_s12 + $0x98] sm:$0xff] %v402_v19  ;;  %v444_v40 = vld [vmem:[%s1812_s11 + $0x280] sm:$0xff]  ;;  %v446_v41 = vld [vmem:[%s1812_s11 + $0x290] sm:$0xff] }
  0x2b   : > { %405 = vst [vmem:[%s1817_s12 + $0xa0] sm:$0xff] %v404_v20  ;;  %v448_v42 = vld [vmem:[%s1812_s11 + $0x2a0] sm:$0xff]  ;;  %v450_v43 = vld [vmem:[%s1812_s11 + $0x2b0] sm:$0xff] }
  0x2c   : > { %407 = vst [vmem:[%s1817_s12 + $0xa8] sm:$0xff] %v406_v21  ;;  %v452_v44 = vld [vmem:[%s1812_s11 + $0x2c0] sm:$0xff]  ;;  %v454_v45 = vld [vmem:[%s1812_s11 + $0x2d0] sm:$0xff] }
  0x2d   : > { %409 = vst [vmem:[%s1817_s12 + $0xb0] sm:$0xff] %v408_v22  ;;  %v456_v46 = vld [vmem:[%s1812_s11 + $0x2e0] sm:$0xff]  ;;  %v458_v47 = vld [vmem:[%s1812_s11 + $0x2f0] sm:$0xff] }
  0x2e   : > { %411 = vst [vmem:[%s1817_s12 + $0xb8] sm:$0xff] %v410_v23  ;;  %v460_v48 = vld [vmem:[%s1812_s11 + $0x300] sm:$0xff]  ;;  %v462_v49 = vld [vmem:[%s1812_s11 + $0x310] sm:$0xff] }
  0x2f   : > { %413 = vst [vmem:[%s1817_s12 + $0xc0] sm:$0xff] %v412_v24  ;;  %v464_v50 = vld [vmem:[%s1812_s11 + $0x320] sm:$0xff]  ;;  %v466_v51 = vld [vmem:[%s1812_s11 + $0x330] sm:$0xff] }
  0x30   : > { %415 = vst [vmem:[%s1817_s12 + $0xc8] sm:$0xff] %v414_v25  ;;  %v468_v52 = vld [vmem:[%s1812_s11 + $0x340] sm:$0xff]  ;;  %v470_v53 = vld [vmem:[%s1812_s11 + $0x350] sm:$0xff] }
  0x31   : > { %417 = vst [vmem:[%s1817_s12 + $0xd0] sm:$0xff] %v416_v26  ;;  %v472_v54 = vld [vmem:[%s1812_s11 + $0x360] sm:$0xff]  ;;  %v474_v55 = vld [vmem:[%s1812_s11 + $0x370] sm:$0xff] }
  0x32   : > { %419 = vst [vmem:[%s1817_s12 + $0xd8] sm:$0xff] %v418_v27  ;;  %v476_v56 = vld [vmem:[%s1812_s11 + $0x380] sm:$0xff]  ;;  %v478_v57 = vld [vmem:[%s1812_s11 + $0x390] sm:$0xff] }
  0x33   : > { %421 = vst [vmem:[%s1817_s12 + $0xe0] sm:$0xff] %v420_v28  ;;  %v480_v58 = vld [vmem:[%s1812_s11 + $0x3a0] sm:$0xff]  ;;  %v482_v59 = vld [vmem:[%s1812_s11 + $0x3b0] sm:$0xff] }
  0x34   : > { %423 = vst [vmem:[%s1817_s12 + $0xe8] sm:$0xff] %v422_v29  ;;  %v484_v60 = vld [vmem:[%s1812_s11 + $0x3c0] sm:$0xff]  ;;  %v486_v61 = vld [vmem:[%s1812_s11 + $0x3d0] sm:$0xff] }
  0x35   : > { %425 = vst [vmem:[%s1817_s12 + $0xf0] sm:$0xff] %v424_v30  ;;  %v488_v62 = vld [vmem:[%s1812_s11 + $0x3e0] sm:$0xff]  ;;  %v490_v63 = vld [vmem:[%s1812_s11 + $0x3f0] sm:$0xff] }
  0x36   : > { %427 = vst [vmem:[%s1817_s12 + $0xf8] sm:$0xff] %v426_v31 }
  0x37   : > { %429 = vst [vmem:[%s1817_s12 + $0x100] sm:$0xff] %v428_v32 }
  0x38   : > { %431 = vst [vmem:[%s1817_s12 + $0x108] sm:$0xff] %v430_v33 }
  0x39   : > { %433 = vst [vmem:[%s1817_s12 + $0x110] sm:$0xff] %v432_v34 }
  0x3a   : > { %435 = vst [vmem:[%s1817_s12 + $0x118] sm:$0xff] %v434_v35 }
  0x3b   : > { %437 = vst [vmem:[%s1817_s12 + $0x120] sm:$0xff] %v436_v36 }
  0x3c   : > { %439 = vst [vmem:[%s1817_s12 + $0x128] sm:$0xff] %v438_v37 }
  0x3d   : > { %441 = vst [vmem:[%s1817_s12 + $0x130] sm:$0xff] %v440_v38 }
  0x3e   : > { %443 = vst [vmem:[%s1817_s12 + $0x138] sm:$0xff] %v442_v39 }
  0x3f   : > { %445 = vst [vmem:[%s1817_s12 + $0x140] sm:$0xff] %v444_v40 }
  0x40   : > { %447 = vst [vmem:[%s1817_s12 + $0x148] sm:$0xff] %v446_v41 }
  0x41   : > { %449 = vst [vmem:[%s1817_s12 + $0x150] sm:$0xff] %v448_v42 }
  0x42   : > { %451 = vst [vmem:[%s1817_s12 + $0x158] sm:$0xff] %v450_v43 }
  0x43   : > { %453 = vst [vmem:[%s1817_s12 + $0x160] sm:$0xff] %v452_v44 }
  0x44   : > { %455 = vst [vmem:[%s1817_s12 + $0x168] sm:$0xff] %v454_v45 }
  0x45   : > { %457 = vst [vmem:[%s1817_s12 + $0x170] sm:$0xff] %v456_v46 }
  0x46   : > { %459 = vst [vmem:[%s1817_s12 + $0x178] sm:$0xff] %v458_v47 }
  0x47   : > { %461 = vst [vmem:[%s1817_s12 + $0x180] sm:$0xff] %v460_v48 }
  0x48   : > { %463 = vst [vmem:[%s1817_s12 + $0x188] sm:$0xff] %v462_v49 }
  0x49   : > { %465 = vst [vmem:[%s1817_s12 + $0x190] sm:$0xff] %v464_v50 }
  0x4a   : > { %467 = vst [vmem:[%s1817_s12 + $0x198] sm:$0xff] %v466_v51 }
  0x4b   : > { %469 = vst [vmem:[%s1817_s12 + $0x1a0] sm:$0xff] %v468_v52 }
  0x4c   : > { %471 = vst [vmem:[%s1817_s12 + $0x1a8] sm:$0xff] %v470_v53 }
  0x4d   : > { %473 = vst [vmem:[%s1817_s12 + $0x1b0] sm:$0xff] %v472_v54 }
  0x4e   : > { %475 = vst [vmem:[%s1817_s12 + $0x1b8] sm:$0xff] %v474_v55 }
  0x4f   : > { %477 = vst [vmem:[%s1817_s12 + $0x1c0] sm:$0xff] %v476_v56 }
  0x50   : > { %479 = vst [vmem:[%s1817_s12 + $0x1c8] sm:$0xff] %v478_v57 }
  0x51   : > { %481 = vst [vmem:[%s1817_s12 + $0x1d0] sm:$0xff] %v480_v58 }
  0x52   : > { %483 = vst [vmem:[%s1817_s12 + $0x1d8] sm:$0xff] %v482_v59 }
  0x53   : > { %485 = vst [vmem:[%s1817_s12 + $0x1e0] sm:$0xff] %v484_v60 }
  0x54   : > { %487 = vst [vmem:[%s1817_s12 + $0x1e8] sm:$0xff] %v486_v61 }
  0x55   : > { %489 = vst [vmem:[%s1817_s12 + $0x1f0] sm:$0xff] %v488_v62 }
  0x56   : > { %491 = vst [vmem:[%s1817_s12 + $0x1f8] sm:$0xff] %v490_v63 }
  0x57 PF: > { %p1280_p7 = scmp.ge.s32.totalorder %s1724_s21, 1  ;;  %p512_p8 = scmp.lt.s32.totalorder %s1724_s21, 11 }
  0x59   : > { %p513_p9 = pnand %p1280_p7, %p512_p8 }
  0x5a   : > { %s519_s13 = sand.u32 (!%p513_p9), 1, %s1700_s15   ;;  %s1282_s14 = sshll.u32 (!%p513_p9), %s1708_s17, 2 }
  0x5b   : > { %516 = sbr.rel (%p513_p9) target bundleno = 330 (0x14a), region = 70  ;;  %s1281_s24 = sshll.u32 (!%p513_p9), %s519_s13, 9 }
  0x5c   : > { %p568_p10 = scmp.lt.s32.totalorder (!%p513_p9), %s1282_s14, 19  ;;  %s1284_s25 = sshll.u32 (!%p513_p9), %s1712_s18, 1 }
  0x5d   : > { %p578_p11 = scmp.lt.s32.totalorder (!%p513_p9), %s1284_s25, 3  ;;  %s1970_s13 = scalar_lea.vmem (!%p513_p9), [#allocation3], %s1281_s24 }
  0x5e   : > { %p1288_p12 = scmp.ne.s32.totalorder (!%p513_p9), %s1708_s17, 0 }
  0x60   : > { %s2170_s14 = smov (!%p568_p10, %s1282_s14), 19  ;;  %s2172_s25 = smov (!%p578_p11, %s1284_s25), 3 }
  0x61   : > { %s1283_s26 = sshll.u32 %s2170_s14, 2  ;;  %s580_s15 = scalar_lea.vmem %s2154_s2, %s2172_s25 }
  0x62   : > { %s1952_s30 = scalar_lea.vmem %s2152_s0, %s1283_s26  ;;  %s585_s18 = scalar_lea.vmem %s2155_s3, %s2172_s25 }
  0x63   : > { %s1287_s9 = sshll.u32 %s2172_s25, 2  ;;  %600 = sbr.rel (%p1288_p12) target bundleno = 107 (0x6b), region = 78 }
  0x64   : > { %s1968_s12 = scalar_lea.vmem %s2156_s4, %s1287_s9 }
  0x68   : > { %v1726_v0 = vmov 0.0  }
  0x69   : > { %601 = vst [vmem:[#allocation2] sm:$0xff] %v1726_v0 }
  0x6a   : > { %602 = vst [vmem:[#allocation2 + $0x8] sm:$0xff] %v1726_v0 }
  0x6b PF: > { %v1347_v1 = vld [vmem:[%s1970_s13 + $0x70] sm:$0xf]  ;;  %v1564_v2 = vld [vmem:[%s1970_s13 + $0x74] sm:$0xf0]  ;;  %v1339_v12 = vld [vmem:[%s1970_s13 + $0x60] sm:$0xf] }
  0x6c   : > { %v1411_v3 = vld [vmem:[%s1970_s13 + $0xf0] sm:$0xf]  ;;  %v1348_v4 = vor.u32 %v1564_v2, %v1347_v1  ;;  %v1580_v5 = vld [vmem:[%s1970_s13 + $0xf4] sm:$0xf0]  ;;  %v1562_v14 = vld [vmem:[%s1970_s13 + $0x64] sm:$0xf0] }
  0x6d   : > { %v1475_v6 = vld [vmem:[%s1970_s13 + $0x170] sm:$0xf]  ;;  %v1596_v7 = vld [vmem:[%s1970_s13 + $0x174] sm:$0xf0]  ;;  %v1412_v8 = vor.u32 %v1580_v5, %v1411_v3  ;;  %v1403_v15 = vld [vmem:[%s1970_s13 + $0xe0] sm:$0xf]  ;;  %v1340_v17 = vor.u32 %v1562_v14, %v1339_v12 }
  0x6e   : > { %v1476_v9 = vor.u32 %v1596_v7, %v1475_v6  ;;  %v1539_v10 = vld [vmem:[%s1970_s13 + $0x1f0] sm:$0xf]  ;;  %v1612_v11 = vld [vmem:[%s1970_s13 + $0x1f4] sm:$0xf0]  ;;  %1005 = vmatpush.bf16.msra.mxu0 %v1348_v4  ;;  %v1578_v16 = vld [vmem:[%s1970_s13 + $0xe4] sm:$0xf0] }
  0x6f   : > { %v1540_v13 = vor.u32 %v1612_v11, %v1539_v10  ;;  %1018 = vmatpush.bf16.msra.mxu1 %v1412_v8  ;;  %v1404_v18 = vor.u32 %v1578_v16, %v1403_v15  ;;  %v1467_v19 = vld [vmem:[%s1970_s13 + $0x160] sm:$0xf]  ;;  %v1594_v20 = vld [vmem:[%s1970_s13 + $0x164] sm:$0xf0]  ;;  %v1331_v24 = vld [vmem:[%s1970_s13 + $0x50] sm:$0xf] }
  0x70   : > { %1031 = vmatpush.bf16.msra.mxu2 %v1476_v9  ;;  %v1531_v21 = vld [vmem:[%s1970_s13 + $0x1e0] sm:$0xf]  ;;  %v1468_v22 = vor.u32 %v1594_v20, %v1467_v19  ;;  %v1610_v23 = vld [vmem:[%s1970_s13 + $0x1e4] sm:$0xf0]  ;;  %v1560_v25 = vld [vmem:[%s1970_s13 + $0x54] sm:$0xf0] }
  0x71   : > { %1044 = vmatpush.bf16.msra.mxu3 %v1540_v13  ;;  %v1532_v26 = vor.u32 %v1610_v23, %v1531_v21  ;;  %v1395_v27 = vld [vmem:[%s1970_s13 + $0xd0] sm:$0xf]  ;;  %v1576_v28 = vld [vmem:[%s1970_s13 + $0xd4] sm:$0xf0]  ;;  %v1332_v30 = vor.u32 %v1560_v25, %v1331_v24  ;;  %v1323_v36 = vld [vmem:[%s1970_s13 + $0x40] sm:$0xf] }
  0x72   : > { %v1459_v29 = vld [vmem:[%s1970_s13 + $0x150] sm:$0xf]  ;;  %1006 = vmatpush.bf16.msra.mxu0 %v1340_v17  ;;  %v1592_v31 = vld [vmem:[%s1970_s13 + $0x154] sm:$0xf0]  ;;  %v1396_v34 = vor.u32 %v1576_v28, %v1395_v27  ;;  %v1558_v37 = vld [vmem:[%s1970_s13 + $0x44] sm:$0xf0] }
  0x73   : > { %v1523_v32 = vld [vmem:[%s1970_s13 + $0x1d0] sm:$0xf]  ;;  %v1608_v33 = vld [vmem:[%s1970_s13 + $0x1d4] sm:$0xf0]  ;;  %1019 = vmatpush.bf16.msra.mxu1 %v1404_v18  ;;  %v1460_v35 = vor.u32 %v1592_v31, %v1459_v29  ;;  %v1387_v38 = vld [vmem:[%s1970_s13 + $0xc0] sm:$0xf]  ;;  %v1324_v45 = vor.u32 %v1558_v37, %v1323_v36 }
  0x74   : > { %1032 = vmatpush.bf16.msra.mxu2 %v1468_v22  ;;  %v1524_v39 = vor.u32 %v1608_v33, %v1523_v32  ;;  %v1574_v40 = vld [vmem:[%s1970_s13 + $0xc4] sm:$0xf0]  ;;  %v1451_v41 = vld [vmem:[%s1970_s13 + $0x140] sm:$0xf]  ;;  %v1315_v48 = vld [vmem:[%s1970_s13 + $0x30] sm:$0xf] }
  0x75   : > { %1045 = vmatpush.bf16.msra.mxu3 %v1532_v26  ;;  %v1590_v42 = vld [vmem:[%s1970_s13 + $0x144] sm:$0xf0]  ;;  %v1515_v43 = vld [vmem:[%s1970_s13 + $0x1c0] sm:$0xf]  ;;  %v1388_v46 = vor.u32 %v1574_v40, %v1387_v38  ;;  %v1556_v49 = vld [vmem:[%s1970_s13 + $0x34] sm:$0xf0] }
  0x76   : > { %v1606_v44 = vld [vmem:[%s1970_s13 + $0x1c4] sm:$0xf0]  ;;  %1007 = vmatpush.bf16.msra.mxu0 %v1332_v30  ;;  %v1452_v47 = vor.u32 %v1590_v42, %v1451_v41  ;;  %v1379_v50 = vld [vmem:[%s1970_s13 + $0xb0] sm:$0xf]  ;;  %v1572_v52 = vld [vmem:[%s1970_s13 + $0xb4] sm:$0xf0]  ;;  %v1316_v57 = vor.u32 %v1556_v49, %v1315_v48 }
  0x77   : > { %1020 = vmatpush.bf16.msra.mxu1 %v1396_v34  ;;  %v1516_v51 = vor.u32 %v1606_v44, %v1515_v43  ;;  %v1443_v53 = vld [vmem:[%s1970_s13 + $0x130] sm:$0xf]  ;;  %v1588_v54 = vld [vmem:[%s1970_s13 + $0x134] sm:$0xf0]  ;;  %v1380_v58 = vor.u32 %v1572_v52, %v1379_v50  ;;  %v1307_v60 = vld [vmem:[%s1970_s13 + $0x20] sm:$0xf] }
  0x78   : > { %1033 = vmatpush.bf16.msra.mxu2 %v1460_v35  ;;  %v1507_v55 = vld [vmem:[%s1970_s13 + $0x1b0] sm:$0xf]  ;;  %v1604_v56 = vld [vmem:[%s1970_s13 + $0x1b4] sm:$0xf0]  ;;  %v1444_v59 = vor.u32 %v1588_v54, %v1443_v53  ;;  %v1554_v61 = vld [vmem:[%s1970_s13 + $0x24] sm:$0xf0] }
  0x79   : > { %1046 = vmatpush.bf16.msra.mxu3 %v1524_v39  ;;  %v1371_v62 = vld [vmem:[%s1970_s13 + $0xa0] sm:$0xf]  ;;  %v1508_v63 = vor.u32 %v1604_v56, %v1507_v55  ;;  %v1570_v0 = vld [vmem:[%s1970_s13 + $0xa4] sm:$0xf0]  ;;  %v1308_v5 = vor.u32 %v1554_v61, %v1307_v60  ;;  %v1299_v8 = vld [vmem:[%s1970_s13 + $0x10] sm:$0xf] }
  0x7a   : > { %1008 = vmatpush.bf16.msra.mxu0 %v1324_v45  ;;  %v1435_v1 = vld [vmem:[%s1970_s13 + $0x120] sm:$0xf]  ;;  %v1586_v2 = vld [vmem:[%s1970_s13 + $0x124] sm:$0xf0]  ;;  %v1372_v6 = vor.u32 %v1570_v0, %v1371_v62  ;;  %v1552_v9 = vld [vmem:[%s1970_s13 + $0x14] sm:$0xf0] }
  0x7b   : > { %1021 = vmatpush.bf16.msra.mxu1 %v1388_v46  ;;  %v1499_v3 = vld [vmem:[%s1970_s13 + $0x1a0] sm:$0xf]  ;;  %v1602_v4 = vld [vmem:[%s1970_s13 + $0x1a4] sm:$0xf0]  ;;  %v1436_v7 = vor.u32 %v1586_v2, %v1435_v1  ;;  %v1363_v10 = vld [vmem:[%s1970_s13 + $0x90] sm:$0xf]  ;;  %v1300_v17 = vor.u32 %v1552_v9, %v1299_v8 }
  0x7c   : > { %1034 = vmatpush.bf16.msra.mxu2 %v1452_v47  ;;  %v1500_v11 = vor.u32 %v1602_v4, %v1499_v3  ;;  %v1568_v12 = vld [vmem:[%s1970_s13 + $0x94] sm:$0xf0]  ;;  %v1427_v13 = vld [vmem:[%s1970_s13 + $0x110] sm:$0xf]  ;;  %v1291_v18 = vld [vmem:[%s1970_s13] sm:$0xf] }
  0x7d   : > { %1047 = vmatpush.bf16.msra.mxu3 %v1516_v51  ;;  %v1584_v14 = vld [vmem:[%s1970_s13 + $0x114] sm:$0xf0]  ;;  %v1491_v15 = vld [vmem:[%s1970_s13 + $0x190] sm:$0xf]  ;;  %v1550_v19 = vld [vmem:[%s1970_s13 + $0x4] sm:$0xf0]  ;;  %v1364_v21 = vor.u32 %v1568_v12, %v1363_v10 }
  0x7e   : > { %1009 = vmatpush.bf16.msra.mxu0 %v1316_v57  ;;  %v1600_v16 = vld [vmem:[%s1970_s13 + $0x194] sm:$0xf0]  ;;  %v1355_v20 = vld [vmem:[%s1970_s13 + $0x80] sm:$0xf]  ;;  %v1428_v22 = vor.u32 %v1584_v14, %v1427_v13  ;;  %v1566_v23 = vld [vmem:[%s1970_s13 + $0x84] sm:$0xf0]  ;;  %v1292_v33 = vor.u32 %v1550_v19, %v1291_v18 }
  0x7f   : > { %1022 = vmatpush.bf16.msra.mxu1 %v1380_v58  ;;  %v1419_v24 = vld [vmem:[%s1970_s13 + $0x100] sm:$0xf]  ;;  %v1582_v25 = vld [vmem:[%s1970_s13 + $0x104] sm:$0xf0]  ;;  %v1492_v26 = vor.u32 %v1600_v16, %v1491_v15  ;;  %v1563_v29 = vld [vmem:[%s1970_s13 + $0x74] sm:$0xf]  ;;  %v1356_v38 = vor.u32 %v1566_v23, %v1355_v20 }
  0x80   : > { %1035 = vmatpush.bf16.msra.mxu2 %v1444_v59  ;;  %v1483_v27 = vld [vmem:[%s1970_s13 + $0x180] sm:$0xf]  ;;  %v1598_v28 = vld [vmem:[%s1970_s13 + $0x184] sm:$0xf0]  ;;  %v1349_v30 = vld [vmem:[%s1970_s13 + $0x78] sm:$0xf0]  ;;  %v1420_v39 = vor.u32 %v1582_v25, %v1419_v24 }
  0x81   : > { %1048 = vmatpush.bf16.msra.mxu3 %v1508_v63  ;;  %v1579_v31 = vld [vmem:[%s1970_s13 + $0xf4] sm:$0xf]  ;;  %v606_v32 = vld [vmem:[%s1952_s30 + $0x8] sm:$0xff]  ;;  %v1484_v43 = vor.u32 %v1598_v28, %v1483_v27  ;;  %v1352_v44 = vor.u32 %v1563_v29, %v1349_v30  ;;  %v1561_v48 = vld [vmem:[%s1970_s13 + $0x64] sm:$0xf]  ;;  %p1545_p13 = scmp.ne.s32.totalorder %s1708_s17, 4 }
  0x82   : > { %1010 = vmatpush.bf16.msra.mxu0 %v1308_v5  ;;  %v1413_v34 = vld [vmem:[%s1970_s13 + $0xf8] sm:$0xf0]  ;;  %v1595_v35 = vld [vmem:[%s1970_s13 + $0x174] sm:$0xf]  ;;  %v675_v37 = vunpack.c.l.b16 %v606_v32  ;;  %v676_v42 = vunpack.c.h.b16 %v606_v32  ;;  %v1341_v49 = vld [vmem:[%s1970_s13 + $0x68] sm:$0xf0] }
  0x83   : > { %1023 = vmatpush.bf16.msra.mxu1 %v1372_v6  ;;  %v1477_v36 = vld [vmem:[%s1970_s13 + $0x178] sm:$0xf0]  ;;  %v1611_v40 = vld [vmem:[%s1970_s13 + $0x1f4] sm:$0xf]  ;;  %v1416_v46 = vor.u32 %v1579_v31, %v1413_v34  ;;  %v1577_v50 = vld [vmem:[%s1970_s13 + $0xe4] sm:$0xf]  ;;  %v1344_v62 = vor.u32 %v1561_v48, %v1341_v49 }
  0x84   : > { %1036 = vmatpush.bf16.msra.mxu2 %v1436_v7  ;;  %v1541_v41 = vld [vmem:[%s1970_s13 + $0x1f8] sm:$0xf0]  ;;  %v605_v45 = vld [vmem:[%s1952_s30] sm:$0xff]  ;;  %v1480_v47 = vor.u32 %v1595_v35, %v1477_v36  ;;  %v1405_v54 = vld [vmem:[%s1970_s13 + $0xe8] sm:$0xf0]  ;;  %v2053_v57 = vpack.c.b16 %v675_v37, %v675_v37  ;;  %v2057_v60 = vpack.c.b16 %v676_v42, %v676_v42 }
  0x85   : > { %1049 = vmatpush.bf16.msra.mxu3 %v1500_v11  ;;  %v673_v51 = vunpack.c.l.b16 %v605_v45  ;;  %v674_v52 = vunpack.c.h.b16 %v605_v45  ;;  %v1544_v53 = vor.u32 %v1611_v40, %v1541_v41  ;;  %v1593_v55 = vld [vmem:[%s1970_s13 + $0x164] sm:$0xf]  ;;  %v1469_v56 = vld [vmem:[%s1970_s13 + $0x168] sm:$0xf0]  ;;  %v1408_v0 = vor.u32 %v1577_v50, %v1405_v54  ;;  %v1559_v2 = vld [vmem:[%s1970_s13 + $0x54] sm:$0xf] }
  0x86   : > { %1011 = vmatpush.bf16.msra.mxu0 %v1300_v17  ;;  %v1609_v58 = vld [vmem:[%s1970_s13 + $0x1e4] sm:$0xf]  ;;  %v1533_v59 = vld [vmem:[%s1970_s13 + $0x1e8] sm:$0xf0]  ;;  %v1472_v1 = vor.u32 %v1593_v55, %v1469_v56  ;;  %v1333_v3 = vld [vmem:[%s1970_s13 + $0x58] sm:$0xf0] }
  0x87   : > { %1024 = vmatpush.bf16.msra.mxu1 %v1364_v21  ;;  %v2059_v61 = vpack.c.b16 %v673_v51, %v673_v51  ;;  %v2061_v63 = vpack.c.b16 %v674_v52, %v674_v52  ;;  %v1575_v4 = vld [vmem:[%s1970_s13 + $0xd4] sm:$0xf]  ;;  %v1536_v5 = vor.u32 %v1609_v58, %v1533_v59  ;;  %v1397_v6 = vld [vmem:[%s1970_s13 + $0xd8] sm:$0xf0]  ;;  %v1336_v11 = vor.u32 %v1559_v2, %v1333_v3  ;;  %v1557_v14 = vld [vmem:[%s1970_s13 + $0x44] sm:$0xf] }
  0x88   : > { %1037 = vmatpush.bf16.msra.mxu2 %v1428_v22  ;;  %v1591_v7 = vld [vmem:[%s1970_s13 + $0x154] sm:$0xf]  ;;  %v1461_v8 = vld [vmem:[%s1970_s13 + $0x158] sm:$0xf0]  ;;  %v1400_v12 = vor.u32 %v1575_v4, %v1397_v6  ;;  %v1325_v15 = vld [vmem:[%s1970_s13 + $0x48] sm:$0xf0] }
  0x89   : > { %1050 = vmatpush.bf16.msra.mxu3 %v1492_v26  ;;  %v1607_v9 = vld [vmem:[%s1970_s13 + $0x1d4] sm:$0xf]  ;;  %v1525_v10 = vld [vmem:[%s1970_s13 + $0x1d8] sm:$0xf0]  ;;  %v1464_v13 = vor.u32 %v1591_v7, %v1461_v8  ;;  %v1573_v16 = vld [vmem:[%s1970_s13 + $0xc4] sm:$0xf]  ;;  %v1328_v23 = vor.u32 %v1557_v14, %v1325_v15 }
  0x8a   : > { %1012 = vmatpush.bf16.msra.mxu0 %v1292_v33  ;;  %v1528_v17 = vor.u32 %v1607_v9, %v1525_v10  ;;  %v1389_v18 = vld [vmem:[%s1970_s13 + $0xc8] sm:$0xf0]  ;;  %v1589_v19 = vld [vmem:[%s1970_s13 + $0x144] sm:$0xf]  ;;  %v1555_v26 = vld [vmem:[%s1970_s13 + $0x34] sm:$0xf] }
  0x8b   : > { %1025 = vmatpush.bf16.msra.mxu1 %v1356_v38  ;;  %v1453_v20 = vld [vmem:[%s1970_s13 + $0x148] sm:$0xf0]  ;;  %v1605_v21 = vld [vmem:[%s1970_s13 + $0x1c4] sm:$0xf]  ;;  %v1392_v24 = vor.u32 %v1573_v16, %v1389_v18  ;;  %v1317_v27 = vld [vmem:[%s1970_s13 + $0x38] sm:$0xf0] }
  0x8c   : > { %1038 = vmatpush.bf16.msra.mxu2 %v1420_v39  ;;  %v1517_v22 = vld [vmem:[%s1970_s13 + $0x1c8] sm:$0xf0]  ;;  %v1456_v25 = vor.u32 %v1589_v19, %v1453_v20  ;;  %v1571_v28 = vld [vmem:[%s1970_s13 + $0xb4] sm:$0xf]  ;;  %v1381_v30 = vld [vmem:[%s1970_s13 + $0xb8] sm:$0xf0]  ;;  %v1320_v35 = vor.u32 %v1555_v26, %v1317_v27 }
  0x8d   : > { %1051 = vmatpush.bf16.msra.mxu3 %v1484_v43  ;;  %1013 = vmatmul.bf16.vlgmr.msra.gmra.mxu0 %v2059_v61  ;;  %v1520_v29 = vor.u32 %v1605_v21, %v1517_v22  ;;  %v1587_v31 = vld [vmem:[%s1970_s13 + $0x134] sm:$0xf]  ;;  %v1445_v32 = vld [vmem:[%s1970_s13 + $0x138] sm:$0xf0]  ;;  %v1384_v36 = vor.u32 %v1571_v28, %v1381_v30  ;;  %v1553_v38 = vld [vmem:[%s1970_s13 + $0x24] sm:$0xf] }
  0x8e   : > { %1057 = vmatpush.bf16.msrb.mxu0 %v1352_v44  ;;  %1026 = vmatmul.bf16.vlgmr.msra.gmra.mxu1 %v2061_v63  ;;  %v1603_v33 = vld [vmem:[%s1970_s13 + $0x1b4] sm:$0xf]  ;;  %v1509_v34 = vld [vmem:[%s1970_s13 + $0x1b8] sm:$0xf0]  ;;  %v1448_v37 = vor.u32 %v1587_v31, %v1445_v32  ;;  %v1309_v39 = vld [vmem:[%s1970_s13 + $0x28] sm:$0xf0] }
  0x8f   : > { %1070 = vmatpush.bf16.msrb.mxu1 %v1416_v46  ;;  %1039 = vmatmul.bf16.vlgmr.msra.gmra.mxu2 %v2053_v57  ;;  %v1569_v40 = vld [vmem:[%s1970_s13 + $0xa4] sm:$0xf]  ;;  %v1512_v41 = vor.u32 %v1603_v33, %v1509_v34  ;;  %v1373_v42 = vld [vmem:[%s1970_s13 + $0xa8] sm:$0xf0]  ;;  %v1551_v50 = vld [vmem:[%s1970_s13 + $0x14] sm:$0xf] }
  0x90   : > { %1083 = vmatpush.bf16.msrb.mxu2 %v1480_v47  ;;  %1052 = vmatmul.bf16.vlgmr.msra.gmra.mxu3 %v2057_v60  ;;  %v1585_v43 = vld [vmem:[%s1970_s13 + $0x124] sm:$0xf]  ;;  %v1437_v44 = vld [vmem:[%s1970_s13 + $0x128] sm:$0xf0]  ;;  %v1312_v47 = vor.u32 %v1553_v38, %v1309_v39  ;;  %v1376_v48 = vor.u32 %v1569_v40, %v1373_v42  ;;  %v1301_v51 = vld [vmem:[%s1970_s13 + $0x18] sm:$0xf0] }
  0x91   : > { %1096 = vmatpush.bf16.msrb.mxu3 %v1544_v53  ;;  %v1601_v45 = vld [vmem:[%s1970_s13 + $0x1a4] sm:$0xf]  ;;  %v1501_v46 = vld [vmem:[%s1970_s13 + $0x1a8] sm:$0xf0]  ;;  %v1440_v49 = vor.u32 %v1585_v43, %v1437_v44  ;;  %v1567_v52 = vld [vmem:[%s1970_s13 + $0x94] sm:$0xf] }
  0x92   : > { %1058 = vmatpush.bf16.msrb.mxu0 %v1344_v62  ;;  %v1504_v53 = vor.u32 %v1601_v45, %v1501_v46  ;;  %v1365_v54 = vld [vmem:[%s1970_s13 + $0x98] sm:$0xf0]  ;;  %v1583_v55 = vld [vmem:[%s1970_s13 + $0x114] sm:$0xf]  ;;  %v1304_v62 = vor.u32 %v1551_v50, %v1301_v51  ;;  %v1549_v2 = vld [vmem:[%s1970_s13 + $0x4] sm:$0xf] }
  0x93   : > { %1071 = vmatpush.bf16.msrb.mxu1 %v1408_v0  ;;  %v1429_v56 = vld [vmem:[%s1970_s13 + $0x118] sm:$0xf0]  ;;  %v1599_v58 = vld [vmem:[%s1970_s13 + $0x194] sm:$0xf]  ;;  %v1368_v0 = vor.u32 %v1567_v52, %v1365_v54  ;;  %v1293_v3 = vld [vmem:[%s1970_s13 + $0x8] sm:$0xf0] }
  0x94   : > { %1084 = vmatpush.bf16.msrb.mxu2 %v1472_v1  ;;  %v1493_v59 = vld [vmem:[%s1970_s13 + $0x198] sm:$0xf0]  ;;  %v1432_v1 = vor.u32 %v1583_v55, %v1429_v56  ;;  %v1565_v4 = vld [vmem:[%s1970_s13 + $0x84] sm:$0xf]  ;;  %v1357_v6 = vld [vmem:[%s1970_s13 + $0x88] sm:$0xf0] }
  0x95   : > { %1097 = vmatpush.bf16.msrb.mxu3 %v1536_v5  ;;  %v1496_v5 = vor.u32 %v1599_v58, %v1493_v59  ;;  %v1581_v7 = vld [vmem:[%s1970_s13 + $0x104] sm:$0xf]  ;;  %v1421_v8 = vld [vmem:[%s1970_s13 + $0x108] sm:$0xf0]  ;;  %v603_v21 = vld [vmem:[#allocation2] sm:$0xff] }
  0x96   : > { %1059 = vmatpush.bf16.msrb.mxu0 %v1336_v11  ;;  %v1597_v9 = vld [vmem:[%s1970_s13 + $0x184] sm:$0xf]  ;;  %v1485_v10 = vld [vmem:[%s1970_s13 + $0x188] sm:$0xf0]  ;;  %v1296_v11 = vor.u32 %v1549_v2, %v1293_v3  ;;  %v604_v31 = vld [vmem:[#allocation2 + $0x8] sm:$0xff] }
  0x97   : > { %1072 = vmatpush.bf16.msrb.mxu1 %v1400_v12  ;;  %v1360_v12 = vor.u32 %v1565_v4, %v1357_v6  ;;  %v1488_v14 = vor.u32 %v1597_v9, %v1485_v10 }
  0x98   : > { %1085 = vmatpush.bf16.msrb.mxu2 %v1464_v13  ;;  %v1424_v13 = vor.u32 %v1581_v7, %v1421_v8 }
  0x99   : > { %1098 = vmatpush.bf16.msrb.mxu3 %v1528_v17 }
  0x9a   : > { %1060 = vmatpush.bf16.msrb.mxu0 %v1328_v23 }
  0x9b   : > { %1073 = vmatpush.bf16.msrb.mxu1 %v1392_v24 }
  0x9c   : > { %1086 = vmatpush.bf16.msrb.mxu2 %v1456_v25 }
  0x9d   : > { %1099 = vmatpush.bf16.msrb.mxu3 %v1520_v29 }
  0x9e   : > { %1061 = vmatpush.bf16.msrb.mxu0 %v1320_v35 }
  0x9f   : > { %1074 = vmatpush.bf16.msrb.mxu1 %v1384_v36 }
  0xa0   : > { %1087 = vmatpush.bf16.msrb.mxu2 %v1448_v37 }
  0xa1   : > { %1100 = vmatpush.bf16.msrb.mxu3 %v1512_v41 }
  0xa2   : > { %1062 = vmatpush.bf16.msrb.mxu0 %v1312_v47 }
  0xa3   : > { %1075 = vmatpush.bf16.msrb.mxu1 %v1376_v48 }
  0xa4   : > { %1088 = vmatpush.bf16.msrb.mxu2 %v1440_v49 }
  0xa5   : > { %1101 = vmatpush.bf16.msrb.mxu3 %v1504_v53 }
  0xa6   : > { %1063 = vmatpush.bf16.msrb.mxu0 %v1304_v62 }
  0xa7   : > { %1076 = vmatpush.bf16.msrb.mxu1 %v1368_v0 }
  0xa8   : > { %1089 = vmatpush.bf16.msrb.mxu2 %v1432_v1 }
  0xa9   : > { %1102 = vmatpush.bf16.msrb.mxu3 %v1496_v5 }
  0xaa   : > { %1064 = vmatpush.bf16.msrb.mxu0 %v1296_v11 }
  0xab   : > { %1077 = vmatpush.bf16.msrb.mxu1 %v1360_v12 }
  0xac   : > { %1090 = vmatpush.bf16.msrb.mxu2 %v1424_v13 }
  0xad   : > { %1103 = vmatpush.bf16.msrb.mxu3 %v1488_v14  ;;  %1065 = vmatmul.bf16.vlgmr.msrb.gmra.mxu0 %v2059_v61 }
  0xae   : > { %1078 = vmatmul.bf16.vlgmr.msrb.gmra.mxu1 %v2061_v63 }
  0xaf   : > { %1091 = vmatmul.bf16.vlgmr.msrb.gmra.mxu2 %v2053_v57 }
  0xb0   : > { %1104 = vmatmul.bf16.vlgmr.msrb.gmra.mxu3 %v2057_v60 }
 0x10a   : > { %v1014_v15 = vpop.f32.mrf.mxu0 }
 0x10b   : > { %v1027_v16 = vpop.f32.mrf.mxu1 }
 0x10c   : > { %v1028_v17 = vadd.f32 %v1027_v16, %v1014_v15 }
 0x112   : > { %v1040_v18 = vpop.f32.mrf.mxu2  ;;  %v1016_v23 = vpop.f32.mrf.mxu0 }
 0x113   : > { %v1041_v19 = vadd.f32 %v1040_v18, %v1028_v17  ;;  %v1053_v20 = vpop.f32.mrf.mxu3  ;;  %v1029_v24 = vpop.f32.mrf.mxu1 }
 0x115   : > { %v1054_v22 = vadd.f32 %v1053_v20, %v1041_v19 }
 0x117   : > { %v1109_v25 = vadd.f32 %v1054_v22, %v603_v21 }
 0x119   : > { %1111 = vst [vmem:[#allocation2] sm:$0xff] %v1109_v25 }
 0x11a   : > { %v1042_v26 = vpop.f32.mrf.mxu2 }
 0x11b   : > { %v1055_v61 = vpop.f32.mrf.mxu3 }
 0x12a   : > { %v1066_v27 = vpop.f32.mrf.mxu0 }
 0x12b   : > { %v1079_v63 = vpop.f32.mrf.mxu1 }
 0x12c   : > { %v1080_v28 = vadd.f32 %v1079_v63, %v1066_v27 }
 0x132   : > { %v1092_v57 = vpop.f32.mrf.mxu2  ;;  %v1068_v30 = vpop.f32.mrf.mxu0 }
 0x133   : > { %v1093_v29 = vadd.f32 %v1092_v57, %v1080_v28  ;;  %v1105_v60 = vpop.f32.mrf.mxu3  ;;  %v1081_v32 = vpop.f32.mrf.mxu1 }
 0x135   : > { %v1106_v33 = vadd.f32 %v1105_v60, %v1093_v29 }
 0x137   : > { %v1110_v34 = vadd.f32 %v1106_v33, %v604_v31  ;;  %1116 = sbr.rel (%p1545_p13) target bundleno = 330 (0x14a), region = 82 }
 0x139   : > { %1112 = vst [vmem:[#allocation2 + $0x8] sm:$0xff] %v1110_v34 }
 0x13a   : > { %v1094_v35 = vpop.f32.mrf.mxu2 }
 0x13b   : > { %v1107_v36 = vpop.f32.mrf.mxu3 }
 0x13c   : > { %v1117_v37 = vld [vmem:[#allocation2] sm:$0xff] }
 0x13d   : > { %v1119_v39 = vld [vmem:[%s580_s15] sm:$0x3] }
 0x13e   : > { %v1121_v40 = vperm.slane %v1119_v39, 0  ;;  %v1122_v41 = vperm.slane %v1119_v39, 1  ;;  %v1127_v42 = vld [vmem:[%s585_s18] sm:$0x3] }
 0x13f   : > { %v1129_v43 = vperm.slane %v1127_v42, 0  ;;  %v1130_v44 = vperm.slane %v1127_v42, 1 }
 0x140   : > { %v1118_v38 = vld [vmem:[#allocation2 + $0x8] sm:$0xff]  ;;  %v1125_v45 = vmul.f32 %v1121_v40, %v1117_v37 }
 0x141   : > { %v1126_v46 = vmul.f32 %v1122_v41, %v1118_v38 }
 0x142   : > { %v1133_v47 = vadd.f32 %v1129_v43, %v1125_v45 }
 0x143   : > { %v1134_v48 = vadd.f32 %v1130_v44, %v1126_v46 }
 0x144   : > { %v1135_v49 = vmax.f32 %v1133_v47, 0.0 }
 0x145   : > { %v1136_v50 = vmax.f32 %v1134_v48, 0.0 }
 0x147   : > { %v1137_v51 = vpack.c.bf16 %v1136_v50, %v1135_v49 }
 0x149   : > { %1138 = vst [vmem:[%s1968_s12] sm:$0xff] %v1137_v51 }
 0x14a PF: > { %s14_s21 = sadd.s32 1, %s1724_s21   ;;  %s2157_s15 = smov %s1704_s16 }
 0x14b   : > { %p11_p0 = scmp.ge.s32.totalorder %s14_s21, 12   ;;  %s2158_s16 = smov %s1803_s28 }
 0x14c   : > { %s2159_s17 = smov %s1716_s19  ;;  %s2160_s18 = smov %s1720_s20 }
 0x14d   : > { %s2161_s19 = smov %s2164_s22  ;;  %s2162_s20 = smov %s2168_s23 }
 0x14e   :  { %13 = sbr.rel (!%p11_p0) target bundleno = 4 (0x4), region = 126 }

// kernel: rgb_point_model_forward.18
= control target key start
LH: loop header
LB: loop body
LE: loop exit
PB: predicated region body
PF: predicated region fallthrough
CT: control target
= control target key end

     0   :  { %s1752_s15 = smov 0   ;;  %s1754_s16 = smov 0   ;;  %s2152_s0 = inlined_call_operand.vmem [shape: bf16[8,2560], index: 0, kind: input, shape index: {}]   ;;  %s2153_s1 = inlined_call_operand.vmem [shape: bf16[2560,1024], index: 1, kind: input, shape index: {}]   ;;  %s2154_s2 = inlined_call_operand.vmem [shape: f32[1,1024], index: 2, kind: input, shape index: {}]   ;;  %s2155_s3 = inlined_call_operand.vmem [shape: f32[1,1024], index: 3, kind: input, shape index: {}]   ;;  %s2156_s4 = inlined_call_operand.vmem [shape: bf16[8,1024], index: 4, kind: output, shape index: {}]  }
   0x1   :  { %s1756_s17 = smov 0   ;;  %s1758_s18 = smov 0  }
   0x2   :  { %s1760_s19 = smov 0   ;;  %s1762_s20 = smov 0  }
   0x3   :  { %s1764_s21 = smov 0  }
   0x4 LB: > { %s26_s22 = sadd.s32 1, %s1716_s19  ;;  %s29_s23 = sadd.s32 1, %s1720_s20  ;;  %s1724_s21 = sphi %s1764_s21, %s14_s21   ;;  %s1720_s20 = sphi %s1762_s20, %s2162_s20   ;;  %s1716_s19 = sphi %s1760_s19, %s2161_s19   ;;  %s1712_s18 = sphi %s1758_s18, %s2160_s18   ;;  %s1708_s17 = sphi %s1756_s17, %s2159_s17   ;;  %s1704_s16 = sphi %s1754_s16, %s2158_s16   ;;  %s1700_s15 = sphi %s1752_s15, %s2157_s15  }
   0x5   : > { %p27_p0 = scmp.ge.s32.totalorder %s26_s22, 5  ;;  %p77_p1 = scmp.ne.s32.totalorder %s1704_s16, %s1700_s15 }
   0x6   : > { %p78_p2 = scmp.eq.s32.totalorder %s1724_s21, 0  ;;  %s70_s27 = sadd.s32 1, %s1704_s16 }
   0x7   : > { %s2164_s22 = smov (%p27_p0, %s26_s22), 0  ;;  %s2166_s23 = smov (!%p27_p0, %s29_s23), %s1720_s20 }
   0x8   : > { %p79_p3 = por %p78_p2, %p77_p1  ;;  %p31_p4 = scmp.ge.s32.totalorder %s2166_s23, 4 }
   0x9   : > { %s65_s24 = ssub.s32 %s1716_s19, %s2164_s22  ;;  %p1274_p6 = scmp.ge.s32.totalorder %s1724_s21, 20 }
   0xa   : > { %s2168_s23 = smov (%p31_p4, %s2166_s23), 0 }
   0xb   : > { %s66_s25 = ssub.s32 %s1720_s20, %s2168_s23  ;;  %183 = sbr.rel (%p1274_p6) target bundleno = 87 (0x57), region = 16 }
   0xc   : > { %s67_s26 = sor.u32 %s66_s25, %s65_s24 }
   0xd   : > { %p68_p5 = scmp.eq.s32.totalorder %s67_s26, 0 }
   0xf   : > { %s1803_s28 = scalar_select %p68_p5, %s1704_s16, %s70_s27  }
  0x10   : > { %199 = sbr.rel (!%p79_p3) target bundleno = 87 (0x57), region = 24  ;;  %s201_s29 = sand.u32 (%p79_p3), 1, %s1704_s16  }
  0x11   : > { %s1277_s30 = sshll.u32 (%p79_p3), %s1720_s20, 1  ;;  %s1275_s5 = sshll.u32 (%p79_p3), %s201_s29, 9 }
  0x12   : > { %s1548_s6 = sshll.u32 (%p79_p3), %s1716_s19, 9  ;;  %s1817_s12 = scalar_lea.vmem (%p79_p3), [#allocation3], %s1275_s5 }
  0x13   : > { %s207_s7 = sadd.s32 (%p79_p3), %s1548_s6, %s1277_s30 }
  0x14   : > { %s1279_s8 = sshll.u32 (%p79_p3), %s207_s7, 2 }
  0x15   : > { %s1812_s11 = scalar_lea.vmem %s2153_s1, %s1279_s8 }
  0x16   : > { %v364_v0 = vld [vmem:[%s1812_s11] sm:$0xff] }
  0x17   : > { %v366_v1 = vld [vmem:[%s1812_s11 + $0x20] sm:$0xff]  ;;  %365 = vst [vmem:[%s1817_s12] sm:$0xff] %v364_v0 }
  0x18   : > { %v368_v2 = vld [vmem:[%s1812_s11 + $0x40] sm:$0xff]  ;;  %367 = vst [vmem:[%s1817_s12 + $0x8] sm:$0xff] %v366_v1 }
  0x19   : > { %v370_v3 = vld [vmem:[%s1812_s11 + $0x60] sm:$0xff]  ;;  %369 = vst [vmem:[%s1817_s12 + $0x10] sm:$0xff] %v368_v2 }
  0x1a   : > { %v372_v4 = vld [vmem:[%s1812_s11 + $0x80] sm:$0xff]  ;;  %371 = vst [vmem:[%s1817_s12 + $0x18] sm:$0xff] %v370_v3 }
  0x1b   : > { %v374_v5 = vld [vmem:[%s1812_s11 + $0xa0] sm:$0xff]  ;;  %373 = vst [vmem:[%s1817_s12 + $0x20] sm:$0xff] %v372_v4 }
  0x1c   : > { %v376_v6 = vld [vmem:[%s1812_s11 + $0xc0] sm:$0xff]  ;;  %375 = vst [vmem:[%s1817_s12 + $0x28] sm:$0xff] %v374_v5 }
  0x1d   : > { %v378_v7 = vld [vmem:[%s1812_s11 + $0xe0] sm:$0xff]  ;;  %377 = vst [vmem:[%s1817_s12 + $0x30] sm:$0xff] %v376_v6 }
  0x1e   : > { %v380_v8 = vld [vmem:[%s1812_s11 + $0x100] sm:$0xff]  ;;  %379 = vst [vmem:[%s1817_s12 + $0x38] sm:$0xff] %v378_v7 }
  0x1f   : > { %v382_v9 = vld [vmem:[%s1812_s11 + $0x120] sm:$0xff]  ;;  %381 = vst [vmem:[%s1817_s12 + $0x40] sm:$0xff] %v380_v8 }
  0x20   : > { %v384_v10 = vld [vmem:[%s1812_s11 + $0x140] sm:$0xff]  ;;  %383 = vst [vmem:[%s1817_s12 + $0x48] sm:$0xff] %v382_v9 }
  0x21   : > { %v386_v11 = vld [vmem:[%s1812_s11 + $0x160] sm:$0xff]  ;;  %385 = vst [vmem:[%s1817_s12 + $0x50] sm:$0xff] %v384_v10 }
  0x22   : > { %v388_v12 = vld [vmem:[%s1812_s11 + $0x180] sm:$0xff]  ;;  %387 = vst [vmem:[%s1817_s12 + $0x58] sm:$0xff] %v386_v11 }
  0x23   : > { %v390_v13 = vld [vmem:[%s1812_s11 + $0x1a0] sm:$0xff]  ;;  %389 = vst [vmem:[%s1817_s12 + $0x60] sm:$0xff] %v388_v12 }
  0x24   : > { %v392_v14 = vld [vmem:[%s1812_s11 + $0x1c0] sm:$0xff]  ;;  %391 = vst [vmem:[%s1817_s12 + $0x68] sm:$0xff] %v390_v13 }
  0x25   : > { %v394_v15 = vld [vmem:[%s1812_s11 + $0x1e0] sm:$0xff]  ;;  %393 = vst [vmem:[%s1817_s12 + $0x70] sm:$0xff] %v392_v14 }
  0x26   : > { %v396_v16 = vld [vmem:[%s1812_s11 + $0x200] sm:$0xff]  ;;  %395 = vst [vmem:[%s1817_s12 + $0x78] sm:$0xff] %v394_v15 }
  0x27   : > { %v398_v17 = vld [vmem:[%s1812_s11 + $0x220] sm:$0xff]  ;;  %397 = vst [vmem:[%s1817_s12 + $0x80] sm:$0xff] %v396_v16 }
  0x28   : > { %v400_v18 = vld [vmem:[%s1812_s11 + $0x240] sm:$0xff]  ;;  %399 = vst [vmem:[%s1817_s12 + $0x88] sm:$0xff] %v398_v17 }
  0x29   : > { %v402_v19 = vld [vmem:[%s1812_s11 + $0x260] sm:$0xff]  ;;  %401 = vst [vmem:[%s1817_s12 + $0x90] sm:$0xff] %v400_v18 }
  0x2a   : > { %v404_v20 = vld [vmem:[%s1812_s11 + $0x280] sm:$0xff]  ;;  %403 = vst [vmem:[%s1817_s12 + $0x98] sm:$0xff] %v402_v19 }
  0x2b   : > { %v406_v21 = vld [vmem:[%s1812_s11 + $0x2a0] sm:$0xff]  ;;  %405 = vst [vmem:[%s1817_s12 + $0xa0] sm:$0xff] %v404_v20 }
  0x2c   : > { %v408_v22 = vld [vmem:[%s1812_s11 + $0x2c0] sm:$0xff]  ;;  %407 = vst [vmem:[%s1817_s12 + $0xa8] sm:$0xff] %v406_v21 }
  0x2d   : > { %v410_v23 = vld [vmem:[%s1812_s11 + $0x2e0] sm:$0xff]  ;;  %409 = vst [vmem:[%s1817_s12 + $0xb0] sm:$0xff] %v408_v22 }
  0x2e   : > { %v412_v24 = vld [vmem:[%s1812_s11 + $0x300] sm:$0xff]  ;;  %411 = vst [vmem:[%s1817_s12 + $0xb8] sm:$0xff] %v410_v23 }
  0x2f   : > { %v414_v25 = vld [vmem:[%s1812_s11 + $0x320] sm:$0xff]  ;;  %413 = vst [vmem:[%s1817_s12 + $0xc0] sm:$0xff] %v412_v24 }
  0x30   : > { %v416_v26 = vld [vmem:[%s1812_s11 + $0x340] sm:$0xff]  ;;  %415 = vst [vmem:[%s1817_s12 + $0xc8] sm:$0xff] %v414_v25 }
  0x31   : > { %v418_v27 = vld [vmem:[%s1812_s11 + $0x360] sm:$0xff]  ;;  %417 = vst [vmem:[%s1817_s12 + $0xd0] sm:$0xff] %v416_v26 }
  0x32   : > { %v420_v28 = vld [vmem:[%s1812_s11 + $0x380] sm:$0xff]  ;;  %419 = vst [vmem:[%s1817_s12 + $0xd8] sm:$0xff] %v418_v27 }
  0x33   : > { %v422_v29 = vld [vmem:[%s1812_s11 + $0x3a0] sm:$0xff]  ;;  %421 = vst [vmem:[%s1817_s12 + $0xe0] sm:$0xff] %v420_v28 }
  0x34   : > { %v424_v30 = vld [vmem:[%s1812_s11 + $0x3c0] sm:$0xff]  ;;  %423 = vst [vmem:[%s1817_s12 + $0xe8] sm:$0xff] %v422_v29 }
  0x35   : > { %v426_v31 = vld [vmem:[%s1812_s11 + $0x3e0] sm:$0xff]  ;;  %425 = vst [vmem:[%s1817_s12 + $0xf0] sm:$0xff] %v424_v30 }
  0x36   : > { %v428_v32 = vld [vmem:[%s1812_s11 + $0x400] sm:$0xff]  ;;  %427 = vst [vmem:[%s1817_s12 + $0xf8] sm:$0xff] %v426_v31 }
  0x37   : > { %v430_v33 = vld [vmem:[%s1812_s11 + $0x420] sm:$0xff]  ;;  %429 = vst [vmem:[%s1817_s12 + $0x100] sm:$0xff] %v428_v32 }
  0x38   : > { %v432_v34 = vld [vmem:[%s1812_s11 + $0x440] sm:$0xff]  ;;  %431 = vst [vmem:[%s1817_s12 + $0x108] sm:$0xff] %v430_v33 }
  0x39   : > { %v434_v35 = vld [vmem:[%s1812_s11 + $0x460] sm:$0xff]  ;;  %433 = vst [vmem:[%s1817_s12 + $0x110] sm:$0xff] %v432_v34 }
  0x3a   : > { %v436_v36 = vld [vmem:[%s1812_s11 + $0x480] sm:$0xff]  ;;  %435 = vst [vmem:[%s1817_s12 + $0x118] sm:$0xff] %v434_v35 }
  0x3b   : > { %v438_v37 = vld [vmem:[%s1812_s11 + $0x4a0] sm:$0xff]  ;;  %437 = vst [vmem:[%s1817_s12 + $0x120] sm:$0xff] %v436_v36 }
  0x3c   : > { %v440_v38 = vld [vmem:[%s1812_s11 + $0x4c0] sm:$0xff]  ;;  %439 = vst [vmem:[%s1817_s12 + $0x128] sm:$0xff] %v438_v37 }
  0x3d   : > { %v442_v39 = vld [vmem:[%s1812_s11 + $0x4e0] sm:$0xff]  ;;  %441 = vst [vmem:[%s1817_s12 + $0x130] sm:$0xff] %v440_v38 }
  0x3e   : > { %v444_v40 = vld [vmem:[%s1812_s11 + $0x500] sm:$0xff]  ;;  %443 = vst [vmem:[%s1817_s12 + $0x138] sm:$0xff] %v442_v39 }
  0x3f   : > { %v446_v41 = vld [vmem:[%s1812_s11 + $0x520] sm:$0xff]  ;;  %445 = vst [vmem:[%s1817_s12 + $0x140] sm:$0xff] %v444_v40 }
  0x40   : > { %v448_v42 = vld [vmem:[%s1812_s11 + $0x540] sm:$0xff]  ;;  %447 = vst [vmem:[%s1817_s12 + $0x148] sm:$0xff] %v446_v41 }
  0x41   : > { %v450_v43 = vld [vmem:[%s1812_s11 + $0x560] sm:$0xff]  ;;  %449 = vst [vmem:[%s1817_s12 + $0x150] sm:$0xff] %v448_v42 }
  0x42   : > { %v452_v44 = vld [vmem:[%s1812_s11 + $0x580] sm:$0xff]  ;;  %451 = vst [vmem:[%s1817_s12 + $0x158] sm:$0xff] %v450_v43 }
  0x43   : > { %v454_v45 = vld [vmem:[%s1812_s11 + $0x5a0] sm:$0xff]  ;;  %453 = vst [vmem:[%s1817_s12 + $0x160] sm:$0xff] %v452_v44 }
  0x44   : > { %v456_v46 = vld [vmem:[%s1812_s11 + $0x5c0] sm:$0xff]  ;;  %455 = vst [vmem:[%s1817_s12 + $0x168] sm:$0xff] %v454_v45 }
  0x45   : > { %v458_v47 = vld [vmem:[%s1812_s11 + $0x5e0] sm:$0xff]  ;;  %457 = vst [vmem:[%s1817_s12 + $0x170] sm:$0xff] %v456_v46 }
  0x46   : > { %v460_v48 = vld [vmem:[%s1812_s11 + $0x600] sm:$0xff]  ;;  %459 = vst [vmem:[%s1817_s12 + $0x178] sm:$0xff] %v458_v47 }
  0x47   : > { %v462_v49 = vld [vmem:[%s1812_s11 + $0x620] sm:$0xff]  ;;  %461 = vst [vmem:[%s1817_s12 + $0x180] sm:$0xff] %v460_v48 }
  0x48   : > { %v464_v50 = vld [vmem:[%s1812_s11 + $0x640] sm:$0xff]  ;;  %463 = vst [vmem:[%s1817_s12 + $0x188] sm:$0xff] %v462_v49 }
  0x49   : > { %v466_v51 = vld [vmem:[%s1812_s11 + $0x660] sm:$0xff]  ;;  %465 = vst [vmem:[%s1817_s12 + $0x190] sm:$0xff] %v464_v50 }
  0x4a   : > { %v468_v52 = vld [vmem:[%s1812_s11 + $0x680] sm:$0xff]  ;;  %467 = vst [vmem:[%s1817_s12 + $0x198] sm:$0xff] %v466_v51 }
  0x4b   : > { %v470_v53 = vld [vmem:[%s1812_s11 + $0x6a0] sm:$0xff]  ;;  %469 = vst [vmem:[%s1817_s12 + $0x1a0] sm:$0xff] %v468_v52 }
  0x4c   : > { %v472_v54 = vld [vmem:[%s1812_s11 + $0x6c0] sm:$0xff]  ;;  %471 = vst [vmem:[%s1817_s12 + $0x1a8] sm:$0xff] %v470_v53 }
  0x4d   : > { %v474_v55 = vld [vmem:[%s1812_s11 + $0x6e0] sm:$0xff]  ;;  %473 = vst [vmem:[%s1817_s12 + $0x1b0] sm:$0xff] %v472_v54 }
  0x4e   : > { %v476_v56 = vld [vmem:[%s1812_s11 + $0x700] sm:$0xff]  ;;  %475 = vst [vmem:[%s1817_s12 + $0x1b8] sm:$0xff] %v474_v55 }
  0x4f   : > { %v478_v57 = vld [vmem:[%s1812_s11 + $0x720] sm:$0xff]  ;;  %477 = vst [vmem:[%s1817_s12 + $0x1c0] sm:$0xff] %v476_v56 }
  0x50   : > { %v480_v58 = vld [vmem:[%s1812_s11 + $0x740] sm:$0xff]  ;;  %479 = vst [vmem:[%s1817_s12 + $0x1c8] sm:$0xff] %v478_v57 }
  0x51   : > { %v482_v59 = vld [vmem:[%s1812_s11 + $0x760] sm:$0xff]  ;;  %481 = vst [vmem:[%s1817_s12 + $0x1d0] sm:$0xff] %v480_v58 }
  0x52   : > { %v484_v60 = vld [vmem:[%s1812_s11 + $0x780] sm:$0xff]  ;;  %483 = vst [vmem:[%s1817_s12 + $0x1d8] sm:$0xff] %v482_v59 }
  0x53   : > { %v486_v61 = vld [vmem:[%s1812_s11 + $0x7a0] sm:$0xff]  ;;  %485 = vst [vmem:[%s1817_s12 + $0x1e0] sm:$0xff] %v484_v60 }
  0x54   : > { %v488_v62 = vld [vmem:[%s1812_s11 + $0x7c0] sm:$0xff]  ;;  %487 = vst [vmem:[%s1817_s12 + $0x1e8] sm:$0xff] %v486_v61 }
  0x55   : > { %v490_v63 = vld [vmem:[%s1812_s11 + $0x7e0] sm:$0xff]  ;;  %489 = vst [vmem:[%s1817_s12 + $0x1f0] sm:$0xff] %v488_v62 }
  0x56   : > { %491 = vst [vmem:[%s1817_s12 + $0x1f8] sm:$0xff] %v490_v63 }
  0x57 PF: > { %p1280_p7 = scmp.ge.s32.totalorder %s1724_s21, 1  ;;  %p512_p8 = scmp.lt.s32.totalorder %s1724_s21, 21 }
  0x59   : > { %p513_p9 = pnand %p1280_p7, %p512_p8 }
  0x5a   : > { %s519_s13 = sand.u32 (!%p513_p9), 1, %s1700_s15   ;;  %s1282_s14 = sshll.u32 (!%p513_p9), %s1708_s17, 2 }
  0x5b   : > { %516 = sbr.rel (%p513_p9) target bundleno = 330 (0x14a), region = 70  ;;  %s1281_s24 = sshll.u32 (!%p513_p9), %s519_s13, 9 }
  0x5c   : > { %p568_p10 = scmp.lt.s32.totalorder (!%p513_p9), %s1282_s14, 19  ;;  %s1284_s25 = sshll.u32 (!%p513_p9), %s1712_s18, 1 }
  0x5d   : > { %p578_p11 = scmp.lt.s32.totalorder (!%p513_p9), %s1284_s25, 7  ;;  %s1970_s13 = scalar_lea.vmem (!%p513_p9), [#allocation3], %s1281_s24 }
  0x5e   : > { %p1288_p12 = scmp.ne.s32.totalorder (!%p513_p9), %s1708_s17, 0 }
  0x60   : > { %s2170_s14 = smov (!%p568_p10, %s1282_s14), 19  ;;  %s2172_s25 = smov (!%p578_p11, %s1284_s25), 7 }
  0x61   : > { %s1283_s26 = sshll.u32 %s2170_s14, 2  ;;  %s580_s15 = scalar_lea.vmem %s2154_s2, %s2172_s25 }
  0x62   : > { %s1952_s30 = scalar_lea.vmem %s2152_s0, %s1283_s26  ;;  %s585_s18 = scalar_lea.vmem %s2155_s3, %s2172_s25 }
  0x63   : > { %s1287_s9 = sshll.u32 %s2172_s25, 2  ;;  %600 = sbr.rel (%p1288_p12) target bundleno = 107 (0x6b), region = 78 }
  0x64   : > { %s1968_s12 = scalar_lea.vmem %s2156_s4, %s1287_s9 }
  0x68   : > { %v1726_v0 = vmov 0.0  }
  0x69   : > { %601 = vst [vmem:[#allocation2] sm:$0xff] %v1726_v0 }
  0x6a   : > { %602 = vst [vmem:[#allocation2 + $0x8] sm:$0xff] %v1726_v0 }
  0x6b PF: > { %v1347_v1 = vld [vmem:[%s1970_s13 + $0x70] sm:$0xf]  ;;  %v1564_v2 = vld [vmem:[%s1970_s13 + $0x74] sm:$0xf0]  ;;  %v1339_v12 = vld [vmem:[%s1970_s13 + $0x60] sm:$0xf] }
  0x6c   : > { %v1411_v3 = vld [vmem:[%s1970_s13 + $0xf0] sm:$0xf]  ;;  %v1348_v4 = vor.u32 %v1564_v2, %v1347_v1  ;;  %v1580_v5 = vld [vmem:[%s1970_s13 + $0xf4] sm:$0xf0]  ;;  %v1562_v14 = vld [vmem:[%s1970_s13 + $0x64] sm:$0xf0] }
  0x6d   : > { %v1475_v6 = vld [vmem:[%s1970_s13 + $0x170] sm:$0xf]  ;;  %v1596_v7 = vld [vmem:[%s1970_s13 + $0x174] sm:$0xf0]  ;;  %v1412_v8 = vor.u32 %v1580_v5, %v1411_v3  ;;  %v1403_v15 = vld [vmem:[%s1970_s13 + $0xe0] sm:$0xf]  ;;  %v1340_v17 = vor.u32 %v1562_v14, %v1339_v12 }
  0x6e   : > { %v1476_v9 = vor.u32 %v1596_v7, %v1475_v6  ;;  %v1539_v10 = vld [vmem:[%s1970_s13 + $0x1f0] sm:$0xf]  ;;  %v1612_v11 = vld [vmem:[%s1970_s13 + $0x1f4] sm:$0xf0]  ;;  %1005 = vmatpush.bf16.msra.mxu0 %v1348_v4  ;;  %v1578_v16 = vld [vmem:[%s1970_s13 + $0xe4] sm:$0xf0] }
  0x6f   : > { %v1540_v13 = vor.u32 %v1612_v11, %v1539_v10  ;;  %1018 = vmatpush.bf16.msra.mxu1 %v1412_v8  ;;  %v1404_v18 = vor.u32 %v1578_v16, %v1403_v15  ;;  %v1467_v19 = vld [vmem:[%s1970_s13 + $0x160] sm:$0xf]  ;;  %v1594_v20 = vld [vmem:[%s1970_s13 + $0x164] sm:$0xf0]  ;;  %v1331_v24 = vld [vmem:[%s1970_s13 + $0x50] sm:$0xf] }
  0x70   : > { %1031 = vmatpush.bf16.msra.mxu2 %v1476_v9  ;;  %v1531_v21 = vld [vmem:[%s1970_s13 + $0x1e0] sm:$0xf]  ;;  %v1468_v22 = vor.u32 %v1594_v20, %v1467_v19  ;;  %v1610_v23 = vld [vmem:[%s1970_s13 + $0x1e4] sm:$0xf0]  ;;  %v1560_v25 = vld [vmem:[%s1970_s13 + $0x54] sm:$0xf0] }
  0x71   : > { %1044 = vmatpush.bf16.msra.mxu3 %v1540_v13  ;;  %v1532_v26 = vor.u32 %v1610_v23, %v1531_v21  ;;  %v1395_v27 = vld [vmem:[%s1970_s13 + $0xd0] sm:$0xf]  ;;  %v1576_v28 = vld [vmem:[%s1970_s13 + $0xd4] sm:$0xf0]  ;;  %v1332_v30 = vor.u32 %v1560_v25, %v1331_v24  ;;  %v1323_v36 = vld [vmem:[%s1970_s13 + $0x40] sm:$0xf] }
  0x72   : > { %v1459_v29 = vld [vmem:[%s1970_s13 + $0x150] sm:$0xf]  ;;  %1006 = vmatpush.bf16.msra.mxu0 %v1340_v17  ;;  %v1592_v31 = vld [vmem:[%s1970_s13 + $0x154] sm:$0xf0]  ;;  %v1396_v34 = vor.u32 %v1576_v28, %v1395_v27  ;;  %v1558_v37 = vld [vmem:[%s1970_s13 + $0x44] sm:$0xf0] }
  0x73   : > { %v1523_v32 = vld [vmem:[%s1970_s13 + $0x1d0] sm:$0xf]  ;;  %v1608_v33 = vld [vmem:[%s1970_s13 + $0x1d4] sm:$0xf0]  ;;  %1019 = vmatpush.bf16.msra.mxu1 %v1404_v18  ;;  %v1460_v35 = vor.u32 %v1592_v31, %v1459_v29  ;;  %v1387_v38 = vld [vmem:[%s1970_s13 + $0xc0] sm:$0xf]  ;;  %v1324_v45 = vor.u32 %v1558_v37, %v1323_v36 }
  0x74   : > { %1032 = vmatpush.bf16.msra.mxu2 %v1468_v22  ;;  %v1524_v39 = vor.u32 %v1608_v33, %v1523_v32  ;;  %v1574_v40 = vld [vmem:[%s1970_s13 + $0xc4] sm:$0xf0]  ;;  %v1451_v41 = vld [vmem:[%s1970_s13 + $0x140] sm:$0xf]  ;;  %v1315_v48 = vld [vmem:[%s1970_s13 + $0x30] sm:$0xf] }
  0x75   : > { %1045 = vmatpush.bf16.msra.mxu3 %v1532_v26  ;;  %v1590_v42 = vld [vmem:[%s1970_s13 + $0x144] sm:$0xf0]  ;;  %v1515_v43 = vld [vmem:[%s1970_s13 + $0x1c0] sm:$0xf]  ;;  %v1388_v46 = vor.u32 %v1574_v40, %v1387_v38  ;;  %v1556_v49 = vld [vmem:[%s1970_s13 + $0x34] sm:$0xf0] }
  0x76   : > { %v1606_v44 = vld [vmem:[%s1970_s13 + $0x1c4] sm:$0xf0]  ;;  %1007 = vmatpush.bf16.msra.mxu0 %v1332_v30  ;;  %v1452_v47 = vor.u32 %v1590_v42, %v1451_v41  ;;  %v1379_v50 = vld [vmem:[%s1970_s13 + $0xb0] sm:$0xf]  ;;  %v1572_v52 = vld [vmem:[%s1970_s13 + $0xb4] sm:$0xf0]  ;;  %v1316_v57 = vor.u32 %v1556_v49, %v1315_v48 }
  0x77   : > { %1020 = vmatpush.bf16.msra.mxu1 %v1396_v34  ;;  %v1516_v51 = vor.u32 %v1606_v44, %v1515_v43  ;;  %v1443_v53 = vld [vmem:[%s1970_s13 + $0x130] sm:$0xf]  ;;  %v1588_v54 = vld [vmem:[%s1970_s13 + $0x134] sm:$0xf0]  ;;  %v1380_v58 = vor.u32 %v1572_v52, %v1379_v50  ;;  %v1307_v60 = vld [vmem:[%s1970_s13 + $0x20] sm:$0xf] }
  0x78   : > { %1033 = vmatpush.bf16.msra.mxu2 %v1460_v35  ;;  %v1507_v55 = vld [vmem:[%s1970_s13 + $0x1b0] sm:$0xf]  ;;  %v1604_v56 = vld [vmem:[%s1970_s13 + $0x1b4] sm:$0xf0]  ;;  %v1444_v59 = vor.u32 %v1588_v54, %v1443_v53  ;;  %v1554_v61 = vld [vmem:[%s1970_s13 + $0x24] sm:$0xf0] }
  0x79   : > { %1046 = vmatpush.bf16.msra.mxu3 %v1524_v39  ;;  %v1371_v62 = vld [vmem:[%s1970_s13 + $0xa0] sm:$0xf]  ;;  %v1508_v63 = vor.u32 %v1604_v56, %v1507_v55  ;;  %v1570_v0 = vld [vmem:[%s1970_s13 + $0xa4] sm:$0xf0]  ;;  %v1308_v5 = vor.u32 %v1554_v61, %v1307_v60  ;;  %v1299_v8 = vld [vmem:[%s1970_s13 + $0x10] sm:$0xf] }
  0x7a   : > { %1008 = vmatpush.bf16.msra.mxu0 %v1324_v45  ;;  %v1435_v1 = vld [vmem:[%s1970_s13 + $0x120] sm:$0xf]  ;;  %v1586_v2 = vld [vmem:[%s1970_s13 + $0x124] sm:$0xf0]  ;;  %v1372_v6 = vor.u32 %v1570_v0, %v1371_v62  ;;  %v1552_v9 = vld [vmem:[%s1970_s13 + $0x14] sm:$0xf0] }
  0x7b   : > { %1021 = vmatpush.bf16.msra.mxu1 %v1388_v46  ;;  %v1499_v3 = vld [vmem:[%s1970_s13 + $0x1a0] sm:$0xf]  ;;  %v1602_v4 = vld [vmem:[%s1970_s13 + $0x1a4] sm:$0xf0]  ;;  %v1436_v7 = vor.u32 %v1586_v2, %v1435_v1  ;;  %v1363_v10 = vld [vmem:[%s1970_s13 + $0x90] sm:$0xf]  ;;  %v1300_v17 = vor.u32 %v1552_v9, %v1299_v8 }
  0x7c   : > { %1034 = vmatpush.bf16.msra.mxu2 %v1452_v47  ;;  %v1500_v11 = vor.u32 %v1602_v4, %v1499_v3  ;;  %v1568_v12 = vld [vmem:[%s1970_s13 + $0x94] sm:$0xf0]  ;;  %v1427_v13 = vld [vmem:[%s1970_s13 + $0x110] sm:$0xf]  ;;  %v1291_v18 = vld [vmem:[%s1970_s13] sm:$0xf] }
  0x7d   : > { %1047 = vmatpush.bf16.msra.mxu3 %v1516_v51  ;;  %v1584_v14 = vld [vmem:[%s1970_s13 + $0x114] sm:$0xf0]  ;;  %v1491_v15 = vld [vmem:[%s1970_s13 + $0x190] sm:$0xf]  ;;  %v1550_v19 = vld [vmem:[%s1970_s13 + $0x4] sm:$0xf0]  ;;  %v1364_v21 = vor.u32 %v1568_v12, %v1363_v10 }
  0x7e   : > { %1009 = vmatpush.bf16.msra.mxu0 %v1316_v57  ;;  %v1600_v16 = vld [vmem:[%s1970_s13 + $0x194] sm:$0xf0]  ;;  %v1355_v20 = vld [vmem:[%s1970_s13 + $0x80] sm:$0xf]  ;;  %v1428_v22 = vor.u32 %v1584_v14, %v1427_v13  ;;  %v1566_v23 = vld [vmem:[%s1970_s13 + $0x84] sm:$0xf0]  ;;  %v1292_v33 = vor.u32 %v1550_v19, %v1291_v18 }
  0x7f   : > { %1022 = vmatpush.bf16.msra.mxu1 %v1380_v58  ;;  %v1419_v24 = vld [vmem:[%s1970_s13 + $0x100] sm:$0xf]  ;;  %v1582_v25 = vld [vmem:[%s1970_s13 + $0x104] sm:$0xf0]  ;;  %v1492_v26 = vor.u32 %v1600_v16, %v1491_v15  ;;  %v1563_v29 = vld [vmem:[%s1970_s13 + $0x74] sm:$0xf]  ;;  %v1356_v38 = vor.u32 %v1566_v23, %v1355_v20 }
  0x80   : > { %1035 = vmatpush.bf16.msra.mxu2 %v1444_v59  ;;  %v1483_v27 = vld [vmem:[%s1970_s13 + $0x180] sm:$0xf]  ;;  %v1598_v28 = vld [vmem:[%s1970_s13 + $0x184] sm:$0xf0]  ;;  %v1349_v30 = vld [vmem:[%s1970_s13 + $0x78] sm:$0xf0]  ;;  %v1420_v39 = vor.u32 %v1582_v25, %v1419_v24 }
  0x81   : > { %1048 = vmatpush.bf16.msra.mxu3 %v1508_v63  ;;  %v1579_v31 = vld [vmem:[%s1970_s13 + $0xf4] sm:$0xf]  ;;  %v606_v32 = vld [vmem:[%s1952_s30 + $0x8] sm:$0xff]  ;;  %v1484_v43 = vor.u32 %v1598_v28, %v1483_v27  ;;  %v1352_v44 = vor.u32 %v1563_v29, %v1349_v30  ;;  %v1561_v48 = vld [vmem:[%s1970_s13 + $0x64] sm:$0xf]  ;;  %p1545_p13 = scmp.ne.s32.totalorder %s1708_s17, 4 }
  0x82   : > { %1010 = vmatpush.bf16.msra.mxu0 %v1308_v5  ;;  %v1413_v34 = vld [vmem:[%s1970_s13 + $0xf8] sm:$0xf0]  ;;  %v1595_v35 = vld [vmem:[%s1970_s13 + $0x174] sm:$0xf]  ;;  %v675_v37 = vunpack.c.l.b16 %v606_v32  ;;  %v676_v42 = vunpack.c.h.b16 %v606_v32  ;;  %v1341_v49 = vld [vmem:[%s1970_s13 + $0x68] sm:$0xf0] }
  0x83   : > { %1023 = vmatpush.bf16.msra.mxu1 %v1372_v6  ;;  %v1477_v36 = vld [vmem:[%s1970_s13 + $0x178] sm:$0xf0]  ;;  %v1611_v40 = vld [vmem:[%s1970_s13 + $0x1f4] sm:$0xf]  ;;  %v1416_v46 = vor.u32 %v1579_v31, %v1413_v34  ;;  %v1577_v50 = vld [vmem:[%s1970_s13 + $0xe4] sm:$0xf]  ;;  %v1344_v62 = vor.u32 %v1561_v48, %v1341_v49 }
  0x84   : > { %1036 = vmatpush.bf16.msra.mxu2 %v1436_v7  ;;  %v1541_v41 = vld [vmem:[%s1970_s13 + $0x1f8] sm:$0xf0]  ;;  %v605_v45 = vld [vmem:[%s1952_s30] sm:$0xff]  ;;  %v1480_v47 = vor.u32 %v1595_v35, %v1477_v36  ;;  %v1405_v54 = vld [vmem:[%s1970_s13 + $0xe8] sm:$0xf0]  ;;  %v2053_v57 = vpack.c.b16 %v675_v37, %v675_v37  ;;  %v2057_v60 = vpack.c.b16 %v676_v42, %v676_v42 }
  0x85   : > { %1049 = vmatpush.bf16.msra.mxu3 %v1500_v11  ;;  %v673_v51 = vunpack.c.l.b16 %v605_v45  ;;  %v674_v52 = vunpack.c.h.b16 %v605_v45  ;;  %v1544_v53 = vor.u32 %v1611_v40, %v1541_v41  ;;  %v1593_v55 = vld [vmem:[%s1970_s13 + $0x164] sm:$0xf]  ;;  %v1469_v56 = vld [vmem:[%s1970_s13 + $0x168] sm:$0xf0]  ;;  %v1408_v0 = vor.u32 %v1577_v50, %v1405_v54  ;;  %v1559_v2 = vld [vmem:[%s1970_s13 + $0x54] sm:$0xf] }
  0x86   : > { %1011 = vmatpush.bf16.msra.mxu0 %v1300_v17  ;;  %v1609_v58 = vld [vmem:[%s1970_s13 + $0x1e4] sm:$0xf]  ;;  %v1533_v59 = vld [vmem:[%s1970_s13 + $0x1e8] sm:$0xf0]  ;;  %v1472_v1 = vor.u32 %v1593_v55, %v1469_v56  ;;  %v1333_v3 = vld [vmem:[%s1970_s13 + $0x58] sm:$0xf0] }
  0x87   : > { %1024 = vmatpush.bf16.msra.mxu1 %v1364_v21  ;;  %v2059_v61 = vpack.c.b16 %v673_v51, %v673_v51  ;;  %v2061_v63 = vpack.c.b16 %v674_v52, %v674_v52  ;;  %v1575_v4 = vld [vmem:[%s1970_s13 + $0xd4] sm:$0xf]  ;;  %v1536_v5 = vor.u32 %v1609_v58, %v1533_v59  ;;  %v1397_v6 = vld [vmem:[%s1970_s13 + $0xd8] sm:$0xf0]  ;;  %v1336_v11 = vor.u32 %v1559_v2, %v1333_v3  ;;  %v1557_v14 = vld [vmem:[%s1970_s13 + $0x44] sm:$0xf] }
  0x88   : > { %1037 = vmatpush.bf16.msra.mxu2 %v1428_v22  ;;  %v1591_v7 = vld [vmem:[%s1970_s13 + $0x154] sm:$0xf]  ;;  %v1461_v8 = vld [vmem:[%s1970_s13 + $0x158] sm:$0xf0]  ;;  %v1400_v12 = vor.u32 %v1575_v4, %v1397_v6  ;;  %v1325_v15 = vld [vmem:[%s1970_s13 + $0x48] sm:$0xf0] }
  0x89   : > { %1050 = vmatpush.bf16.msra.mxu3 %v1492_v26  ;;  %v1607_v9 = vld [vmem:[%s1970_s13 + $0x1d4] sm:$0xf]  ;;  %v1525_v10 = vld [vmem:[%s1970_s13 + $0x1d8] sm:$0xf0]  ;;  %v1464_v13 = vor.u32 %v1591_v7, %v1461_v8  ;;  %v1573_v16 = vld [vmem:[%s1970_s13 + $0xc4] sm:$0xf]  ;;  %v1328_v23 = vor.u32 %v1557_v14, %v1325_v15 }
  0x8a   : > { %1012 = vmatpush.bf16.msra.mxu0 %v1292_v33  ;;  %v1528_v17 = vor.u32 %v1607_v9, %v1525_v10  ;;  %v1389_v18 = vld [vmem:[%s1970_s13 + $0xc8] sm:$0xf0]  ;;  %v1589_v19 = vld [vmem:[%s1970_s13 + $0x144] sm:$0xf]  ;;  %v1555_v26 = vld [vmem:[%s1970_s13 + $0x34] sm:$0xf] }
  0x8b   : > { %1025 = vmatpush.bf16.msra.mxu1 %v1356_v38  ;;  %v1453_v20 = vld [vmem:[%s1970_s13 + $0x148] sm:$0xf0]  ;;  %v1605_v21 = vld [vmem:[%s1970_s13 + $0x1c4] sm:$0xf]  ;;  %v1392_v24 = vor.u32 %v1573_v16, %v1389_v18  ;;  %v1317_v27 = vld [vmem:[%s1970_s13 + $0x38] sm:$0xf0] }
  0x8c   : > { %1038 = vmatpush.bf16.msra.mxu2 %v1420_v39  ;;  %v1517_v22 = vld [vmem:[%s1970_s13 + $0x1c8] sm:$0xf0]  ;;  %v1456_v25 = vor.u32 %v1589_v19, %v1453_v20  ;;  %v1571_v28 = vld [vmem:[%s1970_s13 + $0xb4] sm:$0xf]  ;;  %v1381_v30 = vld [vmem:[%s1970_s13 + $0xb8] sm:$0xf0]  ;;  %v1320_v35 = vor.u32 %v1555_v26, %v1317_v27 }
  0x8d   : > { %1051 = vmatpush.bf16.msra.mxu3 %v1484_v43  ;;  %1013 = vmatmul.bf16.vlgmr.msra.gmra.mxu0 %v2059_v61  ;;  %v1520_v29 = vor.u32 %v1605_v21, %v1517_v22  ;;  %v1587_v31 = vld [vmem:[%s1970_s13 + $0x134] sm:$0xf]  ;;  %v1445_v32 = vld [vmem:[%s1970_s13 + $0x138] sm:$0xf0]  ;;  %v1384_v36 = vor.u32 %v1571_v28, %v1381_v30  ;;  %v1553_v38 = vld [vmem:[%s1970_s13 + $0x24] sm:$0xf] }
  0x8e   : > { %1057 = vmatpush.bf16.msrb.mxu0 %v1352_v44  ;;  %1026 = vmatmul.bf16.vlgmr.msra.gmra.mxu1 %v2061_v63  ;;  %v1603_v33 = vld [vmem:[%s1970_s13 + $0x1b4] sm:$0xf]  ;;  %v1509_v34 = vld [vmem:[%s1970_s13 + $0x1b8] sm:$0xf0]  ;;  %v1448_v37 = vor.u32 %v1587_v31, %v1445_v32  ;;  %v1309_v39 = vld [vmem:[%s1970_s13 + $0x28] sm:$0xf0] }
  0x8f   : > { %1070 = vmatpush.bf16.msrb.mxu1 %v1416_v46  ;;  %1039 = vmatmul.bf16.vlgmr.msra.gmra.mxu2 %v2053_v57  ;;  %v1569_v40 = vld [vmem:[%s1970_s13 + $0xa4] sm:$0xf]  ;;  %v1512_v41 = vor.u32 %v1603_v33, %v1509_v34  ;;  %v1373_v42 = vld [vmem:[%s1970_s13 + $0xa8] sm:$0xf0]  ;;  %v1551_v50 = vld [vmem:[%s1970_s13 + $0x14] sm:$0xf] }
  0x90   : > { %1083 = vmatpush.bf16.msrb.mxu2 %v1480_v47  ;;  %1052 = vmatmul.bf16.vlgmr.msra.gmra.mxu3 %v2057_v60  ;;  %v1585_v43 = vld [vmem:[%s1970_s13 + $0x124] sm:$0xf]  ;;  %v1437_v44 = vld [vmem:[%s1970_s13 + $0x128] sm:$0xf0]  ;;  %v1312_v47 = vor.u32 %v1553_v38, %v1309_v39  ;;  %v1376_v48 = vor.u32 %v1569_v40, %v1373_v42  ;;  %v1301_v51 = vld [vmem:[%s1970_s13 + $0x18] sm:$0xf0] }
  0x91   : > { %1096 = vmatpush.bf16.msrb.mxu3 %v1544_v53  ;;  %v1601_v45 = vld [vmem:[%s1970_s13 + $0x1a4] sm:$0xf]  ;;  %v1501_v46 = vld [vmem:[%s1970_s13 + $0x1a8] sm:$0xf0]  ;;  %v1440_v49 = vor.u32 %v1585_v43, %v1437_v44  ;;  %v1567_v52 = vld [vmem:[%s1970_s13 + $0x94] sm:$0xf] }
  0x92   : > { %1058 = vmatpush.bf16.msrb.mxu0 %v1344_v62  ;;  %v1504_v53 = vor.u32 %v1601_v45, %v1501_v46  ;;  %v1365_v54 = vld [vmem:[%s1970_s13 + $0x98] sm:$0xf0]  ;;  %v1583_v55 = vld [vmem:[%s1970_s13 + $0x114] sm:$0xf]  ;;  %v1304_v62 = vor.u32 %v1551_v50, %v1301_v51  ;;  %v1549_v2 = vld [vmem:[%s1970_s13 + $0x4] sm:$0xf] }
  0x93   : > { %1071 = vmatpush.bf16.msrb.mxu1 %v1408_v0  ;;  %v1429_v56 = vld [vmem:[%s1970_s13 + $0x118] sm:$0xf0]  ;;  %v1599_v58 = vld [vmem:[%s1970_s13 + $0x194] sm:$0xf]  ;;  %v1368_v0 = vor.u32 %v1567_v52, %v1365_v54  ;;  %v1293_v3 = vld [vmem:[%s1970_s13 + $0x8] sm:$0xf0] }
  0x94   : > { %1084 = vmatpush.bf16.msrb.mxu2 %v1472_v1  ;;  %v1493_v59 = vld [vmem:[%s1970_s13 + $0x198] sm:$0xf0]  ;;  %v1432_v1 = vor.u32 %v1583_v55, %v1429_v56  ;;  %v1565_v4 = vld [vmem:[%s1970_s13 + $0x84] sm:$0xf]  ;;  %v1357_v6 = vld [vmem:[%s1970_s13 + $0x88] sm:$0xf0] }
  0x95   : > { %1097 = vmatpush.bf16.msrb.mxu3 %v1536_v5  ;;  %v1496_v5 = vor.u32 %v1599_v58, %v1493_v59  ;;  %v1581_v7 = vld [vmem:[%s1970_s13 + $0x104] sm:$0xf]  ;;  %v1421_v8 = vld [vmem:[%s1970_s13 + $0x108] sm:$0xf0]  ;;  %v603_v21 = vld [vmem:[#allocation2] sm:$0xff] }
  0x96   : > { %1059 = vmatpush.bf16.msrb.mxu0 %v1336_v11  ;;  %v1597_v9 = vld [vmem:[%s1970_s13 + $0x184] sm:$0xf]  ;;  %v1485_v10 = vld [vmem:[%s1970_s13 + $0x188] sm:$0xf0]  ;;  %v1296_v11 = vor.u32 %v1549_v2, %v1293_v3  ;;  %v604_v31 = vld [vmem:[#allocation2 + $0x8] sm:$0xff] }
  0x97   : > { %1072 = vmatpush.bf16.msrb.mxu1 %v1400_v12  ;;  %v1360_v12 = vor.u32 %v1565_v4, %v1357_v6  ;;  %v1488_v14 = vor.u32 %v1597_v9, %v1485_v10 }
  0x98   : > { %1085 = vmatpush.bf16.msrb.mxu2 %v1464_v13  ;;  %v1424_v13 = vor.u32 %v1581_v7, %v1421_v8 }
  0x99   : > { %1098 = vmatpush.bf16.msrb.mxu3 %v1528_v17 }
  0x9a   : > { %1060 = vmatpush.bf16.msrb.mxu0 %v1328_v23 }
  0x9b   : > { %1073 = vmatpush.bf16.msrb.mxu1 %v1392_v24 }
  0x9c   : > { %1086 = vmatpush.bf16.msrb.mxu2 %v1456_v25 }
  0x9d   : > { %1099 = vmatpush.bf16.msrb.mxu3 %v1520_v29 }
  0x9e   : > { %1061 = vmatpush.bf16.msrb.mxu0 %v1320_v35 }
  0x9f   : > { %1074 = vmatpush.bf16.msrb.mxu1 %v1384_v36 }
  0xa0   : > { %1087 = vmatpush.bf16.msrb.mxu2 %v1448_v37 }
  0xa1   : > { %1100 = vmatpush.bf16.msrb.mxu3 %v1512_v41 }
  0xa2   : > { %1062 = vmatpush.bf16.msrb.mxu0 %v1312_v47 }
  0xa3   : > { %1075 = vmatpush.bf16.msrb.mxu1 %v1376_v48 }
  0xa4   : > { %1088 = vmatpush.bf16.msrb.mxu2 %v1440_v49 }
  0xa5   : > { %1101 = vmatpush.bf16.msrb.mxu3 %v1504_v53 }
  0xa6   : > { %1063 = vmatpush.bf16.msrb.mxu0 %v1304_v62 }
  0xa7   : > { %1076 = vmatpush.bf16.msrb.mxu1 %v1368_v0 }
  0xa8   : > { %1089 = vmatpush.bf16.msrb.mxu2 %v1432_v1 }
  0xa9   : > { %1102 = vmatpush.bf16.msrb.mxu3 %v1496_v5 }
  0xaa   : > { %1064 = vmatpush.bf16.msrb.mxu0 %v1296_v11 }
  0xab   : > { %1077 = vmatpush.bf16.msrb.mxu1 %v1360_v12 }
  0xac   : > { %1090 = vmatpush.bf16.msrb.mxu2 %v1424_v13 }
  0xad   : > { %1103 = vmatpush.bf16.msrb.mxu3 %v1488_v14  ;;  %1065 = vmatmul.bf16.vlgmr.msrb.gmra.mxu0 %v2059_v61 }
  0xae   : > { %1078 = vmatmul.bf16.vlgmr.msrb.gmra.mxu1 %v2061_v63 }
  0xaf   : > { %1091 = vmatmul.bf16.vlgmr.msrb.gmra.mxu2 %v2053_v57 }
  0xb0   : > { %1104 = vmatmul.bf16.vlgmr.msrb.gmra.mxu3 %v2057_v60 }
 0x10a   : > { %v1014_v15 = vpop.f32.mrf.mxu0 }
 0x10b   : > { %v1027_v16 = vpop.f32.mrf.mxu1 }
 0x10c   : > { %v1028_v17 = vadd.f32 %v1027_v16, %v1014_v15 }
 0x112   : > { %v1040_v18 = vpop.f32.mrf.mxu2  ;;  %v1016_v23 = vpop.f32.mrf.mxu0 }
 0x113   : > { %v1041_v19 = vadd.f32 %v1040_v18, %v1028_v17  ;;  %v1053_v20 = vpop.f32.mrf.mxu3  ;;  %v1029_v24 = vpop.f32.mrf.mxu1 }
 0x115   : > { %v1054_v22 = vadd.f32 %v1053_v20, %v1041_v19 }
 0x117   : > { %v1109_v25 = vadd.f32 %v1054_v22, %v603_v21 }
 0x119   : > { %1111 = vst [vmem:[#allocation2] sm:$0xff] %v1109_v25 }
 0x11a   : > { %v1042_v26 = vpop.f32.mrf.mxu2 }
 0x11b   : > { %v1055_v61 = vpop.f32.mrf.mxu3 }
 0x12a   : > { %v1066_v27 = vpop.f32.mrf.mxu0 }
 0x12b   : > { %v1079_v63 = vpop.f32.mrf.mxu1 }
 0x12c   : > { %v1080_v28 = vadd.f32 %v1079_v63, %v1066_v27 }
 0x132   : > { %v1092_v57 = vpop.f32.mrf.mxu2  ;;  %v1068_v30 = vpop.f32.mrf.mxu0 }
 0x133   : > { %v1093_v29 = vadd.f32 %v1092_v57, %v1080_v28  ;;  %v1105_v60 = vpop.f32.mrf.mxu3  ;;  %v1081_v32 = vpop.f32.mrf.mxu1 }
 0x135   : > { %v1106_v33 = vadd.f32 %v1105_v60, %v1093_v29 }
 0x137   : > { %v1110_v34 = vadd.f32 %v1106_v33, %v604_v31  ;;  %1116 = sbr.rel (%p1545_p13) target bundleno = 330 (0x14a), region = 82 }
 0x139   : > { %1112 = vst [vmem:[#allocation2 + $0x8] sm:$0xff] %v1110_v34 }
 0x13a   : > { %v1094_v35 = vpop.f32.mrf.mxu2 }
 0x13b   : > { %v1107_v36 = vpop.f32.mrf.mxu3 }
 0x13c   : > { %v1117_v37 = vld [vmem:[#allocation2] sm:$0xff] }
 0x13d   : > { %v1119_v39 = vld [vmem:[%s580_s15] sm:$0x3] }
 0x13e   : > { %v1121_v40 = vperm.slane %v1119_v39, 0  ;;  %v1122_v41 = vperm.slane %v1119_v39, 1  ;;  %v1127_v42 = vld [vmem:[%s585_s18] sm:$0x3] }
 0x13f   : > { %v1129_v43 = vperm.slane %v1127_v42, 0  ;;  %v1130_v44 = vperm.slane %v1127_v42, 1 }
 0x140   : > { %v1118_v38 = vld [vmem:[#allocation2 + $0x8] sm:$0xff]  ;;  %v1125_v45 = vmul.f32 %v1121_v40, %v1117_v37 }
 0x141   : > { %v1126_v46 = vmul.f32 %v1122_v41, %v1118_v38 }
 0x142   : > { %v1133_v47 = vadd.f32 %v1129_v43, %v1125_v45 }
 0x143   : > { %v1134_v48 = vadd.f32 %v1130_v44, %v1126_v46 }
 0x144   : > { %v1135_v49 = vmax.f32 %v1133_v47, 0.0 }
 0x145   : > { %v1136_v50 = vmax.f32 %v1134_v48, 0.0 }
 0x147   : > { %v1137_v51 = vpack.c.bf16 %v1136_v50, %v1135_v49 }
 0x149   : > { %1138 = vst [vmem:[%s1968_s12] sm:$0xff] %v1137_v51 }
 0x14a PF: > { %s14_s21 = sadd.s32 1, %s1724_s21   ;;  %s2157_s15 = smov %s1704_s16 }
 0x14b   : > { %p11_p0 = scmp.ge.s32.totalorder %s14_s21, 22   ;;  %s2158_s16 = smov %s1803_s28 }
 0x14c   : > { %s2159_s17 = smov %s1716_s19  ;;  %s2160_s18 = smov %s1720_s20 }
 0x14d   : > { %s2161_s19 = smov %s2164_s22  ;;  %s2162_s20 = smov %s2168_s23 }
 0x14e   :  { %13 = sbr.rel (!%p11_p0) target bundleno = 4 (0x4), region = 126 }

// kernel: rgb_point_model_forward.19
= control target key start
LH: loop header
LB: loop body
LE: loop exit
PB: predicated region body
PF: predicated region fallthrough
CT: control target
= control target key end

     0   :  { %s2792_s15 = smov 0   ;;  %s2794_s16 = smov 0   ;;  %s3430_s0 = inlined_call_operand.vmem [shape: bf16[8,1024], index: 0, kind: input, shape index: {}]   ;;  %s3431_s1 = inlined_call_operand.vmem [shape: bf16[1024,512], index: 1, kind: input, shape index: {}]   ;;  %s3432_s2 = inlined_call_operand.vmem [shape: f32[1,512], index: 2, kind: input, shape index: {}]   ;;  %s3433_s3 = inlined_call_operand.vmem [shape: f32[1,512], index: 3, kind: input, shape index: {}]   ;;  %s3434_s4 = inlined_call_operand.vmem [shape: bf16[8,512], index: 4, kind: output, shape index: {}]  }
   0x1   :  { %s2796_s17 = smov 0   ;;  %s2798_s18 = smov 0  }
   0x2   :  { %s2800_s19 = smov 0  }
   0x3 LB: > { %s29_s20 = sadd.s32 1, %s2761_s18  ;;  %p77_p1 = scmp.ne.s32.totalorder %s2753_s16, %s2749_s15  ;;  %s2765_s19 = sphi %s2800_s19, %s14_s19   ;;  %s2761_s18 = sphi %s2798_s18, %s3438_s18   ;;  %s2757_s17 = sphi %s2796_s17, %s3437_s17   ;;  %s2753_s16 = sphi %s2794_s16, %s3436_s16   ;;  %s2749_s15 = sphi %s2792_s15, %s3435_s15  }
   0x4   : > { %p31_p0 = scmp.ge.s32.totalorder %s29_s20, 2  ;;  %p78_p2 = scmp.eq.s32.totalorder %s2765_s19, 0 }
   0x5   : > { %s70_s22 = sadd.s32 1, %s2753_s16  ;;  %p2034_p5 = scmp.ge.s32.totalorder %s2765_s19, 2 }
   0x6   : > { %s3440_s20 = smov (%p31_p0, %s29_s20), 0  ;;  %p79_p3 = por %p78_p2, %p77_p1 }
   0x7   : > { %s66_s21 = ssub.s32 %s2761_s18, %s3440_s20  ;;  %196 = sbr.rel (%p2034_p5) target bundleno = 144 (0x90), region = 20 }
   0x8   : > { %p68_p4 = scmp.eq.s32.totalorder %s66_s21, 0 }
   0xa   : > { %s2827_s23 = scalar_select %p68_p4, %s2753_s16, %s70_s22  }
   0xc   : > { %199 = sbr.rel (!%p79_p3) target bundleno = 144 (0x90), region = 24  ;;  %s201_s24 = sand.u32 (%p79_p3), 1, %s2753_s16  }
   0xd   : > { %s2558_s25 = sshll.u32 (%p79_p3), %s2761_s18, 3  ;;  %s2035_s26 = sshll.u32 (%p79_p3), %s201_s24, 10 }
   0xe   : > { %s2835_s29 = scalar_lea.vmem (%p79_p3), %s3431_s1, %s2558_s25  ;;  %s2840_s30 = scalar_lea.vmem (%p79_p3), [#allocation3], %s2035_s26 }
   0xf   : > { %v492_v0 = vld [vmem:[%s2835_s29] sm:$0xff] (%p79_p3)  ;;  %v494_v1 = vld [vmem:[%s2835_s29 + $0x10] sm:$0xff] (%p79_p3) }
  0x10   : > { %v496_v2 = vld [vmem:[%s2835_s29 + $0x20] sm:$0xff] (%p79_p3)  ;;  %493 = vst [vmem:[%s2840_s30] sm:$0xff] (%p79_p3), %v492_v0  ;;  %v498_v3 = vld [vmem:[%s2835_s29 + $0x30] sm:$0xff] (%p79_p3) }
  0x11   : > { %495 = vst [vmem:[%s2840_s30 + $0x8] sm:$0xff] %v494_v1  ;;  %v500_v4 = vld [vmem:[%s2835_s29 + $0x40] sm:$0xff]  ;;  %v502_v5 = vld [vmem:[%s2835_s29 + $0x50] sm:$0xff] }
  0x12   : > { %497 = vst [vmem:[%s2840_s30 + $0x10] sm:$0xff] %v496_v2  ;;  %v504_v6 = vld [vmem:[%s2835_s29 + $0x60] sm:$0xff]  ;;  %v506_v7 = vld [vmem:[%s2835_s29 + $0x70] sm:$0xff] }
  0x13   : > { %499 = vst [vmem:[%s2840_s30 + $0x18] sm:$0xff] %v498_v3  ;;  %v508_v8 = vld [vmem:[%s2835_s29 + $0x80] sm:$0xff]  ;;  %v510_v9 = vld [vmem:[%s2835_s29 + $0x90] sm:$0xff] }
  0x14   : > { %501 = vst [vmem:[%s2840_s30 + $0x20] sm:$0xff] %v500_v4  ;;  %v512_v10 = vld [vmem:[%s2835_s29 + $0xa0] sm:$0xff]  ;;  %v514_v11 = vld [vmem:[%s2835_s29 + $0xb0] sm:$0xff] }
  0x15   : > { %503 = vst [vmem:[%s2840_s30 + $0x28] sm:$0xff] %v502_v5  ;;  %v516_v12 = vld [vmem:[%s2835_s29 + $0xc0] sm:$0xff]  ;;  %v518_v13 = vld [vmem:[%s2835_s29 + $0xd0] sm:$0xff] }
  0x16   : > { %505 = vst [vmem:[%s2840_s30 + $0x30] sm:$0xff] %v504_v6  ;;  %v520_v14 = vld [vmem:[%s2835_s29 + $0xe0] sm:$0xff]  ;;  %v522_v15 = vld [vmem:[%s2835_s29 + $0xf0] sm:$0xff] }
  0x17   : > { %507 = vst [vmem:[%s2840_s30 + $0x38] sm:$0xff] %v506_v7  ;;  %v524_v16 = vld [vmem:[%s2835_s29 + $0x100] sm:$0xff]  ;;  %v526_v17 = vld [vmem:[%s2835_s29 + $0x110] sm:$0xff] }
  0x18   : > { %509 = vst [vmem:[%s2840_s30 + $0x40] sm:$0xff] %v508_v8  ;;  %v528_v18 = vld [vmem:[%s2835_s29 + $0x120] sm:$0xff]  ;;  %v530_v19 = vld [vmem:[%s2835_s29 + $0x130] sm:$0xff] }
  0x19   : > { %511 = vst [vmem:[%s2840_s30 + $0x48] sm:$0xff] %v510_v9  ;;  %v532_v20 = vld [vmem:[%s2835_s29 + $0x140] sm:$0xff]  ;;  %v534_v21 = vld [vmem:[%s2835_s29 + $0x150] sm:$0xff] }
  0x1a   : > { %513 = vst [vmem:[%s2840_s30 + $0x50] sm:$0xff] %v512_v10  ;;  %v536_v22 = vld [vmem:[%s2835_s29 + $0x160] sm:$0xff]  ;;  %v538_v23 = vld [vmem:[%s2835_s29 + $0x170] sm:$0xff] }
  0x1b   : > { %515 = vst [vmem:[%s2840_s30 + $0x58] sm:$0xff] %v514_v11  ;;  %v540_v24 = vld [vmem:[%s2835_s29 + $0x180] sm:$0xff]  ;;  %v542_v25 = vld [vmem:[%s2835_s29 + $0x190] sm:$0xff] }
  0x1c   : > { %517 = vst [vmem:[%s2840_s30 + $0x60] sm:$0xff] %v516_v12  ;;  %v544_v26 = vld [vmem:[%s2835_s29 + $0x1a0] sm:$0xff]  ;;  %v546_v27 = vld [vmem:[%s2835_s29 + $0x1b0] sm:$0xff] }
  0x1d   : > { %519 = vst [vmem:[%s2840_s30 + $0x68] sm:$0xff] %v518_v13  ;;  %v548_v28 = vld [vmem:[%s2835_s29 + $0x1c0] sm:$0xff]  ;;  %v550_v29 = vld [vmem:[%s2835_s29 + $0x1d0] sm:$0xff] }
  0x1e   : > { %521 = vst [vmem:[%s2840_s30 + $0x70] sm:$0xff] %v520_v14  ;;  %v552_v30 = vld [vmem:[%s2835_s29 + $0x1e0] sm:$0xff]  ;;  %v554_v31 = vld [vmem:[%s2835_s29 + $0x1f0] sm:$0xff] }
  0x1f   : > { %523 = vst [vmem:[%s2840_s30 + $0x78] sm:$0xff] %v522_v15  ;;  %v556_v32 = vld [vmem:[%s2835_s29 + $0x200] sm:$0xff]  ;;  %v558_v33 = vld [vmem:[%s2835_s29 + $0x210] sm:$0xff] }
  0x20   : > { %525 = vst [vmem:[%s2840_s30 + $0x80] sm:$0xff] %v524_v16  ;;  %v560_v34 = vld [vmem:[%s2835_s29 + $0x220] sm:$0xff]  ;;  %v562_v35 = vld [vmem:[%s2835_s29 + $0x230] sm:$0xff] }
  0x21   : > { %527 = vst [vmem:[%s2840_s30 + $0x88] sm:$0xff] %v526_v17  ;;  %v564_v36 = vld [vmem:[%s2835_s29 + $0x240] sm:$0xff]  ;;  %v566_v37 = vld [vmem:[%s2835_s29 + $0x250] sm:$0xff] }
  0x22   : > { %529 = vst [vmem:[%s2840_s30 + $0x90] sm:$0xff] %v528_v18  ;;  %v568_v38 = vld [vmem:[%s2835_s29 + $0x260] sm:$0xff]  ;;  %v570_v39 = vld [vmem:[%s2835_s29 + $0x270] sm:$0xff] }
  0x23   : > { %531 = vst [vmem:[%s2840_s30 + $0x98] sm:$0xff] %v530_v19  ;;  %v572_v40 = vld [vmem:[%s2835_s29 + $0x280] sm:$0xff]  ;;  %v574_v41 = vld [vmem:[%s2835_s29 + $0x290] sm:$0xff] }
  0x24   : > { %533 = vst [vmem:[%s2840_s30 + $0xa0] sm:$0xff] %v532_v20  ;;  %v576_v42 = vld [vmem:[%s2835_s29 + $0x2a0] sm:$0xff]  ;;  %v578_v43 = vld [vmem:[%s2835_s29 + $0x2b0] sm:$0xff] }
  0x25   : > { %535 = vst [vmem:[%s2840_s30 + $0xa8] sm:$0xff] %v534_v21  ;;  %v580_v44 = vld [vmem:[%s2835_s29 + $0x2c0] sm:$0xff]  ;;  %v582_v45 = vld [vmem:[%s2835_s29 + $0x2d0] sm:$0xff] }
  0x26   : > { %537 = vst [vmem:[%s2840_s30 + $0xb0] sm:$0xff] %v536_v22  ;;  %v584_v46 = vld [vmem:[%s2835_s29 + $0x2e0] sm:$0xff]  ;;  %v586_v47 = vld [vmem:[%s2835_s29 + $0x2f0] sm:$0xff] }
  0x27   : > { %539 = vst [vmem:[%s2840_s30 + $0xb8] sm:$0xff] %v538_v23  ;;  %v588_v48 = vld [vmem:[%s2835_s29 + $0x300] sm:$0xff]  ;;  %v590_v49 = vld [vmem:[%s2835_s29 + $0x310] sm:$0xff] }
  0x28   : > { %541 = vst [vmem:[%s2840_s30 + $0xc0] sm:$0xff] %v540_v24  ;;  %v592_v50 = vld [vmem:[%s2835_s29 + $0x320] sm:$0xff]  ;;  %v594_v51 = vld [vmem:[%s2835_s29 + $0x330] sm:$0xff] }
  0x29   : > { %543 = vst [vmem:[%s2840_s30 + $0xc8] sm:$0xff] %v542_v25  ;;  %v596_v52 = vld [vmem:[%s2835_s29 + $0x340] sm:$0xff]  ;;  %v598_v53 = vld [vmem:[%s2835_s29 + $0x350] sm:$0xff] }
  0x2a   : > { %545 = vst [vmem:[%s2840_s30 + $0xd0] sm:$0xff] %v544_v26  ;;  %v600_v54 = vld [vmem:[%s2835_s29 + $0x360] sm:$0xff]  ;;  %v602_v55 = vld [vmem:[%s2835_s29 + $0x370] sm:$0xff] }
  0x2b   : > { %547 = vst [vmem:[%s2840_s30 + $0xd8] sm:$0xff] %v546_v27  ;;  %v604_v56 = vld [vmem:[%s2835_s29 + $0x380] sm:$0xff]  ;;  %v606_v57 = vld [vmem:[%s2835_s29 + $0x390] sm:$0xff] }
  0x2c   : > { %549 = vst [vmem:[%s2840_s30 + $0xe0] sm:$0xff] %v548_v28  ;;  %v608_v58 = vld [vmem:[%s2835_s29 + $0x3a0] sm:$0xff]  ;;  %v610_v59 = vld [vmem:[%s2835_s29 + $0x3b0] sm:$0xff] }
  0x2d   : > { %551 = vst [vmem:[%s2840_s30 + $0xe8] sm:$0xff] %v550_v29  ;;  %v612_v60 = vld [vmem:[%s2835_s29 + $0x3c0] sm:$0xff]  ;;  %v614_v61 = vld [vmem:[%s2835_s29 + $0x3d0] sm:$0xff] }
  0x2e   : > { %553 = vst [vmem:[%s2840_s30 + $0xf0] sm:$0xff] %v552_v30  ;;  %v616_v62 = vld [vmem:[%s2835_s29 + $0x3e0] sm:$0xff]  ;;  %v618_v63 = vld [vmem:[%s2835_s29 + $0x3f0] sm:$0xff] }
  0x2f   : > { %555 = vst [vmem:[%s2840_s30 + $0xf8] sm:$0xff] %v554_v31  ;;  %v620_v0 = vld [vmem:[%s2835_s29 + $0x400] sm:$0xff]  ;;  %v622_v1 = vld [vmem:[%s2835_s29 + $0x410] sm:$0xff] }
  0x30   : > { %557 = vst [vmem:[%s2840_s30 + $0x100] sm:$0xff] %v556_v32  ;;  %v624_v2 = vld [vmem:[%s2835_s29 + $0x420] sm:$0xff]  ;;  %v626_v3 = vld [vmem:[%s2835_s29 + $0x430] sm:$0xff] }
  0x31   : > { %559 = vst [vmem:[%s2840_s30 + $0x108] sm:$0xff] %v558_v33  ;;  %v628_v4 = vld [vmem:[%s2835_s29 + $0x440] sm:$0xff]  ;;  %v630_v5 = vld [vmem:[%s2835_s29 + $0x450] sm:$0xff] }
  0x32   : > { %561 = vst [vmem:[%s2840_s30 + $0x110] sm:$0xff] %v560_v34  ;;  %v632_v6 = vld [vmem:[%s2835_s29 + $0x460] sm:$0xff]  ;;  %v634_v7 = vld [vmem:[%s2835_s29 + $0x470] sm:$0xff] }
  0x33   : > { %563 = vst [vmem:[%s2840_s30 + $0x118] sm:$0xff] %v562_v35  ;;  %v636_v8 = vld [vmem:[%s2835_s29 + $0x480] sm:$0xff]  ;;  %v638_v9 = vld [vmem:[%s2835_s29 + $0x490] sm:$0xff] }
  0x34   : > { %565 = vst [vmem:[%s2840_s30 + $0x120] sm:$0xff] %v564_v36  ;;  %v640_v10 = vld [vmem:[%s2835_s29 + $0x4a0] sm:$0xff]  ;;  %v642_v11 = vld [vmem:[%s2835_s29 + $0x4b0] sm:$0xff] }
  0x35   : > { %567 = vst [vmem:[%s2840_s30 + $0x128] sm:$0xff] %v566_v37  ;;  %v644_v12 = vld [vmem:[%s2835_s29 + $0x4c0] sm:$0xff]  ;;  %v646_v13 = vld [vmem:[%s2835_s29 + $0x4d0] sm:$0xff] }
  0x36   : > { %569 = vst [vmem:[%s2840_s30 + $0x130] sm:$0xff] %v568_v38  ;;  %v648_v14 = vld [vmem:[%s2835_s29 + $0x4e0] sm:$0xff]  ;;  %v650_v15 = vld [vmem:[%s2835_s29 + $0x4f0] sm:$0xff] }
  0x37   : > { %571 = vst [vmem:[%s2840_s30 + $0x138] sm:$0xff] %v570_v39  ;;  %v652_v16 = vld [vmem:[%s2835_s29 + $0x500] sm:$0xff]  ;;  %v654_v17 = vld [vmem:[%s2835_s29 + $0x510] sm:$0xff] }
  0x38   : > { %573 = vst [vmem:[%s2840_s30 + $0x140] sm:$0xff] %v572_v40  ;;  %v656_v18 = vld [vmem:[%s2835_s29 + $0x520] sm:$0xff]  ;;  %v658_v19 = vld [vmem:[%s2835_s29 + $0x530] sm:$0xff] }
  0x39   : > { %575 = vst [vmem:[%s2840_s30 + $0x148] sm:$0xff] %v574_v41  ;;  %v660_v20 = vld [vmem:[%s2835_s29 + $0x540] sm:$0xff]  ;;  %v662_v21 = vld [vmem:[%s2835_s29 + $0x550] sm:$0xff] }
  0x3a   : > { %577 = vst [vmem:[%s2840_s30 + $0x150] sm:$0xff] %v576_v42  ;;  %v664_v22 = vld [vmem:[%s2835_s29 + $0x560] sm:$0xff]  ;;  %v666_v23 = vld [vmem:[%s2835_s29 + $0x570] sm:$0xff] }
  0x3b   : > { %579 = vst [vmem:[%s2840_s30 + $0x158] sm:$0xff] %v578_v43  ;;  %v668_v24 = vld [vmem:[%s2835_s29 + $0x580] sm:$0xff]  ;;  %v670_v25 = vld [vmem:[%s2835_s29 + $0x590] sm:$0xff] }
  0x3c   : > { %581 = vst [vmem:[%s2840_s30 + $0x160] sm:$0xff] %v580_v44  ;;  %v672_v26 = vld [vmem:[%s2835_s29 + $0x5a0] sm:$0xff]  ;;  %v674_v27 = vld [vmem:[%s2835_s29 + $0x5b0] sm:$0xff] }
  0x3d   : > { %583 = vst [vmem:[%s2840_s30 + $0x168] sm:$0xff] %v582_v45  ;;  %v676_v28 = vld [vmem:[%s2835_s29 + $0x5c0] sm:$0xff]  ;;  %v678_v29 = vld [vmem:[%s2835_s29 + $0x5d0] sm:$0xff] }
  0x3e   : > { %585 = vst [vmem:[%s2840_s30 + $0x170] sm:$0xff] %v584_v46  ;;  %v680_v30 = vld [vmem:[%s2835_s29 + $0x5e0] sm:$0xff]  ;;  %v682_v31 = vld [vmem:[%s2835_s29 + $0x5f0] sm:$0xff] }
  0x3f   : > { %587 = vst [vmem:[%s2840_s30 + $0x178] sm:$0xff] %v586_v47  ;;  %v684_v32 = vld [vmem:[%s2835_s29 + $0x600] sm:$0xff]  ;;  %v686_v33 = vld [vmem:[%s2835_s29 + $0x610] sm:$0xff] }
  0x40   : > { %589 = vst [vmem:[%s2840_s30 + $0x180] sm:$0xff] %v588_v48  ;;  %v688_v34 = vld [vmem:[%s2835_s29 + $0x620] sm:$0xff]  ;;  %v690_v35 = vld [vmem:[%s2835_s29 + $0x630] sm:$0xff] }
  0x41   : > { %591 = vst [vmem:[%s2840_s30 + $0x188] sm:$0xff] %v590_v49  ;;  %v692_v36 = vld [vmem:[%s2835_s29 + $0x640] sm:$0xff]  ;;  %v694_v37 = vld [vmem:[%s2835_s29 + $0x650] sm:$0xff] }
  0x42   : > { %593 = vst [vmem:[%s2840_s30 + $0x190] sm:$0xff] %v592_v50  ;;  %v696_v38 = vld [vmem:[%s2835_s29 + $0x660] sm:$0xff]  ;;  %v698_v39 = vld [vmem:[%s2835_s29 + $0x670] sm:$0xff] }
  0x43   : > { %595 = vst [vmem:[%s2840_s30 + $0x198] sm:$0xff] %v594_v51  ;;  %v700_v40 = vld [vmem:[%s2835_s29 + $0x680] sm:$0xff]  ;;  %v702_v41 = vld [vmem:[%s2835_s29 + $0x690] sm:$0xff] }
  0x44   : > { %597 = vst [vmem:[%s2840_s30 + $0x1a0] sm:$0xff] %v596_v52  ;;  %v704_v42 = vld [vmem:[%s2835_s29 + $0x6a0] sm:$0xff]  ;;  %v706_v43 = vld [vmem:[%s2835_s29 + $0x6b0] sm:$0xff] }
  0x45   : > { %599 = vst [vmem:[%s2840_s30 + $0x1a8] sm:$0xff] %v598_v53  ;;  %v708_v44 = vld [vmem:[%s2835_s29 + $0x6c0] sm:$0xff]  ;;  %v710_v45 = vld [vmem:[%s2835_s29 + $0x6d0] sm:$0xff] }
  0x46   : > { %601 = vst [vmem:[%s2840_s30 + $0x1b0] sm:$0xff] %v600_v54  ;;  %v712_v46 = vld [vmem:[%s2835_s29 + $0x6e0] sm:$0xff]  ;;  %v714_v47 = vld [vmem:[%s2835_s29 + $0x6f0] sm:$0xff] }
  0x47   : > { %603 = vst [vmem:[%s2840_s30 + $0x1b8] sm:$0xff] %v602_v55  ;;  %v716_v48 = vld [vmem:[%s2835_s29 + $0x700] sm:$0xff]  ;;  %v718_v49 = vld [vmem:[%s2835_s29 + $0x710] sm:$0xff] }
  0x48   : > { %605 = vst [vmem:[%s2840_s30 + $0x1c0] sm:$0xff] %v604_v56  ;;  %v720_v50 = vld [vmem:[%s2835_s29 + $0x720] sm:$0xff]  ;;  %v722_v51 = vld [vmem:[%s2835_s29 + $0x730] sm:$0xff] }
  0x49   : > { %607 = vst [vmem:[%s2840_s30 + $0x1c8] sm:$0xff] %v606_v57  ;;  %v724_v52 = vld [vmem:[%s2835_s29 + $0x740] sm:$0xff]  ;;  %v726_v53 = vld [vmem:[%s2835_s29 + $0x750] sm:$0xff] }
  0x4a   : > { %609 = vst [vmem:[%s2840_s30 + $0x1d0] sm:$0xff] %v608_v58  ;;  %v728_v54 = vld [vmem:[%s2835_s29 + $0x760] sm:$0xff]  ;;  %v730_v55 = vld [vmem:[%s2835_s29 + $0x770] sm:$0xff] }
  0x4b   : > { %611 = vst [vmem:[%s2840_s30 + $0x1d8] sm:$0xff] %v610_v59  ;;  %v732_v56 = vld [vmem:[%s2835_s29 + $0x780] sm:$0xff]  ;;  %v734_v57 = vld [vmem:[%s2835_s29 + $0x790] sm:$0xff] }
  0x4c   : > { %613 = vst [vmem:[%s2840_s30 + $0x1e0] sm:$0xff] %v612_v60  ;;  %v736_v58 = vld [vmem:[%s2835_s29 + $0x7a0] sm:$0xff]  ;;  %v738_v59 = vld [vmem:[%s2835_s29 + $0x7b0] sm:$0xff] }
  0x4d   : > { %615 = vst [vmem:[%s2840_s30 + $0x1e8] sm:$0xff] %v614_v61  ;;  %v740_v60 = vld [vmem:[%s2835_s29 + $0x7c0] sm:$0xff]  ;;  %v742_v61 = vld [vmem:[%s2835_s29 + $0x7d0] sm:$0xff] }
  0x4e   : > { %617 = vst [vmem:[%s2840_s30 + $0x1f0] sm:$0xff] %v616_v62  ;;  %v744_v62 = vld [vmem:[%s2835_s29 + $0x7e0] sm:$0xff] }
  0x4f   : > { %619 = vst [vmem:[%s2840_s30 + $0x1f8] sm:$0xff] %v618_v63  ;;  %v746_v63 = vld [vmem:[%s2835_s29 + $0x7f0] sm:$0xff] }
  0x50   : > { %621 = vst [vmem:[%s2840_s30 + $0x200] sm:$0xff] %v620_v0 }
  0x51   : > { %623 = vst [vmem:[%s2840_s30 + $0x208] sm:$0xff] %v622_v1 }
  0x52   : > { %625 = vst [vmem:[%s2840_s30 + $0x210] sm:$0xff] %v624_v2 }
  0x53   : > { %627 = vst [vmem:[%s2840_s30 + $0x218] sm:$0xff] %v626_v3 }
  0x54   : > { %629 = vst [vmem:[%s2840_s30 + $0x220] sm:$0xff] %v628_v4 }
  0x55   : > { %631 = vst [vmem:[%s2840_s30 + $0x228] sm:$0xff] %v630_v5 }
  0x56   : > { %633 = vst [vmem:[%s2840_s30 + $0x230] sm:$0xff] %v632_v6 }
  0x57   : > { %635 = vst [vmem:[%s2840_s30 + $0x238] sm:$0xff] %v634_v7 }
  0x58   : > { %637 = vst [vmem:[%s2840_s30 + $0x240] sm:$0xff] %v636_v8 }
  0x59   : > { %639 = vst [vmem:[%s2840_s30 + $0x248] sm:$0xff] %v638_v9 }
  0x5a   : > { %641 = vst [vmem:[%s2840_s30 + $0x250] sm:$0xff] %v640_v10 }
  0x5b   : > { %643 = vst [vmem:[%s2840_s30 + $0x258] sm:$0xff] %v642_v11 }
  0x5c   : > { %645 = vst [vmem:[%s2840_s30 + $0x260] sm:$0xff] %v644_v12 }
  0x5d   : > { %647 = vst [vmem:[%s2840_s30 + $0x268] sm:$0xff] %v646_v13 }
  0x5e   : > { %649 = vst [vmem:[%s2840_s30 + $0x270] sm:$0xff] %v648_v14 }
  0x5f   : > { %651 = vst [vmem:[%s2840_s30 + $0x278] sm:$0xff] %v650_v15 }
  0x60   : > { %653 = vst [vmem:[%s2840_s30 + $0x280] sm:$0xff] %v652_v16 }
  0x61   : > { %655 = vst [vmem:[%s2840_s30 + $0x288] sm:$0xff] %v654_v17 }
  0x62   : > { %657 = vst [vmem:[%s2840_s30 + $0x290] sm:$0xff] %v656_v18 }
  0x63   : > { %659 = vst [vmem:[%s2840_s30 + $0x298] sm:$0xff] %v658_v19 }
  0x64   : > { %661 = vst [vmem:[%s2840_s30 + $0x2a0] sm:$0xff] %v660_v20 }
  0x65   : > { %663 = vst [vmem:[%s2840_s30 + $0x2a8] sm:$0xff] %v662_v21 }
  0x66   : > { %665 = vst [vmem:[%s2840_s30 + $0x2b0] sm:$0xff] %v664_v22 }
  0x67   : > { %667 = vst [vmem:[%s2840_s30 + $0x2b8] sm:$0xff] %v666_v23 }
  0x68   : > { %669 = vst [vmem:[%s2840_s30 + $0x2c0] sm:$0xff] %v668_v24 }
  0x69   : > { %671 = vst [vmem:[%s2840_s30 + $0x2c8] sm:$0xff] %v670_v25 }
  0x6a   : > { %673 = vst [vmem:[%s2840_s30 + $0x2d0] sm:$0xff] %v672_v26 }
  0x6b   : > { %675 = vst [vmem:[%s2840_s30 + $0x2d8] sm:$0xff] %v674_v27 }
  0x6c   : > { %677 = vst [vmem:[%s2840_s30 + $0x2e0] sm:$0xff] %v676_v28 }
  0x6d   : > { %679 = vst [vmem:[%s2840_s30 + $0x2e8] sm:$0xff] %v678_v29 }
  0x6e   : > { %681 = vst [vmem:[%s2840_s30 + $0x2f0] sm:$0xff] %v680_v30 }
  0x6f   : > { %683 = vst [vmem:[%s2840_s30 + $0x2f8] sm:$0xff] %v682_v31 }
  0x70   : > { %685 = vst [vmem:[%s2840_s30 + $0x300] sm:$0xff] %v684_v32 }
  0x71   : > { %687 = vst [vmem:[%s2840_s30 + $0x308] sm:$0xff] %v686_v33 }
  0x72   : > { %689 = vst [vmem:[%s2840_s30 + $0x310] sm:$0xff] %v688_v34 }
  0x73   : > { %691 = vst [vmem:[%s2840_s30 + $0x318] sm:$0xff] %v690_v35 }
  0x74   : > { %693 = vst [vmem:[%s2840_s30 + $0x320] sm:$0xff] %v692_v36 }
  0x75   : > { %695 = vst [vmem:[%s2840_s30 + $0x328] sm:$0xff] %v694_v37 }
  0x76   : > { %697 = vst [vmem:[%s2840_s30 + $0x330] sm:$0xff] %v696_v38 }
  0x77   : > { %699 = vst [vmem:[%s2840_s30 + $0x338] sm:$0xff] %v698_v39 }
  0x78   : > { %701 = vst [vmem:[%s2840_s30 + $0x340] sm:$0xff] %v700_v40 }
  0x79   : > { %703 = vst [vmem:[%s2840_s30 + $0x348] sm:$0xff] %v702_v41 }
  0x7a   : > { %705 = vst [vmem:[%s2840_s30 + $0x350] sm:$0xff] %v704_v42 }
  0x7b   : > { %707 = vst [vmem:[%s2840_s30 + $0x358] sm:$0xff] %v706_v43 }
  0x7c   : > { %709 = vst [vmem:[%s2840_s30 + $0x360] sm:$0xff] %v708_v44 }
  0x7d   : > { %711 = vst [vmem:[%s2840_s30 + $0x368] sm:$0xff] %v710_v45 }
  0x7e   : > { %713 = vst [vmem:[%s2840_s30 + $0x370] sm:$0xff] %v712_v46 }
  0x7f   : > { %715 = vst [vmem:[%s2840_s30 + $0x378] sm:$0xff] %v714_v47 }
  0x80   : > { %717 = vst [vmem:[%s2840_s30 + $0x380] sm:$0xff] %v716_v48 }
  0x81   : > { %719 = vst [vmem:[%s2840_s30 + $0x388] sm:$0xff] %v718_v49 }
  0x82   : > { %721 = vst [vmem:[%s2840_s30 + $0x390] sm:$0xff] %v720_v50 }
  0x83   : > { %723 = vst [vmem:[%s2840_s30 + $0x398] sm:$0xff] %v722_v51 }
  0x84   : > { %725 = vst [vmem:[%s2840_s30 + $0x3a0] sm:$0xff] %v724_v52 }
  0x85   : > { %727 = vst [vmem:[%s2840_s30 + $0x3a8] sm:$0xff] %v726_v53 }
  0x86   : > { %729 = vst [vmem:[%s2840_s30 + $0x3b0] sm:$0xff] %v728_v54 }
  0x87   : > { %731 = vst [vmem:[%s2840_s30 + $0x3b8] sm:$0xff] %v730_v55 }
  0x88   : > { %733 = vst [vmem:[%s2840_s30 + $0x3c0] sm:$0xff] %v732_v56 }
  0x89   : > { %735 = vst [vmem:[%s2840_s30 + $0x3c8] sm:$0xff] %v734_v57 }
  0x8a   : > { %737 = vst [vmem:[%s2840_s30 + $0x3d0] sm:$0xff] %v736_v58 }
  0x8b   : > { %739 = vst [vmem:[%s2840_s30 + $0x3d8] sm:$0xff] %v738_v59 }
  0x8c   : > { %741 = vst [vmem:[%s2840_s30 + $0x3e0] sm:$0xff] %v740_v60 }
  0x8d   : > { %743 = vst [vmem:[%s2840_s30 + $0x3e8] sm:$0xff] %v742_v61 }
  0x8e   : > { %745 = vst [vmem:[%s2840_s30 + $0x3f0] sm:$0xff] %v744_v62 }
  0x8f   : > { %747 = vst [vmem:[%s2840_s30 + $0x3f8] sm:$0xff] %v746_v63 }
  0x90 PF: > { %p2038_p6 = scmp.ge.s32.totalorder %s2765_s19, 1  ;;  %p768_p7 = scmp.lt.s32.totalorder %s2765_s19, 3 }
  0x92   : > { %p769_p8 = pnand %p2038_p6, %p768_p7 }
  0x93   : > { %s775_s5 = sand.u32 (!%p769_p8), 1, %s2749_s15   ;;  %s2040_s21 = sshll.u32 (!%p769_p8), %s2757_s17, 1 }
  0x94   : > { %772 = sbr.rel (%p769_p8) target bundleno = 430 (0x1ae), region = 70  ;;  %s2039_s6 = sshll.u32 (!%p769_p8), %s775_s5, 10 }
  0x95   : > { %s3098_s7 = scalar_lea.vmem (!%p769_p8), [#allocation3], %s2039_s6  ;;  %p834_p9 = scmp.lt.s32.totalorder (!%p769_p8), %s2040_s21, 3 }
  0x99   : > { %v2102_v0 = vld [vmem:[%s3098_s7 + $0x70] sm:$0xf]  ;;  %v2574_v1 = vld [vmem:[%s3098_s7 + $0x74] sm:$0xf0]  ;;  %v2094_v11 = vld [vmem:[%s3098_s7 + $0x60] sm:$0xf] }
  0x9a   : > { %v2166_v2 = vld [vmem:[%s3098_s7 + $0xf0] sm:$0xf]  ;;  %v2103_v3 = vor.u32 %v2574_v1, %v2102_v0  ;;  %v2590_v4 = vld [vmem:[%s3098_s7 + $0xf4] sm:$0xf0]  ;;  %v2572_v13 = vld [vmem:[%s3098_s7 + $0x64] sm:$0xf0] }
  0x9b   : > { %v2230_v5 = vld [vmem:[%s3098_s7 + $0x170] sm:$0xf]  ;;  %v2606_v6 = vld [vmem:[%s3098_s7 + $0x174] sm:$0xf0]  ;;  %v2167_v7 = vor.u32 %v2590_v4, %v2166_v2  ;;  %v2158_v14 = vld [vmem:[%s3098_s7 + $0xe0] sm:$0xf]  ;;  %v2095_v16 = vor.u32 %v2572_v13, %v2094_v11 }
  0x9c   : > { %v2231_v8 = vor.u32 %v2606_v6, %v2230_v5  ;;  %v2294_v9 = vld [vmem:[%s3098_s7 + $0x1f0] sm:$0xf]  ;;  %v2622_v10 = vld [vmem:[%s3098_s7 + $0x1f4] sm:$0xf0]  ;;  %1661 = vmatpush.bf16.msra.mxu0 %v2103_v3  ;;  %v2588_v15 = vld [vmem:[%s3098_s7 + $0xe4] sm:$0xf0] }
  0x9d   : > { %v2295_v12 = vor.u32 %v2622_v10, %v2294_v9  ;;  %1674 = vmatpush.bf16.msra.mxu1 %v2167_v7  ;;  %v2159_v17 = vor.u32 %v2588_v15, %v2158_v14  ;;  %v2222_v18 = vld [vmem:[%s3098_s7 + $0x160] sm:$0xf]  ;;  %v2604_v19 = vld [vmem:[%s3098_s7 + $0x164] sm:$0xf0]  ;;  %v2086_v23 = vld [vmem:[%s3098_s7 + $0x50] sm:$0xf] }
  0x9e   : > { %1687 = vmatpush.bf16.msra.mxu2 %v2231_v8  ;;  %v2286_v20 = vld [vmem:[%s3098_s7 + $0x1e0] sm:$0xf]  ;;  %v2223_v21 = vor.u32 %v2604_v19, %v2222_v18  ;;  %v2620_v22 = vld [vmem:[%s3098_s7 + $0x1e4] sm:$0xf0]  ;;  %v2570_v24 = vld [vmem:[%s3098_s7 + $0x54] sm:$0xf0] }
  0x9f   : > { %1700 = vmatpush.bf16.msra.mxu3 %v2295_v12  ;;  %v2287_v25 = vor.u32 %v2620_v22, %v2286_v20  ;;  %v2150_v26 = vld [vmem:[%s3098_s7 + $0xd0] sm:$0xf]  ;;  %v2586_v27 = vld [vmem:[%s3098_s7 + $0xd4] sm:$0xf0]  ;;  %v2087_v29 = vor.u32 %v2570_v24, %v2086_v23  ;;  %v2078_v35 = vld [vmem:[%s3098_s7 + $0x40] sm:$0xf] }
  0xa0   : > { %v2214_v28 = vld [vmem:[%s3098_s7 + $0x150] sm:$0xf]  ;;  %1662 = vmatpush.bf16.msra.mxu0 %v2095_v16  ;;  %v2602_v30 = vld [vmem:[%s3098_s7 + $0x154] sm:$0xf0]  ;;  %v2151_v33 = vor.u32 %v2586_v27, %v2150_v26  ;;  %v2568_v36 = vld [vmem:[%s3098_s7 + $0x44] sm:$0xf0] }
  0xa1   : > { %v2278_v31 = vld [vmem:[%s3098_s7 + $0x1d0] sm:$0xf]  ;;  %v2618_v32 = vld [vmem:[%s3098_s7 + $0x1d4] sm:$0xf0]  ;;  %1675 = vmatpush.bf16.msra.mxu1 %v2159_v17  ;;  %v2215_v34 = vor.u32 %v2602_v30, %v2214_v28  ;;  %v2142_v37 = vld [vmem:[%s3098_s7 + $0xc0] sm:$0xf]  ;;  %v2079_v44 = vor.u32 %v2568_v36, %v2078_v35 }
  0xa2   : > { %1688 = vmatpush.bf16.msra.mxu2 %v2223_v21  ;;  %v2279_v38 = vor.u32 %v2618_v32, %v2278_v31  ;;  %v2584_v39 = vld [vmem:[%s3098_s7 + $0xc4] sm:$0xf0]  ;;  %v2206_v40 = vld [vmem:[%s3098_s7 + $0x140] sm:$0xf]  ;;  %v2070_v47 = vld [vmem:[%s3098_s7 + $0x30] sm:$0xf] }
  0xa3   : > { %1701 = vmatpush.bf16.msra.mxu3 %v2287_v25  ;;  %v2600_v41 = vld [vmem:[%s3098_s7 + $0x144] sm:$0xf0]  ;;  %v2270_v42 = vld [vmem:[%s3098_s7 + $0x1c0] sm:$0xf]  ;;  %v2143_v45 = vor.u32 %v2584_v39, %v2142_v37  ;;  %v2566_v48 = vld [vmem:[%s3098_s7 + $0x34] sm:$0xf0] }
  0xa4   : > { %v2616_v43 = vld [vmem:[%s3098_s7 + $0x1c4] sm:$0xf0]  ;;  %1663 = vmatpush.bf16.msra.mxu0 %v2087_v29  ;;  %v2207_v46 = vor.u32 %v2600_v41, %v2206_v40  ;;  %v2134_v49 = vld [vmem:[%s3098_s7 + $0xb0] sm:$0xf]  ;;  %v2582_v51 = vld [vmem:[%s3098_s7 + $0xb4] sm:$0xf0]  ;;  %v2071_v56 = vor.u32 %v2566_v48, %v2070_v47 }
  0xa5   : > { %1676 = vmatpush.bf16.msra.mxu1 %v2151_v33  ;;  %v2271_v50 = vor.u32 %v2616_v43, %v2270_v42  ;;  %v2198_v52 = vld [vmem:[%s3098_s7 + $0x130] sm:$0xf]  ;;  %v2598_v53 = vld [vmem:[%s3098_s7 + $0x134] sm:$0xf0]  ;;  %v2135_v57 = vor.u32 %v2582_v51, %v2134_v49  ;;  %v2062_v59 = vld [vmem:[%s3098_s7 + $0x20] sm:$0xf] }
  0xa6   : > { %1689 = vmatpush.bf16.msra.mxu2 %v2215_v34  ;;  %v2262_v54 = vld [vmem:[%s3098_s7 + $0x1b0] sm:$0xf]  ;;  %v2614_v55 = vld [vmem:[%s3098_s7 + $0x1b4] sm:$0xf0]  ;;  %v2199_v58 = vor.u32 %v2598_v53, %v2198_v52  ;;  %v2564_v60 = vld [vmem:[%s3098_s7 + $0x24] sm:$0xf0] }
  0xa7   : > { %1702 = vmatpush.bf16.msra.mxu3 %v2279_v38  ;;  %v2126_v61 = vld [vmem:[%s3098_s7 + $0xa0] sm:$0xf]  ;;  %v2263_v62 = vor.u32 %v2614_v55, %v2262_v54  ;;  %v2580_v63 = vld [vmem:[%s3098_s7 + $0xa4] sm:$0xf0]  ;;  %v2063_v4 = vor.u32 %v2564_v60, %v2062_v59  ;;  %v2054_v7 = vld [vmem:[%s3098_s7 + $0x10] sm:$0xf] }
  0xa8   : > { %1664 = vmatpush.bf16.msra.mxu0 %v2079_v44  ;;  %v2190_v0 = vld [vmem:[%s3098_s7 + $0x120] sm:$0xf]  ;;  %v2596_v1 = vld [vmem:[%s3098_s7 + $0x124] sm:$0xf0]  ;;  %v2127_v5 = vor.u32 %v2580_v63, %v2126_v61  ;;  %v2562_v8 = vld [vmem:[%s3098_s7 + $0x14] sm:$0xf0] }
  0xa9   : > { %1677 = vmatpush.bf16.msra.mxu1 %v2143_v45  ;;  %v2254_v2 = vld [vmem:[%s3098_s7 + $0x1a0] sm:$0xf]  ;;  %v2612_v3 = vld [vmem:[%s3098_s7 + $0x1a4] sm:$0xf0]  ;;  %v2191_v6 = vor.u32 %v2596_v1, %v2190_v0  ;;  %v2118_v9 = vld [vmem:[%s3098_s7 + $0x90] sm:$0xf]  ;;  %v2055_v16 = vor.u32 %v2562_v8, %v2054_v7 }
  0xaa   : > { %1690 = vmatpush.bf16.msra.mxu2 %v2207_v46  ;;  %v2255_v10 = vor.u32 %v2612_v3, %v2254_v2  ;;  %v2578_v11 = vld [vmem:[%s3098_s7 + $0x94] sm:$0xf0]  ;;  %v2182_v12 = vld [vmem:[%s3098_s7 + $0x110] sm:$0xf]  ;;  %v2046_v17 = vld [vmem:[%s3098_s7] sm:$0xf] }
  0xab   : > { %1703 = vmatpush.bf16.msra.mxu3 %v2271_v50  ;;  %v2594_v13 = vld [vmem:[%s3098_s7 + $0x114] sm:$0xf0]  ;;  %v2246_v14 = vld [vmem:[%s3098_s7 + $0x190] sm:$0xf]  ;;  %v2560_v18 = vld [vmem:[%s3098_s7 + $0x4] sm:$0xf0]  ;;  %v2119_v19 = vor.u32 %v2578_v11, %v2118_v9 }
  0xac   : > { %1665 = vmatpush.bf16.msra.mxu0 %v2071_v56  ;;  %v2610_v15 = vld [vmem:[%s3098_s7 + $0x194] sm:$0xf0]  ;;  %v2183_v20 = vor.u32 %v2594_v13, %v2182_v12  ;;  %v2110_v21 = vld [vmem:[%s3098_s7 + $0x80] sm:$0xf]  ;;  %v2576_v22 = vld [vmem:[%s3098_s7 + $0x84] sm:$0xf0]  ;;  %v2047_v31 = vor.u32 %v2560_v18, %v2046_v17 }
  0xad   : > { %1678 = vmatpush.bf16.msra.mxu1 %v2135_v57  ;;  %v2174_v23 = vld [vmem:[%s3098_s7 + $0x100] sm:$0xf]  ;;  %v2247_v24 = vor.u32 %v2610_v15, %v2246_v14  ;;  %v2592_v25 = vld [vmem:[%s3098_s7 + $0x104] sm:$0xf0]  ;;  %v2358_v28 = vld [vmem:[%s3098_s7 + $0x270] sm:$0xf]  ;;  %v2111_v35 = vor.u32 %v2576_v22, %v2110_v21 }
  0xae   : > { %1691 = vmatpush.bf16.msra.mxu2 %v2199_v58  ;;  %v2238_v26 = vld [vmem:[%s3098_s7 + $0x180] sm:$0xf]  ;;  %v2608_v27 = vld [vmem:[%s3098_s7 + $0x184] sm:$0xf0]  ;;  %v2638_v29 = vld [vmem:[%s3098_s7 + $0x274] sm:$0xf0]  ;;  %v2175_v36 = vor.u32 %v2592_v25, %v2174_v23 }
  0xaf   : > { %1704 = vmatpush.bf16.msra.mxu3 %v2263_v62  ;;  %v2422_v30 = vld [vmem:[%s3098_s7 + $0x2f0] sm:$0xf]  ;;  %v2654_v32 = vld [vmem:[%s3098_s7 + $0x2f4] sm:$0xf0]  ;;  %v2239_v39 = vor.u32 %v2608_v27, %v2238_v26  ;;  %v2359_v40 = vor.u32 %v2638_v29, %v2358_v28  ;;  %v2350_v43 = vld [vmem:[%s3098_s7 + $0x260] sm:$0xf] }
  0xb0   : > { %1666 = vmatpush.bf16.msra.mxu0 %v2063_v4  ;;  %v2486_v33 = vld [vmem:[%s3098_s7 + $0x370] sm:$0xf]  ;;  %v2670_v34 = vld [vmem:[%s3098_s7 + $0x374] sm:$0xf0]  ;;  %v2423_v41 = vor.u32 %v2654_v32, %v2422_v30  ;;  %v2636_v44 = vld [vmem:[%s3098_s7 + $0x264] sm:$0xf0] }
  0xb1   : > { %1679 = vmatpush.bf16.msra.mxu1 %v2127_v5  ;;  %v2550_v37 = vld [vmem:[%s3098_s7 + $0x3f0] sm:$0xf]  ;;  %v2686_v38 = vld [vmem:[%s3098_s7 + $0x3f4] sm:$0xf0]  ;;  %v2487_v42 = vor.u32 %v2670_v34, %v2486_v33  ;;  %v2414_v45 = vld [vmem:[%s3098_s7 + $0x2e0] sm:$0xf]  ;;  %v2351_v52 = vor.u32 %v2636_v44, %v2350_v43 }
  0xb2   : > { %1692 = vmatpush.bf16.msra.mxu2 %v2191_v6  ;;  %v2551_v46 = vor.u32 %v2686_v38, %v2550_v37  ;;  %v2652_v47 = vld [vmem:[%s3098_s7 + $0x2e4] sm:$0xf0]  ;;  %v2478_v48 = vld [vmem:[%s3098_s7 + $0x360] sm:$0xf]  ;;  %v2342_v53 = vld [vmem:[%s3098_s7 + $0x250] sm:$0xf] }
  0xb3   : > { %1705 = vmatpush.bf16.msra.mxu3 %v2255_v10  ;;  %v2668_v49 = vld [vmem:[%s3098_s7 + $0x364] sm:$0xf0]  ;;  %v2542_v50 = vld [vmem:[%s3098_s7 + $0x3e0] sm:$0xf]  ;;  %v2415_v54 = vor.u32 %v2652_v47, %v2414_v45  ;;  %v2634_v56 = vld [vmem:[%s3098_s7 + $0x254] sm:$0xf0] }
  0xb4   : > { %1667 = vmatpush.bf16.msra.mxu0 %v2055_v16  ;;  %v2684_v51 = vld [vmem:[%s3098_s7 + $0x3e4] sm:$0xf0]  ;;  %v2479_v55 = vor.u32 %v2668_v49, %v2478_v48  ;;  %v2406_v57 = vld [vmem:[%s3098_s7 + $0x2d0] sm:$0xf]  ;;  %v2650_v60 = vld [vmem:[%s3098_s7 + $0x2d4] sm:$0xf0]  ;;  %v2343_v3 = vor.u32 %v2634_v56, %v2342_v53 }
  0xb5   : > { %1680 = vmatpush.bf16.msra.mxu1 %v2119_v19  ;;  %v862_v58 = vld [vmem:[%s3430_s0 + $0x8] sm:$0xff]  ;;  %v2543_v59 = vor.u32 %v2684_v51, %v2542_v50  ;;  %v2470_v61 = vld [vmem:[%s3098_s7 + $0x350] sm:$0xf]  ;;  %v2666_v62 = vld [vmem:[%s3098_s7 + $0x354] sm:$0xf0]  ;;  %v2407_v7 = vor.u32 %v2650_v60, %v2406_v57  ;;  %s3442_s21 = smov (!%p834_p9, %s2040_s21), 3 }
  0xb6   : > { %1693 = vmatpush.bf16.msra.mxu2 %v2183_v20  ;;  %v999_v63 = vunpack.c.l.b16 %v862_v58  ;;  %v1000_v0 = vunpack.c.h.b16 %v862_v58  ;;  %v2534_v1 = vld [vmem:[%s3098_s7 + $0x3d0] sm:$0xf]  ;;  %v2682_v2 = vld [vmem:[%s3098_s7 + $0x3d4] sm:$0xf0]  ;;  %v861_v5 = vld [vmem:[%s3430_s0] sm:$0xff]  ;;  %v2471_v8 = vor.u32 %v2666_v62, %v2470_v61  ;;  %s836_s25 = scalar_lea.vmem %s3432_s2, %s3442_s21  ;;  %s841_s27 = scalar_lea.vmem %s3433_s3, %s3442_s21 }
  0xb7   : > { %1706 = vmatpush.bf16.msra.mxu3 %v2247_v24  ;;  %v2334_v9 = vld [vmem:[%s3098_s7 + $0x240] sm:$0xf]  ;;  %v2632_v10 = vld [vmem:[%s3098_s7 + $0x244] sm:$0xf0]  ;;  %v997_v12 = vunpack.c.l.b16 %v861_v5  ;;  %v998_v13 = vunpack.c.h.b16 %v861_v5  ;;  %v2535_v14 = vor.u32 %v2682_v2, %v2534_v1  ;;  %v2326_v25 = vld [vmem:[%s3098_s7 + $0x230] sm:$0xf] }
  0xb8   : > { %1668 = vmatpush.bf16.msra.mxu0 %v2047_v31  ;;  %v3191_v4 = vpack.c.b16 %v999_v63, %v999_v63  ;;  %v3196_v6 = vpack.c.b16 %v1000_v0, %v1000_v0  ;;  %v2398_v11 = vld [vmem:[%s3098_s7 + $0x2c0] sm:$0xf]  ;;  %v2648_v15 = vld [vmem:[%s3098_s7 + $0x2c4] sm:$0xf0]  ;;  %v2335_v22 = vor.u32 %v2632_v10, %v2334_v9  ;;  %v2630_v26 = vld [vmem:[%s3098_s7 + $0x234] sm:$0xf0] }
  0xb9   : > { %1681 = vmatpush.bf16.msra.mxu1 %v2111_v35  ;;  %v2462_v16 = vld [vmem:[%s3098_s7 + $0x340] sm:$0xf]  ;;  %v2664_v17 = vld [vmem:[%s3098_s7 + $0x344] sm:$0xf0]  ;;  %v3207_v20 = vpack.c.b16 %v997_v12, %v997_v12  ;;  %v3210_v21 = vpack.c.b16 %v998_v13, %v998_v13  ;;  %v2399_v23 = vor.u32 %v2648_v15, %v2398_v11  ;;  %v2390_v27 = vld [vmem:[%s3098_s7 + $0x2b0] sm:$0xf]  ;;  %v2327_v34 = vor.u32 %v2630_v26, %v2326_v25 }
  0xba   : > { %1694 = vmatpush.bf16.msra.mxu2 %v2175_v36  ;;  %v2526_v18 = vld [vmem:[%s3098_s7 + $0x3c0] sm:$0xf]  ;;  %v2680_v19 = vld [vmem:[%s3098_s7 + $0x3c4] sm:$0xf0]  ;;  %v2463_v24 = vor.u32 %v2664_v17, %v2462_v16  ;;  %v2646_v29 = vld [vmem:[%s3098_s7 + $0x2b4] sm:$0xf0] }
  0xbb   : > { %1707 = vmatpush.bf16.msra.mxu3 %v2239_v39  ;;  %v2527_v28 = vor.u32 %v2680_v19, %v2526_v18  ;;  %v2454_v30 = vld [vmem:[%s3098_s7 + $0x330] sm:$0xf]  ;;  %v2662_v31 = vld [vmem:[%s3098_s7 + $0x334] sm:$0xf0]  ;;  %1669 = vmatmul.bf16.vlgmr.msra.gmra.mxu0 %v3207_v20  ;;  %v2391_v35 = vor.u32 %v2646_v29, %v2390_v27  ;;  %v2318_v37 = vld [vmem:[%s3098_s7 + $0x220] sm:$0xf] }
  0xbc   : > { %1713 = vmatpush.bf16.msrb.mxu0 %v2359_v40  ;;  %v2518_v32 = vld [vmem:[%s3098_s7 + $0x3b0] sm:$0xf]  ;;  %v2678_v33 = vld [vmem:[%s3098_s7 + $0x3b4] sm:$0xf0]  ;;  %1682 = vmatmul.bf16.vlgmr.msra.gmra.mxu1 %v3210_v21  ;;  %v2455_v36 = vor.u32 %v2662_v31, %v2454_v30  ;;  %v2628_v38 = vld [vmem:[%s3098_s7 + $0x224] sm:$0xf0] }
  0xbd   : > { %1726 = vmatpush.bf16.msrb.mxu1 %v2423_v41  ;;  %1695 = vmatmul.bf16.vlgmr.msra.gmra.mxu2 %v3191_v4  ;;  %v2382_v39 = vld [vmem:[%s3098_s7 + $0x2a0] sm:$0xf]  ;;  %v2519_v40 = vor.u32 %v2678_v33, %v2518_v32  ;;  %v2644_v41 = vld [vmem:[%s3098_s7 + $0x2a4] sm:$0xf0]  ;;  %v2310_v49 = vld [vmem:[%s3098_s7 + $0x210] sm:$0xf] }
  0xbe   : > { %1739 = vmatpush.bf16.msrb.mxu2 %v2487_v42  ;;  %1708 = vmatmul.bf16.vlgmr.msra.gmra.mxu3 %v3196_v6  ;;  %v2446_v42 = vld [vmem:[%s3098_s7 + $0x320] sm:$0xf]  ;;  %v2660_v43 = vld [vmem:[%s3098_s7 + $0x324] sm:$0xf0]  ;;  %v2383_v47 = vor.u32 %v2644_v41, %v2382_v39  ;;  %v2626_v50 = vld [vmem:[%s3098_s7 + $0x214] sm:$0xf0] }
  0xbf   : > { %1752 = vmatpush.bf16.msrb.mxu3 %v2551_v46  ;;  %v2510_v44 = vld [vmem:[%s3098_s7 + $0x3a0] sm:$0xf]  ;;  %v2676_v45 = vld [vmem:[%s3098_s7 + $0x3a4] sm:$0xf0]  ;;  %v2319_v46 = vor.u32 %v2628_v38, %v2318_v37  ;;  %v2447_v48 = vor.u32 %v2660_v43, %v2446_v42  ;;  %v2374_v51 = vld [vmem:[%s3098_s7 + $0x290] sm:$0xf] }
  0xc0   : > { %1714 = vmatpush.bf16.msrb.mxu0 %v2351_v52  ;;  %v2511_v52 = vor.u32 %v2676_v45, %v2510_v44  ;;  %v2642_v53 = vld [vmem:[%s3098_s7 + $0x294] sm:$0xf0]  ;;  %v2502_v56 = vld [vmem:[%s3098_s7 + $0x390] sm:$0xf]  ;;  %v2302_v58 = vld [vmem:[%s3098_s7 + $0x200] sm:$0xf] }
  0xc1   : > { %1727 = vmatpush.bf16.msrb.mxu1 %v2415_v54  ;;  %v2438_v54 = vld [vmem:[%s3098_s7 + $0x310] sm:$0xf]  ;;  %v2674_v57 = vld [vmem:[%s3098_s7 + $0x394] sm:$0xf0]  ;;  %v2624_v60 = vld [vmem:[%s3098_s7 + $0x204] sm:$0xf0]  ;;  %v2375_v63 = vor.u32 %v2642_v53, %v2374_v51 }
  0xc2   : > { %1740 = vmatpush.bf16.msrb.mxu2 %v2479_v55  ;;  %v2658_v55 = vld [vmem:[%s3098_s7 + $0x314] sm:$0xf0]  ;;  %v2366_v61 = vld [vmem:[%s3098_s7 + $0x280] sm:$0xf]  ;;  %v2640_v62 = vld [vmem:[%s3098_s7 + $0x284] sm:$0xf0]  ;;  %v2503_v5 = vor.u32 %v2674_v57, %v2502_v56  ;;  %v2303_v13 = vor.u32 %v2624_v60, %v2302_v58 }
  0xc3   : > { %1753 = vmatpush.bf16.msrb.mxu3 %v2543_v59  ;;  %v2311_v59 = vor.u32 %v2626_v50, %v2310_v49  ;;  %v2439_v0 = vor.u32 %v2658_v55, %v2438_v54  ;;  %v2430_v1 = vld [vmem:[%s3098_s7 + $0x300] sm:$0xf]  ;;  %v2656_v2 = vld [vmem:[%s3098_s7 + $0x304] sm:$0xf0]  ;;  %v863_v9 = vld [vmem:[%s3430_s0 + $0x10] sm:$0xff]  ;;  %v2367_v18 = vor.u32 %v2640_v62, %v2366_v61  ;;  %s2043_s28 = sshll.u32 %s3442_s21, 2 }
  0xc4   : > { %1715 = vmatpush.bf16.msrb.mxu0 %v2343_v3  ;;  %v864_v3 = vld [vmem:[%s3430_s0 + $0x18] sm:$0xff]  ;;  %v2573_v10 = vld [vmem:[%s3098_s7 + $0x74] sm:$0xf]  ;;  %v2431_v19 = vor.u32 %v2656_v2, %v2430_v1  ;;  %v2571_v31 = vld [vmem:[%s3098_s7 + $0x64] sm:$0xf]  ;;  %s851_s5 = scalar_lea.vmem %s3434_s4, %s2043_s28 }
  0xc5   : > { %1728 = vmatpush.bf16.msrb.mxu1 %v2407_v7  ;;  %v2494_v7 = vld [vmem:[%s3098_s7 + $0x380] sm:$0xf]  ;;  %v2104_v11 = vld [vmem:[%s3098_s7 + $0x78] sm:$0xf0]  ;;  %v2589_v12 = vld [vmem:[%s3098_s7 + $0xf4] sm:$0xf]  ;;  %v1003_v17 = vunpack.c.l.b16 %v864_v3  ;;  %v1004_v25 = vunpack.c.h.b16 %v864_v3 }
  0xc6   : > { %1741 = vmatpush.bf16.msrb.mxu2 %v2471_v8  ;;  %v2672_v8 = vld [vmem:[%s3098_s7 + $0x384] sm:$0xf0]  ;;  %v2605_v15 = vld [vmem:[%s3098_s7 + $0x174] sm:$0xf]  ;;  %v2232_v16 = vld [vmem:[%s3098_s7 + $0x178] sm:$0xf0]  ;;  %v2107_v27 = vor.u32 %v2573_v10, %v2104_v11 }
  0xc7   : > { %1754 = vmatpush.bf16.msrb.mxu3 %v2535_v14  ;;  %v2168_v14 = vld [vmem:[%s3098_s7 + $0xf8] sm:$0xf0]  ;;  %v2495_v26 = vor.u32 %v2672_v8, %v2494_v7  ;;  %v2235_v30 = vor.u32 %v2605_v15, %v2232_v16  ;;  %v2096_v32 = vld [vmem:[%s3098_s7 + $0x68] sm:$0xf0]  ;;  %v2587_v33 = vld [vmem:[%s3098_s7 + $0xe4] sm:$0xf]  ;;  %v3266_v38 = vpack.c.b16 %v1003_v17, %v1003_v17  ;;  %v3272_v42 = vpack.c.b16 %v1004_v25, %v1004_v25 }
  0xc8   : > { %1716 = vmatpush.bf16.msrb.mxu0 %v2335_v22  ;;  %v2621_v22 = vld [vmem:[%s3098_s7 + $0x1f4] sm:$0xf]  ;;  %v2171_v29 = vor.u32 %v2589_v12, %v2168_v14  ;;  %v2224_v37 = vld [vmem:[%s3098_s7 + $0x168] sm:$0xf0]  ;;  %v2619_v39 = vld [vmem:[%s3098_s7 + $0x1e4] sm:$0xf]  ;;  %v2099_v43 = vor.u32 %v2571_v31, %v2096_v32 }
  0xc9   : > { %1729 = vmatpush.bf16.msrb.mxu1 %v2399_v23  ;;  %v2296_v23 = vld [vmem:[%s3098_s7 + $0x1f8] sm:$0xf0]  ;;  %v2585_v49 = vld [vmem:[%s3098_s7 + $0xd4] sm:$0xf]  ;;  %v2080_v60 = vld [vmem:[%s3098_s7 + $0x48] sm:$0xf0] }
  0xca   : > { %1742 = vmatpush.bf16.msrb.mxu2 %v2463_v24  ;;  %v1001_v24 = vunpack.c.l.b16 %v863_v9  ;;  %v2152_v51 = vld [vmem:[%s3098_s7 + $0xd8] sm:$0xf0]  ;;  %v2617_v54 = vld [vmem:[%s3098_s7 + $0x1d4] sm:$0xf]  ;;  %v2583_v61 = vld [vmem:[%s3098_s7 + $0xc4] sm:$0xf] }
  0xcb   : > { %1755 = vmatpush.bf16.msrb.mxu3 %v2527_v28  ;;  %v1002_v28 = vunpack.c.h.b16 %v863_v9  ;;  %v2216_v53 = vld [vmem:[%s3098_s7 + $0x158] sm:$0xf0]  ;;  %v2155_v57 = vor.u32 %v2585_v49, %v2152_v51  ;;  %v2208_v1 = vld [vmem:[%s3098_s7 + $0x148] sm:$0xf0]  ;;  %v2615_v2 = vld [vmem:[%s3098_s7 + $0x1c4] sm:$0xf] }
  0xcc   : > { %1717 = vmatpush.bf16.msrb.mxu0 %v2327_v34  ;;  %v2299_v34 = vor.u32 %v2621_v22, %v2296_v23  ;;  %v3270_v41 = vpack.c.b16 %v1001_v24, %v1001_v24  ;;  %v2280_v55 = vld [vmem:[%s3098_s7 + $0x1d8] sm:$0xf0]  ;;  %v2272_v3 = vld [vmem:[%s3098_s7 + $0x1c8] sm:$0xf0]  ;;  %v2565_v9 = vld [vmem:[%s3098_s7 + $0x34] sm:$0xf] }
  0xcd   : > { %1730 = vmatpush.bf16.msrb.mxu1 %v2391_v35  ;;  %v2160_v35 = vld [vmem:[%s3098_s7 + $0xe8] sm:$0xf0]  ;;  %v3274_v44 = vpack.c.b16 %v1002_v28, %v1002_v28  ;;  %v2283_v62 = vor.u32 %v2617_v54, %v2280_v55  ;;  %v2072_v10 = vld [vmem:[%s3098_s7 + $0x38] sm:$0xf0]  ;;  %v2581_v11 = vld [vmem:[%s3098_s7 + $0xb4] sm:$0xf]  ;;  %v2275_v12 = vor.u32 %v2615_v2, %v2272_v3 }
  0xce   : > { %1743 = vmatpush.bf16.msrb.mxu2 %v2455_v36  ;;  %v2603_v36 = vld [vmem:[%s3098_s7 + $0x164] sm:$0xf]  ;;  %v2163_v45 = vor.u32 %v2587_v33, %v2160_v35  ;;  %v2597_v14 = vld [vmem:[%s3098_s7 + $0x134] sm:$0xf]  ;;  %v2200_v15 = vld [vmem:[%s3098_s7 + $0x138] sm:$0xf0] }
  0xcf   : > { %1756 = vmatpush.bf16.msrb.mxu3 %v2519_v40  ;;  %v2288_v40 = vld [vmem:[%s3098_s7 + $0x1e8] sm:$0xf0]  ;;  %v2613_v16 = vld [vmem:[%s3098_s7 + $0x1b4] sm:$0xf]  ;;  %v2264_v17 = vld [vmem:[%s3098_s7 + $0x1b8] sm:$0xf0]  ;;  %v2203_v22 = vor.u32 %v2597_v14, %v2200_v15 }
  0xd0   : > { %1718 = vmatpush.bf16.msrb.mxu0 %v2319_v46  ;;  %v2227_v46 = vor.u32 %v2603_v36, %v2224_v37  ;;  %v2291_v50 = vor.u32 %v2619_v39, %v2288_v40  ;;  %v2563_v23 = vld [vmem:[%s3098_s7 + $0x24] sm:$0xf]  ;;  %v2064_v24 = vld [vmem:[%s3098_s7 + $0x28] sm:$0xf0]  ;;  %v2561_v35 = vld [vmem:[%s3098_s7 + $0x14] sm:$0xf] }
  0xd1   : > { %1731 = vmatpush.bf16.msrb.mxu1 %v2383_v47  ;;  %v2569_v47 = vld [vmem:[%s3098_s7 + $0x54] sm:$0xf]  ;;  %v2579_v25 = vld [vmem:[%s3098_s7 + $0xa4] sm:$0xf]  ;;  %v2256_v31 = vld [vmem:[%s3098_s7 + $0x1a8] sm:$0xf0]  ;;  %v2067_v32 = vor.u32 %v2563_v23, %v2064_v24 }
  0xd2   : > { %1744 = vmatpush.bf16.msrb.mxu2 %v2447_v48  ;;  %v2088_v48 = vld [vmem:[%s3098_s7 + $0x58] sm:$0xf0]  ;;  %v2595_v28 = vld [vmem:[%s3098_s7 + $0x124] sm:$0xf]  ;;  %v2577_v37 = vld [vmem:[%s3098_s7 + $0x94] sm:$0xf] }
  0xd3   : > { %1757 = vmatpush.bf16.msrb.mxu3 %v2511_v52  ;;  %v2601_v52 = vld [vmem:[%s3098_s7 + $0x154] sm:$0xf]  ;;  %v2091_v56 = vor.u32 %v2569_v47, %v2088_v48  ;;  %v2056_v36 = vld [vmem:[%s3098_s7 + $0x18] sm:$0xf0]  ;;  %v2559_v49 = vld [vmem:[%s3098_s7 + $0x4] sm:$0xf] }
  0xd4   : > { %1719 = vmatpush.bf16.msrb.mxu0 %v2311_v59  ;;  %v2219_v58 = vor.u32 %v2601_v52, %v2216_v53  ;;  %v2567_v59 = vld [vmem:[%s3098_s7 + $0x44] sm:$0xf]  ;;  %v2120_v40 = vld [vmem:[%s3098_s7 + $0x98] sm:$0xf0]  ;;  %v2059_v48 = vor.u32 %v2561_v35, %v2056_v36  ;;  %v2112_v54 = vld [vmem:[%s3098_s7 + $0x88] sm:$0xf0] }
  0xd5   : > { %1732 = vmatpush.bf16.msrb.mxu1 %v2375_v63  ;;  %v2144_v63 = vld [vmem:[%s3098_s7 + $0xc8] sm:$0xf0]  ;;  %v2248_v47 = vld [vmem:[%s3098_s7 + $0x198] sm:$0xf0]  ;;  %v2123_v51 = vor.u32 %v2577_v37, %v2120_v40  ;;  %v2575_v53 = vld [vmem:[%s3098_s7 + $0x84] sm:$0xf] }
  0xd6   : > { %1745 = vmatpush.bf16.msrb.mxu2 %v2439_v0  ;;  %v2599_v0 = vld [vmem:[%s3098_s7 + $0x144] sm:$0xf]  ;;  %v2147_v7 = vor.u32 %v2583_v61, %v2144_v63  ;;  %v2360_v61 = vld [vmem:[%s3098_s7 + $0x278] sm:$0xf0]  ;;  %v2115_v3 = vor.u32 %v2575_v53, %v2112_v54  ;;  %v2352_v14 = vld [vmem:[%s3098_s7 + $0x268] sm:$0xf0] }
  0xd7   : > { %1758 = vmatpush.bf16.msrb.mxu3 %v2503_v5  ;;  %v2083_v5 = vor.u32 %v2567_v59, %v2080_v60  ;;  %v2211_v8 = vor.u32 %v2599_v0, %v2208_v1  ;;  %v2591_v55 = vld [vmem:[%s3098_s7 + $0x104] sm:$0xf]  ;;  %v2240_v59 = vld [vmem:[%s3098_s7 + $0x188] sm:$0xf0]  ;;  %v2637_v60 = vld [vmem:[%s3098_s7 + $0x274] sm:$0xf] }
  0xd8   : > { %1720 = vmatpush.bf16.msrb.mxu0 %v2303_v13  ;;  %v2136_v13 = vld [vmem:[%s3098_s7 + $0xb8] sm:$0xf0]  ;;  %v2669_v1 = vld [vmem:[%s3098_s7 + $0x374] sm:$0xf]  ;;  %v2651_v15 = vld [vmem:[%s3098_s7 + $0x2e4] sm:$0xf] }
  0xd9   : > { %1733 = vmatpush.bf16.msrb.mxu1 %v2367_v18  ;;  %v2075_v18 = vor.u32 %v2565_v9, %v2072_v10  ;;  %v2424_v0 = vld [vmem:[%s3098_s7 + $0x2f8] sm:$0xf0]  ;;  %v2363_v10 = vor.u32 %v2637_v60, %v2360_v61  ;;  %v2544_v23 = vld [vmem:[%s3098_s7 + $0x3e8] sm:$0xf0]  ;;  %v2645_v53 = vld [vmem:[%s3098_s7 + $0x2b4] sm:$0xf] }
  0xda   : > { %1746 = vmatpush.bf16.msrb.mxu2 %v2431_v19  ;;  %v2139_v19 = vor.u32 %v2581_v11, %v2136_v13  ;;  %v2488_v2 = vld [vmem:[%s3098_s7 + $0x378] sm:$0xf0]  ;;  %v2635_v13 = vld [vmem:[%s3098_s7 + $0x264] sm:$0xf]  ;;  %v2336_v40 = vld [vmem:[%s3098_s7 + $0x248] sm:$0xf0] }
  0xdb   : > { %1759 = vmatpush.bf16.msrb.mxu3 %v2495_v26  ;;  %1721 = vmatmul.bf16.vlgmr.msrb.gmra.mxu0 %v3270_v41  ;;  %v2267_v26 = vor.u32 %v2613_v16, %v2264_v17  ;;  %v2416_v17 = vld [vmem:[%s3098_s7 + $0x2e8] sm:$0xf0]  ;;  %v2355_v24 = vor.u32 %v2635_v13, %v2352_v14  ;;  %v2536_v35 = vld [vmem:[%s3098_s7 + $0x3d8] sm:$0xf0]  ;;  %v2625_v13 = vld [vmem:[%s3098_s7 + $0x214] sm:$0xf] }
  0xdc   : > { %1765 = vmatpush.bf16.msra.mxu0 %v2107_v27  ;;  %1734 = vmatmul.bf16.vlgmr.msrb.gmra.mxu1 %v3274_v44  ;;  %v2128_v27 = vld [vmem:[%s3098_s7 + $0xa8] sm:$0xf0]  ;;  %v2312_v14 = vld [vmem:[%s3098_s7 + $0x218] sm:$0xf0] }
  0xdd   : > { %1778 = vmatpush.bf16.msra.mxu1 %v2171_v29  ;;  %1747 = vmatmul.bf16.vlgmr.msrb.gmra.mxu2 %v3266_v38  ;;  %v2192_v29 = vld [vmem:[%s3098_s7 + $0x128] sm:$0xf0]  ;;  %v2131_v33 = vor.u32 %v2579_v25, %v2128_v27  ;;  %v2419_v25 = vor.u32 %v2651_v15, %v2416_v17  ;;  %v2633_v27 = vld [vmem:[%s3098_s7 + $0x254] sm:$0xf]  ;;  %v2376_v17 = vld [vmem:[%s3098_s7 + $0x298] sm:$0xf0] }
  0xde   : > { %1791 = vmatpush.bf16.msra.mxu2 %v2235_v30  ;;  %1760 = vmatmul.bf16.vlgmr.msrb.gmra.mxu3 %v3272_v42  ;;  %v2611_v30 = vld [vmem:[%s3098_s7 + $0x1a4] sm:$0xf]  ;;  %v2641_v15 = vld [vmem:[%s3098_s7 + $0x294] sm:$0xf] }
  0xdf   : > { %1804 = vmatpush.bf16.msra.mxu3 %v2299_v34  ;;  %v2195_v34 = vor.u32 %v2595_v28, %v2192_v29  ;;  %v2259_v39 = vor.u32 %v2611_v30, %v2256_v31  ;;  %v2344_v28 = vld [vmem:[%s3098_s7 + $0x258] sm:$0xf0]  ;;  %v2649_v29 = vld [vmem:[%s3098_s7 + $0x2d4] sm:$0xf] }
  0xe0   : > { %1766 = vmatpush.bf16.msra.mxu0 %v2099_v43  ;;  %v2593_v43 = vld [vmem:[%s3098_s7 + $0x114] sm:$0xf]  ;;  %v2408_v31 = vld [vmem:[%s3098_s7 + $0x2d8] sm:$0xf0]  ;;  %v2347_v36 = vor.u32 %v2633_v27, %v2344_v28  ;;  %v2623_v27 = vld [vmem:[%s3098_s7 + $0x204] sm:$0xf] }
  0xe1   : > { %1779 = vmatpush.bf16.msra.mxu1 %v2163_v45  ;;  %v2184_v45 = vld [vmem:[%s3098_s7 + $0x118] sm:$0xf0]  ;;  %v2304_v28 = vld [vmem:[%s3098_s7 + $0x208] sm:$0xf0] }
  0xe2   : > { %1792 = vmatpush.bf16.msra.mxu2 %v2227_v46  ;;  %v2609_v46 = vld [vmem:[%s3098_s7 + $0x194] sm:$0xf]  ;;  %v2187_v52 = vor.u32 %v2593_v43, %v2184_v45  ;;  %v2647_v43 = vld [vmem:[%s3098_s7 + $0x2c4] sm:$0xf]  ;;  %v2400_v45 = vld [vmem:[%s3098_s7 + $0x2c8] sm:$0xf0] }
  0xe3   : > { %1805 = vmatpush.bf16.msra.mxu3 %v2291_v50  ;;  %v2048_v50 = vld [vmem:[%s3098_s7 + $0x8] sm:$0xf0] }
  0xe4   : > { %1767 = vmatpush.bf16.msra.mxu0 %v2091_v56  ;;  %v2251_v56 = vor.u32 %v2609_v46, %v2248_v47  ;;  %v2051_v63 = vor.u32 %v2559_v49, %v2048_v50  ;;  %v2464_v46 = vld [vmem:[%s3098_s7 + $0x348] sm:$0xf0]  ;;  %v2679_v47 = vld [vmem:[%s3098_s7 + $0x3c4] sm:$0xf]  ;;  %v2403_v49 = vor.u32 %v2647_v43, %v2400_v45 }
  0xe5   : > { %1780 = vmatpush.bf16.msra.mxu1 %v2155_v57  ;;  %v2176_v57 = vld [vmem:[%s3098_s7 + $0x108] sm:$0xf0] }
  0xe6   : > { %1793 = vmatpush.bf16.msra.mxu2 %v2219_v58  ;;  %v2607_v58 = vld [vmem:[%s3098_s7 + $0x184] sm:$0xf] }
  0xe7   : > { %1806 = vmatpush.bf16.msra.mxu3 %v2283_v62  ;;  %v2653_v62 = vld [vmem:[%s3098_s7 + $0x2f4] sm:$0xf]  ;;  %v2243_v9 = vor.u32 %v2607_v58, %v2240_v59  ;;  %v2520_v59 = vld [vmem:[%s3098_s7 + $0x3b8] sm:$0xf0] }
  0xe8   : > { %1768 = vmatpush.bf16.msra.mxu0 %v2083_v5  ;;  %v2179_v5 = vor.u32 %v2591_v55, %v2176_v57  ;;  %v2427_v11 = vor.u32 %v2653_v62, %v2424_v0  ;;  %v2392_v55 = vld [vmem:[%s3098_s7 + $0x2b8] sm:$0xf0]  ;;  %v2677_v58 = vld [vmem:[%s3098_s7 + $0x3b4] sm:$0xf]  ;;  %v2320_v0 = vld [vmem:[%s3098_s7 + $0x228] sm:$0xf0] }
  0xe9   : > { %1781 = vmatpush.bf16.msra.mxu1 %v2147_v7  ;;  %v2685_v7 = vld [vmem:[%s3098_s7 + $0x3f4] sm:$0xf]  ;;  %v2456_v57 = vld [vmem:[%s3098_s7 + $0x338] sm:$0xf0]  ;;  %v2395_v61 = vor.u32 %v2645_v53, %v2392_v55 }
  0xea   : > { %1794 = vmatpush.bf16.msra.mxu2 %v2211_v8  ;;  %v2552_v8 = vld [vmem:[%s3098_s7 + $0x3f8] sm:$0xf0] }
  0xeb   : > { %1807 = vmatpush.bf16.msra.mxu3 %v2275_v12  ;;  %v2491_v12 = vor.u32 %v2669_v1, %v2488_v2  ;;  %v2555_v16 = vor.u32 %v2685_v7, %v2552_v8  ;;  %v2643_v1 = vld [vmem:[%s3098_s7 + $0x2a4] sm:$0xf]  ;;  %v2523_v2 = vor.u32 %v2677_v58, %v2520_v59  ;;  %v2448_v7 = vld [vmem:[%s3098_s7 + $0x328] sm:$0xf0] }
  0xec   : > { %1769 = vmatpush.bf16.msra.mxu0 %v2075_v18  ;;  %v2667_v18 = vld [vmem:[%s3098_s7 + $0x364] sm:$0xf] }
  0xed   : > { %1782 = vmatpush.bf16.msra.mxu1 %v2139_v19  ;;  %v2480_v19 = vld [vmem:[%s3098_s7 + $0x368] sm:$0xf0]  ;;  %v2675_v8 = vld [vmem:[%s3098_s7 + $0x3a4] sm:$0xf] }
  0xee   : > { %1795 = vmatpush.bf16.msra.mxu2 %v2203_v22  ;;  %v2683_v22 = vld [vmem:[%s3098_s7 + $0x3e4] sm:$0xf] }
  0xef   : > { %1808 = vmatpush.bf16.msra.mxu3 %v2267_v26  ;;  %v2483_v26 = vor.u32 %v2667_v18, %v2480_v19  ;;  %v2547_v30 = vor.u32 %v2683_v22, %v2544_v23  ;;  %v2657_v18 = vld [vmem:[%s3098_s7 + $0x314] sm:$0xf]  ;;  %v2440_v19 = vld [vmem:[%s3098_s7 + $0x318] sm:$0xf0] }
  0xf0   : > { %1770 = vmatpush.bf16.msra.mxu0 %v2067_v32  ;;  %v2665_v32 = vld [vmem:[%s3098_s7 + $0x354] sm:$0xf]  ;;  %v2504_v23 = vld [vmem:[%s3098_s7 + $0x398] sm:$0xf0] }
  0xf1   : > { %1783 = vmatpush.bf16.msra.mxu1 %v2131_v33  ;;  %v2472_v33 = vld [vmem:[%s3098_s7 + $0x358] sm:$0xf0]  ;;  %v2673_v22 = vld [vmem:[%s3098_s7 + $0x394] sm:$0xf] }
  0xf2   : > { %1796 = vmatpush.bf16.msra.mxu2 %v2195_v34  ;;  %v2681_v34 = vld [vmem:[%s3098_s7 + $0x3d4] sm:$0xf]  ;;  %v2475_v37 = vor.u32 %v2665_v32, %v2472_v33  ;;  %v2655_v32 = vld [vmem:[%s3098_s7 + $0x304] sm:$0xf]  ;;  %v2432_v33 = vld [vmem:[%s3098_s7 + $0x308] sm:$0xf0] }
  0xf3   : > { %1809 = vmatpush.bf16.msra.mxu3 %v2259_v39  ;;  %v2631_v39 = vld [vmem:[%s3098_s7 + $0x244] sm:$0xf] }
  0xf4   : > { %1771 = vmatpush.bf16.msra.mxu0 %v2059_v48  ;;  %v2339_v48 = vor.u32 %v2631_v39, %v2336_v40 }
  0xf5   : > { %1784 = vmatpush.bf16.msra.mxu1 %v2123_v51  ;;  %v2629_v51 = vld [vmem:[%s3098_s7 + $0x234] sm:$0xf] }
  0xf6   : > { %1797 = vmatpush.bf16.msra.mxu2 %v2187_v52  ;;  %v2328_v52 = vld [vmem:[%s3098_s7 + $0x238] sm:$0xf0] }
  0xf7   : > { %1810 = vmatpush.bf16.msra.mxu3 %v2251_v56  ;;  %v2661_v56 = vld [vmem:[%s3098_s7 + $0x334] sm:$0xf]  ;;  %v2331_v60 = vor.u32 %v2629_v51, %v2328_v52 }
  0xf8   : > { %1772 = vmatpush.bf16.msra.mxu0 %v2051_v63  ;;  %v2459_v62 = vor.u32 %v2661_v56, %v2456_v57  ;;  %v2627_v63 = vld [vmem:[%s3098_s7 + $0x224] sm:$0xf] }
  0xf9   : > { %1785 = vmatpush.bf16.msra.mxu1 %v2115_v3  ;;  %v2384_v3 = vld [vmem:[%s3098_s7 + $0x2a8] sm:$0xf0] }
  0xfa   : > { %1798 = vmatpush.bf16.msra.mxu2 %v2179_v5  ;;  %v2659_v5 = vld [vmem:[%s3098_s7 + $0x324] sm:$0xf] }
  0xfb   : > { %1811 = vmatpush.bf16.msra.mxu3 %v2243_v9  ;;  %1773 = vmatmul.bf16.vlgmr.msra.gmra.mxu0 %v3207_v20  ;;  %v2539_v20 = vor.u32 %v2681_v34, %v2536_v35  ;;  %v2512_v9 = vld [vmem:[%s3098_s7 + $0x3a8] sm:$0xf0]  ;;  %v2671_v34 = vld [vmem:[%s3098_s7 + $0x384] sm:$0xf] }
  0xfc   : > { %1817 = vmatpush.bf16.msrb.mxu0 %v2363_v10  ;;  %1786 = vmatmul.bf16.vlgmr.msra.gmra.mxu1 %v3210_v21  ;;  %v2528_v21 = vld [vmem:[%s3098_s7 + $0x3c8] sm:$0xf0]  ;;  %v2323_v10 = vor.u32 %v2627_v63, %v2320_v0 }
  0xfd   : > { %1830 = vmatpush.bf16.msrb.mxu1 %v2427_v11  ;;  %1799 = vmatmul.bf16.vlgmr.msra.gmra.mxu2 %v3191_v4  ;;  %v2411_v4 = vor.u32 %v2649_v29, %v2408_v31  ;;  %v2531_v54 = vor.u32 %v2679_v47, %v2528_v21  ;;  %v2387_v11 = vor.u32 %v2643_v1, %v2384_v3  ;;  %v2639_v29 = vld [vmem:[%s3098_s7 + $0x284] sm:$0xf]  ;;  %v2368_v31 = vld [vmem:[%s3098_s7 + $0x288] sm:$0xf0] }
  0xfe   : > { %1843 = vmatpush.bf16.msrb.mxu2 %v2491_v12  ;;  %1812 = vmatmul.bf16.vlgmr.msra.gmra.mxu3 %v3196_v6  ;;  %v2663_v6 = vld [vmem:[%s3098_s7 + $0x344] sm:$0xf]  ;;  %v2451_v12 = vor.u32 %v2659_v5, %v2448_v7  ;;  %v2496_v35 = vld [vmem:[%s3098_s7 + $0x388] sm:$0xf0] }
  0xff   : > { %1856 = vmatpush.bf16.msrb.mxu3 %v2555_v16  ;;  %v2467_v50 = vor.u32 %v2663_v6, %v2464_v46  ;;  %v2515_v16 = vor.u32 %v2675_v8, %v2512_v9  ;;  %v2499_v39 = vor.u32 %v2671_v34, %v2496_v35  ;;  %v1878_v8 = vld [vmem:[%s836_s25] sm:$0x3] }
 0x100   : > { %1818 = vmatpush.bf16.msrb.mxu0 %v2355_v24  ;;  %v2315_v24 = vor.u32 %v2625_v13, %v2312_v14  ;;  %v1886_v13 = vld [vmem:[%s841_s27] sm:$0x3] }
 0x101   : > { %1831 = vmatpush.bf16.msrb.mxu1 %v2419_v25  ;;  %v2379_v25 = vor.u32 %v2641_v15, %v2376_v17  ;;  %v1888_v17 = vperm.slane %v1886_v13, 0 }
 0x102   : > { %1844 = vmatpush.bf16.msrb.mxu2 %v2483_v26  ;;  %v2443_v26 = vor.u32 %v2657_v18, %v2440_v19 }
 0x103   : > { %1857 = vmatpush.bf16.msrb.mxu3 %v2547_v30  ;;  %v2507_v30 = vor.u32 %v2673_v22, %v2504_v23  ;;  %v1881_v22 = vperm.slane %v1878_v8, 1 }
 0x104   : > { %1819 = vmatpush.bf16.msrb.mxu0 %v2347_v36  ;;  %v2307_v36 = vor.u32 %v2623_v27, %v2304_v28 }
 0x105   : > { %1832 = vmatpush.bf16.msrb.mxu1 %v2411_v4  ;;  %v2371_v4 = vor.u32 %v2639_v29, %v2368_v31 }
 0x106   : > { %1845 = vmatpush.bf16.msrb.mxu2 %v2475_v37  ;;  %v2435_v37 = vor.u32 %v2655_v32, %v2432_v33 }
 0x107   : > { %1858 = vmatpush.bf16.msrb.mxu3 %v2539_v20 }
 0x108   : > { %1820 = vmatpush.bf16.msrb.mxu0 %v2339_v48 }
 0x109   : > { %1833 = vmatpush.bf16.msrb.mxu1 %v2403_v49 }
 0x10a   : > { %1846 = vmatpush.bf16.msrb.mxu2 %v2467_v50 }
 0x10b   : > { %1859 = vmatpush.bf16.msrb.mxu3 %v2531_v54 }
 0x10c   : > { %1821 = vmatpush.bf16.msrb.mxu0 %v2331_v60 }
 0x10d   : > { %1834 = vmatpush.bf16.msrb.mxu1 %v2395_v61 }
 0x10e   : > { %1847 = vmatpush.bf16.msrb.mxu2 %v2459_v62 }
 0x10f   : > { %1860 = vmatpush.bf16.msrb.mxu3 %v2523_v2 }
 0x110   : > { %1822 = vmatpush.bf16.msrb.mxu0 %v2323_v10 }
 0x111   : > { %1835 = vmatpush.bf16.msrb.mxu1 %v2387_v11 }
 0x112   : > { %1848 = vmatpush.bf16.msrb.mxu2 %v2451_v12  ;;  %v1880_v12 = vperm.slane %v1878_v8, 0 }
 0x113   : > { %1861 = vmatpush.bf16.msrb.mxu3 %v2515_v16 }
 0x114   : > { %1823 = vmatpush.bf16.msrb.mxu0 %v2315_v24 }
 0x115   : > { %1836 = vmatpush.bf16.msrb.mxu1 %v2379_v25 }
 0x116   : > { %1849 = vmatpush.bf16.msrb.mxu2 %v2443_v26  ;;  %v1889_v26 = vperm.slane %v1886_v13, 1 }
 0x117   : > { %1862 = vmatpush.bf16.msrb.mxu3 %v2507_v30 }
 0x118   : > { %1824 = vmatpush.bf16.msrb.mxu0 %v2307_v36 }
 0x119   : > { %1837 = vmatpush.bf16.msrb.mxu1 %v2371_v4 }
 0x11a   : > { %1850 = vmatpush.bf16.msrb.mxu2 %v2435_v37 }
 0x11b   : > { %1863 = vmatpush.bf16.msrb.mxu3 %v2499_v39  ;;  %1825 = vmatmul.bf16.vlgmr.msrb.gmra.mxu0 %v3270_v41 }
 0x11c   : > { %1838 = vmatmul.bf16.vlgmr.msrb.gmra.mxu1 %v3274_v44 }
 0x11d   : > { %1851 = vmatmul.bf16.vlgmr.msrb.gmra.mxu2 %v3266_v38 }
 0x11e   : > { %1864 = vmatmul.bf16.vlgmr.msrb.gmra.mxu3 %v3272_v42 }
 0x138   : > { %v1670_v40 = vpop.f32.mrf.mxu0 }
 0x139   : > { %v1683_v43 = vpop.f32.mrf.mxu1 }
 0x13a   : > { %v1684_v20 = vadd.f32 %v1683_v43, %v1670_v40 }
 0x140   : > { %v1696_v45 = vpop.f32.mrf.mxu2  ;;  %v1672_v21 = vpop.f32.mrf.mxu0 }
 0x141   : > { %v1709_v6 = vpop.f32.mrf.mxu3  ;;  %v1697_v46 = vadd.f32 %v1696_v45, %v1684_v20  ;;  %v1685_v48 = vpop.f32.mrf.mxu1 }
 0x143   : > { %v1710_v47 = vadd.f32 %v1709_v6, %v1697_v46 }
 0x148   : > { %v1698_v49 = vpop.f32.mrf.mxu2 }
 0x149   : > { %v1711_v50 = vpop.f32.mrf.mxu3 }
 0x158   : > { %v1722_v51 = vpop.f32.mrf.mxu0 }
 0x159   : > { %v1735_v41 = vpop.f32.mrf.mxu1  ;;  %v1723_v63 = vadd.f32 %v1722_v51, %v1710_v47 }
 0x15b   : > { %v1736_v1 = vadd.f32 %v1735_v41, %v1723_v63 }
 0x160   : > { %v1748_v52 = vpop.f32.mrf.mxu2  ;;  %v1724_v53 = vpop.f32.mrf.mxu0 }
 0x161   : > { %v1761_v44 = vpop.f32.mrf.mxu3  ;;  %v1737_v38 = vpop.f32.mrf.mxu1  ;;  %v1749_v3 = vadd.f32 %v1748_v52, %v1736_v1 }
 0x163   : > { %v1762_v11 = vadd.f32 %v1761_v44, %v1749_v3 }
 0x165   : > { %v1884_v16 = vmul.f32 %v1880_v12, %v1762_v11 }
 0x167   : > { %v1892_v27 = vadd.f32 %v1888_v17, %v1884_v16 }
 0x168   : > { %v1750_v54 = vpop.f32.mrf.mxu2 }
 0x169   : > { %v1763_v42 = vpop.f32.mrf.mxu3  ;;  %v1894_v31 = vmax.f32 %v1892_v27, 0.0 }
 0x178   : > { %v1774_v55 = vpop.f32.mrf.mxu0 }
 0x179   : > { %v1787_v56 = vpop.f32.mrf.mxu1 }
 0x17a   : > { %v1788_v0 = vadd.f32 %v1787_v56, %v1774_v55 }
 0x180   : > { %v1800_v57 = vpop.f32.mrf.mxu2  ;;  %v1776_v59 = vpop.f32.mrf.mxu0 }
 0x181   : > { %v1813_v58 = vpop.f32.mrf.mxu3  ;;  %v1789_v60 = vpop.f32.mrf.mxu1  ;;  %v1801_v2 = vadd.f32 %v1800_v57, %v1788_v0 }
 0x183   : > { %v1814_v5 = vadd.f32 %v1813_v58, %v1801_v2 }
 0x188   : > { %v1802_v61 = vpop.f32.mrf.mxu2 }
 0x189   : > { %v1815_v62 = vpop.f32.mrf.mxu3 }
 0x198   : > { %v1826_v7 = vpop.f32.mrf.mxu0 }
 0x199   : > { %v1839_v9 = vpop.f32.mrf.mxu1  ;;  %v1827_v10 = vadd.f32 %v1826_v7, %v1814_v5 }
 0x19b   : > { %v1840_v14 = vadd.f32 %v1839_v9, %v1827_v10 }
 0x1a0   : > { %v1852_v15 = vpop.f32.mrf.mxu2  ;;  %v1828_v23 = vpop.f32.mrf.mxu0 }
 0x1a1   : > { %v1853_v18 = vadd.f32 %v1852_v15, %v1840_v14  ;;  %v1865_v19 = vpop.f32.mrf.mxu3  ;;  %v1841_v24 = vpop.f32.mrf.mxu1 }
 0x1a3   : > { %v1866_v25 = vadd.f32 %v1865_v19, %v1853_v18 }
 0x1a5   : > { %v1885_v28 = vmul.f32 %v1881_v22, %v1866_v25 }
 0x1a7   : > { %v1893_v29 = vadd.f32 %v1889_v26, %v1885_v28 }
 0x1a8   : > { %v1854_v30 = vpop.f32.mrf.mxu2 }
 0x1a9   : > { %v1895_v32 = vmax.f32 %v1893_v29, 0.0  ;;  %v1867_v33 = vpop.f32.mrf.mxu3 }
 0x1ab   : > { %v1896_v34 = vpack.c.bf16 %v1895_v32, %v1894_v31 }
 0x1ad   : > { %1897 = vst [vmem:[%s851_s5] sm:$0xff] %v1896_v34 }
 0x1ae PF: > { %s14_s19 = sadd.s32 1, %s2765_s19   ;;  %s3435_s15 = smov %s2753_s16 }
 0x1af   : > { %p11_p10 = scmp.ge.s32.totalorder %s14_s19, 4   ;;  %s3436_s16 = smov %s2827_s23 }
 0x1b0   : > { %s3437_s17 = smov %s2761_s18  ;;  %s3438_s18 = smov %s3440_s20 }
 0x1b1   :  { %13 = sbr.rel (!%p11_p10) target bundleno = 3 (0x3), region = 126 }

// kernel: rgb_point_model_forward.20
= control target key start
LH: loop header
LB: loop body
LE: loop exit
PB: predicated region body
PF: predicated region fallthrough
CT: control target
= control target key end

     0   :  { %s1559_s1 = inlined_call_operand.vmem [shape: bf16[512,256], index: 1, kind: input, shape index: {}]   ;;  %s1560_s0 = inlined_call_operand.vmem [shape: bf16[32,512], index: 0, kind: input, shape index: {}]   ;;  %s1561_s2 = inlined_call_operand.vmem [shape: f32[1,256], index: 2, kind: input, shape index: {}]   ;;  %s1562_s3 = inlined_call_operand.vmem [shape: f32[1,256], index: 3, kind: input, shape index: {}]   ;;  %s1563_s4 = inlined_call_operand.vmem [shape: bf16[32,256], index: 4, kind: output, shape index: {}]  }
   0x1   :  { %v786_v0 = vld [vmem:[%s1559_s1 + $0x70] sm:$0xf]  ;;  %v1007_v1 = vld [vmem:[%s1559_s1 + $0x74] sm:$0xf0]  ;;  %v778_v11 = vld [vmem:[%s1559_s1 + $0x60] sm:$0xf] }
   0x2   :  { %v850_v2 = vld [vmem:[%s1559_s1 + $0xf0] sm:$0xf]  ;;  %v787_v3 = vor.u32 %v1007_v1, %v786_v0  ;;  %v1023_v4 = vld [vmem:[%s1559_s1 + $0xf4] sm:$0xf0]  ;;  %v1005_v13 = vld [vmem:[%s1559_s1 + $0x64] sm:$0xf0] }
   0x3   :  { %v914_v5 = vld [vmem:[%s1559_s1 + $0x170] sm:$0xf]  ;;  %v1039_v6 = vld [vmem:[%s1559_s1 + $0x174] sm:$0xf0]  ;;  %v851_v7 = vor.u32 %v1023_v4, %v850_v2  ;;  %v842_v14 = vld [vmem:[%s1559_s1 + $0xe0] sm:$0xf]  ;;  %v779_v16 = vor.u32 %v1005_v13, %v778_v11 }
   0x4   :  { %v915_v8 = vor.u32 %v1039_v6, %v914_v5  ;;  %v978_v9 = vld [vmem:[%s1559_s1 + $0x1f0] sm:$0xf]  ;;  %v1055_v10 = vld [vmem:[%s1559_s1 + $0x1f4] sm:$0xf0]  ;;  %469 = vmatpush.bf16.msra.mxu0 %v787_v3  ;;  %v1021_v15 = vld [vmem:[%s1559_s1 + $0xe4] sm:$0xf0] }
   0x5   :  { %v979_v12 = vor.u32 %v1055_v10, %v978_v9  ;;  %488 = vmatpush.bf16.msra.mxu1 %v851_v7  ;;  %v843_v17 = vor.u32 %v1021_v15, %v842_v14  ;;  %v906_v18 = vld [vmem:[%s1559_s1 + $0x160] sm:$0xf]  ;;  %v1037_v19 = vld [vmem:[%s1559_s1 + $0x164] sm:$0xf0]  ;;  %v770_v23 = vld [vmem:[%s1559_s1 + $0x50] sm:$0xf] }
   0x6   :  { %507 = vmatpush.bf16.msra.mxu2 %v915_v8  ;;  %v970_v20 = vld [vmem:[%s1559_s1 + $0x1e0] sm:$0xf]  ;;  %v907_v21 = vor.u32 %v1037_v19, %v906_v18  ;;  %v1053_v22 = vld [vmem:[%s1559_s1 + $0x1e4] sm:$0xf0]  ;;  %v1003_v24 = vld [vmem:[%s1559_s1 + $0x54] sm:$0xf0] }
   0x7   :  { %526 = vmatpush.bf16.msra.mxu3 %v979_v12  ;;  %v971_v25 = vor.u32 %v1053_v22, %v970_v20  ;;  %v834_v26 = vld [vmem:[%s1559_s1 + $0xd0] sm:$0xf]  ;;  %v1019_v27 = vld [vmem:[%s1559_s1 + $0xd4] sm:$0xf0]  ;;  %v771_v29 = vor.u32 %v1003_v24, %v770_v23  ;;  %v762_v35 = vld [vmem:[%s1559_s1 + $0x40] sm:$0xf] }
   0x8   :  { %v898_v28 = vld [vmem:[%s1559_s1 + $0x150] sm:$0xf]  ;;  %470 = vmatpush.bf16.msra.mxu0 %v779_v16  ;;  %v1035_v30 = vld [vmem:[%s1559_s1 + $0x154] sm:$0xf0]  ;;  %v835_v33 = vor.u32 %v1019_v27, %v834_v26  ;;  %v1001_v36 = vld [vmem:[%s1559_s1 + $0x44] sm:$0xf0] }
   0x9   :  { %v962_v31 = vld [vmem:[%s1559_s1 + $0x1d0] sm:$0xf]  ;;  %v1051_v32 = vld [vmem:[%s1559_s1 + $0x1d4] sm:$0xf0]  ;;  %489 = vmatpush.bf16.msra.mxu1 %v843_v17  ;;  %v899_v34 = vor.u32 %v1035_v30, %v898_v28  ;;  %v826_v37 = vld [vmem:[%s1559_s1 + $0xc0] sm:$0xf]  ;;  %v763_v44 = vor.u32 %v1001_v36, %v762_v35 }
   0xa   :  { %508 = vmatpush.bf16.msra.mxu2 %v907_v21  ;;  %v963_v38 = vor.u32 %v1051_v32, %v962_v31  ;;  %v1017_v39 = vld [vmem:[%s1559_s1 + $0xc4] sm:$0xf0]  ;;  %v890_v40 = vld [vmem:[%s1559_s1 + $0x140] sm:$0xf]  ;;  %v754_v47 = vld [vmem:[%s1559_s1 + $0x30] sm:$0xf] }
   0xb   :  { %527 = vmatpush.bf16.msra.mxu3 %v971_v25  ;;  %v1033_v41 = vld [vmem:[%s1559_s1 + $0x144] sm:$0xf0]  ;;  %v954_v42 = vld [vmem:[%s1559_s1 + $0x1c0] sm:$0xf]  ;;  %v827_v45 = vor.u32 %v1017_v39, %v826_v37  ;;  %v999_v48 = vld [vmem:[%s1559_s1 + $0x34] sm:$0xf0] }
   0xc   :  { %v1049_v43 = vld [vmem:[%s1559_s1 + $0x1c4] sm:$0xf0]  ;;  %471 = vmatpush.bf16.msra.mxu0 %v771_v29  ;;  %v891_v46 = vor.u32 %v1033_v41, %v890_v40  ;;  %v818_v49 = vld [vmem:[%s1559_s1 + $0xb0] sm:$0xf]  ;;  %v1015_v51 = vld [vmem:[%s1559_s1 + $0xb4] sm:$0xf0]  ;;  %v755_v56 = vor.u32 %v999_v48, %v754_v47 }
   0xd   :  { %490 = vmatpush.bf16.msra.mxu1 %v835_v33  ;;  %v955_v50 = vor.u32 %v1049_v43, %v954_v42  ;;  %v882_v52 = vld [vmem:[%s1559_s1 + $0x130] sm:$0xf]  ;;  %v1031_v53 = vld [vmem:[%s1559_s1 + $0x134] sm:$0xf0]  ;;  %v819_v57 = vor.u32 %v1015_v51, %v818_v49  ;;  %v746_v59 = vld [vmem:[%s1559_s1 + $0x20] sm:$0xf] }
   0xe   :  { %509 = vmatpush.bf16.msra.mxu2 %v899_v34  ;;  %v946_v54 = vld [vmem:[%s1559_s1 + $0x1b0] sm:$0xf]  ;;  %v1047_v55 = vld [vmem:[%s1559_s1 + $0x1b4] sm:$0xf0]  ;;  %v883_v58 = vor.u32 %v1031_v53, %v882_v52  ;;  %v997_v60 = vld [vmem:[%s1559_s1 + $0x24] sm:$0xf0] }
   0xf   :  { %528 = vmatpush.bf16.msra.mxu3 %v963_v38  ;;  %v810_v61 = vld [vmem:[%s1559_s1 + $0xa0] sm:$0xf]  ;;  %v947_v62 = vor.u32 %v1047_v55, %v946_v54  ;;  %v1013_v63 = vld [vmem:[%s1559_s1 + $0xa4] sm:$0xf0]  ;;  %v747_v4 = vor.u32 %v997_v60, %v746_v59  ;;  %v738_v7 = vld [vmem:[%s1559_s1 + $0x10] sm:$0xf] }
  0x10   :  { %472 = vmatpush.bf16.msra.mxu0 %v763_v44  ;;  %v874_v0 = vld [vmem:[%s1559_s1 + $0x120] sm:$0xf]  ;;  %v1029_v1 = vld [vmem:[%s1559_s1 + $0x124] sm:$0xf0]  ;;  %v811_v5 = vor.u32 %v1013_v63, %v810_v61  ;;  %v995_v8 = vld [vmem:[%s1559_s1 + $0x14] sm:$0xf0] }
  0x11   :  { %491 = vmatpush.bf16.msra.mxu1 %v827_v45  ;;  %v938_v2 = vld [vmem:[%s1559_s1 + $0x1a0] sm:$0xf]  ;;  %v1045_v3 = vld [vmem:[%s1559_s1 + $0x1a4] sm:$0xf0]  ;;  %v875_v6 = vor.u32 %v1029_v1, %v874_v0  ;;  %v802_v9 = vld [vmem:[%s1559_s1 + $0x90] sm:$0xf]  ;;  %v739_v17 = vor.u32 %v995_v8, %v738_v7 }
  0x12   :  { %510 = vmatpush.bf16.msra.mxu2 %v891_v46  ;;  %v939_v10 = vor.u32 %v1045_v3, %v938_v2  ;;  %v1011_v11 = vld [vmem:[%s1559_s1 + $0x94] sm:$0xf0]  ;;  %v866_v12 = vld [vmem:[%s1559_s1 + $0x110] sm:$0xf]  ;;  %v730_v16 = vld [vmem:[%s1559_s1] sm:$0xf] }
  0x13   :  { %529 = vmatpush.bf16.msra.mxu3 %v955_v50  ;;  %v1027_v13 = vld [vmem:[%s1559_s1 + $0x114] sm:$0xf0]  ;;  %v930_v14 = vld [vmem:[%s1559_s1 + $0x190] sm:$0xf]  ;;  %v993_v18 = vld [vmem:[%s1559_s1 + $0x4] sm:$0xf0]  ;;  %v803_v21 = vor.u32 %v1011_v11, %v802_v9 }
  0x14   :  { %473 = vmatpush.bf16.msra.mxu0 %v755_v56  ;;  %v1043_v15 = vld [vmem:[%s1559_s1 + $0x194] sm:$0xf0]  ;;  %v794_v19 = vld [vmem:[%s1559_s1 + $0x80] sm:$0xf]  ;;  %v1009_v20 = vld [vmem:[%s1559_s1 + $0x84] sm:$0xf0]  ;;  %v867_v22 = vor.u32 %v1027_v13, %v866_v12  ;;  %v731_v34 = vor.u32 %v993_v18, %v730_v16 }
  0x15   :  { %492 = vmatpush.bf16.msra.mxu1 %v819_v57  ;;  %v858_v23 = vld [vmem:[%s1559_s1 + $0x100] sm:$0xf]  ;;  %v1025_v24 = vld [vmem:[%s1559_s1 + $0x104] sm:$0xf0]  ;;  %v931_v26 = vor.u32 %v1043_v15, %v930_v14  ;;  %v986_v29 = vld [vmem:[%s1560_s0 + $0xc] sm:$0xf0]  ;;  %v795_v38 = vor.u32 %v1009_v20, %v794_v19 }
  0x16   :  { %511 = vmatpush.bf16.msra.mxu2 %v883_v58  ;;  %v922_v25 = vld [vmem:[%s1559_s1 + $0x180] sm:$0xf]  ;;  %v1041_v27 = vld [vmem:[%s1559_s1 + $0x184] sm:$0xf0]  ;;  %v984_v30 = vld [vmem:[%s1560_s0 + $0x4] sm:$0xf]  ;;  %v859_v39 = vor.u32 %v1025_v24, %v858_v23 }
  0x17   :  { %530 = vmatpush.bf16.msra.mxu3 %v947_v62  ;;  %v698_v28 = vld [vmem:[%s1560_s0] sm:$0xf]  ;;  %v700_v31 = vld [vmem:[%s1560_s0 + $0x10] sm:$0xf0]  ;;  %v916_v33 = vld [vmem:[%s1559_s1 + $0x178] sm:$0xf0]  ;;  %v923_v43 = vor.u32 %v1041_v27, %v922_v25 }
  0x18   :  { %474 = vmatpush.bf16.msra.mxu0 %v747_v4  ;;  %v1038_v32 = vld [vmem:[%s1559_s1 + $0x174] sm:$0xf]  ;;  %v706_v35 = vld [vmem:[%s1560_s0 + $0x8] sm:$0xf]  ;;  %v852_v37 = vld [vmem:[%s1559_s1 + $0xf8] sm:$0xf0]  ;;  %v1318_v48 = vor.u32 %v986_v29, %v698_v28  ;;  %v1329_v53 = vor.u32 %v984_v30, %v700_v31 }
  0x19   :  { %493 = vmatpush.bf16.msra.mxu1 %v811_v5  ;;  %v1022_v36 = vld [vmem:[%s1559_s1 + $0xf4] sm:$0xf]  ;;  %v987_v40 = vld [vmem:[%s1560_s0 + $0x14] sm:$0xf0]  ;;  %v985_v41 = vld [vmem:[%s1560_s0 + $0xc] sm:$0xf]  ;;  %v919_v44 = vor.u32 %v1038_v32, %v916_v33 }
  0x1a   :  { %512 = vmatpush.bf16.msra.mxu2 %v875_v6  ;;  %v708_v42 = vld [vmem:[%s1560_s0 + $0x18] sm:$0xf0]  ;;  %v1006_v45 = vld [vmem:[%s1559_s1 + $0x74] sm:$0xf]  ;;  %v855_v49 = vor.u32 %v1022_v36, %v852_v37  ;;  %v1036_v51 = vld [vmem:[%s1559_s1 + $0x164] sm:$0xf]  ;;  %v1331_v54 = vor.u32 %v987_v40, %v706_v35 }
  0x1b   :  { %531 = vmatpush.bf16.msra.mxu3 %v939_v10  ;;  %v788_v46 = vld [vmem:[%s1559_s1 + $0x78] sm:$0xf0]  ;;  %v1054_v47 = vld [vmem:[%s1559_s1 + $0x1f4] sm:$0xf]  ;;  %v908_v52 = vld [vmem:[%s1559_s1 + $0x168] sm:$0xf0]  ;;  %v1339_v57 = vor.u32 %v985_v41, %v708_v42 }
  0x1c   :  { %475 = vmatpush.bf16.msra.mxu0 %v739_v17  ;;  %v980_v50 = vld [vmem:[%s1559_s1 + $0x1f8] sm:$0xf0]  ;;  %v1020_v55 = vld [vmem:[%s1559_s1 + $0xe4] sm:$0xf]  ;;  %v844_v56 = vld [vmem:[%s1559_s1 + $0xe8] sm:$0xf0]  ;;  %v791_v58 = vor.u32 %v1006_v45, %v788_v46  ;;  %v911_v60 = vor.u32 %v1036_v51, %v908_v52 }
  0x1d   :  { %494 = vmatpush.bf16.msra.mxu1 %v803_v21  ;;  %v983_v59 = vor.u32 %v1054_v47, %v980_v50  ;;  %v1004_v61 = vld [vmem:[%s1559_s1 + $0x64] sm:$0xf]  ;;  %v780_v62 = vld [vmem:[%s1559_s1 + $0x68] sm:$0xf0]  ;;  %v847_v0 = vor.u32 %v1020_v55, %v844_v56  ;;  %v1034_v2 = vld [vmem:[%s1559_s1 + $0x154] sm:$0xf] }
  0x1e   :  { %513 = vmatpush.bf16.msra.mxu2 %v867_v22  ;;  %v1052_v63 = vld [vmem:[%s1559_s1 + $0x1e4] sm:$0xf]  ;;  %v972_v1 = vld [vmem:[%s1559_s1 + $0x1e8] sm:$0xf0]  ;;  %v900_v3 = vld [vmem:[%s1559_s1 + $0x158] sm:$0xf0]  ;;  %v783_v6 = vor.u32 %v1004_v61, %v780_v62 }
  0x1f   :  { %532 = vmatpush.bf16.msra.mxu3 %v931_v26  ;;  %v1018_v4 = vld [vmem:[%s1559_s1 + $0xd4] sm:$0xf]  ;;  %v836_v5 = vld [vmem:[%s1559_s1 + $0xd8] sm:$0xf0]  ;;  %v975_v7 = vor.u32 %v1052_v63, %v972_v1  ;;  %v903_v8 = vor.u32 %v1034_v2, %v900_v3  ;;  %v1032_v14 = vld [vmem:[%s1559_s1 + $0x144] sm:$0xf] }
  0x20   :  { %476 = vmatpush.bf16.msra.mxu0 %v731_v34  ;;  %v1002_v9 = vld [vmem:[%s1559_s1 + $0x54] sm:$0xf]  ;;  %v772_v10 = vld [vmem:[%s1559_s1 + $0x58] sm:$0xf0]  ;;  %v839_v12 = vor.u32 %v1018_v4, %v836_v5  ;;  %v892_v15 = vld [vmem:[%s1559_s1 + $0x148] sm:$0xf0] }
  0x21   :  { %495 = vmatpush.bf16.msra.mxu1 %v795_v38  ;;  %v1050_v11 = vld [vmem:[%s1559_s1 + $0x1d4] sm:$0xf]  ;;  %v964_v13 = vld [vmem:[%s1559_s1 + $0x1d8] sm:$0xf0]  ;;  %v1016_v16 = vld [vmem:[%s1559_s1 + $0xc4] sm:$0xf]  ;;  %v775_v18 = vor.u32 %v1002_v9, %v772_v10  ;;  %v895_v23 = vor.u32 %v1032_v14, %v892_v15 }
  0x22   :  { %514 = vmatpush.bf16.msra.mxu2 %v859_v39  ;;  %v828_v17 = vld [vmem:[%s1559_s1 + $0xc8] sm:$0xf0]  ;;  %v1000_v19 = vld [vmem:[%s1559_s1 + $0x44] sm:$0xf]  ;;  %v967_v22 = vor.u32 %v1050_v11, %v964_v13  ;;  %v714_v25 = vld [vmem:[%s1560_s0 + $0x20] sm:$0xf] }
  0x23   :  { %533 = vmatpush.bf16.msra.mxu3 %v923_v43  ;;  %477 = vmatmul.bf16.vlgmr.msra.gmra.mxu0 %v1318_v48  ;;  %v764_v20 = vld [vmem:[%s1559_s1 + $0x48] sm:$0xf0]  ;;  %v1048_v21 = vld [vmem:[%s1559_s1 + $0x1c4] sm:$0xf]  ;;  %v990_v26 = vld [vmem:[%s1560_s0 + $0x2c] sm:$0xf0]  ;;  %v831_v27 = vor.u32 %v1016_v16, %v828_v17 }
  0x24   :  { %496 = vmatmul.bf16.vlgmr.msra.gmra.mxu1 %v1329_v53  ;;  %545 = vmatpush.bf16.msrb.mxu0 %v791_v58  ;;  %v956_v24 = vld [vmem:[%s1559_s1 + $0x1c8] sm:$0xf0]  ;;  %v988_v28 = vld [vmem:[%s1560_s0 + $0x24] sm:$0xf]  ;;  %v716_v29 = vld [vmem:[%s1560_s0 + $0x30] sm:$0xf0]  ;;  %v767_v35 = vor.u32 %v1000_v19, %v764_v20 }
  0x25   :  { %564 = vmatpush.bf16.msrb.mxu1 %v855_v49  ;;  %515 = vmatmul.bf16.vlgmr.msra.gmra.mxu2 %v1331_v54  ;;  %v1030_v30 = vld [vmem:[%s1559_s1 + $0x134] sm:$0xf]  ;;  %v884_v31 = vld [vmem:[%s1559_s1 + $0x138] sm:$0xf0]  ;;  %v722_v32 = vld [vmem:[%s1560_s0 + $0x28] sm:$0xf]  ;;  %v959_v39 = vor.u32 %v1048_v21, %v956_v24  ;;  %v1461_v50 = vor.u32 %v988_v28, %v716_v29 }
  0x26   :  { %583 = vmatpush.bf16.msrb.mxu2 %v919_v44  ;;  %534 = vmatmul.bf16.vlgmr.msra.gmra.mxu3 %v1339_v57  ;;  %v1014_v33 = vld [vmem:[%s1559_s1 + $0xb4] sm:$0xf]  ;;  %v820_v34 = vld [vmem:[%s1559_s1 + $0xb8] sm:$0xf0]  ;;  %v991_v36 = vld [vmem:[%s1560_s0 + $0x34] sm:$0xf0]  ;;  %v887_v40 = vor.u32 %v1030_v30, %v884_v31  ;;  %v1450_v44 = vor.u32 %v990_v26, %v714_v25 }
  0x27   :  { %602 = vmatpush.bf16.msrb.mxu3 %v983_v59  ;;  %v989_v37 = vld [vmem:[%s1560_s0 + $0x2c] sm:$0xf]  ;;  %v724_v38 = vld [vmem:[%s1560_s0 + $0x38] sm:$0xf0]  ;;  %v998_v41 = vld [vmem:[%s1559_s1 + $0x34] sm:$0xf]  ;;  %v823_v45 = vor.u32 %v1014_v33, %v820_v34  ;;  %v1463_v51 = vor.u32 %v991_v36, %v722_v32 }
  0x28   :  { %546 = vmatpush.bf16.msrb.mxu0 %v783_v6  ;;  %v756_v42 = vld [vmem:[%s1559_s1 + $0x38] sm:$0xf0]  ;;  %v1046_v43 = vld [vmem:[%s1559_s1 + $0x1b4] sm:$0xf]  ;;  %v1028_v47 = vld [vmem:[%s1559_s1 + $0x124] sm:$0xf]  ;;  %v727_v56 = vor.u32 %v989_v37, %v724_v38 }
  0x29   :  { %565 = vmatpush.bf16.msrb.mxu1 %v847_v0  ;;  %v948_v46 = vld [vmem:[%s1559_s1 + $0x1b8] sm:$0xf0]  ;;  %v876_v49 = vld [vmem:[%s1559_s1 + $0x128] sm:$0xf0]  ;;  %v1012_v52 = vld [vmem:[%s1559_s1 + $0xa4] sm:$0xf]  ;;  %v759_v58 = vor.u32 %v998_v41, %v756_v42 }
  0x2a   :  { %584 = vmatpush.bf16.msrb.mxu2 %v911_v60  ;;  %v812_v55 = vld [vmem:[%s1559_s1 + $0xa8] sm:$0xf0]  ;;  %v951_v59 = vor.u32 %v1046_v43, %v948_v46  ;;  %v879_v60 = vor.u32 %v1028_v47, %v876_v49  ;;  %v996_v61 = vld [vmem:[%s1559_s1 + $0x24] sm:$0xf]  ;;  %v1026_v2 = vld [vmem:[%s1559_s1 + $0x114] sm:$0xf] }
  0x2b   :  { %603 = vmatpush.bf16.msrb.mxu3 %v975_v7  ;;  %v748_v62 = vld [vmem:[%s1559_s1 + $0x28] sm:$0xf0]  ;;  %v1044_v63 = vld [vmem:[%s1559_s1 + $0x1a4] sm:$0xf]  ;;  %v815_v0 = vor.u32 %v1012_v52, %v812_v55  ;;  %v868_v3 = vld [vmem:[%s1559_s1 + $0x118] sm:$0xf0] }
  0x2c   :  { %547 = vmatpush.bf16.msrb.mxu0 %v775_v18  ;;  %v940_v1 = vld [vmem:[%s1559_s1 + $0x1a8] sm:$0xf0]  ;;  %v1010_v4 = vld [vmem:[%s1559_s1 + $0x94] sm:$0xf]  ;;  %v804_v5 = vld [vmem:[%s1559_s1 + $0x98] sm:$0xf0]  ;;  %v751_v6 = vor.u32 %v996_v61, %v748_v62 }
  0x2d   :  { %566 = vmatpush.bf16.msrb.mxu1 %v839_v12  ;;  %v943_v7 = vor.u32 %v1044_v63, %v940_v1  ;;  %v994_v9 = vld [vmem:[%s1559_s1 + $0x14] sm:$0xf]  ;;  %v740_v10 = vld [vmem:[%s1559_s1 + $0x18] sm:$0xf0]  ;;  %v807_v12 = vor.u32 %v1010_v4, %v804_v5  ;;  %v1024_v14 = vld [vmem:[%s1559_s1 + $0x104] sm:$0xf] }
  0x2e   :  { %585 = vmatpush.bf16.msrb.mxu2 %v903_v8  ;;  %v871_v8 = vor.u32 %v1026_v2, %v868_v3  ;;  %v1042_v11 = vld [vmem:[%s1559_s1 + $0x194] sm:$0xf]  ;;  %v932_v13 = vld [vmem:[%s1559_s1 + $0x198] sm:$0xf0]  ;;  %v860_v15 = vld [vmem:[%s1559_s1 + $0x108] sm:$0xf0]  ;;  %v743_v18 = vor.u32 %v994_v9, %v740_v10 }
  0x2f   :  { %604 = vmatpush.bf16.msrb.mxu3 %v967_v22  ;;  %v1008_v16 = vld [vmem:[%s1559_s1 + $0x84] sm:$0xf]  ;;  %v796_v17 = vld [vmem:[%s1559_s1 + $0x88] sm:$0xf0]  ;;  %v935_v19 = vor.u32 %v1042_v11, %v932_v13  ;;  %v863_v20 = vor.u32 %v1024_v14, %v860_v15  ;;  %v662_v49 = vld [vmem:[%s1562_s3] sm:$0x3] }
  0x30   :  { %548 = vmatpush.bf16.msrb.mxu0 %v767_v35  ;;  %v992_v21 = vld [vmem:[%s1559_s1 + $0x4] sm:$0xf]  ;;  %v732_v22 = vld [vmem:[%s1559_s1 + $0x8] sm:$0xf0] }
  0x31   :  { %567 = vmatpush.bf16.msrb.mxu1 %v831_v27  ;;  %v1040_v24 = vld [vmem:[%s1559_s1 + $0x184] sm:$0xf]  ;;  %v924_v25 = vld [vmem:[%s1559_s1 + $0x188] sm:$0xf0]  ;;  %v735_v26 = vor.u32 %v992_v21, %v732_v22 }
  0x32   :  { %586 = vmatpush.bf16.msrb.mxu2 %v895_v23  ;;  %v799_v23 = vor.u32 %v1008_v16, %v796_v17  ;;  %v927_v27 = vor.u32 %v1040_v24, %v924_v25 }
  0x33   :  { %605 = vmatpush.bf16.msrb.mxu3 %v959_v39  ;;  %482 = vmatmul.bf16.gmra.mxu0 %v1450_v44 }
  0x34   :  { %501 = vmatmul.bf16.gmra.mxu1 %v1461_v50  ;;  %549 = vmatpush.bf16.msrb.mxu0 %v759_v58  ;;  %v664_v58 = vperm.slane %v662_v49, 0 }
  0x35   :  { %568 = vmatpush.bf16.msrb.mxu1 %v823_v45  ;;  %520 = vmatmul.bf16.gmra.mxu2 %v1463_v51 }
  0x36   :  { %587 = vmatpush.bf16.msrb.mxu2 %v887_v40  ;;  %539 = vmatmul.bf16.gmra.mxu3 %v727_v56 }
  0x37   :  { %606 = vmatpush.bf16.msrb.mxu3 %v951_v59 }
  0x38   :  { %550 = vmatpush.bf16.msrb.mxu0 %v751_v6 }
  0x39   :  { %569 = vmatpush.bf16.msrb.mxu1 %v815_v0  ;;  %v665_v0 = vperm.slane %v662_v49, 1 }
  0x3a   :  { %588 = vmatpush.bf16.msrb.mxu2 %v879_v60 }
  0x3b   :  { %607 = vmatpush.bf16.msrb.mxu3 %v943_v7 }
  0x3c   :  { %551 = vmatpush.bf16.msrb.mxu0 %v743_v18 }
  0x3d   :  { %570 = vmatpush.bf16.msrb.mxu1 %v807_v12 }
  0x3e   :  { %589 = vmatpush.bf16.msrb.mxu2 %v871_v8 }
  0x3f   :  { %608 = vmatpush.bf16.msrb.mxu3 %v935_v19 }
  0x40   :  { %552 = vmatpush.bf16.msrb.mxu0 %v735_v26 }
  0x41   :  { %571 = vmatpush.bf16.msrb.mxu1 %v799_v23 }
  0x42   :  { %590 = vmatpush.bf16.msrb.mxu2 %v863_v20 }
  0x43   :  { %609 = vmatpush.bf16.msrb.mxu3 %v927_v27  ;;  %553 = vmatmul.bf16.vlgmr.msrb.gmra.mxu0 %v1318_v48 }
  0x44   :  { %572 = vmatmul.bf16.vlgmr.msrb.gmra.mxu1 %v1329_v53 }
  0x45   :  { %591 = vmatmul.bf16.vlgmr.msrb.gmra.mxu2 %v1331_v54 }
  0x46   :  { %610 = vmatmul.bf16.vlgmr.msrb.gmra.mxu3 %v1339_v57 }
  0x53   :  { %558 = vmatmul.bf16.gmra.mxu0 %v1450_v44  ;;  %v648_v44 = vld [vmem:[%s1561_s2] sm:$0x3] }
  0x54   :  { %577 = vmatmul.bf16.gmra.mxu1 %v1461_v50  ;;  %v650_v46 = vperm.slane %v648_v44, 0  ;;  %v651_v60 = vperm.slane %v648_v44, 1 }
  0x55   :  { %596 = vmatmul.bf16.gmra.mxu2 %v1463_v51 }
  0x56   :  { %615 = vmatmul.bf16.gmra.mxu3 %v727_v56 }
  0xa0   :  { %v478_v28 = vpop.f32.mrf.mxu0 }
  0xa1   :  { %v497_v29 = vpop.f32.mrf.mxu1 }
  0xa2   :  { %v498_v38 = vadd.f32 %v497_v29, %v478_v28 }
  0xa8   :  { %v516_v30 = vpop.f32.mrf.mxu2  ;;  %v480_v32 = vpop.f32.mrf.mxu0 }
  0xa9   :  { %v535_v31 = vpop.f32.mrf.mxu3  ;;  %v499_v33 = vpop.f32.mrf.mxu1  ;;  %v517_v41 = vadd.f32 %v516_v30, %v498_v38 }
  0xaa   :  { %v500_v50 = vadd.f32 %v499_v33, %v480_v32 }
  0xab   :  { %v536_v45 = vadd.f32 %v535_v31, %v517_v41 }
  0xad   :  { %v654_v56 = vmul.f32 %v650_v46, %v536_v45 }
  0xaf   :  { %v668_v2 = vadd.f32 %v664_v58, %v654_v56 }
  0xb0   :  { %v518_v48 = vpop.f32.mrf.mxu2  ;;  %v483_v53 = vpop.f32.mrf.mxu0 }
  0xb1   :  { %v537_v34 = vpop.f32.mrf.mxu3  ;;  %v502_v35 = vpop.f32.mrf.mxu1  ;;  %v519_v51 = vadd.f32 %v518_v48, %v500_v50  ;;  %v676_v10 = vmax.f32 %v668_v2, 0.0 }
  0xb2   :  { %v503_v3 = vadd.f32 %v502_v35, %v483_v53 }
  0xb3   :  { %v538_v1 = vadd.f32 %v537_v34, %v519_v51 }
  0xb5   :  { %v656_v7 = vmul.f32 %v650_v46, %v538_v1 }
  0xb7   :  { %v670_v18 = vadd.f32 %v664_v58, %v656_v7 }
  0xb8   :  { %v521_v54 = vpop.f32.mrf.mxu2  ;;  %v485_v57 = vpop.f32.mrf.mxu0 }
  0xb9   :  { %v540_v36 = vpop.f32.mrf.mxu3  ;;  %v504_v37 = vpop.f32.mrf.mxu1  ;;  %v522_v11 = vadd.f32 %v521_v54, %v503_v3  ;;  %v678_v24 = vmax.f32 %v670_v18, 0.0 }
  0xba   :  { %v505_v22 = vadd.f32 %v504_v37, %v485_v57 }
  0xbb   :  { %v541_v19 = vadd.f32 %v540_v36, %v522_v11 }
  0xbd   :  { %v658_v27 = vmul.f32 %v650_v46, %v541_v19 }
  0xbf   :  { %v672_v34 = vadd.f32 %v664_v58, %v658_v27 }
  0xc0   :  { %v523_v39 = vpop.f32.mrf.mxu2  ;;  %v554_v42 = vpop.f32.mrf.mxu0 }
  0xc1   :  { %v542_v40 = vpop.f32.mrf.mxu3  ;;  %v573_v43 = vpop.f32.mrf.mxu1  ;;  %v524_v28 = vadd.f32 %v523_v39, %v505_v22  ;;  %v680_v37 = vmax.f32 %v672_v34, 0.0 }
  0xc2   :  { %v574_v47 = vadd.f32 %v573_v43, %v554_v42 }
  0xc3   :  { %v543_v53 = vadd.f32 %v542_v40, %v524_v28 }
  0xc5   :  { %v660_v38 = vmul.f32 %v650_v46, %v543_v53 }
  0xc7   :  { %v674_v45 = vadd.f32 %v664_v58, %v660_v38 }
  0xc8   :  { %v592_v52 = vpop.f32.mrf.mxu2  ;;  %v556_v61 = vpop.f32.mrf.mxu0 }
  0xc9   :  { %v611_v55 = vpop.f32.mrf.mxu3  ;;  %v593_v59 = vadd.f32 %v592_v52, %v574_v47  ;;  %v575_v62 = vpop.f32.mrf.mxu1  ;;  %v682_v49 = vmax.f32 %v674_v45, 0.0 }
  0xca   :  { %v576_v6 = vadd.f32 %v575_v62, %v556_v61 }
  0xcb   :  { %v612_v63 = vadd.f32 %v611_v55, %v593_v59 }
  0xcd   :  { %v655_v4 = vmul.f32 %v651_v60, %v612_v63 }
  0xcf   :  { %v669_v5 = vadd.f32 %v665_v0, %v655_v4 }
  0xd0   :  { %v594_v8 = vpop.f32.mrf.mxu2  ;;  %v559_v14 = vpop.f32.mrf.mxu0 }
  0xd1   :  { %v613_v9 = vpop.f32.mrf.mxu3  ;;  %v677_v12 = vmax.f32 %v669_v5, 0.0  ;;  %v595_v13 = vadd.f32 %v594_v8, %v576_v6  ;;  %v578_v15 = vpop.f32.mrf.mxu1 }
  0xd2   :  { %v579_v21 = vadd.f32 %v578_v15, %v559_v14 }
  0xd3   :  { %v684_v16 = vpack.c.bf16 %v677_v12, %v676_v10  ;;  %v614_v17 = vadd.f32 %v613_v9, %v595_v13 }
  0xd5   :  { %688 = vst [vmem:[%s1563_s4] sm:$0xff] %v684_v16  ;;  %v657_v20 = vmul.f32 %v651_v60, %v614_v17 }
  0xd7   :  { %v671_v23 = vadd.f32 %v665_v0, %v657_v20 }
  0xd8   :  { %v597_v25 = vpop.f32.mrf.mxu2  ;;  %v561_v33 = vpop.f32.mrf.mxu0 }
  0xd9   :  { %v616_v26 = vpop.f32.mrf.mxu3  ;;  %v679_v29 = vmax.f32 %v671_v23, 0.0  ;;  %v598_v30 = vadd.f32 %v597_v25, %v579_v21  ;;  %v580_v48 = vpop.f32.mrf.mxu1 }
  0xda   :  { %v581_v36 = vadd.f32 %v580_v48, %v561_v33 }
  0xdb   :  { %v685_v31 = vpack.c.bf16 %v679_v29, %v678_v24  ;;  %v617_v32 = vadd.f32 %v616_v26, %v598_v30 }
  0xdd   :  { %689 = vst [vmem:[%s1563_s4 + $0x8] sm:$0xff] %v685_v31  ;;  %v659_v35 = vmul.f32 %v651_v60, %v617_v32 }
  0xdf   :  { %v673_v54 = vadd.f32 %v665_v0, %v659_v35 }
  0xe0   :  { %v599_v57 = vpop.f32.mrf.mxu2 }
  0xe1   :  { %v681_v41 = vmax.f32 %v673_v54, 0.0  ;;  %v600_v39 = vadd.f32 %v599_v57, %v581_v36  ;;  %v618_v42 = vpop.f32.mrf.mxu3 }
  0xe3   :  { %v686_v43 = vpack.c.bf16 %v681_v41, %v680_v37  ;;  %v619_v44 = vadd.f32 %v618_v42, %v600_v39 }
  0xe5   :  { %690 = vst [vmem:[%s1563_s4 + $0x10] sm:$0xff] %v686_v43  ;;  %v661_v40 = vmul.f32 %v651_v60, %v619_v44 }
  0xe7   :  { %v675_v47 = vadd.f32 %v665_v0, %v661_v40 }
  0xe9   :  { %v683_v50 = vmax.f32 %v675_v47, 0.0 }
  0xeb   :  { %v687_v51 = vpack.c.bf16 %v683_v50, %v682_v49 }
  0xed   :  { %691 = vst [vmem:[%s1563_s4 + $0x18] sm:$0xff] %v687_v51 }

// kernel: rgb_point_model_forward.21
= control target key start
LH: loop header
LB: loop body
LE: loop exit
PB: predicated region body
PF: predicated region fallthrough
CT: control target
= control target key end

     0   :  { %s592_s1 = inlined_call_operand.vmem [shape: bf16[128,128], index: 1, kind: input, shape index: {}]   ;;  %s593_s2 = inlined_call_operand.vmem [shape: f32[1,128], index: 2, kind: input, shape index: {}]   ;;  %s594_s3 = inlined_call_operand.vmem [shape: f32[1,128], index: 3, kind: input, shape index: {}]   ;;  %s595_s0 = inlined_call_operand.vmem [shape: bf16[128,128], index: 0, kind: input, shape index: {}]   ;;  %s596_s4 = inlined_call_operand.vmem [shape: f32[128,128], index: 4, kind: output, shape index: {}]  }
   0x1   :  { %v420_v0 = vld [vmem:[%s592_s1 + $0x38] sm:$0xff]  ;;  %v419_v1 = vld [vmem:[%s592_s1 + $0x30] sm:$0xff]  ;;  %v418_v2 = vld [vmem:[%s592_s1 + $0x28] sm:$0xff] }
   0x2   :  { %181 = vmatpush.bf16.msra.mxu0 %v420_v0  ;;  %421 = vmatpush.bf16.msra.mxu1 %v420_v0  ;;  %v417_v3 = vld [vmem:[%s592_s1 + $0x20] sm:$0xff]  ;;  %v416_v4 = vld [vmem:[%s592_s1 + $0x18] sm:$0xff]  ;;  %v415_v5 = vld [vmem:[%s592_s1 + $0x10] sm:$0xff] }
   0x3   :  { %422 = vmatpush.bf16.msra.mxu2 %v420_v0  ;;  %423 = vmatpush.bf16.msra.mxu3 %v420_v0  ;;  %v414_v6 = vld [vmem:[%s592_s1 + $0x8] sm:$0xff]  ;;  %v413_v7 = vld [vmem:[%s592_s1] sm:$0xff]  ;;  %v407_v9 = vld [vmem:[%s595_s0 + $0x10] sm:$0xff] }
   0x4   :  { %v405_v8 = vld [vmem:[%s595_s0] sm:$0xff]  ;;  %v411_v11 = vld [vmem:[%s595_s0 + $0x30] sm:$0xff]  ;;  %v406_v12 = vld [vmem:[%s595_s0 + $0x8] sm:$0xff] }
   0x5   :  { %v409_v10 = vld [vmem:[%s595_s0 + $0x20] sm:$0xff]  ;;  %v408_v13 = vld [vmem:[%s595_s0 + $0x18] sm:$0xff]  ;;  %v410_v14 = vld [vmem:[%s595_s0 + $0x28] sm:$0xff] }
   0x6   :  { %182 = vmatpush.bf16.msra.mxu0 %v419_v1  ;;  %424 = vmatpush.bf16.msra.mxu1 %v419_v1  ;;  %v412_v15 = vld [vmem:[%s595_s0 + $0x38] sm:$0xff]  ;;  %v445_v16 = vld [vmem:[%s593_s2] ss:$0 sm:$0xff] }
   0x7   :  { %425 = vmatpush.bf16.msra.mxu2 %v419_v1  ;;  %426 = vmatpush.bf16.msra.mxu3 %v419_v1  ;;  %v526_v17 = vld [vmem:[%s594_s3] ss:$0 sm:$0xff] }
   0xa   :  { %183 = vmatpush.bf16.msra.mxu0 %v418_v2  ;;  %427 = vmatpush.bf16.msra.mxu1 %v418_v2 }
   0xb   :  { %428 = vmatpush.bf16.msra.mxu2 %v418_v2  ;;  %429 = vmatpush.bf16.msra.mxu3 %v418_v2 }
   0xe   :  { %184 = vmatpush.bf16.msra.mxu0 %v417_v3  ;;  %430 = vmatpush.bf16.msra.mxu1 %v417_v3 }
   0xf   :  { %431 = vmatpush.bf16.msra.mxu2 %v417_v3  ;;  %432 = vmatpush.bf16.msra.mxu3 %v417_v3 }
  0x12   :  { %185 = vmatpush.bf16.msra.mxu0 %v416_v4  ;;  %433 = vmatpush.bf16.msra.mxu1 %v416_v4 }
  0x13   :  { %434 = vmatpush.bf16.msra.mxu2 %v416_v4  ;;  %435 = vmatpush.bf16.msra.mxu3 %v416_v4 }
  0x16   :  { %186 = vmatpush.bf16.msra.mxu0 %v415_v5  ;;  %436 = vmatpush.bf16.msra.mxu1 %v415_v5 }
  0x17   :  { %437 = vmatpush.bf16.msra.mxu2 %v415_v5  ;;  %438 = vmatpush.bf16.msra.mxu3 %v415_v5 }
  0x1a   :  { %187 = vmatpush.bf16.msra.mxu0 %v414_v6  ;;  %439 = vmatpush.bf16.msra.mxu1 %v414_v6 }
  0x1b   :  { %440 = vmatpush.bf16.msra.mxu2 %v414_v6  ;;  %441 = vmatpush.bf16.msra.mxu3 %v414_v6 }
  0x1e   :  { %188 = vmatpush.bf16.msra.mxu0 %v413_v7  ;;  %442 = vmatpush.bf16.msra.mxu1 %v413_v7 }
  0x1f   :  { %443 = vmatpush.bf16.msra.mxu2 %v413_v7  ;;  %444 = vmatpush.bf16.msra.mxu3 %v413_v7 }
  0x21   :  { %189 = vmatmul.bf16.vlgmr.msra.gmra.mxu0 %v405_v8  ;;  %199 = vmatmul.bf16.vlgmr.msra.gmra.mxu1 %v407_v9 }
  0x22   :  { %209 = vmatmul.bf16.vlgmr.msra.gmra.mxu2 %v409_v10  ;;  %219 = vmatmul.bf16.vlgmr.msra.gmra.mxu3 %v411_v11 }
  0x31   :  { %194 = vmatmul.bf16.gmra.mxu0 %v406_v12  ;;  %204 = vmatmul.bf16.gmra.mxu1 %v408_v13 }
  0x32   :  { %214 = vmatmul.bf16.gmra.mxu2 %v410_v14  ;;  %224 = vmatmul.bf16.gmra.mxu3 %v412_v15 }
  0x9e   :  { %v190_v18 = vpop.f32.mrf.mxu0  ;;  %v200_v19 = vpop.f32.mrf.mxu1 }
  0x9f   :  { %v285_v20 = vmul.f32 %v445_v16, %v190_v18  ;;  %v289_v21 = vmul.f32 %v445_v16, %v200_v19 }
  0xa1   :  { %v305_v22 = vadd.f32 %v526_v17, %v285_v20  ;;  %v309_v23 = vadd.f32 %v526_v17, %v289_v21 }
  0xa3   :  { %321 = vst [vmem:[%s596_s4] sm:$0xff] %v305_v22 }
  0xa4   :  { %325 = vst [vmem:[%s596_s4 + $0x20] sm:$0xff] %v309_v23 }
  0xa5   :  { %v210_v24 = vpop.f32.mrf.mxu2  ;;  %v220_v25 = vpop.f32.mrf.mxu3 }
  0xa6   :  { %v293_v26 = vmul.f32 %v445_v16, %v210_v24  ;;  %v297_v27 = vmul.f32 %v445_v16, %v220_v25  ;;  %v192_v28 = vpop.f32.mrf.mxu0  ;;  %v202_v29 = vpop.f32.mrf.mxu1 }
  0xa7   :  { %v286_v30 = vmul.f32 %v445_v16, %v192_v28  ;;  %v290_v31 = vmul.f32 %v445_v16, %v202_v29 }
  0xa8   :  { %v313_v32 = vadd.f32 %v526_v17, %v293_v26  ;;  %v317_v33 = vadd.f32 %v526_v17, %v297_v27 }
  0xa9   :  { %v306_v34 = vadd.f32 %v526_v17, %v286_v30  ;;  %v310_v35 = vadd.f32 %v526_v17, %v290_v31 }
  0xaa   :  { %329 = vst [vmem:[%s596_s4 + $0x40] sm:$0xff] %v313_v32 }
  0xab   :  { %333 = vst [vmem:[%s596_s4 + $0x60] sm:$0xff] %v317_v33 }
  0xac   :  { %322 = vst [vmem:[%s596_s4 + $0x8] sm:$0xff] %v306_v34 }
  0xad   :  { %326 = vst [vmem:[%s596_s4 + $0x28] sm:$0xff] %v310_v35  ;;  %v212_v36 = vpop.f32.mrf.mxu2  ;;  %v222_v37 = vpop.f32.mrf.mxu3 }
  0xae   :  { %v294_v38 = vmul.f32 %v445_v16, %v212_v36  ;;  %v298_v39 = vmul.f32 %v445_v16, %v222_v37  ;;  %v195_v40 = vpop.f32.mrf.mxu0  ;;  %v205_v41 = vpop.f32.mrf.mxu1 }
  0xaf   :  { %v287_v42 = vmul.f32 %v445_v16, %v195_v40  ;;  %v291_v43 = vmul.f32 %v445_v16, %v205_v41 }
  0xb0   :  { %v314_v44 = vadd.f32 %v526_v17, %v294_v38  ;;  %v318_v45 = vadd.f32 %v526_v17, %v298_v39 }
  0xb1   :  { %v307_v46 = vadd.f32 %v526_v17, %v287_v42  ;;  %v311_v47 = vadd.f32 %v526_v17, %v291_v43 }
  0xb2   :  { %330 = vst [vmem:[%s596_s4 + $0x48] sm:$0xff] %v314_v44 }
  0xb3   :  { %334 = vst [vmem:[%s596_s4 + $0x68] sm:$0xff] %v318_v45 }
  0xb4   :  { %323 = vst [vmem:[%s596_s4 + $0x10] sm:$0xff] %v307_v46 }
  0xb5   :  { %327 = vst [vmem:[%s596_s4 + $0x30] sm:$0xff] %v311_v47  ;;  %v215_v48 = vpop.f32.mrf.mxu2  ;;  %v225_v49 = vpop.f32.mrf.mxu3 }
  0xb6   :  { %v295_v50 = vmul.f32 %v445_v16, %v215_v48  ;;  %v299_v51 = vmul.f32 %v445_v16, %v225_v49  ;;  %v197_v52 = vpop.f32.mrf.mxu0  ;;  %v207_v53 = vpop.f32.mrf.mxu1 }
  0xb7   :  { %v288_v54 = vmul.f32 %v445_v16, %v197_v52  ;;  %v292_v55 = vmul.f32 %v445_v16, %v207_v53 }
  0xb8   :  { %v315_v56 = vadd.f32 %v526_v17, %v295_v50  ;;  %v319_v57 = vadd.f32 %v526_v17, %v299_v51 }
  0xb9   :  { %v308_v58 = vadd.f32 %v526_v17, %v288_v54  ;;  %v312_v59 = vadd.f32 %v526_v17, %v292_v55 }
  0xba   :  { %331 = vst [vmem:[%s596_s4 + $0x50] sm:$0xff] %v315_v56 }
  0xbb   :  { %335 = vst [vmem:[%s596_s4 + $0x70] sm:$0xff] %v319_v57 }
  0xbc   :  { %324 = vst [vmem:[%s596_s4 + $0x18] sm:$0xff] %v308_v58 }
  0xbd   :  { %328 = vst [vmem:[%s596_s4 + $0x38] sm:$0xff] %v312_v59  ;;  %v217_v60 = vpop.f32.mrf.mxu2  ;;  %v227_v61 = vpop.f32.mrf.mxu3 }
  0xbe   :  { %v296_v62 = vmul.f32 %v445_v16, %v217_v60  ;;  %v300_v63 = vmul.f32 %v445_v16, %v227_v61 }
  0xc0   :  { %v316_v0 = vadd.f32 %v526_v17, %v296_v62  ;;  %v320_v1 = vadd.f32 %v526_v17, %v300_v63 }
  0xc2   :  { %332 = vst [vmem:[%s596_s4 + $0x58] sm:$0xff] %v316_v0 }
  0xc3   :  { %336 = vst [vmem:[%s596_s4 + $0x78] sm:$0xff] %v320_v1 }

// kernel: rgb_point_model_forward.22
= control target key start
LH: loop header
LB: loop body
LE: loop exit
PB: predicated region body
PF: predicated region fallthrough
CT: control target
= control target key end

     0   :  { %vm13_vm0 = vcmask 523264   ;;  %s154_s0 = inlined_call_operand.vmem [shape: f32[16,64], index: 0, kind: input, shape index: {}]   ;;  %s155_s1 = inlined_call_operand.vmem [shape: f32[64,128], index: 1, kind: input, shape index: {}]   ;;  %s156_s2 = inlined_call_operand.vmem [shape: f32[16,128], index: 2, kind: output, shape index: {}]  }
   0x1   :  { %v11_v0 = vld [vmem:[%s154_s0] sm:$0xff]  ;;  %v39_v1 = vld [vmem:[%s155_s1 + $0x38] sm:$0xff]  ;;  %v38_v3 = vld [vmem:[%s155_s1 + $0x30] sm:$0xff] }
   0x2   :  { %v14_v2 = vsel %vm13_vm0, %v11_v0, -inf  ;;  %54 = vmatpush.msra.mxu0 %v39_v1  ;;  %81 = vmatpush.msra.mxu1 %v39_v1  ;;  %v12_v4 = vld [vmem:[%s154_s0 + $0x8] sm:$0xff]  ;;  %v36_v7 = vld [vmem:[%s155_s1 + $0x20] sm:$0xff]  ;;  %v35_v8 = vld [vmem:[%s155_s1 + $0x18] sm:$0xff] }
   0x3   :  { %15 = vmax.xlane.f32.xlu0 %v14_v2  ;;  %v17_v5 = vsel %vm13_vm0, %v12_v4, -inf  ;;  %v37_v6 = vld [vmem:[%s155_s1 + $0x28] sm:$0xff]  ;;  %v34_v9 = vld [vmem:[%s155_s1 + $0x10] sm:$0xff]  ;;  %v32_v11 = vld [vmem:[%s155_s1] sm:$0xff] }
   0x4   :  { %55 = vmatpush.msra.mxu0 %v38_v3  ;;  %82 = vmatpush.msra.mxu1 %v38_v3  ;;  %v33_v10 = vld [vmem:[%s155_s1 + $0x8] sm:$0xff] }
   0x6   :  { %56 = vmatpush.msra.mxu0 %v37_v6  ;;  %83 = vmatpush.msra.mxu1 %v37_v6 }
   0x8   :  { %57 = vmatpush.msra.mxu0 %v36_v7  ;;  %84 = vmatpush.msra.mxu1 %v36_v7 }
   0xa   :  { %58 = vmatpush.msra.mxu0 %v35_v8  ;;  %85 = vmatpush.msra.mxu1 %v35_v8 }
   0xb   :  { %18 = vmax.xlane.f32.xlu0 %v17_v5 }
   0xc   :  { %59 = vmatpush.msra.mxu0 %v34_v9  ;;  %86 = vmatpush.msra.mxu1 %v34_v9 }
   0xe   :  { %60 = vmatpush.msra.mxu0 %v33_v10  ;;  %87 = vmatpush.msra.mxu1 %v33_v10 }
  0x10   :  { %61 = vmatpush.msra.mxu0 %v32_v11  ;;  %88 = vmatpush.msra.mxu1 %v32_v11 }
  0x76   :  { %v16_v12 = vpop.xlane.xlu0 %15 }
  0x77   :  { %v20_v13 = vsub.f32 %v11_v0, %v16_v12 }
  0x79   :  { %v22_v14 = vmul.f32 1.442695, %v20_v13 }
  0x7b   :  { %89 = vpow2.f32 %v22_v14 }
  0x7e   :  { %v19_v15 = vpop.xlane.xlu0 %18 }
  0x7f   :  { %v21_v16 = vsub.f32 %v12_v4, %v19_v15 }
  0x81   :  { %v90_v17 = vpop.eup %89  ;;  %v24_v18 = vmul.f32 1.442695, %v21_v16 }
  0x82   :  { %79 = vmatmul.msk.f32.vlgmr.msra.gmra.mxu0 %vm13_vm0, %v90_v17  ;;  %v26_v19 = vsel %vm13_vm0, %v90_v17, 0.0 }
  0x83   :  { %91 = vpow2.f32 %v24_v18  ;;  %27 = vadd.xlane.f32.xlu1 %v26_v19 }
  0x89   :  { %v92_v20 = vpop.eup %91 }
  0x8a   :  { %80 = vmatmul.msk.f32.vlgmr.msra.gmra.mxu1 %vm13_vm0, %v92_v20  ;;  %v29_v21 = vsel %vm13_vm0, %v92_v20, 0.0 }
  0x8b   :  { %30 = vadd.xlane.f32.xlu1 %v29_v21 }
  0xf6   :  { %v28_v22 = vpop.xlane.xlu1 %27 }
  0xf7   :  { %93 = vrcp.f32 %v28_v22 }
  0xfd   :  { %v94_v24 = vpop.eup %93 }
  0xfe   :  { %v31_v23 = vpop.xlane.xlu1 %30 }
  0xff   :  { %v63_v25 = vpop.f32.mrf.mxu0  ;;  %95 = vrcp.f32 %v31_v23 }
 0x100   :  { %v71_v26 = vmul.f32 %v94_v24, %v63_v25 }
 0x102   :  { %73 = vst [vmem:[%s156_s2] sm:$0xff] %v71_v26 }
 0x105   :  { %v96_v27 = vpop.eup %95 }
 0x107   :  { %v66_v28 = vpop.f32.mrf.mxu1 }
 0x108   :  { %v72_v29 = vmul.f32 %v96_v27, %v66_v28 }
 0x10a   :  { %74 = vst [vmem:[%s156_s2 + $0x8] sm:$0xff] %v72_v29 }

// kernel: rgb_point_model_forward.23
= control target key start
LH: loop header
LB: loop body
LE: loop exit
PB: predicated region body
PF: predicated region fallthrough
CT: control target
= control target key end

     0   :  { %s666_s1 = inlined_call_operand.vmem [shape: bf16[512,128], index: 1, kind: input, shape index: {}]   ;;  %s667_s0 = inlined_call_operand.vmem [shape: bf16[8,512], index: 0, kind: input, shape index: {}]   ;;  %s668_s2 = inlined_call_operand.vmem [shape: f32[1,128], index: 2, kind: input, shape index: {}]   ;;  %s669_s3 = inlined_call_operand.vmem [shape: f32[1,128], index: 3, kind: input, shape index: {}]   ;;  %s670_s4 = inlined_call_operand.vmem [shape: f32[8,128], index: 4, kind: output, shape index: {}]  }
   0x1   :  { %v503_v0 = vld [vmem:[%s666_s1 + $0x38] sm:$0xff]  ;;  %v502_v4 = vld [vmem:[%s666_s1 + $0x30] sm:$0xff]  ;;  %v501_v8 = vld [vmem:[%s666_s1 + $0x28] sm:$0xff] }
   0x2   :  { %v511_v1 = vld [vmem:[%s666_s1 + $0x78] sm:$0xff]  ;;  %295 = vmatpush.bf16.msra.mxu0 %v503_v0  ;;  %v510_v5 = vld [vmem:[%s666_s1 + $0x70] sm:$0xff]  ;;  %v509_v9 = vld [vmem:[%s666_s1 + $0x68] sm:$0xff] }
   0x3   :  { %v519_v2 = vld [vmem:[%s666_s1 + $0xb8] sm:$0xff]  ;;  %308 = vmatpush.bf16.msra.mxu1 %v511_v1  ;;  %v518_v6 = vld [vmem:[%s666_s1 + $0xb0] sm:$0xff]  ;;  %v517_v10 = vld [vmem:[%s666_s1 + $0xa8] sm:$0xff] }
   0x4   :  { %v527_v3 = vld [vmem:[%s666_s1 + $0xf8] sm:$0xff]  ;;  %321 = vmatpush.bf16.msra.mxu2 %v519_v2  ;;  %v526_v7 = vld [vmem:[%s666_s1 + $0xf0] sm:$0xff]  ;;  %v525_v11 = vld [vmem:[%s666_s1 + $0xe8] sm:$0xff] }
   0x5   :  { %334 = vmatpush.bf16.msra.mxu3 %v527_v3  ;;  %v500_v12 = vld [vmem:[%s666_s1 + $0x20] sm:$0xff]  ;;  %v499_v16 = vld [vmem:[%s666_s1 + $0x18] sm:$0xff]  ;;  %v498_v20 = vld [vmem:[%s666_s1 + $0x10] sm:$0xff] }
   0x6   :  { %296 = vmatpush.bf16.msra.mxu0 %v502_v4  ;;  %v508_v13 = vld [vmem:[%s666_s1 + $0x60] sm:$0xff]  ;;  %v507_v17 = vld [vmem:[%s666_s1 + $0x58] sm:$0xff]  ;;  %v506_v21 = vld [vmem:[%s666_s1 + $0x50] sm:$0xff] }
   0x7   :  { %309 = vmatpush.bf16.msra.mxu1 %v510_v5  ;;  %v516_v14 = vld [vmem:[%s666_s1 + $0xa0] sm:$0xff]  ;;  %v515_v18 = vld [vmem:[%s666_s1 + $0x98] sm:$0xff]  ;;  %v514_v22 = vld [vmem:[%s666_s1 + $0x90] sm:$0xff] }
   0x8   :  { %322 = vmatpush.bf16.msra.mxu2 %v518_v6  ;;  %v524_v15 = vld [vmem:[%s666_s1 + $0xe0] sm:$0xff]  ;;  %v523_v19 = vld [vmem:[%s666_s1 + $0xd8] sm:$0xff]  ;;  %v522_v23 = vld [vmem:[%s666_s1 + $0xd0] sm:$0xff] }
   0x9   :  { %335 = vmatpush.bf16.msra.mxu3 %v526_v7  ;;  %v497_v24 = vld [vmem:[%s666_s1 + $0x8] sm:$0xff]  ;;  %v23_v26 = vld [vmem:[%s667_s0] sm:$0xff] }
   0xa   :  { %297 = vmatpush.bf16.msra.mxu0 %v501_v8  ;;  %v505_v25 = vld [vmem:[%s666_s1 + $0x48] sm:$0xff]  ;;  %v91_v30 = vunpack.c.l.b16 %v23_v26  ;;  %v92_v31 = vunpack.c.h.b16 %v23_v26  ;;  %v496_v32 = vld [vmem:[%s666_s1] sm:$0xff] }
   0xb   :  { %310 = vmatpush.bf16.msra.mxu1 %v509_v9  ;;  %v513_v27 = vld [vmem:[%s666_s1 + $0x88] sm:$0xff]  ;;  %v504_v33 = vld [vmem:[%s666_s1 + $0x40] sm:$0xff] }
   0xc   :  { %323 = vmatpush.bf16.msra.mxu2 %v517_v10  ;;  %v521_v28 = vld [vmem:[%s666_s1 + $0xc8] sm:$0xff]  ;;  %v512_v36 = vld [vmem:[%s666_s1 + $0x80] sm:$0xff]  ;;  %v95_v38 = vpack.c.b16 %v91_v30, %v91_v30  ;;  %v96_v39 = vpack.c.b16 %v92_v31, %v92_v31 }
   0xd   :  { %336 = vmatpush.bf16.msra.mxu3 %v525_v11  ;;  %v24_v29 = vld [vmem:[%s667_s0 + $0x8] sm:$0xff]  ;;  %v520_v37 = vld [vmem:[%s666_s1 + $0xc0] sm:$0xff] }
   0xe   :  { %298 = vmatpush.bf16.msra.mxu0 %v500_v12  ;;  %v93_v34 = vunpack.c.l.b16 %v24_v29  ;;  %v94_v35 = vunpack.c.h.b16 %v24_v29  ;;  %v528_v48 = vld [vmem:[%s668_s2] ss:$0 sm:$0xff] }
   0xf   :  { %311 = vmatpush.bf16.msra.mxu1 %v508_v13  ;;  %v529_v52 = vld [vmem:[%s669_s3] ss:$0 sm:$0xff] }
  0x10   :  { %324 = vmatpush.bf16.msra.mxu2 %v516_v14  ;;  %v97_v40 = vpack.c.b16 %v93_v34, %v93_v34  ;;  %v98_v41 = vpack.c.b16 %v94_v35, %v94_v35 }
  0x11   :  { %337 = vmatpush.bf16.msra.mxu3 %v524_v15 }
  0x12   :  { %299 = vmatpush.bf16.msra.mxu0 %v499_v16 }
  0x13   :  { %312 = vmatpush.bf16.msra.mxu1 %v507_v17 }
  0x14   :  { %325 = vmatpush.bf16.msra.mxu2 %v515_v18 }
  0x15   :  { %338 = vmatpush.bf16.msra.mxu3 %v523_v19 }
  0x16   :  { %300 = vmatpush.bf16.msra.mxu0 %v498_v20 }
  0x17   :  { %313 = vmatpush.bf16.msra.mxu1 %v506_v21 }
  0x18   :  { %326 = vmatpush.bf16.msra.mxu2 %v514_v22 }
  0x19   :  { %339 = vmatpush.bf16.msra.mxu3 %v522_v23 }
  0x1a   :  { %301 = vmatpush.bf16.msra.mxu0 %v497_v24 }
  0x1b   :  { %314 = vmatpush.bf16.msra.mxu1 %v505_v25 }
  0x1c   :  { %327 = vmatpush.bf16.msra.mxu2 %v513_v27 }
  0x1d   :  { %340 = vmatpush.bf16.msra.mxu3 %v521_v28 }
  0x1e   :  { %302 = vmatpush.bf16.msra.mxu0 %v496_v32 }
  0x1f   :  { %315 = vmatpush.bf16.msra.mxu1 %v504_v33 }
  0x20   :  { %328 = vmatpush.bf16.msra.mxu2 %v512_v36 }
  0x21   :  { %341 = vmatpush.bf16.msra.mxu3 %v520_v37  ;;  %303 = vmatmul.bf16.vlgmr.msra.gmra.mxu0 %v95_v38 }
  0x22   :  { %316 = vmatmul.bf16.vlgmr.msra.gmra.mxu1 %v96_v39 }
  0x23   :  { %329 = vmatmul.bf16.vlgmr.msra.gmra.mxu2 %v97_v40 }
  0x24   :  { %342 = vmatmul.bf16.vlgmr.msra.gmra.mxu3 %v98_v41 }
  0x9e   :  { %v304_v42 = vpop.f32.mrf.mxu0 }
  0x9f   :  { %v317_v43 = vpop.f32.mrf.mxu1 }
  0xa0   :  { %v318_v44 = vadd.f32 %v317_v43, %v304_v42 }
  0xa6   :  { %v330_v45 = vpop.f32.mrf.mxu2  ;;  %v306_v49 = vpop.f32.mrf.mxu0 }
  0xa7   :  { %v343_v46 = vpop.f32.mrf.mxu3  ;;  %v331_v47 = vadd.f32 %v330_v45, %v318_v44  ;;  %v319_v50 = vpop.f32.mrf.mxu1 }
  0xa9   :  { %v344_v51 = vadd.f32 %v343_v46, %v331_v47 }
  0xab   :  { %v357_v53 = vmul.f32 %v528_v48, %v344_v51 }
  0xad   :  { %v362_v54 = vadd.f32 %v529_v52, %v357_v53 }
  0xae   :  { %v332_v55 = vpop.f32.mrf.mxu2 }
  0xaf   :  { %v345_v56 = vpop.f32.mrf.mxu3  ;;  %363 = vst [vmem:[%s670_s4] sm:$0xff] %v362_v54 }

</bundles_post_ra>
